<compile_context>
chip_gen: v6e
topology: v6e:2x2x1
jax: 0.10.0
libtpu: 0.0.40
codegen_flags: <defaults>
</compile_context>

<pallas_src>
import jax
import jax.numpy as jnp
from jax import lax
from jax.experimental import pallas as pl
from jax.experimental.pallas import tpu as pltpu

DILATIONS = (1, 4, 8, 12)
KTAPS = 27  # 3x3x3


def _round_up(x, m):
    return (x + m - 1) // m * m


# ----------------------------------------------------------------------------
# Static (trace-time) tap tables: flat shifts, padding masks, dead-tap pruning
# ----------------------------------------------------------------------------
def _active_taps(D, H, W):
    """Per dilation branch: tuple of (tap_index, flat_shift, constraints).

    flat_shift is the source-voxel offset in flattened d*H*W + h*W + w pixel
    order; constraints is a tuple of (coord_row, kind, bound), kind in
    ('lt', 'ge'), describing which output pixels have an in-volume source
    (the rest read the conv's zero 'same' padding and are masked to zero).
    Taps whose offset >= the extent in some dim contribute exactly zero and
    are dropped at trace time.
    """
    sizes = (D, H, W)
    strides = (H * W, W, 1)
    branches = []
    for dil in DILATIONS:
        taps = []
        for t in range(KTAPS):
            ks = (t // 9, (t // 3) % 3, t % 3)
            deltas = tuple((k - 1) * dil for k in ks)
            if any(abs(dlt) >= sz for dlt, sz in zip(deltas, sizes)):
                continue
            shift = sum(dlt * st for dlt, st in zip(deltas, strides))
            cons = []
            for row, (dlt, sz) in enumerate(zip(deltas, sizes)):
                if dlt > 0:
                    cons.append((row, 'lt', sz - dlt))   # idx < sz - delta
                elif dlt < 0:
                    cons.append((row, 'ge', -dlt))       # idx >= -delta
            taps.append((t, shift, tuple(cons)))
        branches.append(tuple(taps))
    return tuple(branches)


# ----------------------------------------------------------------------------
# Pallas kernel: fused 4-dilation conv3d + BN + ReLU, channel-group reduction
# ----------------------------------------------------------------------------
def _make_kernel(branch_taps, *, s0, p_out):
    def kernel(idx_ref, x_ref, w_ref, b_ref, o_ref, acc_ref):
        # idx_ref: (3, P_out)  int32  d/h/w coordinate of each output pixel
        # x_ref:   (Cg, Ppad)  bf16   halo-padded activations, one channel group
        # w_ref:   (nb, 27, Cout, Cg) bf16  BN-folded weights for this group
        # b_ref:   (nb, Cout, 1) f32  per-branch BN bias
        # o_ref:   (nb, Cout, P_out) bf16
        # acc_ref: (nb, Cout, P_out) f32  persists across channel-group steps
        c = pl.program_id(1)

        @pl.when(c == 0)
        def _init():
            acc_ref[...] = jnp.zeros_like(acc_ref)

        rows = (idx_ref[0:1, :], idx_ref[1:2, :], idx_ref[2:3, :])

        for br, taps in enumerate(branch_taps):
            part = None
            for (t, shift, cons) in taps:
                # shifted view of the resident slab = this tap's source voxels
                slab = x_ref[:, s0 + shift:s0 + shift + p_out]   # (Cg, P_out)
                contrib = jnp.dot(w_ref[br, t], slab,
                                  preferred_element_type=jnp.float32)
                if cons:  # zero the pixels whose source lies in the padding
                    mask = None
                    for (row, kind, bound) in cons:
                        m = (rows[row] < bound) if kind == 'lt' else (rows[row] >= bound)
                        mask = m if mask is None else mask & m
                    contrib = jnp.where(mask, contrib, 0.0)
                part = contrib if part is None else part + contrib
            acc_ref[br] += part

        @pl.when(c == pl.num_programs(1) - 1)
        def _finish():
            o_ref[...] = jnp.maximum(acc_ref[...] + b_ref[...],
                                     0.0).astype(o_ref.dtype)

    return kernel


def _choose_groups(B, Cin, p_out, ppad_in, nb, cout, budget_bytes, min_steps=8):
    """VMEM-budget-driven choice of the input-channel group count (grid K axis)."""
    def est(g):
        cg = Cin // g
        return (2 * cg * ppad_in * 2              # x slab, double buffered, bf16
                + 2 * nb * KTAPS * cout * cg * 2  # weight block
                + 2 * nb * cout * p_out * 2       # output block, bf16
                + nb * cout * p_out * 4           # accumulator scratch
                + 2 * 3 * p_out * 4               # pixel-coordinate rows
                + 2 * nb * cout * 4)              # bias

    cands = [g for g in range(1, Cin + 1)
             if Cin % g == 0 and (g == 1 or (Cin // g) % 16 == 0)]
    feasible = [g for g in cands if est(g) <= budget_bytes]
    if not feasible:
        g = cands[-1]
    else:
        g = feasible[0]
        for cand in feasible[1:]:
            if B * g >= min_steps:   # enough steps for megacore + overlap
                break
            g = cand
    return g, est(g)


def fused_multi_dilation_conv(x_grp, w_grp, bias, idx, *, branch_taps, s0,
                              vmem_limit_bytes):
    """x_grp: (B,G,Cg,Ppad) bf16, w_grp: (G,nb,27,Cout,Cg) bf16,
    bias: (nb,Cout,1) f32, idx: (3,P_out) int32 -> (B,nb,Cout,P_out) bf16."""
    B, G, Cg, Ppad_in = x_grp.shape
    _, nb, _, Cout, _ = w_grp.shape
    P_out = idx.shape[1]
    kernel = _make_kernel(branch_taps, s0=s0, p_out=P_out)
    return pl.pallas_call(
        kernel,
        out_shape=jax.ShapeDtypeStruct((B, nb, Cout, P_out), jnp.bfloat16),
        grid_spec=pltpu.PrefetchScalarGridSpec(
            num_scalar_prefetch=0,
            grid=(B, G),                       # reduction (channel-group) axis last
            in_specs=[
                # pixel coordinates: constant index map -> VMEM resident
                pl.BlockSpec((3, P_out), lambda b, c: (0, 0)),
                # halo-padded activations for (batch b, channel group c)
                pl.BlockSpec((None, None, Cg, Ppad_in), lambda b, c: (b, c, 0, 0)),
                # BN-folded weights of channel group c (all branches / taps)
                pl.BlockSpec((None, nb, KTAPS, Cout, Cg),
                             lambda b, c: (c, 0, 0, 0, 0)),
                # per-branch BN bias: constant -> resident
                pl.BlockSpec((nb, Cout, 1), lambda b, c: (0, 0, 0)),
            ],
            out_specs=pl.BlockSpec((None, nb, Cout, P_out),
                                   lambda b, c: (b, 0, 0, 0)),
            scratch_shapes=[pltpu.VMEM((nb, Cout, P_out), jnp.float32)],
        ),
        compiler_params=pltpu.CompilerParams(
            dimension_semantics=("parallel", "arbitrary"),
            vmem_limit_bytes=vmem_limit_bytes,
        ),
    )(idx, x_grp, w_grp, bias)


# ----------------------------------------------------------------------------
# JAX glue: BN folding, halo padding, pool branch, full forward
# ----------------------------------------------------------------------------
def _bn_fold(gamma, beta, mean, var, eps=1e-5):
    scale = gamma / jnp.sqrt(var + eps)
    bias = beta - mean * scale
    return scale.astype(jnp.float32), bias.astype(jnp.float32)


def multi_scale_attention_block(x, params, *, compute_dtype=jnp.bfloat16,
                                vmem_budget_bytes=14 * 1024 * 1024):
    B, Cin, D, H, W = x.shape
    P = D * H * W
    Cout = params["conv0_w"].shape[0]
    nb = len(DILATIONS)

    branch_taps = _active_taps(D, H, W)
    smax = max(1, max(abs(s) for taps in branch_taps for (_, s, _) in taps))
    P_out = _round_up(P, 128)                    # lane-dense output width
    Ppad_in = _round_up(2 * smax + P_out, 128)   # halo-padded slab width
    s0 = smax

    G, vmem_est = _choose_groups(B, Cin, P_out, Ppad_in, nb, Cout,
                                 vmem_budget_bytes)
    Cg = Cin // G
    vmem_limit = int(min(40 * 1024 * 1024,
                         max(2 * vmem_est, 16 * 1024 * 1024)))

    # --- BN-scale-folded weights, tap-major: (G, nb, 27, Cout, Cg) ---
    w_list, b_list = [], []
    for i in range(nb):
        scale, bias = _bn_fold(*params[f"bn{i}"])
        w_list.append(scale[:, None, None, None, None] * params[f"conv{i}_w"])
        b_list.append(bias)
    w_all = jnp.stack(w_list, axis=0)                                  # (nb,Cout,Cin,3,3,3)
    w_all = w_all.reshape(nb, Cout, Cin, KTAPS).transpose(0, 3, 1, 2)  # (nb,27,Cout,Cin)
    w_grp = (w_all.reshape(nb, KTAPS, Cout, G, Cg)
             .transpose(3, 0, 1, 2, 4).astype(compute_dtype))          # (G,nb,27,Cout,Cg)
    bias_conv = jnp.stack(b_list, axis=0)[:, :, None].astype(jnp.float32)

    # --- raw activations: flatten pixels, halo-pad the lane axis, group channels
    xq = x.reshape(B, Cin, P).astype(compute_dtype)
    x_pad = jnp.pad(xq, ((0, 0), (0, 0), (s0, Ppad_in - s0 - P)))
    x_grp = x_pad.reshape(B, G, Cg, Ppad_in)

    # --- per-pixel (d, h, w) coordinates for the 'same'-padding masks ---
    pix = jnp.arange(P, dtype=jnp.int32)
    idx = jnp.stack([pix // (H * W), (pix // W) % H, pix % W], axis=0)
    idx = jnp.pad(idx, ((0, 0), (0, P_out - P)), constant_values=2 ** 20)

    conv = fused_multi_dilation_conv(
        x_grp, w_grp, bias_conv, idx, branch_taps=branch_taps, s0=s0,
        vmem_limit_bytes=vmem_limit)                           # (B, nb, Cout, P_out)
    conv = conv[:, :, :, :P].reshape(B, nb * Cout, D, H, W)

    # --- pool branch (avgpool -> 1x1 conv -> BN -> ReLU): a few hundred FLOPs,
    #     plain JAX, concatenated outside the matmul (no all-zero weight rows).
    scale_p, bias_p = _bn_fold(*params["bn_pool"])
    xm = jnp.mean(x, axis=(2, 3, 4))                           # (B, Cin)
    pool = jnp.maximum(xm @ params["pool_w"].reshape(Cout, Cin).T * scale_p
                       + bias_p, 0.0)
    pool = jnp.broadcast_to(pool[:, :, None, None, None],
                            (B, Cout, D, H, W)).astype(conv.dtype)

    out = jnp.concatenate([conv, pool], axis=1)                # (B, 5*Cout, D, H, W)
    # TODO(synk): ViT transformer stage omitted (definition not provided).
    return out


# ----------------------------------------------------------------------------
# Reference (XLA dilated conv) with the same bf16 quantization, f32 accumulation
# ----------------------------------------------------------------------------
def reference(x, params, *, compute_dtype=jnp.bfloat16, eps=1e-5):
    B, Cin, D, H, W = x.shape
    Cout = params["conv0_w"].shape[0]
    xq = x.astype(compute_dtype)
    outs = []
    for i, dil in enumerate(DILATIONS):
        scale, bias = _bn_fold(*params[f"bn{i}"], eps=eps)
        w = (scale[:, None, None, None, None] * params[f"conv{i}_w"]
             ).astype(compute_dtype)
        y = lax.conv_general_dilated(
            xq, w, window_strides=(1, 1, 1),
            padding=[(dil, dil)] * 3, rhs_dilation=(dil, dil, dil),
            dimension_numbers=("NCDHW", "OIDHW", "NCDHW"),
            preferred_element_type=jnp.float32)
        outs.append(jnp.maximum(y + bias[None, :, None, None, None], 0.0))
    g, b, m, v = params["bn_pool"]
    xm = jnp.mean(x, axis=(2, 3, 4))
    y = xm @ params["pool_w"].reshape(Cout, Cin).T
    y = (y - m) / jnp.sqrt(v + eps) * g + b
    y = jnp.maximum(y, 0.0)
    outs.append(jnp.broadcast_to(y[:, :, None, None, None], (B, Cout, D, H, W)))
    return jnp.concatenate(outs, axis=1)


# ----------------------------------------------------------------------------
# Deterministic parameter init + run
# ----------------------------------------------------------------------------
def make_params(key, planes, out_planes):
    params = {}
    keys = jax.random.split(key, 32)
    ki = 0

    def bn_params():
        nonlocal ki
        g = 1.0 + 0.1 * jax.random.normal(keys[ki], (out_planes,), jnp.float32); ki += 1
        b = 0.05 * jax.random.normal(keys[ki], (out_planes,), jnp.float32); ki += 1
        m = 0.02 * jax.random.normal(keys[ki], (out_planes,), jnp.float32); ki += 1
        v = 1.0 + 0.1 * jnp.abs(jax.random.normal(keys[ki], (out_planes,), jnp.float32)); ki += 1
        return (g, b, m, v)

    for i in range(4):
        params[f"conv{i}_w"] = 0.05 * jax.random.normal(
            keys[ki], (out_planes, planes, 3, 3, 3), jnp.float32); ki += 1
        params[f"bn{i}"] = bn_params()
    params["pool_w"] = 0.05 * jax.random.normal(
        keys[ki], (out_planes, planes, 1, 1, 1), jnp.float32); ki += 1
    params["bn_pool"] = bn_params()
    return params


if __name__ == "__main__":
    # Small shapes consistent with the module (planes // reduction_factor out-channels).
    B, planes, D, H, W = 2, 32, 8, 8, 8
    reduction_factor = 8
    out_planes = planes // reduction_factor

    key = jax.random.PRNGKey(0)
    kx, kp = jax.random.split(key)
    x = jax.random.normal(kx, (B, planes, D, H, W), jnp.float32)
    params = make_params(kp, planes, out_planes)

    fwd = jax.jit(multi_scale_attention_block)
    out = jax.block_until_ready(fwd(x, params))

    assert out.shape == (B, 5 * out_planes, D, H, W), out.shape
    ref = jax.block_until_ready(reference(x, params))
    out_f32 = out.astype(jnp.float32)
    max_err = float(jnp.max(jnp.abs(out_f32 - ref)))
    assert jnp.allclose(out_f32, ref, rtol=2e-2, atol=5e-2), max_err

    print("KERNEL_OK")
</pallas_src>

<mosaic_0001>
module attributes {stable_mosaic.version = 11 : i64} {
  func.func @kernel(%arg0: i32, %arg1: i32, %arg2: memref<3x512xi32, #tpu.memory_space<vmem>>, %arg3: memref<1x1x16x1152xbf16, #tpu.memory_space<vmem>>, %arg4: memref<1x4x27x4x16xbf16, #tpu.memory_space<vmem>>, %arg5: memref<4x4x1xf32, #tpu.memory_space<vmem>>, %arg6: memref<1x4x4x512xbf16, #tpu.memory_space<vmem>>, %arg7: memref<4x4x512xf32, #tpu.memory_space<vmem>>) attributes {dimension_semantics = [#tpu.dimension_semantics<parallel>, #tpu.dimension_semantics<arbitrary>], iteration_bounds = array<i64: 2, 2>, scalar_prefetch = 0 : i64, scratch_operands = 1 : i64, tpu.core_type = #tpu.core_type<tc>, window_params = [{pipeline_mode = #tpu.pipeline_mode<synchronous>, transform_indices = @transform_0, window_bounds = array<i64: 3, 512>}, {transform_indices = @transform_1, window_bounds = array<i64: 1, 1, 16, 1152>}, {transform_indices = @transform_2, window_bounds = array<i64: 1, 4, 27, 4, 16>}, {pipeline_mode = #tpu.pipeline_mode<synchronous>, transform_indices = @transform_3, window_bounds = array<i64: 4, 4, 1>}, {transform_indices = @transform_4, window_bounds = array<i64: 1, 4, 4, 512>}]} {
    %c0_i32 = arith.constant 0 : i32
    %0 = arith.cmpi eq, %arg1, %c0_i32 : i32
    %1 = arith.extui %0 : i1 to i32
    %c0_i32_0 = arith.constant 0 : i32
    %2 = arith.cmpi ne, %1, %c0_i32_0 : i32
    scf.if %2 {
      %cst_672 = arith.constant 0.000000e+00 : f32
      %845 = vector.broadcast %cst_672 : f32 to vector<4x4x512xf32>
      %c0_673 = arith.constant 0 : index
      %c0_674 = arith.constant 0 : index
      %c0_675 = arith.constant 0 : index
      %846 = vector.load %arg7[%c0_673, %c0_674, %c0_675] : memref<4x4x512xf32, #tpu.memory_space<vmem>>, vector<4x4x512xf32>
      tpu.vector_store %arg7[%c0_673, %c0_674, %c0_675], %845 {strides = array<i32>} : memref<4x4x512xf32, #tpu.memory_space<vmem>>, vector<4x4x512xf32>,
    } else {
    }
    %c0 = arith.constant 0 : index
    %c0_1 = arith.constant 0 : index
    %3 = vector.load %arg2[%c0, %c0_1] : memref<3x512xi32, #tpu.memory_space<vmem>>, vector<1x512xi32>
    %c1 = arith.constant 1 : index
    %c0_2 = arith.constant 0 : index
    %4 = vector.load %arg2[%c1, %c0_2] : memref<3x512xi32, #tpu.memory_space<vmem>>, vector<1x512xi32>
    %c2 = arith.constant 2 : index
    %c0_3 = arith.constant 0 : index
    %5 = vector.load %arg2[%c2, %c0_3] : memref<3x512xi32, #tpu.memory_space<vmem>>, vector<1x512xi32>
    %c0_4 = arith.constant 0 : index
    %c0_5 = arith.constant 0 : index
    %c0_6 = arith.constant 0 : index
    %c219 = arith.constant 219 : index
    %6 = vector.load %arg3[%c0_4, %c0_5, %c0_6, %c219] : memref<1x1x16x1152xbf16, #tpu.memory_space<vmem>>, vector<1x1x16x512xbf16>
    %7 = vector.shape_cast %6 : vector<1x1x16x512xbf16> to vector<16x512xbf16>
    %c0_7 = arith.constant 0 : index
    %c0_8 = arith.constant 0 : index
    %c0_9 = arith.constant 0 : index
    %c0_10 = arith.constant 0 : index
    %c0_11 = arith.constant 0 : index
    %8 = vector.load %arg4[%c0_7, %c0_8, %c0_9, %c0_10, %c0_11] : memref<1x4x27x4x16xbf16, #tpu.memory_space<vmem>>, vector<1x1x1x4x16xbf16>
    %9 = vector.shape_cast %8 : vector<1x1x1x4x16xbf16> to vector<4x16xbf16>
    %cst = arith.constant dense<0.000000e+00> : vector<4x512xf32>
    %10 = tpu.matmul %9, %7, %cst {dimension_numbers = #tpu.dot_dimension_numbers<[1], [0], [0], [1], [0, 0, 1, 1], [], []>} : vector<4x16xbf16>, vector<16x512xbf16>, vector<4x512xf32> -> vector<4x512xf32>
    %c1_i32 = arith.constant 1 : i32
    %11 = vector.broadcast %c1_i32 : i32 to vector<1x512xi32>
    %12 = arith.cmpi sge, %3, %11 : vector<1x512xi32>
    %c1_i32_12 = arith.constant 1 : i32
    %13 = vector.broadcast %c1_i32_12 : i32 to vector<1x512xi32>
    %14 = arith.cmpi sge, %4, %13 : vector<1x512xi32>
    %15 = arith.andi %12, %14 : vector<1x512xi1>
    %c1_i32_13 = arith.constant 1 : i32
    %16 = vector.broadcast %c1_i32_13 : i32 to vector<1x512xi32>
    %17 = arith.cmpi sge, %5, %16 : vector<1x512xi32>
    %18 = arith.andi %15, %17 : vector<1x512xi1>
    %cst_14 = arith.constant 0.000000e+00 : f32
    %19 = vector.shape_cast %18 : vector<1x512xi1> to vector<1x512xi1>
    %20 = vector.broadcast %19 : vector<1x512xi1> to vector<4x512xi1>
    %21 = vector.broadcast %cst_14 : f32 to vector<4x512xf32>
    %22 = arith.select %20, %10, %21 : vector<4x512xi1>, vector<4x512xf32>
    %c0_15 = arith.constant 0 : index
    %c0_16 = arith.constant 0 : index
    %c0_17 = arith.constant 0 : index
    %c220 = arith.constant 220 : index
    %23 = vector.load %arg3[%c0_15, %c0_16, %c0_17, %c220] : memref<1x1x16x1152xbf16, #tpu.memory_space<vmem>>, vector<1x1x16x512xbf16>
    %24 = vector.shape_cast %23 : vector<1x1x16x512xbf16> to vector<16x512xbf16>
    %c0_18 = arith.constant 0 : index
    %c0_19 = arith.constant 0 : index
    %c1_20 = arith.constant 1 : index
    %c0_21 = arith.constant 0 : index
    %c0_22 = arith.constant 0 : index
    %25 = vector.load %arg4[%c0_18, %c0_19, %c1_20, %c0_21, %c0_22] : memref<1x4x27x4x16xbf16, #tpu.memory_space<vmem>>, vector<1x1x1x4x16xbf16>
    %26 = vector.shape_cast %25 : vector<1x1x1x4x16xbf16> to vector<4x16xbf16>
    %cst_23 = arith.constant dense<0.000000e+00> : vector<4x512xf32>
    %27 = tpu.matmul %26, %24, %cst_23 {dimension_numbers = #tpu.dot_dimension_numbers<[1], [0], [0], [1], [0, 0, 1, 1], [], []>} : vector<4x16xbf16>, vector<16x512xbf16>, vector<4x512xf32> -> vector<4x512xf32>
    %c1_i32_24 = arith.constant 1 : i32
    %28 = vector.broadcast %c1_i32_24 : i32 to vector<1x512xi32>
    %29 = arith.cmpi sge, %3, %28 : vector<1x512xi32>
    %c1_i32_25 = arith.constant 1 : i32
    %30 = vector.broadcast %c1_i32_25 : i32 to vector<1x512xi32>
    %31 = arith.cmpi sge, %4, %30 : vector<1x512xi32>
    %32 = arith.andi %29, %31 : vector<1x512xi1>
    %cst_26 = arith.constant 0.000000e+00 : f32
    %33 = vector.shape_cast %32 : vector<1x512xi1> to vector<1x512xi1>
    %34 = vector.broadcast %33 : vector<1x512xi1> to vector<4x512xi1>
    %35 = vector.broadcast %cst_26 : f32 to vector<4x512xf32>
    %36 = arith.select %34, %27, %35 : vector<4x512xi1>, vector<4x512xf32>
    %37 = arith.addf %22, %36 : vector<4x512xf32>
    %c0_27 = arith.constant 0 : index
    %c0_28 = arith.constant 0 : index
    %c0_29 = arith.constant 0 : index
    %c221 = arith.constant 221 : index
    %38 = vector.load %arg3[%c0_27, %c0_28, %c0_29, %c221] : memref<1x1x16x1152xbf16, #tpu.memory_space<vmem>>, vector<1x1x16x512xbf16>
    %39 = vector.shape_cast %38 : vector<1x1x16x512xbf16> to vector<16x512xbf16>
    %c0_30 = arith.constant 0 : index
    %c0_31 = arith.constant 0 : index
    %c2_32 = arith.constant 2 : index
    %c0_33 = arith.constant 0 : index
    %c0_34 = arith.constant 0 : index
    %40 = vector.load %arg4[%c0_30, %c0_31, %c2_32, %c0_33, %c0_34] : memref<1x4x27x4x16xbf16, #tpu.memory_space<vmem>>, vector<1x1x1x4x16xbf16>
    %41 = vector.shape_cast %40 : vector<1x1x1x4x16xbf16> to vector<4x16xbf16>
    %cst_35 = arith.constant dense<0.000000e+00> : vector<4x512xf32>
    %42 = tpu.matmul %41, %39, %cst_35 {dimension_numbers = #tpu.dot_dimension_numbers<[1], [0], [0], [1], [0, 0, 1, 1], [], []>} : vector<4x16xbf16>, vector<16x512xbf16>, vector<4x512xf32> -> vector<4x512xf32>
    %c1_i32_36 = arith.constant 1 : i32
    %43 = vector.broadcast %c1_i32_36 : i32 to vector<1x512xi32>
    %44 = arith.cmpi sge, %3, %43 : vector<1x512xi32>
    %c1_i32_37 = arith.constant 1 : i32
    %45 = vector.broadcast %c1_i32_37 : i32 to vector<1x512xi32>
    %46 = arith.cmpi sge, %4, %45 : vector<1x512xi32>
    %47 = arith.andi %44, %46 : vector<1x512xi1>
    %c7_i32 = arith.constant 7 : i32
    %48 = vector.broadcast %c7_i32 : i32 to vector<1x512xi32>
    %49 = arith.cmpi slt, %5, %48 : vector<1x512xi32>
    %50 = arith.andi %47, %49 : vector<1x512xi1>
    %cst_38 = arith.constant 0.000000e+00 : f32
    %51 = vector.shape_cast %50 : vector<1x512xi1> to vector<1x512xi1>
    %52 = vector.broadcast %51 : vector<1x512xi1> to vector<4x512xi1>
    %53 = vector.broadcast %cst_38 : f32 to vector<4x512xf32>
    %54 = arith.select %52, %42, %53 : vector<4x512xi1>, vector<4x512xf32>
    %55 = arith.addf %37, %54 : vector<4x512xf32>
    %c0_39 = arith.constant 0 : index
    %c0_40 = arith.constant 0 : index
    %c0_41 = arith.constant 0 : index
    %c227 = arith.constant 227 : index
    %56 = vector.load %arg3[%c0_39, %c0_40, %c0_41, %c227] : memref<1x1x16x1152xbf16, #tpu.memory_space<vmem>>, vector<1x1x16x512xbf16>
    %57 = vector.shape_cast %56 : vector<1x1x16x512xbf16> to vector<16x512xbf16>
    %c0_42 = arith.constant 0 : index
    %c0_43 = arith.constant 0 : index
    %c3 = arith.constant 3 : index
    %c0_44 = arith.constant 0 : index
    %c0_45 = arith.constant 0 : index
    %58 = vector.load %arg4[%c0_42, %c0_43, %c3, %c0_44, %c0_45] : memref<1x4x27x4x16xbf16, #tpu.memory_space<vmem>>, vector<1x1x1x4x16xbf16>
    %59 = vector.shape_cast %58 : vector<1x1x1x4x16xbf16> to vector<4x16xbf16>
    %cst_46 = arith.constant dense<0.000000e+00> : vector<4x512xf32>
    %60 = tpu.matmul %59, %57, %cst_46 {dimension_numbers = #tpu.dot_dimension_numbers<[1], [0], [0], [1], [0, 0, 1, 1], [], []>} : vector<4x16xbf16>, vector<16x512xbf16>, vector<4x512xf32> -> vector<4x512xf32>
    %c1_i32_47 = arith.constant 1 : i32
    %61 = vector.broadcast %c1_i32_47 : i32 to vector<1x512xi32>
    %62 = arith.cmpi sge, %3, %61 : vector<1x512xi32>
    %c1_i32_48 = arith.constant 1 : i32
    %63 = vector.broadcast %c1_i32_48 : i32 to vector<1x512xi32>
    %64 = arith.cmpi sge, %5, %63 : vector<1x512xi32>
    %65 = arith.andi %62, %64 : vector<1x512xi1>
    %cst_49 = arith.constant 0.000000e+00 : f32
    %66 = vector.shape_cast %65 : vector<1x512xi1> to vector<1x512xi1>
    %67 = vector.broadcast %66 : vector<1x512xi1> to vector<4x512xi1>
    %68 = vector.broadcast %cst_49 : f32 to vector<4x512xf32>
    %69 = arith.select %67, %60, %68 : vector<4x512xi1>, vector<4x512xf32>
    %70 = arith.addf %55, %69 : vector<4x512xf32>
    %c0_50 = arith.constant 0 : index
    %c0_51 = arith.constant 0 : index
    %c0_52 = arith.constant 0 : index
    %c228 = arith.constant 228 : index
    %71 = vector.load %arg3[%c0_50, %c0_51, %c0_52, %c228] : memref<1x1x16x1152xbf16, #tpu.memory_space<vmem>>, vector<1x1x16x512xbf16>
    %72 = vector.shape_cast %71 : vector<1x1x16x512xbf16> to vector<16x512xbf16>
    %c0_53 = arith.constant 0 : index
    %c0_54 = arith.constant 0 : index
    %c4 = arith.constant 4 : index
    %c0_55 = arith.constant 0 : index
    %c0_56 = arith.constant 0 : index
    %73 = vector.load %arg4[%c0_53, %c0_54, %c4, %c0_55, %c0_56] : memref<1x4x27x4x16xbf16, #tpu.memory_space<vmem>>, vector<1x1x1x4x16xbf16>
    %74 = vector.shape_cast %73 : vector<1x1x1x4x16xbf16> to vector<4x16xbf16>
    %cst_57 = arith.constant dense<0.000000e+00> : vector<4x512xf32>
    %75 = tpu.matmul %74, %72, %cst_57 {dimension_numbers = #tpu.dot_dimension_numbers<[1], [0], [0], [1], [0, 0, 1, 1], [], []>} : vector<4x16xbf16>, vector<16x512xbf16>, vector<4x512xf32> -> vector<4x512xf32>
    %c1_i32_58 = arith.constant 1 : i32
    %76 = vector.broadcast %c1_i32_58 : i32 to vector<1x512xi32>
    %77 = arith.cmpi sge, %3, %76 : vector<1x512xi32>
    %cst_59 = arith.constant 0.000000e+00 : f32
    %78 = vector.shape_cast %77 : vector<1x512xi1> to vector<1x512xi1>
    %79 = vector.broadcast %78 : vector<1x512xi1> to vector<4x512xi1>
    %80 = vector.broadcast %cst_59 : f32 to vector<4x512xf32>
    %81 = arith.select %79, %75, %80 : vector<4x512xi1>, vector<4x512xf32>
    %82 = arith.addf %70, %81 : vector<4x512xf32>
    %c0_60 = arith.constant 0 : index
    %c0_61 = arith.constant 0 : index
    %c0_62 = arith.constant 0 : index
    %c229 = arith.constant 229 : index
    %83 = vector.load %arg3[%c0_60, %c0_61, %c0_62, %c229] : memref<1x1x16x1152xbf16, #tpu.memory_space<vmem>>, vector<1x1x16x512xbf16>
    %84 = vector.shape_cast %83 : vector<1x1x16x512xbf16> to vector<16x512xbf16>
    %c0_63 = arith.constant 0 : index
    %c0_64 = arith.constant 0 : index
    %c5 = arith.constant 5 : index
    %c0_65 = arith.constant 0 : index
    %c0_66 = arith.constant 0 : index
    %85 = vector.load %arg4[%c0_63, %c0_64, %c5, %c0_65, %c0_66] : memref<1x4x27x4x16xbf16, #tpu.memory_space<vmem>>, vector<1x1x1x4x16xbf16>
    %86 = vector.shape_cast %85 : vector<1x1x1x4x16xbf16> to vector<4x16xbf16>
    %cst_67 = arith.constant dense<0.000000e+00> : vector<4x512xf32>
    %87 = tpu.matmul %86, %84, %cst_67 {dimension_numbers = #tpu.dot_dimension_numbers<[1], [0], [0], [1], [0, 0, 1, 1], [], []>} : vector<4x16xbf16>, vector<16x512xbf16>, vector<4x512xf32> -> vector<4x512xf32>
    %c1_i32_68 = arith.constant 1 : i32
    %88 = vector.broadcast %c1_i32_68 : i32 to vector<1x512xi32>
    %89 = arith.cmpi sge, %3, %88 : vector<1x512xi32>
    %c7_i32_69 = arith.constant 7 : i32
    %90 = vector.broadcast %c7_i32_69 : i32 to vector<1x512xi32>
    %91 = arith.cmpi slt, %5, %90 : vector<1x512xi32>
    %92 = arith.andi %89, %91 : vector<1x512xi1>
    %cst_70 = arith.constant 0.000000e+00 : f32
    %93 = vector.shape_cast %92 : vector<1x512xi1> to vector<1x512xi1>
    %94 = vector.broadcast %93 : vector<1x512xi1> to vector<4x512xi1>
    %95 = vector.broadcast %cst_70 : f32 to vector<4x512xf32>
    %96 = arith.select %94, %87, %95 : vector<4x512xi1>, vector<4x512xf32>
    %97 = arith.addf %82, %96 : vector<4x512xf32>
    %c0_71 = arith.constant 0 : index
    %c0_72 = arith.constant 0 : index
    %c0_73 = arith.constant 0 : index
    %c235 = arith.constant 235 : index
    %98 = vector.load %arg3[%c0_71, %c0_72, %c0_73, %c235] : memref<1x1x16x1152xbf16, #tpu.memory_space<vmem>>, vector<1x1x16x512xbf16>
    %99 = vector.shape_cast %98 : vector<1x1x16x512xbf16> to vector<16x512xbf16>
    %c0_74 = arith.constant 0 : index
    %c0_75 = arith.constant 0 : index
    %c6 = arith.constant 6 : index
    %c0_76 = arith.constant 0 : index
    %c0_77 = arith.constant 0 : index
    %100 = vector.load %arg4[%c0_74, %c0_75, %c6, %c0_76, %c0_77] : memref<1x4x27x4x16xbf16, #tpu.memory_space<vmem>>, vector<1x1x1x4x16xbf16>
    %101 = vector.shape_cast %100 : vector<1x1x1x4x16xbf16> to vector<4x16xbf16>
    %cst_78 = arith.constant dense<0.000000e+00> : vector<4x512xf32>
    %102 = tpu.matmul %101, %99, %cst_78 {dimension_numbers = #tpu.dot_dimension_numbers<[1], [0], [0], [1], [0, 0, 1, 1], [], []>} : vector<4x16xbf16>, vector<16x512xbf16>, vector<4x512xf32> -> vector<4x512xf32>
    %c1_i32_79 = arith.constant 1 : i32
    %103 = vector.broadcast %c1_i32_79 : i32 to vector<1x512xi32>
    %104 = arith.cmpi sge, %3, %103 : vector<1x512xi32>
    %c7_i32_80 = arith.constant 7 : i32
    %105 = vector.broadcast %c7_i32_80 : i32 to vector<1x512xi32>
    %106 = arith.cmpi slt, %4, %105 : vector<1x512xi32>
    %107 = arith.andi %104, %106 : vector<1x512xi1>
    %c1_i32_81 = arith.constant 1 : i32
    %108 = vector.broadcast %c1_i32_81 : i32 to vector<1x512xi32>
    %109 = arith.cmpi sge, %5, %108 : vector<1x512xi32>
    %110 = arith.andi %107, %109 : vector<1x512xi1>
    %cst_82 = arith.constant 0.000000e+00 : f32
    %111 = vector.shape_cast %110 : vector<1x512xi1> to vector<1x512xi1>
    %112 = vector.broadcast %111 : vector<1x512xi1> to vector<4x512xi1>
    %113 = vector.broadcast %cst_82 : f32 to vector<4x512xf32>
    %114 = arith.select %112, %102, %113 : vector<4x512xi1>, vector<4x512xf32>
    %115 = arith.addf %97, %114 : vector<4x512xf32>
    %c0_83 = arith.constant 0 : index
    %c0_84 = arith.constant 0 : index
    %c0_85 = arith.constant 0 : index
    %c236 = arith.constant 236 : index
    %116 = vector.load %arg3[%c0_83, %c0_84, %c0_85, %c236] : memref<1x1x16x1152xbf16, #tpu.memory_space<vmem>>, vector<1x1x16x512xbf16>
    %117 = vector.shape_cast %116 : vector<1x1x16x512xbf16> to vector<16x512xbf16>
    %c0_86 = arith.constant 0 : index
    %c0_87 = arith.constant 0 : index
    %c7 = arith.constant 7 : index
    %c0_88 = arith.constant 0 : index
    %c0_89 = arith.constant 0 : index
    %118 = vector.load %arg4[%c0_86, %c0_87, %c7, %c0_88, %c0_89] : memref<1x4x27x4x16xbf16, #tpu.memory_space<vmem>>, vector<1x1x1x4x16xbf16>
    %119 = vector.shape_cast %118 : vector<1x1x1x4x16xbf16> to vector<4x16xbf16>
    %cst_90 = arith.constant dense<0.000000e+00> : vector<4x512xf32>
    %120 = tpu.matmul %119, %117, %cst_90 {dimension_numbers = #tpu.dot_dimension_numbers<[1], [0], [0], [1], [0, 0, 1, 1], [], []>} : vector<4x16xbf16>, vector<16x512xbf16>, vector<4x512xf32> -> vector<4x512xf32>
    %c1_i32_91 = arith.constant 1 : i32
    %121 = vector.broadcast %c1_i32_91 : i32 to vector<1x512xi32>
    %122 = arith.cmpi sge, %3, %121 : vector<1x512xi32>
    %c7_i32_92 = arith.constant 7 : i32
    %123 = vector.broadcast %c7_i32_92 : i32 to vector<1x512xi32>
    %124 = arith.cmpi slt, %4, %123 : vector<1x512xi32>
    %125 = arith.andi %122, %124 : vector<1x512xi1>
    %cst_93 = arith.constant 0.000000e+00 : f32
    %126 = vector.shape_cast %125 : vector<1x512xi1> to vector<1x512xi1>
    %127 = vector.broadcast %126 : vector<1x512xi1> to vector<4x512xi1>
    %128 = vector.broadcast %cst_93 : f32 to vector<4x512xf32>
    %129 = arith.select %127, %120, %128 : vector<4x512xi1>, vector<4x512xf32>
    %130 = arith.addf %115, %129 : vector<4x512xf32>
    %c0_94 = arith.constant 0 : index
    %c0_95 = arith.constant 0 : index
    %c0_96 = arith.constant 0 : index
    %c237 = arith.constant 237 : index
    %131 = vector.load %arg3[%c0_94, %c0_95, %c0_96, %c237] : memref<1x1x16x1152xbf16, #tpu.memory_space<vmem>>, vector<1x1x16x512xbf16>
    %132 = vector.shape_cast %131 : vector<1x1x16x512xbf16> to vector<16x512xbf16>
    %c0_97 = arith.constant 0 : index
    %c0_98 = arith.constant 0 : index
    %c8 = arith.constant 8 : index
    %c0_99 = arith.constant 0 : index
    %c0_100 = arith.constant 0 : index
    %133 = vector.load %arg4[%c0_97, %c0_98, %c8, %c0_99, %c0_100] : memref<1x4x27x4x16xbf16, #tpu.memory_space<vmem>>, vector<1x1x1x4x16xbf16>
    %134 = vector.shape_cast %133 : vector<1x1x1x4x16xbf16> to vector<4x16xbf16>
    %cst_101 = arith.constant dense<0.000000e+00> : vector<4x512xf32>
    %135 = tpu.matmul %134, %132, %cst_101 {dimension_numbers = #tpu.dot_dimension_numbers<[1], [0], [0], [1], [0, 0, 1, 1], [], []>} : vector<4x16xbf16>, vector<16x512xbf16>, vector<4x512xf32> -> vector<4x512xf32>
    %c1_i32_102 = arith.constant 1 : i32
    %136 = vector.broadcast %c1_i32_102 : i32 to vector<1x512xi32>
    %137 = arith.cmpi sge, %3, %136 : vector<1x512xi32>
    %c7_i32_103 = arith.constant 7 : i32
    %138 = vector.broadcast %c7_i32_103 : i32 to vector<1x512xi32>
    %139 = arith.cmpi slt, %4, %138 : vector<1x512xi32>
    %140 = arith.andi %137, %139 : vector<1x512xi1>
    %c7_i32_104 = arith.constant 7 : i32
    %141 = vector.broadcast %c7_i32_104 : i32 to vector<1x512xi32>
    %142 = arith.cmpi slt, %5, %141 : vector<1x512xi32>
    %143 = arith.andi %140, %142 : vector<1x512xi1>
    %cst_105 = arith.constant 0.000000e+00 : f32
    %144 = vector.shape_cast %143 : vector<1x512xi1> to vector<1x512xi1>
    %145 = vector.broadcast %144 : vector<1x512xi1> to vector<4x512xi1>
    %146 = vector.broadcast %cst_105 : f32 to vector<4x512xf32>
    %147 = arith.select %145, %135, %146 : vector<4x512xi1>, vector<4x512xf32>
    %148 = arith.addf %130, %147 : vector<4x512xf32>
    %c0_106 = arith.constant 0 : index
    %c0_107 = arith.constant 0 : index
    %c0_108 = arith.constant 0 : index
    %c283 = arith.constant 283 : index
    %149 = vector.load %arg3[%c0_106, %c0_107, %c0_108, %c283] : memref<1x1x16x1152xbf16, #tpu.memory_space<vmem>>, vector<1x1x16x512xbf16>
    %150 = vector.shape_cast %149 : vector<1x1x16x512xbf16> to vector<16x512xbf16>
    %c0_109 = arith.constant 0 : index
    %c0_110 = arith.constant 0 : index
    %c9 = arith.constant 9 : index
    %c0_111 = arith.constant 0 : index
    %c0_112 = arith.constant 0 : index
    %151 = vector.load %arg4[%c0_109, %c0_110, %c9, %c0_111, %c0_112] : memref<1x4x27x4x16xbf16, #tpu.memory_space<vmem>>, vector<1x1x1x4x16xbf16>
    %152 = vector.shape_cast %151 : vector<1x1x1x4x16xbf16> to vector<4x16xbf16>
    %cst_113 = arith.constant dense<0.000000e+00> : vector<4x512xf32>
    %153 = tpu.matmul %152, %150, %cst_113 {dimension_numbers = #tpu.dot_dimension_numbers<[1], [0], [0], [1], [0, 0, 1, 1], [], []>} : vector<4x16xbf16>, vector<16x512xbf16>, vector<4x512xf32> -> vector<4x512xf32>
    %c1_i32_114 = arith.constant 1 : i32
    %154 = vector.broadcast %c1_i32_114 : i32 to vector<1x512xi32>
    %155 = arith.cmpi sge, %4, %154 : vector<1x512xi32>
    %c1_i32_115 = arith.constant 1 : i32
    %156 = vector.broadcast %c1_i32_115 : i32 to vector<1x512xi32>
    %157 = arith.cmpi sge, %5, %156 : vector<1x512xi32>
    %158 = arith.andi %155, %157 : vector<1x512xi1>
    %cst_116 = arith.constant 0.000000e+00 : f32
    %159 = vector.shape_cast %158 : vector<1x512xi1> to vector<1x512xi1>
    %160 = vector.broadcast %159 : vector<1x512xi1> to vector<4x512xi1>
    %161 = vector.broadcast %cst_116 : f32 to vector<4x512xf32>
    %162 = arith.select %160, %153, %161 : vector<4x512xi1>, vector<4x512xf32>
    %163 = arith.addf %148, %162 : vector<4x512xf32>
    %c0_117 = arith.constant 0 : index
    %c0_118 = arith.constant 0 : index
    %c0_119 = arith.constant 0 : index
    %c284 = arith.constant 284 : index
    %164 = vector.load %arg3[%c0_117, %c0_118, %c0_119, %c284] : memref<1x1x16x1152xbf16, #tpu.memory_space<vmem>>, vector<1x1x16x512xbf16>
    %165 = vector.shape_cast %164 : vector<1x1x16x512xbf16> to vector<16x512xbf16>
    %c0_120 = arith.constant 0 : index
    %c0_121 = arith.constant 0 : index
    %c10 = arith.constant 10 : index
    %c0_122 = arith.constant 0 : index
    %c0_123 = arith.constant 0 : index
    %166 = vector.load %arg4[%c0_120, %c0_121, %c10, %c0_122, %c0_123] : memref<1x4x27x4x16xbf16, #tpu.memory_space<vmem>>, vector<1x1x1x4x16xbf16>
    %167 = vector.shape_cast %166 : vector<1x1x1x4x16xbf16> to vector<4x16xbf16>
    %cst_124 = arith.constant dense<0.000000e+00> : vector<4x512xf32>
    %168 = tpu.matmul %167, %165, %cst_124 {dimension_numbers = #tpu.dot_dimension_numbers<[1], [0], [0], [1], [0, 0, 1, 1], [], []>} : vector<4x16xbf16>, vector<16x512xbf16>, vector<4x512xf32> -> vector<4x512xf32>
    %c1_i32_125 = arith.constant 1 : i32
    %169 = vector.broadcast %c1_i32_125 : i32 to vector<1x512xi32>
    %170 = arith.cmpi sge, %4, %169 : vector<1x512xi32>
    %cst_126 = arith.constant 0.000000e+00 : f32
    %171 = vector.shape_cast %170 : vector<1x512xi1> to vector<1x512xi1>
    %172 = vector.broadcast %171 : vector<1x512xi1> to vector<4x512xi1>
    %173 = vector.broadcast %cst_126 : f32 to vector<4x512xf32>
    %174 = arith.select %172, %168, %173 : vector<4x512xi1>, vector<4x512xf32>
    %175 = arith.addf %163, %174 : vector<4x512xf32>
    %c0_127 = arith.constant 0 : index
    %c0_128 = arith.constant 0 : index
    %c0_129 = arith.constant 0 : index
    %c285 = arith.constant 285 : index
    %176 = vector.load %arg3[%c0_127, %c0_128, %c0_129, %c285] : memref<1x1x16x1152xbf16, #tpu.memory_space<vmem>>, vector<1x1x16x512xbf16>
    %177 = vector.shape_cast %176 : vector<1x1x16x512xbf16> to vector<16x512xbf16>
    %c0_130 = arith.constant 0 : index
    %c0_131 = arith.constant 0 : index
    %c11 = arith.constant 11 : index
    %c0_132 = arith.constant 0 : index
    %c0_133 = arith.constant 0 : index
    %178 = vector.load %arg4[%c0_130, %c0_131, %c11, %c0_132, %c0_133] : memref<1x4x27x4x16xbf16, #tpu.memory_space<vmem>>, vector<1x1x1x4x16xbf16>
    %179 = vector.shape_cast %178 : vector<1x1x1x4x16xbf16> to vector<4x16xbf16>
    %cst_134 = arith.constant dense<0.000000e+00> : vector<4x512xf32>
    %180 = tpu.matmul %179, %177, %cst_134 {dimension_numbers = #tpu.dot_dimension_numbers<[1], [0], [0], [1], [0, 0, 1, 1], [], []>} : vector<4x16xbf16>, vector<16x512xbf16>, vector<4x512xf32> -> vector<4x512xf32>
    %c1_i32_135 = arith.constant 1 : i32
    %181 = vector.broadcast %c1_i32_135 : i32 to vector<1x512xi32>
    %182 = arith.cmpi sge, %4, %181 : vector<1x512xi32>
    %c7_i32_136 = arith.constant 7 : i32
    %183 = vector.broadcast %c7_i32_136 : i32 to vector<1x512xi32>
    %184 = arith.cmpi slt, %5, %183 : vector<1x512xi32>
    %185 = arith.andi %182, %184 : vector<1x512xi1>
    %cst_137 = arith.constant 0.000000e+00 : f32
    %186 = vector.shape_cast %185 : vector<1x512xi1> to vector<1x512xi1>
    %187 = vector.broadcast %186 : vector<1x512xi1> to vector<4x512xi1>
    %188 = vector.broadcast %cst_137 : f32 to vector<4x512xf32>
    %189 = arith.select %187, %180, %188 : vector<4x512xi1>, vector<4x512xf32>
    %190 = arith.addf %175, %189 : vector<4x512xf32>
    %c0_138 = arith.constant 0 : index
    %c0_139 = arith.constant 0 : index
    %c0_140 = arith.constant 0 : index
    %c291 = arith.constant 291 : index
    %191 = vector.load %arg3[%c0_138, %c0_139, %c0_140, %c291] : memref<1x1x16x1152xbf16, #tpu.memory_space<vmem>>, vector<1x1x16x512xbf16>
    %192 = vector.shape_cast %191 : vector<1x1x16x512xbf16> to vector<16x512xbf16>
    %c0_141 = arith.constant 0 : index
    %c0_142 = arith.constant 0 : index
    %c12 = arith.constant 12 : index
    %c0_143 = arith.constant 0 : index
    %c0_144 = arith.constant 0 : index
    %193 = vector.load %arg4[%c0_141, %c0_142, %c12, %c0_143, %c0_144] : memref<1x4x27x4x16xbf16, #tpu.memory_space<vmem>>, vector<1x1x1x4x16xbf16>
    %194 = vector.shape_cast %193 : vector<1x1x1x4x16xbf16> to vector<4x16xbf16>
    %cst_145 = arith.constant dense<0.000000e+00> : vector<4x512xf32>
    %195 = tpu.matmul %194, %192, %cst_145 {dimension_numbers = #tpu.dot_dimension_numbers<[1], [0], [0], [1], [0, 0, 1, 1], [], []>} : vector<4x16xbf16>, vector<16x512xbf16>, vector<4x512xf32> -> vector<4x512xf32>
    %c1_i32_146 = arith.constant 1 : i32
    %196 = vector.broadcast %c1_i32_146 : i32 to vector<1x512xi32>
    %197 = arith.cmpi sge, %5, %196 : vector<1x512xi32>
    %cst_147 = arith.constant 0.000000e+00 : f32
    %198 = vector.shape_cast %197 : vector<1x512xi1> to vector<1x512xi1>
    %199 = vector.broadcast %198 : vector<1x512xi1> to vector<4x512xi1>
    %200 = vector.broadcast %cst_147 : f32 to vector<4x512xf32>
    %201 = arith.select %199, %195, %200 : vector<4x512xi1>, vector<4x512xf32>
    %202 = arith.addf %190, %201 : vector<4x512xf32>
    %c0_148 = arith.constant 0 : index
    %c0_149 = arith.constant 0 : index
    %c0_150 = arith.constant 0 : index
    %c292 = arith.constant 292 : index
    %203 = vector.load %arg3[%c0_148, %c0_149, %c0_150, %c292] : memref<1x1x16x1152xbf16, #tpu.memory_space<vmem>>, vector<1x1x16x512xbf16>
    %204 = vector.shape_cast %203 : vector<1x1x16x512xbf16> to vector<16x512xbf16>
    %c0_151 = arith.constant 0 : index
    %c0_152 = arith.constant 0 : index
    %c13 = arith.constant 13 : index
    %c0_153 = arith.constant 0 : index
    %c0_154 = arith.constant 0 : index
    %205 = vector.load %arg4[%c0_151, %c0_152, %c13, %c0_153, %c0_154] : memref<1x4x27x4x16xbf16, #tpu.memory_space<vmem>>, vector<1x1x1x4x16xbf16>
    %206 = vector.shape_cast %205 : vector<1x1x1x4x16xbf16> to vector<4x16xbf16>
    %cst_155 = arith.constant dense<0.000000e+00> : vector<4x512xf32>
    %207 = tpu.matmul %206, %204, %cst_155 {dimension_numbers = #tpu.dot_dimension_numbers<[1], [0], [0], [1], [0, 0, 1, 1], [], []>} : vector<4x16xbf16>, vector<16x512xbf16>, vector<4x512xf32> -> vector<4x512xf32>
    %208 = arith.addf %202, %207 : vector<4x512xf32>
    %c0_156 = arith.constant 0 : index
    %c0_157 = arith.constant 0 : index
    %c0_158 = arith.constant 0 : index
    %c293 = arith.constant 293 : index
    %209 = vector.load %arg3[%c0_156, %c0_157, %c0_158, %c293] : memref<1x1x16x1152xbf16, #tpu.memory_space<vmem>>, vector<1x1x16x512xbf16>
    %210 = vector.shape_cast %209 : vector<1x1x16x512xbf16> to vector<16x512xbf16>
    %c0_159 = arith.constant 0 : index
    %c0_160 = arith.constant 0 : index
    %c14 = arith.constant 14 : index
    %c0_161 = arith.constant 0 : index
    %c0_162 = arith.constant 0 : index
    %211 = vector.load %arg4[%c0_159, %c0_160, %c14, %c0_161, %c0_162] : memref<1x4x27x4x16xbf16, #tpu.memory_space<vmem>>, vector<1x1x1x4x16xbf16>
    %212 = vector.shape_cast %211 : vector<1x1x1x4x16xbf16> to vector<4x16xbf16>
    %cst_163 = arith.constant dense<0.000000e+00> : vector<4x512xf32>
    %213 = tpu.matmul %212, %210, %cst_163 {dimension_numbers = #tpu.dot_dimension_numbers<[1], [0], [0], [1], [0, 0, 1, 1], [], []>} : vector<4x16xbf16>, vector<16x512xbf16>, vector<4x512xf32> -> vector<4x512xf32>
    %c7_i32_164 = arith.constant 7 : i32
    %214 = vector.broadcast %c7_i32_164 : i32 to vector<1x512xi32>
    %215 = arith.cmpi slt, %5, %214 : vector<1x512xi32>
    %cst_165 = arith.constant 0.000000e+00 : f32
    %216 = vector.shape_cast %215 : vector<1x512xi1> to vector<1x512xi1>
    %217 = vector.broadcast %216 : vector<1x512xi1> to vector<4x512xi1>
    %218 = vector.broadcast %cst_165 : f32 to vector<4x512xf32>
    %219 = arith.select %217, %213, %218 : vector<4x512xi1>, vector<4x512xf32>
    %220 = arith.addf %208, %219 : vector<4x512xf32>
    %c0_166 = arith.constant 0 : index
    %c0_167 = arith.constant 0 : index
    %c0_168 = arith.constant 0 : index
    %c299 = arith.constant 299 : index
    %221 = vector.load %arg3[%c0_166, %c0_167, %c0_168, %c299] : memref<1x1x16x1152xbf16, #tpu.memory_space<vmem>>, vector<1x1x16x512xbf16>
    %222 = vector.shape_cast %221 : vector<1x1x16x512xbf16> to vector<16x512xbf16>
    %c0_169 = arith.constant 0 : index
    %c0_170 = arith.constant 0 : index
    %c15 = arith.constant 15 : index
    %c0_171 = arith.constant 0 : index
    %c0_172 = arith.constant 0 : index
    %223 = vector.load %arg4[%c0_169, %c0_170, %c15, %c0_171, %c0_172] : memref<1x4x27x4x16xbf16, #tpu.memory_space<vmem>>, vector<1x1x1x4x16xbf16>
    %224 = vector.shape_cast %223 : vector<1x1x1x4x16xbf16> to vector<4x16xbf16>
    %cst_173 = arith.constant dense<0.000000e+00> : vector<4x512xf32>
    %225 = tpu.matmul %224, %222, %cst_173 {dimension_numbers = #tpu.dot_dimension_numbers<[1], [0], [0], [1], [0, 0, 1, 1], [], []>} : vector<4x16xbf16>, vector<16x512xbf16>, vector<4x512xf32> -> vector<4x512xf32>
    %c7_i32_174 = arith.constant 7 : i32
    %226 = vector.broadcast %c7_i32_174 : i32 to vector<1x512xi32>
    %227 = arith.cmpi slt, %4, %226 : vector<1x512xi32>
    %c1_i32_175 = arith.constant 1 : i32
    %228 = vector.broadcast %c1_i32_175 : i32 to vector<1x512xi32>
    %229 = arith.cmpi sge, %5, %228 : vector<1x512xi32>
    %230 = arith.andi %227, %229 : vector<1x512xi1>
    %cst_176 = arith.constant 0.000000e+00 : f32
    %231 = vector.shape_cast %230 : vector<1x512xi1> to vector<1x512xi1>
    %232 = vector.broadcast %231 : vector<1x512xi1> to vector<4x512xi1>
    %233 = vector.broadcast %cst_176 : f32 to vector<4x512xf32>
    %234 = arith.select %232, %225, %233 : vector<4x512xi1>, vector<4x512xf32>
    %235 = arith.addf %220, %234 : vector<4x512xf32>
    %c0_177 = arith.constant 0 : index
    %c0_178 = arith.constant 0 : index
    %c0_179 = arith.constant 0 : index
    %c300 = arith.constant 300 : index
    %236 = vector.load %arg3[%c0_177, %c0_178, %c0_179, %c300] : memref<1x1x16x1152xbf16, #tpu.memory_space<vmem>>, vector<1x1x16x512xbf16>
    %237 = vector.shape_cast %236 : vector<1x1x16x512xbf16> to vector<16x512xbf16>
    %c0_180 = arith.constant 0 : index
    %c0_181 = arith.constant 0 : index
    %c16 = arith.constant 16 : index
    %c0_182 = arith.constant 0 : index
    %c0_183 = arith.constant 0 : index
    %238 = vector.load %arg4[%c0_180, %c0_181, %c16, %c0_182, %c0_183] : memref<1x4x27x4x16xbf16, #tpu.memory_space<vmem>>, vector<1x1x1x4x16xbf16>
    %239 = vector.shape_cast %238 : vector<1x1x1x4x16xbf16> to vector<4x16xbf16>
    %cst_184 = arith.constant dense<0.000000e+00> : vector<4x512xf32>
    %240 = tpu.matmul %239, %237, %cst_184 {dimension_numbers = #tpu.dot_dimension_numbers<[1], [0], [0], [1], [0, 0, 1, 1], [], []>} : vector<4x16xbf16>, vector<16x512xbf16>, vector<4x512xf32> -> vector<4x512xf32>
    %c7_i32_185 = arith.constant 7 : i32
    %241 = vector.broadcast %c7_i32_185 : i32 to vector<1x512xi32>
    %242 = arith.cmpi slt, %4, %241 : vector<1x512xi32>
    %cst_186 = arith.constant 0.000000e+00 : f32
    %243 = vector.shape_cast %242 : vector<1x512xi1> to vector<1x512xi1>
    %244 = vector.broadcast %243 : vector<1x512xi1> to vector<4x512xi1>
    %245 = vector.broadcast %cst_186 : f32 to vector<4x512xf32>
    %246 = arith.select %244, %240, %245 : vector<4x512xi1>, vector<4x512xf32>
    %247 = arith.addf %235, %246 : vector<4x512xf32>
    %c0_187 = arith.constant 0 : index
    %c0_188 = arith.constant 0 : index
    %c0_189 = arith.constant 0 : index
    %c301 = arith.constant 301 : index
    %248 = vector.load %arg3[%c0_187, %c0_188, %c0_189, %c301] : memref<1x1x16x1152xbf16, #tpu.memory_space<vmem>>, vector<1x1x16x512xbf16>
    %249 = vector.shape_cast %248 : vector<1x1x16x512xbf16> to vector<16x512xbf16>
    %c0_190 = arith.constant 0 : index
    %c0_191 = arith.constant 0 : index
    %c17 = arith.constant 17 : index
    %c0_192 = arith.constant 0 : index
    %c0_193 = arith.constant 0 : index
    %250 = vector.load %arg4[%c0_190, %c0_191, %c17, %c0_192, %c0_193] : memref<1x4x27x4x16xbf16, #tpu.memory_space<vmem>>, vector<1x1x1x4x16xbf16>
    %251 = vector.shape_cast %250 : vector<1x1x1x4x16xbf16> to vector<4x16xbf16>
    %cst_194 = arith.constant dense<0.000000e+00> : vector<4x512xf32>
    %252 = tpu.matmul %251, %249, %cst_194 {dimension_numbers = #tpu.dot_dimension_numbers<[1], [0], [0], [1], [0, 0, 1, 1], [], []>} : vector<4x16xbf16>, vector<16x512xbf16>, vector<4x512xf32> -> vector<4x512xf32>
    %c7_i32_195 = arith.constant 7 : i32
    %253 = vector.broadcast %c7_i32_195 : i32 to vector<1x512xi32>
    %254 = arith.cmpi slt, %4, %253 : vector<1x512xi32>
    %c7_i32_196 = arith.constant 7 : i32
    %255 = vector.broadcast %c7_i32_196 : i32 to vector<1x512xi32>
    %256 = arith.cmpi slt, %5, %255 : vector<1x512xi32>
    %257 = arith.andi %254, %256 : vector<1x512xi1>
    %cst_197 = arith.constant 0.000000e+00 : f32
    %258 = vector.shape_cast %257 : vector<1x512xi1> to vector<1x512xi1>
    %259 = vector.broadcast %258 : vector<1x512xi1> to vector<4x512xi1>
    %260 = vector.broadcast %cst_197 : f32 to vector<4x512xf32>
    %261 = arith.select %259, %252, %260 : vector<4x512xi1>, vector<4x512xf32>
    %262 = arith.addf %247, %261 : vector<4x512xf32>
    %c0_198 = arith.constant 0 : index
    %c0_199 = arith.constant 0 : index
    %c0_200 = arith.constant 0 : index
    %c347 = arith.constant 347 : index
    %263 = vector.load %arg3[%c0_198, %c0_199, %c0_200, %c347] : memref<1x1x16x1152xbf16, #tpu.memory_space<vmem>>, vector<1x1x16x512xbf16>
    %264 = vector.shape_cast %263 : vector<1x1x16x512xbf16> to vector<16x512xbf16>
    %c0_201 = arith.constant 0 : index
    %c0_202 = arith.constant 0 : index
    %c18 = arith.constant 18 : index
    %c0_203 = arith.constant 0 : index
    %c0_204 = arith.constant 0 : index
    %265 = vector.load %arg4[%c0_201, %c0_202, %c18, %c0_203, %c0_204] : memref<1x4x27x4x16xbf16, #tpu.memory_space<vmem>>, vector<1x1x1x4x16xbf16>
    %266 = vector.shape_cast %265 : vector<1x1x1x4x16xbf16> to vector<4x16xbf16>
    %cst_205 = arith.constant dense<0.000000e+00> : vector<4x512xf32>
    %267 = tpu.matmul %266, %264, %cst_205 {dimension_numbers = #tpu.dot_dimension_numbers<[1], [0], [0], [1], [0, 0, 1, 1], [], []>} : vector<4x16xbf16>, vector<16x512xbf16>, vector<4x512xf32> -> vector<4x512xf32>
    %c7_i32_206 = arith.constant 7 : i32
    %268 = vector.broadcast %c7_i32_206 : i32 to vector<1x512xi32>
    %269 = arith.cmpi slt, %3, %268 : vector<1x512xi32>
    %c1_i32_207 = arith.constant 1 : i32
    %270 = vector.broadcast %c1_i32_207 : i32 to vector<1x512xi32>
    %271 = arith.cmpi sge, %4, %270 : vector<1x512xi32>
    %272 = arith.andi %269, %271 : vector<1x512xi1>
    %c1_i32_208 = arith.constant 1 : i32
    %273 = vector.broadcast %c1_i32_208 : i32 to vector<1x512xi32>
    %274 = arith.cmpi sge, %5, %273 : vector<1x512xi32>
    %275 = arith.andi %272, %274 : vector<1x512xi1>
    %cst_209 = arith.constant 0.000000e+00 : f32
    %276 = vector.shape_cast %275 : vector<1x512xi1> to vector<1x512xi1>
    %277 = vector.broadcast %276 : vector<1x512xi1> to vector<4x512xi1>
    %278 = vector.broadcast %cst_209 : f32 to vector<4x512xf32>
    %279 = arith.select %277, %267, %278 : vector<4x512xi1>, vector<4x512xf32>
    %280 = arith.addf %262, %279 : vector<4x512xf32>
    %c0_210 = arith.constant 0 : index
    %c0_211 = arith.constant 0 : index
    %c0_212 = arith.constant 0 : index
    %c348 = arith.constant 348 : index
    %281 = vector.load %arg3[%c0_210, %c0_211, %c0_212, %c348] : memref<1x1x16x1152xbf16, #tpu.memory_space<vmem>>, vector<1x1x16x512xbf16>
    %282 = vector.shape_cast %281 : vector<1x1x16x512xbf16> to vector<16x512xbf16>
    %c0_213 = arith.constant 0 : index
    %c0_214 = arith.constant 0 : index
    %c19 = arith.constant 19 : index
    %c0_215 = arith.constant 0 : index
    %c0_216 = arith.constant 0 : index
    %283 = vector.load %arg4[%c0_213, %c0_214, %c19, %c0_215, %c0_216] : memref<1x4x27x4x16xbf16, #tpu.memory_space<vmem>>, vector<1x1x1x4x16xbf16>
    %284 = vector.shape_cast %283 : vector<1x1x1x4x16xbf16> to vector<4x16xbf16>
    %cst_217 = arith.constant dense<0.000000e+00> : vector<4x512xf32>
    %285 = tpu.matmul %284, %282, %cst_217 {dimension_numbers = #tpu.dot_dimension_numbers<[1], [0], [0], [1], [0, 0, 1, 1], [], []>} : vector<4x16xbf16>, vector<16x512xbf16>, vector<4x512xf32> -> vector<4x512xf32>
    %c7_i32_218 = arith.constant 7 : i32
    %286 = vector.broadcast %c7_i32_218 : i32 to vector<1x512xi32>
    %287 = arith.cmpi slt, %3, %286 : vector<1x512xi32>
    %c1_i32_219 = arith.constant 1 : i32
    %288 = vector.broadcast %c1_i32_219 : i32 to vector<1x512xi32>
    %289 = arith.cmpi sge, %4, %288 : vector<1x512xi32>
    %290 = arith.andi %287, %289 : vector<1x512xi1>
    %cst_220 = arith.constant 0.000000e+00 : f32
    %291 = vector.shape_cast %290 : vector<1x512xi1> to vector<1x512xi1>
    %292 = vector.broadcast %291 : vector<1x512xi1> to vector<4x512xi1>
    %293 = vector.broadcast %cst_220 : f32 to vector<4x512xf32>
    %294 = arith.select %292, %285, %293 : vector<4x512xi1>, vector<4x512xf32>
    %295 = arith.addf %280, %294 : vector<4x512xf32>
    %c0_221 = arith.constant 0 : index
    %c0_222 = arith.constant 0 : index
    %c0_223 = arith.constant 0 : index
    %c349 = arith.constant 349 : index
    %296 = vector.load %arg3[%c0_221, %c0_222, %c0_223, %c349] : memref<1x1x16x1152xbf16, #tpu.memory_space<vmem>>, vector<1x1x16x512xbf16>
    %297 = vector.shape_cast %296 : vector<1x1x16x512xbf16> to vector<16x512xbf16>
    %c0_224 = arith.constant 0 : index
    %c0_225 = arith.constant 0 : index
    %c20 = arith.constant 20 : index
    %c0_226 = arith.constant 0 : index
    %c0_227 = arith.constant 0 : index
    %298 = vector.load %arg4[%c0_224, %c0_225, %c20, %c0_226, %c0_227] : memref<1x4x27x4x16xbf16, #tpu.memory_space<vmem>>, vector<1x1x1x4x16xbf16>
    %299 = vector.shape_cast %298 : vector<1x1x1x4x16xbf16> to vector<4x16xbf16>
    %cst_228 = arith.constant dense<0.000000e+00> : vector<4x512xf32>
    %300 = tpu.matmul %299, %297, %cst_228 {dimension_numbers = #tpu.dot_dimension_numbers<[1], [0], [0], [1], [0, 0, 1, 1], [], []>} : vector<4x16xbf16>, vector<16x512xbf16>, vector<4x512xf32> -> vector<4x512xf32>
    %c7_i32_229 = arith.constant 7 : i32
    %301 = vector.broadcast %c7_i32_229 : i32 to vector<1x512xi32>
    %302 = arith.cmpi slt, %3, %301 : vector<1x512xi32>
    %c1_i32_230 = arith.constant 1 : i32
    %303 = vector.broadcast %c1_i32_230 : i32 to vector<1x512xi32>
    %304 = arith.cmpi sge, %4, %303 : vector<1x512xi32>
    %305 = arith.andi %302, %304 : vector<1x512xi1>
    %c7_i32_231 = arith.constant 7 : i32
    %306 = vector.broadcast %c7_i32_231 : i32 to vector<1x512xi32>
    %307 = arith.cmpi slt, %5, %306 : vector<1x512xi32>
    %308 = arith.andi %305, %307 : vector<1x512xi1>
    %cst_232 = arith.constant 0.000000e+00 : f32
    %309 = vector.shape_cast %308 : vector<1x512xi1> to vector<1x512xi1>
    %310 = vector.broadcast %309 : vector<1x512xi1> to vector<4x512xi1>
    %311 = vector.broadcast %cst_232 : f32 to vector<4x512xf32>
    %312 = arith.select %310, %300, %311 : vector<4x512xi1>, vector<4x512xf32>
    %313 = arith.addf %295, %312 : vector<4x512xf32>
    %c0_233 = arith.constant 0 : index
    %c0_234 = arith.constant 0 : index
    %c0_235 = arith.constant 0 : index
    %c355 = arith.constant 355 : index
    %314 = vector.load %arg3[%c0_233, %c0_234, %c0_235, %c355] : memref<1x1x16x1152xbf16, #tpu.memory_space<vmem>>, vector<1x1x16x512xbf16>
    %315 = vector.shape_cast %314 : vector<1x1x16x512xbf16> to vector<16x512xbf16>
    %c0_236 = arith.constant 0 : index
    %c0_237 = arith.constant 0 : index
    %c21 = arith.constant 21 : index
    %c0_238 = arith.constant 0 : index
    %c0_239 = arith.constant 0 : index
    %316 = vector.load %arg4[%c0_236, %c0_237, %c21, %c0_238, %c0_239] : memref<1x4x27x4x16xbf16, #tpu.memory_space<vmem>>, vector<1x1x1x4x16xbf16>
    %317 = vector.shape_cast %316 : vector<1x1x1x4x16xbf16> to vector<4x16xbf16>
    %cst_240 = arith.constant dense<0.000000e+00> : vector<4x512xf32>
    %318 = tpu.matmul %317, %315, %cst_240 {dimension_numbers = #tpu.dot_dimension_numbers<[1], [0], [0], [1], [0, 0, 1, 1], [], []>} : vector<4x16xbf16>, vector<16x512xbf16>, vector<4x512xf32> -> vector<4x512xf32>
    %c7_i32_241 = arith.constant 7 : i32
    %319 = vector.broadcast %c7_i32_241 : i32 to vector<1x512xi32>
    %320 = arith.cmpi slt, %3, %319 : vector<1x512xi32>
    %c1_i32_242 = arith.constant 1 : i32
    %321 = vector.broadcast %c1_i32_242 : i32 to vector<1x512xi32>
    %322 = arith.cmpi sge, %5, %321 : vector<1x512xi32>
    %323 = arith.andi %320, %322 : vector<1x512xi1>
    %cst_243 = arith.constant 0.000000e+00 : f32
    %324 = vector.shape_cast %323 : vector<1x512xi1> to vector<1x512xi1>
    %325 = vector.broadcast %324 : vector<1x512xi1> to vector<4x512xi1>
    %326 = vector.broadcast %cst_243 : f32 to vector<4x512xf32>
    %327 = arith.select %325, %318, %326 : vector<4x512xi1>, vector<4x512xf32>
    %328 = arith.addf %313, %327 : vector<4x512xf32>
    %c0_244 = arith.constant 0 : index
    %c0_245 = arith.constant 0 : index
    %c0_246 = arith.constant 0 : index
    %c356 = arith.constant 356 : index
    %329 = vector.load %arg3[%c0_244, %c0_245, %c0_246, %c356] : memref<1x1x16x1152xbf16, #tpu.memory_space<vmem>>, vector<1x1x16x512xbf16>
    %330 = vector.shape_cast %329 : vector<1x1x16x512xbf16> to vector<16x512xbf16>
    %c0_247 = arith.constant 0 : index
    %c0_248 = arith.constant 0 : index
    %c22 = arith.constant 22 : index
    %c0_249 = arith.constant 0 : index
    %c0_250 = arith.constant 0 : index
    %331 = vector.load %arg4[%c0_247, %c0_248, %c22, %c0_249, %c0_250] : memref<1x4x27x4x16xbf16, #tpu.memory_space<vmem>>, vector<1x1x1x4x16xbf16>
    %332 = vector.shape_cast %331 : vector<1x1x1x4x16xbf16> to vector<4x16xbf16>
    %cst_251 = arith.constant dense<0.000000e+00> : vector<4x512xf32>
    %333 = tpu.matmul %332, %330, %cst_251 {dimension_numbers = #tpu.dot_dimension_numbers<[1], [0], [0], [1], [0, 0, 1, 1], [], []>} : vector<4x16xbf16>, vector<16x512xbf16>, vector<4x512xf32> -> vector<4x512xf32>
    %c7_i32_252 = arith.constant 7 : i32
    %334 = vector.broadcast %c7_i32_252 : i32 to vector<1x512xi32>
    %335 = arith.cmpi slt, %3, %334 : vector<1x512xi32>
    %cst_253 = arith.constant 0.000000e+00 : f32
    %336 = vector.shape_cast %335 : vector<1x512xi1> to vector<1x512xi1>
    %337 = vector.broadcast %336 : vector<1x512xi1> to vector<4x512xi1>
    %338 = vector.broadcast %cst_253 : f32 to vector<4x512xf32>
    %339 = arith.select %337, %333, %338 : vector<4x512xi1>, vector<4x512xf32>
    %340 = arith.addf %328, %339 : vector<4x512xf32>
    %c0_254 = arith.constant 0 : index
    %c0_255 = arith.constant 0 : index
    %c0_256 = arith.constant 0 : index
    %c357 = arith.constant 357 : index
    %341 = vector.load %arg3[%c0_254, %c0_255, %c0_256, %c357] : memref<1x1x16x1152xbf16, #tpu.memory_space<vmem>>, vector<1x1x16x512xbf16>
    %342 = vector.shape_cast %341 : vector<1x1x16x512xbf16> to vector<16x512xbf16>
    %c0_257 = arith.constant 0 : index
    %c0_258 = arith.constant 0 : index
    %c23 = arith.constant 23 : index
    %c0_259 = arith.constant 0 : index
    %c0_260 = arith.constant 0 : index
    %343 = vector.load %arg4[%c0_257, %c0_258, %c23, %c0_259, %c0_260] : memref<1x4x27x4x16xbf16, #tpu.memory_space<vmem>>, vector<1x1x1x4x16xbf16>
    %344 = vector.shape_cast %343 : vector<1x1x1x4x16xbf16> to vector<4x16xbf16>
    %cst_261 = arith.constant dense<0.000000e+00> : vector<4x512xf32>
    %345 = tpu.matmul %344, %342, %cst_261 {dimension_numbers = #tpu.dot_dimension_numbers<[1], [0], [0], [1], [0, 0, 1, 1], [], []>} : vector<4x16xbf16>, vector<16x512xbf16>, vector<4x512xf32> -> vector<4x512xf32>
    %c7_i32_262 = arith.constant 7 : i32
    %346 = vector.broadcast %c7_i32_262 : i32 to vector<1x512xi32>
    %347 = arith.cmpi slt, %3, %346 : vector<1x512xi32>
    %c7_i32_263 = arith.constant 7 : i32
    %348 = vector.broadcast %c7_i32_263 : i32 to vector<1x512xi32>
    %349 = arith.cmpi slt, %5, %348 : vector<1x512xi32>
    %350 = arith.andi %347, %349 : vector<1x512xi1>
    %cst_264 = arith.constant 0.000000e+00 : f32
    %351 = vector.shape_cast %350 : vector<1x512xi1> to vector<1x512xi1>
    %352 = vector.broadcast %351 : vector<1x512xi1> to vector<4x512xi1>
    %353 = vector.broadcast %cst_264 : f32 to vector<4x512xf32>
    %354 = arith.select %352, %345, %353 : vector<4x512xi1>, vector<4x512xf32>
    %355 = arith.addf %340, %354 : vector<4x512xf32>
    %c0_265 = arith.constant 0 : index
    %c0_266 = arith.constant 0 : index
    %c0_267 = arith.constant 0 : index
    %c363 = arith.constant 363 : index
    %356 = vector.load %arg3[%c0_265, %c0_266, %c0_267, %c363] : memref<1x1x16x1152xbf16, #tpu.memory_space<vmem>>, vector<1x1x16x512xbf16>
    %357 = vector.shape_cast %356 : vector<1x1x16x512xbf16> to vector<16x512xbf16>
    %c0_268 = arith.constant 0 : index
    %c0_269 = arith.constant 0 : index
    %c24 = arith.constant 24 : index
    %c0_270 = arith.constant 0 : index
    %c0_271 = arith.constant 0 : index
    %358 = vector.load %arg4[%c0_268, %c0_269, %c24, %c0_270, %c0_271] : memref<1x4x27x4x16xbf16, #tpu.memory_space<vmem>>, vector<1x1x1x4x16xbf16>
    %359 = vector.shape_cast %358 : vector<1x1x1x4x16xbf16> to vector<4x16xbf16>
    %cst_272 = arith.constant dense<0.000000e+00> : vector<4x512xf32>
    %360 = tpu.matmul %359, %357, %cst_272 {dimension_numbers = #tpu.dot_dimension_numbers<[1], [0], [0], [1], [0, 0, 1, 1], [], []>} : vector<4x16xbf16>, vector<16x512xbf16>, vector<4x512xf32> -> vector<4x512xf32>
    %c7_i32_273 = arith.constant 7 : i32
    %361 = vector.broadcast %c7_i32_273 : i32 to vector<1x512xi32>
    %362 = arith.cmpi slt, %3, %361 : vector<1x512xi32>
    %c7_i32_274 = arith.constant 7 : i32
    %363 = vector.broadcast %c7_i32_274 : i32 to vector<1x512xi32>
    %364 = arith.cmpi slt, %4, %363 : vector<1x512xi32>
    %365 = arith.andi %362, %364 : vector<1x512xi1>
    %c1_i32_275 = arith.constant 1 : i32
    %366 = vector.broadcast %c1_i32_275 : i32 to vector<1x512xi32>
    %367 = arith.cmpi sge, %5, %366 : vector<1x512xi32>
    %368 = arith.andi %365, %367 : vector<1x512xi1>
    %cst_276 = arith.constant 0.000000e+00 : f32
    %369 = vector.shape_cast %368 : vector<1x512xi1> to vector<1x512xi1>
    %370 = vector.broadcast %369 : vector<1x512xi1> to vector<4x512xi1>
    %371 = vector.broadcast %cst_276 : f32 to vector<4x512xf32>
    %372 = arith.select %370, %360, %371 : vector<4x512xi1>, vector<4x512xf32>
    %373 = arith.addf %355, %372 : vector<4x512xf32>
    %c0_277 = arith.constant 0 : index
    %c0_278 = arith.constant 0 : index
    %c0_279 = arith.constant 0 : index
    %c364 = arith.constant 364 : index
    %374 = vector.load %arg3[%c0_277, %c0_278, %c0_279, %c364] : memref<1x1x16x1152xbf16, #tpu.memory_space<vmem>>, vector<1x1x16x512xbf16>
    %375 = vector.shape_cast %374 : vector<1x1x16x512xbf16> to vector<16x512xbf16>
    %c0_280 = arith.constant 0 : index
    %c0_281 = arith.constant 0 : index
    %c25 = arith.constant 25 : index
    %c0_282 = arith.constant 0 : index
    %c0_283 = arith.constant 0 : index
    %376 = vector.load %arg4[%c0_280, %c0_281, %c25, %c0_282, %c0_283] : memref<1x4x27x4x16xbf16, #tpu.memory_space<vmem>>, vector<1x1x1x4x16xbf16>
    %377 = vector.shape_cast %376 : vector<1x1x1x4x16xbf16> to vector<4x16xbf16>
    %cst_284 = arith.constant dense<0.000000e+00> : vector<4x512xf32>
    %378 = tpu.matmul %377, %375, %cst_284 {dimension_numbers = #tpu.dot_dimension_numbers<[1], [0], [0], [1], [0, 0, 1, 1], [], []>} : vector<4x16xbf16>, vector<16x512xbf16>, vector<4x512xf32> -> vector<4x512xf32>
    %c7_i32_285 = arith.constant 7 : i32
    %379 = vector.broadcast %c7_i32_285 : i32 to vector<1x512xi32>
    %380 = arith.cmpi slt, %3, %379 : vector<1x512xi32>
    %c7_i32_286 = arith.constant 7 : i32
    %381 = vector.broadcast %c7_i32_286 : i32 to vector<1x512xi32>
    %382 = arith.cmpi slt, %4, %381 : vector<1x512xi32>
    %383 = arith.andi %380, %382 : vector<1x512xi1>
    %cst_287 = arith.constant 0.000000e+00 : f32
    %384 = vector.shape_cast %383 : vector<1x512xi1> to vector<1x512xi1>
    %385 = vector.broadcast %384 : vector<1x512xi1> to vector<4x512xi1>
    %386 = vector.broadcast %cst_287 : f32 to vector<4x512xf32>
    %387 = arith.select %385, %378, %386 : vector<4x512xi1>, vector<4x512xf32>
    %388 = arith.addf %373, %387 : vector<4x512xf32>
    %c0_288 = arith.constant 0 : index
    %c0_289 = arith.constant 0 : index
    %c0_290 = arith.constant 0 : index
    %c365 = arith.constant 365 : index
    %389 = vector.load %arg3[%c0_288, %c0_289, %c0_290, %c365] : memref<1x1x16x1152xbf16, #tpu.memory_space<vmem>>, vector<1x1x16x512xbf16>
    %390 = vector.shape_cast %389 : vector<1x1x16x512xbf16> to vector<16x512xbf16>
    %c0_291 = arith.constant 0 : index
    %c0_292 = arith.constant 0 : index
    %c26 = arith.constant 26 : index
    %c0_293 = arith.constant 0 : index
    %c0_294 = arith.constant 0 : index
    %391 = vector.load %arg4[%c0_291, %c0_292, %c26, %c0_293, %c0_294] : memref<1x4x27x4x16xbf16, #tpu.memory_space<vmem>>, vector<1x1x1x4x16xbf16>
    %392 = vector.shape_cast %391 : vector<1x1x1x4x16xbf16> to vector<4x16xbf16>
    %cst_295 = arith.constant dense<0.000000e+00> : vector<4x512xf32>
    %393 = tpu.matmul %392, %390, %cst_295 {dimension_numbers = #tpu.dot_dimension_numbers<[1], [0], [0], [1], [0, 0, 1, 1], [], []>} : vector<4x16xbf16>, vector<16x512xbf16>, vector<4x512xf32> -> vector<4x512xf32>
    %c7_i32_296 = arith.constant 7 : i32
    %394 = vector.broadcast %c7_i32_296 : i32 to vector<1x512xi32>
    %395 = arith.cmpi slt, %3, %394 : vector<1x512xi32>
    %c7_i32_297 = arith.constant 7 : i32
    %396 = vector.broadcast %c7_i32_297 : i32 to vector<1x512xi32>
    %397 = arith.cmpi slt, %4, %396 : vector<1x512xi32>
    %398 = arith.andi %395, %397 : vector<1x512xi1>
    %c7_i32_298 = arith.constant 7 : i32
    %399 = vector.broadcast %c7_i32_298 : i32 to vector<1x512xi32>
    %400 = arith.cmpi slt, %5, %399 : vector<1x512xi32>
    %401 = arith.andi %398, %400 : vector<1x512xi1>
    %cst_299 = arith.constant 0.000000e+00 : f32
    %402 = vector.shape_cast %401 : vector<1x512xi1> to vector<1x512xi1>
    %403 = vector.broadcast %402 : vector<1x512xi1> to vector<4x512xi1>
    %404 = vector.broadcast %cst_299 : f32 to vector<4x512xf32>
    %405 = arith.select %403, %393, %404 : vector<4x512xi1>, vector<4x512xf32>
    %406 = arith.addf %388, %405 : vector<4x512xf32>
    %c0_300 = arith.constant 0 : index
    %c0_301 = arith.constant 0 : index
    %c0_302 = arith.constant 0 : index
    %407 = vector.load %arg7[%c0_300, %c0_301, %c0_302] : memref<4x4x512xf32, #tpu.memory_space<vmem>>, vector<1x4x512xf32>
    %408 = vector.shape_cast %407 : vector<1x4x512xf32> to vector<4x512xf32>
    %409 = arith.addf %408, %406 : vector<4x512xf32>
    %c0_303 = arith.constant 0 : index
    %c0_304 = arith.constant 0 : index
    %c0_305 = arith.constant 0 : index
    %410 = vector.load %arg7[%c0_303, %c0_304, %c0_305] : memref<4x4x512xf32, #tpu.memory_space<vmem>>, vector<1x4x512xf32>
    %411 = vector.shape_cast %410 : vector<1x4x512xf32> to vector<4x512xf32>
    %412 = vector.shape_cast %409 : vector<4x512xf32> to vector<1x4x512xf32>
    tpu.vector_store %arg7[%c0_303, %c0_304, %c0_305], %412 {strides = array<i32>} : memref<4x4x512xf32, #tpu.memory_space<vmem>>, vector<1x4x512xf32>,
    %c0_306 = arith.constant 0 : index
    %c0_307 = arith.constant 0 : index
    %c0_308 = arith.constant 0 : index
    %c0_309 = arith.constant 0 : index
    %413 = vector.load %arg3[%c0_306, %c0_307, %c0_308, %c0_309] : memref<1x1x16x1152xbf16, #tpu.memory_space<vmem>>, vector<1x1x16x512xbf16>
    %414 = vector.shape_cast %413 : vector<1x1x16x512xbf16> to vector<16x512xbf16>
    %c0_310 = arith.constant 0 : index
    %c1_311 = arith.constant 1 : index
    %c0_312 = arith.constant 0 : index
    %c0_313 = arith.constant 0 : index
    %c0_314 = arith.constant 0 : index
    %415 = vector.load %arg4[%c0_310, %c1_311, %c0_312, %c0_313, %c0_314] : memref<1x4x27x4x16xbf16, #tpu.memory_space<vmem>>, vector<1x1x1x4x16xbf16>
    %416 = vector.shape_cast %415 : vector<1x1x1x4x16xbf16> to vector<4x16xbf16>
    %cst_315 = arith.constant dense<0.000000e+00> : vector<4x512xf32>
    %417 = tpu.matmul %416, %414, %cst_315 {dimension_numbers = #tpu.dot_dimension_numbers<[1], [0], [0], [1], [0, 0, 1, 1], [], []>} : vector<4x16xbf16>, vector<16x512xbf16>, vector<4x512xf32> -> vector<4x512xf32>
    %c4_i32 = arith.constant 4 : i32
    %418 = vector.broadcast %c4_i32 : i32 to vector<1x512xi32>
    %419 = arith.cmpi sge, %3, %418 : vector<1x512xi32>
    %c4_i32_316 = arith.constant 4 : i32
    %420 = vector.broadcast %c4_i32_316 : i32 to vector<1x512xi32>
    %421 = arith.cmpi sge, %4, %420 : vector<1x512xi32>
    %422 = arith.andi %419, %421 : vector<1x512xi1>
    %c4_i32_317 = arith.constant 4 : i32
    %423 = vector.broadcast %c4_i32_317 : i32 to vector<1x512xi32>
    %424 = arith.cmpi sge, %5, %423 : vector<1x512xi32>
    %425 = arith.andi %422, %424 : vector<1x512xi1>
    %cst_318 = arith.constant 0.000000e+00 : f32
    %426 = vector.shape_cast %425 : vector<1x512xi1> to vector<1x512xi1>
    %427 = vector.broadcast %426 : vector<1x512xi1> to vector<4x512xi1>
    %428 = vector.broadcast %cst_318 : f32 to vector<4x512xf32>
    %429 = arith.select %427, %417, %428 : vector<4x512xi1>, vector<4x512xf32>
    %c0_319 = arith.constant 0 : index
    %c0_320 = arith.constant 0 : index
    %c0_321 = arith.constant 0 : index
    %c4_322 = arith.constant 4 : index
    %430 = vector.load %arg3[%c0_319, %c0_320, %c0_321, %c4_322] : memref<1x1x16x1152xbf16, #tpu.memory_space<vmem>>, vector<1x1x16x512xbf16>
    %431 = vector.shape_cast %430 : vector<1x1x16x512xbf16> to vector<16x512xbf16>
    %c0_323 = arith.constant 0 : index
    %c1_324 = arith.constant 1 : index
    %c1_325 = arith.constant 1 : index
    %c0_326 = arith.constant 0 : index
    %c0_327 = arith.constant 0 : index
    %432 = vector.load %arg4[%c0_323, %c1_324, %c1_325, %c0_326, %c0_327] : memref<1x4x27x4x16xbf16, #tpu.memory_space<vmem>>, vector<1x1x1x4x16xbf16>
    %433 = vector.shape_cast %432 : vector<1x1x1x4x16xbf16> to vector<4x16xbf16>
    %cst_328 = arith.constant dense<0.000000e+00> : vector<4x512xf32>
    %434 = tpu.matmul %433, %431, %cst_328 {dimension_numbers = #tpu.dot_dimension_numbers<[1], [0], [0], [1], [0, 0, 1, 1], [], []>} : vector<4x16xbf16>, vector<16x512xbf16>, vector<4x512xf32> -> vector<4x512xf32>
    %c4_i32_329 = arith.constant 4 : i32
    %435 = vector.broadcast %c4_i32_329 : i32 to vector<1x512xi32>
    %436 = arith.cmpi sge, %3, %435 : vector<1x512xi32>
    %c4_i32_330 = arith.constant 4 : i32
    %437 = vector.broadcast %c4_i32_330 : i32 to vector<1x512xi32>
    %438 = arith.cmpi sge, %4, %437 : vector<1x512xi32>
    %439 = arith.andi %436, %438 : vector<1x512xi1>
    %cst_331 = arith.constant 0.000000e+00 : f32
    %440 = vector.shape_cast %439 : vector<1x512xi1> to vector<1x512xi1>
    %441 = vector.broadcast %440 : vector<1x512xi1> to vector<4x512xi1>
    %442 = vector.broadcast %cst_331 : f32 to vector<4x512xf32>
    %443 = arith.select %441, %434, %442 : vector<4x512xi1>, vector<4x512xf32>
    %444 = arith.addf %429, %443 : vector<4x512xf32>
    %c0_332 = arith.constant 0 : index
    %c0_333 = arith.constant 0 : index
    %c0_334 = arith.constant 0 : index
    %c8_335 = arith.constant 8 : index
    %445 = vector.load %arg3[%c0_332, %c0_333, %c0_334, %c8_335] : memref<1x1x16x1152xbf16, #tpu.memory_space<vmem>>, vector<1x1x16x512xbf16>
    %446 = vector.shape_cast %445 : vector<1x1x16x512xbf16> to vector<16x512xbf16>
    %c0_336 = arith.constant 0 : index
    %c1_337 = arith.constant 1 : index
    %c2_338 = arith.constant 2 : index
    %c0_339 = arith.constant 0 : index
    %c0_340 = arith.constant 0 : index
    %447 = vector.load %arg4[%c0_336, %c1_337, %c2_338, %c0_339, %c0_340] : memref<1x4x27x4x16xbf16, #tpu.memory_space<vmem>>, vector<1x1x1x4x16xbf16>
    %448 = vector.shape_cast %447 : vector<1x1x1x4x16xbf16> to vector<4x16xbf16>
    %cst_341 = arith.constant dense<0.000000e+00> : vector<4x512xf32>
    %449 = tpu.matmul %448, %446, %cst_341 {dimension_numbers = #tpu.dot_dimension_numbers<[1], [0], [0], [1], [0, 0, 1, 1], [], []>} : vector<4x16xbf16>, vector<16x512xbf16>, vector<4x512xf32> -> vector<4x512xf32>
    %c4_i32_342 = arith.constant 4 : i32
    %450 = vector.broadcast %c4_i32_342 : i32 to vector<1x512xi32>
    %451 = arith.cmpi sge, %3, %450 : vector<1x512xi32>
    %c4_i32_343 = arith.constant 4 : i32
    %452 = vector.broadcast %c4_i32_343 : i32 to vector<1x512xi32>
    %453 = arith.cmpi sge, %4, %452 : vector<1x512xi32>
    %454 = arith.andi %451, %453 : vector<1x512xi1>
    %c4_i32_344 = arith.constant 4 : i32
    %455 = vector.broadcast %c4_i32_344 : i32 to vector<1x512xi32>
    %456 = arith.cmpi slt, %5, %455 : vector<1x512xi32>
    %457 = arith.andi %454, %456 : vector<1x512xi1>
    %cst_345 = arith.constant 0.000000e+00 : f32
    %458 = vector.shape_cast %457 : vector<1x512xi1> to vector<1x512xi1>
    %459 = vector.broadcast %458 : vector<1x512xi1> to vector<4x512xi1>
    %460 = vector.broadcast %cst_345 : f32 to vector<4x512xf32>
    %461 = arith.select %459, %449, %460 : vector<4x512xi1>, vector<4x512xf32>
    %462 = arith.addf %444, %461 : vector<4x512xf32>
    %c0_346 = arith.constant 0 : index
    %c0_347 = arith.constant 0 : index
    %c0_348 = arith.constant 0 : index
    %c32 = arith.constant 32 : index
    %463 = vector.load %arg3[%c0_346, %c0_347, %c0_348, %c32] : memref<1x1x16x1152xbf16, #tpu.memory_space<vmem>>, vector<1x1x16x512xbf16>
    %464 = vector.shape_cast %463 : vector<1x1x16x512xbf16> to vector<16x512xbf16>
    %c0_349 = arith.constant 0 : index
    %c1_350 = arith.constant 1 : index
    %c3_351 = arith.constant 3 : index
    %c0_352 = arith.constant 0 : index
    %c0_353 = arith.constant 0 : index
    %465 = vector.load %arg4[%c0_349, %c1_350, %c3_351, %c0_352, %c0_353] : memref<1x4x27x4x16xbf16, #tpu.memory_space<vmem>>, vector<1x1x1x4x16xbf16>
    %466 = vector.shape_cast %465 : vector<1x1x1x4x16xbf16> to vector<4x16xbf16>
    %cst_354 = arith.constant dense<0.000000e+00> : vector<4x512xf32>
    %467 = tpu.matmul %466, %464, %cst_354 {dimension_numbers = #tpu.dot_dimension_numbers<[1], [0], [0], [1], [0, 0, 1, 1], [], []>} : vector<4x16xbf16>, vector<16x512xbf16>, vector<4x512xf32> -> vector<4x512xf32>
    %c4_i32_355 = arith.constant 4 : i32
    %468 = vector.broadcast %c4_i32_355 : i32 to vector<1x512xi32>
    %469 = arith.cmpi sge, %3, %468 : vector<1x512xi32>
    %c4_i32_356 = arith.constant 4 : i32
    %470 = vector.broadcast %c4_i32_356 : i32 to vector<1x512xi32>
    %471 = arith.cmpi sge, %5, %470 : vector<1x512xi32>
    %472 = arith.andi %469, %471 : vector<1x512xi1>
    %cst_357 = arith.constant 0.000000e+00 : f32
    %473 = vector.shape_cast %472 : vector<1x512xi1> to vector<1x512xi1>
    %474 = vector.broadcast %473 : vector<1x512xi1> to vector<4x512xi1>
    %475 = vector.broadcast %cst_357 : f32 to vector<4x512xf32>
    %476 = arith.select %474, %467, %475 : vector<4x512xi1>, vector<4x512xf32>
    %477 = arith.addf %462, %476 : vector<4x512xf32>
    %c0_358 = arith.constant 0 : index
    %c0_359 = arith.constant 0 : index
    %c0_360 = arith.constant 0 : index
    %c36 = arith.constant 36 : index
    %478 = vector.load %arg3[%c0_358, %c0_359, %c0_360, %c36] : memref<1x1x16x1152xbf16, #tpu.memory_space<vmem>>, vector<1x1x16x512xbf16>
    %479 = vector.shape_cast %478 : vector<1x1x16x512xbf16> to vector<16x512xbf16>
    %c0_361 = arith.constant 0 : index
    %c1_362 = arith.constant 1 : index
    %c4_363 = arith.constant 4 : index
    %c0_364 = arith.constant 0 : index
    %c0_365 = arith.constant 0 : index
    %480 = vector.load %arg4[%c0_361, %c1_362, %c4_363, %c0_364, %c0_365] : memref<1x4x27x4x16xbf16, #tpu.memory_space<vmem>>, vector<1x1x1x4x16xbf16>
    %481 = vector.shape_cast %480 : vector<1x1x1x4x16xbf16> to vector<4x16xbf16>
    %cst_366 = arith.constant dense<0.000000e+00> : vector<4x512xf32>
    %482 = tpu.matmul %481, %479, %cst_366 {dimension_numbers = #tpu.dot_dimension_numbers<[1], [0], [0], [1], [0, 0, 1, 1], [], []>} : vector<4x16xbf16>, vector<16x512xbf16>, vector<4x512xf32> -> vector<4x512xf32>
    %c4_i32_367 = arith.constant 4 : i32
    %483 = vector.broadcast %c4_i32_367 : i32 to vector<1x512xi32>
    %484 = arith.cmpi sge, %3, %483 : vector<1x512xi32>
    %cst_368 = arith.constant 0.000000e+00 : f32
    %485 = vector.shape_cast %484 : vector<1x512xi1> to vector<1x512xi1>
    %486 = vector.broadcast %485 : vector<1x512xi1> to vector<4x512xi1>
    %487 = vector.broadcast %cst_368 : f32 to vector<4x512xf32>
    %488 = arith.select %486, %482, %487 : vector<4x512xi1>, vector<4x512xf32>
    %489 = arith.addf %477, %488 : vector<4x512xf32>
    %c0_369 = arith.constant 0 : index
    %c0_370 = arith.constant 0 : index
    %c0_371 = arith.constant 0 : index
    %c40 = arith.constant 40 : index
    %490 = vector.load %arg3[%c0_369, %c0_370, %c0_371, %c40] : memref<1x1x16x1152xbf16, #tpu.memory_space<vmem>>, vector<1x1x16x512xbf16>
    %491 = vector.shape_cast %490 : vector<1x1x16x512xbf16> to vector<16x512xbf16>
    %c0_372 = arith.constant 0 : index
    %c1_373 = arith.constant 1 : index
    %c5_374 = arith.constant 5 : index
    %c0_375 = arith.constant 0 : index
    %c0_376 = arith.constant 0 : index
    %492 = vector.load %arg4[%c0_372, %c1_373, %c5_374, %c0_375, %c0_376] : memref<1x4x27x4x16xbf16, #tpu.memory_space<vmem>>, vector<1x1x1x4x16xbf16>
    %493 = vector.shape_cast %492 : vector<1x1x1x4x16xbf16> to vector<4x16xbf16>
    %cst_377 = arith.constant dense<0.000000e+00> : vector<4x512xf32>
    %494 = tpu.matmul %493, %491, %cst_377 {dimension_numbers = #tpu.dot_dimension_numbers<[1], [0], [0], [1], [0, 0, 1, 1], [], []>} : vector<4x16xbf16>, vector<16x512xbf16>, vector<4x512xf32> -> vector<4x512xf32>
    %c4_i32_378 = arith.constant 4 : i32
    %495 = vector.broadcast %c4_i32_378 : i32 to vector<1x512xi32>
    %496 = arith.cmpi sge, %3, %495 : vector<1x512xi32>
    %c4_i32_379 = arith.constant 4 : i32
    %497 = vector.broadcast %c4_i32_379 : i32 to vector<1x512xi32>
    %498 = arith.cmpi slt, %5, %497 : vector<1x512xi32>
    %499 = arith.andi %496, %498 : vector<1x512xi1>
    %cst_380 = arith.constant 0.000000e+00 : f32
    %500 = vector.shape_cast %499 : vector<1x512xi1> to vector<1x512xi1>
    %501 = vector.broadcast %500 : vector<1x512xi1> to vector<4x512xi1>
    %502 = vector.broadcast %cst_380 : f32 to vector<4x512xf32>
    %503 = arith.select %501, %494, %502 : vector<4x512xi1>, vector<4x512xf32>
    %504 = arith.addf %489, %503 : vector<4x512xf32>
    %c0_381 = arith.constant 0 : index
    %c0_382 = arith.constant 0 : index
    %c0_383 = arith.constant 0 : index
    %c64 = arith.constant 64 : index
    %505 = vector.load %arg3[%c0_381, %c0_382, %c0_383, %c64] : memref<1x1x16x1152xbf16, #tpu.memory_space<vmem>>, vector<1x1x16x512xbf16>
    %506 = vector.shape_cast %505 : vector<1x1x16x512xbf16> to vector<16x512xbf16>
    %c0_384 = arith.constant 0 : index
    %c1_385 = arith.constant 1 : index
    %c6_386 = arith.constant 6 : index
    %c0_387 = arith.constant 0 : index
    %c0_388 = arith.constant 0 : index
    %507 = vector.load %arg4[%c0_384, %c1_385, %c6_386, %c0_387, %c0_388] : memref<1x4x27x4x16xbf16, #tpu.memory_space<vmem>>, vector<1x1x1x4x16xbf16>
    %508 = vector.shape_cast %507 : vector<1x1x1x4x16xbf16> to vector<4x16xbf16>
    %cst_389 = arith.constant dense<0.000000e+00> : vector<4x512xf32>
    %509 = tpu.matmul %508, %506, %cst_389 {dimension_numbers = #tpu.dot_dimension_numbers<[1], [0], [0], [1], [0, 0, 1, 1], [], []>} : vector<4x16xbf16>, vector<16x512xbf16>, vector<4x512xf32> -> vector<4x512xf32>
    %c4_i32_390 = arith.constant 4 : i32
    %510 = vector.broadcast %c4_i32_390 : i32 to vector<1x512xi32>
    %511 = arith.cmpi sge, %3, %510 : vector<1x512xi32>
    %c4_i32_391 = arith.constant 4 : i32
    %512 = vector.broadcast %c4_i32_391 : i32 to vector<1x512xi32>
    %513 = arith.cmpi slt, %4, %512 : vector<1x512xi32>
    %514 = arith.andi %511, %513 : vector<1x512xi1>
    %c4_i32_392 = arith.constant 4 : i32
    %515 = vector.broadcast %c4_i32_392 : i32 to vector<1x512xi32>
    %516 = arith.cmpi sge, %5, %515 : vector<1x512xi32>
    %517 = arith.andi %514, %516 : vector<1x512xi1>
    %cst_393 = arith.constant 0.000000e+00 : f32
    %518 = vector.shape_cast %517 : vector<1x512xi1> to vector<1x512xi1>
    %519 = vector.broadcast %518 : vector<1x512xi1> to vector<4x512xi1>
    %520 = vector.broadcast %cst_393 : f32 to vector<4x512xf32>
    %521 = arith.select %519, %509, %520 : vector<4x512xi1>, vector<4x512xf32>
    %522 = arith.addf %504, %521 : vector<4x512xf32>
    %c0_394 = arith.constant 0 : index
    %c0_395 = arith.constant 0 : index
    %c0_396 = arith.constant 0 : index
    %c68 = arith.constant 68 : index
    %523 = vector.load %arg3[%c0_394, %c0_395, %c0_396, %c68] : memref<1x1x16x1152xbf16, #tpu.memory_space<vmem>>, vector<1x1x16x512xbf16>
    %524 = vector.shape_cast %523 : vector<1x1x16x512xbf16> to vector<16x512xbf16>
    %c0_397 = arith.constant 0 : index
    %c1_398 = arith.constant 1 : index
    %c7_399 = arith.constant 7 : index
    %c0_400 = arith.constant 0 : index
    %c0_401 = arith.constant 0 : index
    %525 = vector.load %arg4[%c0_397, %c1_398, %c7_399, %c0_400, %c0_401] : memref<1x4x27x4x16xbf16, #tpu.memory_space<vmem>>, vector<1x1x1x4x16xbf16>
    %526 = vector.shape_cast %525 : vector<1x1x1x4x16xbf16> to vector<4x16xbf16>
    %cst_402 = arith.constant dense<0.000000e+00> : vector<4x512xf32>
    %527 = tpu.matmul %526, %524, %cst_402 {dimension_numbers = #tpu.dot_dimension_numbers<[1], [0], [0], [1], [0, 0, 1, 1], [], []>} : vector<4x16xbf16>, vector<16x512xbf16>, vector<4x512xf32> -> vector<4x512xf32>
    %c4_i32_403 = arith.constant 4 : i32
    %528 = vector.broadcast %c4_i32_403 : i32 to vector<1x512xi32>
    %529 = arith.cmpi sge, %3, %528 : vector<1x512xi32>
    %c4_i32_404 = arith.constant 4 : i32
    %530 = vector.broadcast %c4_i32_404 : i32 to vector<1x512xi32>
    %531 = arith.cmpi slt, %4, %530 : vector<1x512xi32>
    %532 = arith.andi %529, %531 : vector<1x512xi1>
    %cst_405 = arith.constant 0.000000e+00 : f32
    %533 = vector.shape_cast %532 : vector<1x512xi1> to vector<1x512xi1>
    %534 = vector.broadcast %533 : vector<1x512xi1> to vector<4x512xi1>
    %535 = vector.broadcast %cst_405 : f32 to vector<4x512xf32>
    %536 = arith.select %534, %527, %535 : vector<4x512xi1>, vector<4x512xf32>
    %537 = arith.addf %522, %536 : vector<4x512xf32>
    %c0_406 = arith.constant 0 : index
    %c0_407 = arith.constant 0 : index
    %c0_408 = arith.constant 0 : index
    %c72 = arith.constant 72 : index
    %538 = vector.load %arg3[%c0_406, %c0_407, %c0_408, %c72] : memref<1x1x16x1152xbf16, #tpu.memory_space<vmem>>, vector<1x1x16x512xbf16>
    %539 = vector.shape_cast %538 : vector<1x1x16x512xbf16> to vector<16x512xbf16>
    %c0_409 = arith.constant 0 : index
    %c1_410 = arith.constant 1 : index
    %c8_411 = arith.constant 8 : index
    %c0_412 = arith.constant 0 : index
    %c0_413 = arith.constant 0 : index
    %540 = vector.load %arg4[%c0_409, %c1_410, %c8_411, %c0_412, %c0_413] : memref<1x4x27x4x16xbf16, #tpu.memory_space<vmem>>, vector<1x1x1x4x16xbf16>
    %541 = vector.shape_cast %540 : vector<1x1x1x4x16xbf16> to vector<4x16xbf16>
    %cst_414 = arith.constant dense<0.000000e+00> : vector<4x512xf32>
    %542 = tpu.matmul %541, %539, %cst_414 {dimension_numbers = #tpu.dot_dimension_numbers<[1], [0], [0], [1], [0, 0, 1, 1], [], []>} : vector<4x16xbf16>, vector<16x512xbf16>, vector<4x512xf32> -> vector<4x512xf32>
    %c4_i32_415 = arith.constant 4 : i32
    %543 = vector.broadcast %c4_i32_415 : i32 to vector<1x512xi32>
    %544 = arith.cmpi sge, %3, %543 : vector<1x512xi32>
    %c4_i32_416 = arith.constant 4 : i32
    %545 = vector.broadcast %c4_i32_416 : i32 to vector<1x512xi32>
    %546 = arith.cmpi slt, %4, %545 : vector<1x512xi32>
    %547 = arith.andi %544, %546 : vector<1x512xi1>
    %c4_i32_417 = arith.constant 4 : i32
    %548 = vector.broadcast %c4_i32_417 : i32 to vector<1x512xi32>
    %549 = arith.cmpi slt, %5, %548 : vector<1x512xi32>
    %550 = arith.andi %547, %549 : vector<1x512xi1>
    %cst_418 = arith.constant 0.000000e+00 : f32
    %551 = vector.shape_cast %550 : vector<1x512xi1> to vector<1x512xi1>
    %552 = vector.broadcast %551 : vector<1x512xi1> to vector<4x512xi1>
    %553 = vector.broadcast %cst_418 : f32 to vector<4x512xf32>
    %554 = arith.select %552, %542, %553 : vector<4x512xi1>, vector<4x512xf32>
    %555 = arith.addf %537, %554 : vector<4x512xf32>
    %c0_419 = arith.constant 0 : index
    %c0_420 = arith.constant 0 : index
    %c0_421 = arith.constant 0 : index
    %c256 = arith.constant 256 : index
    %556 = vector.load %arg3[%c0_419, %c0_420, %c0_421, %c256] : memref<1x1x16x1152xbf16, #tpu.memory_space<vmem>>, vector<1x1x16x512xbf16>
    %557 = vector.shape_cast %556 : vector<1x1x16x512xbf16> to vector<16x512xbf16>
    %c0_422 = arith.constant 0 : index
    %c1_423 = arith.constant 1 : index
    %c9_424 = arith.constant 9 : index
    %c0_425 = arith.constant 0 : index
    %c0_426 = arith.constant 0 : index
    %558 = vector.load %arg4[%c0_422, %c1_423, %c9_424, %c0_425, %c0_426] : memref<1x4x27x4x16xbf16, #tpu.memory_space<vmem>>, vector<1x1x1x4x16xbf16>
    %559 = vector.shape_cast %558 : vector<1x1x1x4x16xbf16> to vector<4x16xbf16>
    %cst_427 = arith.constant dense<0.000000e+00> : vector<4x512xf32>
    %560 = tpu.matmul %559, %557, %cst_427 {dimension_numbers = #tpu.dot_dimension_numbers<[1], [0], [0], [1], [0, 0, 1, 1], [], []>} : vector<4x16xbf16>, vector<16x512xbf16>, vector<4x512xf32> -> vector<4x512xf32>
    %c4_i32_428 = arith.constant 4 : i32
    %561 = vector.broadcast %c4_i32_428 : i32 to vector<1x512xi32>
    %562 = arith.cmpi sge, %4, %561 : vector<1x512xi32>
    %c4_i32_429 = arith.constant 4 : i32
    %563 = vector.broadcast %c4_i32_429 : i32 to vector<1x512xi32>
    %564 = arith.cmpi sge, %5, %563 : vector<1x512xi32>
    %565 = arith.andi %562, %564 : vector<1x512xi1>
    %cst_430 = arith.constant 0.000000e+00 : f32
    %566 = vector.shape_cast %565 : vector<1x512xi1> to vector<1x512xi1>
    %567 = vector.broadcast %566 : vector<1x512xi1> to vector<4x512xi1>
    %568 = vector.broadcast %cst_430 : f32 to vector<4x512xf32>
    %569 = arith.select %567, %560, %568 : vector<4x512xi1>, vector<4x512xf32>
    %570 = arith.addf %555, %569 : vector<4x512xf32>
    %c0_431 = arith.constant 0 : index
    %c0_432 = arith.constant 0 : index
    %c0_433 = arith.constant 0 : index
    %c260 = arith.constant 260 : index
    %571 = vector.load %arg3[%c0_431, %c0_432, %c0_433, %c260] : memref<1x1x16x1152xbf16, #tpu.memory_space<vmem>>, vector<1x1x16x512xbf16>
    %572 = vector.shape_cast %571 : vector<1x1x16x512xbf16> to vector<16x512xbf16>
    %c0_434 = arith.constant 0 : index
    %c1_435 = arith.constant 1 : index
    %c10_436 = arith.constant 10 : index
    %c0_437 = arith.constant 0 : index
    %c0_438 = arith.constant 0 : index
    %573 = vector.load %arg4[%c0_434, %c1_435, %c10_436, %c0_437, %c0_438] : memref<1x4x27x4x16xbf16, #tpu.memory_space<vmem>>, vector<1x1x1x4x16xbf16>
    %574 = vector.shape_cast %573 : vector<1x1x1x4x16xbf16> to vector<4x16xbf16>
    %cst_439 = arith.constant dense<0.000000e+00> : vector<4x512xf32>
    %575 = tpu.matmul %574, %572, %cst_439 {dimension_numbers = #tpu.dot_dimension_numbers<[1], [0], [0], [1], [0, 0, 1, 1], [], []>} : vector<4x16xbf16>, vector<16x512xbf16>, vector<4x512xf32> -> vector<4x512xf32>
    %c4_i32_440 = arith.constant 4 : i32
    %576 = vector.broadcast %c4_i32_440 : i32 to vector<1x512xi32>
    %577 = arith.cmpi sge, %4, %576 : vector<1x512xi32>
    %cst_441 = arith.constant 0.000000e+00 : f32
    %578 = vector.shape_cast %577 : vector<1x512xi1> to vector<1x512xi1>
    %579 = vector.broadcast %578 : vector<1x512xi1> to vector<4x512xi1>
    %580 = vector.broadcast %cst_441 : f32 to vector<4x512xf32>
    %581 = arith.select %579, %575, %580 : vector<4x512xi1>, vector<4x512xf32>
    %582 = arith.addf %570, %581 : vector<4x512xf32>
    %c0_442 = arith.constant 0 : index
    %c0_443 = arith.constant 0 : index
    %c0_444 = arith.constant 0 : index
    %c264 = arith.constant 264 : index
    %583 = vector.load %arg3[%c0_442, %c0_443, %c0_444, %c264] : memref<1x1x16x1152xbf16, #tpu.memory_space<vmem>>, vector<1x1x16x512xbf16>
    %584 = vector.shape_cast %583 : vector<1x1x16x512xbf16> to vector<16x512xbf16>
    %c0_445 = arith.constant 0 : index
    %c1_446 = arith.constant 1 : index
    %c11_447 = arith.constant 11 : index
    %c0_448 = arith.constant 0 : index
    %c0_449 = arith.constant 0 : index
    %585 = vector.load %arg4[%c0_445, %c1_446, %c11_447, %c0_448, %c0_449] : memref<1x4x27x4x16xbf16, #tpu.memory_space<vmem>>, vector<1x1x1x4x16xbf16>
    %586 = vector.shape_cast %585 : vector<1x1x1x4x16xbf16> to vector<4x16xbf16>
    %cst_450 = arith.constant dense<0.000000e+00> : vector<4x512xf32>
    %587 = tpu.matmul %586, %584, %cst_450 {dimension_numbers = #tpu.dot_dimension_numbers<[1], [0], [0], [1], [0, 0, 1, 1], [], []>} : vector<4x16xbf16>, vector<16x512xbf16>, vector<4x512xf32> -> vector<4x512xf32>
    %c4_i32_451 = arith.constant 4 : i32
    %588 = vector.broadcast %c4_i32_451 : i32 to vector<1x512xi32>
    %589 = arith.cmpi sge, %4, %588 : vector<1x512xi32>
    %c4_i32_452 = arith.constant 4 : i32
    %590 = vector.broadcast %c4_i32_452 : i32 to vector<1x512xi32>
    %591 = arith.cmpi slt, %5, %590 : vector<1x512xi32>
    %592 = arith.andi %589, %591 : vector<1x512xi1>
    %cst_453 = arith.constant 0.000000e+00 : f32
    %593 = vector.shape_cast %592 : vector<1x512xi1> to vector<1x512xi1>
    %594 = vector.broadcast %593 : vector<1x512xi1> to vector<4x512xi1>
    %595 = vector.broadcast %cst_453 : f32 to vector<4x512xf32>
    %596 = arith.select %594, %587, %595 : vector<4x512xi1>, vector<4x512xf32>
    %597 = arith.addf %582, %596 : vector<4x512xf32>
    %c0_454 = arith.constant 0 : index
    %c0_455 = arith.constant 0 : index
    %c0_456 = arith.constant 0 : index
    %c288 = arith.constant 288 : index
    %598 = vector.load %arg3[%c0_454, %c0_455, %c0_456, %c288] : memref<1x1x16x1152xbf16, #tpu.memory_space<vmem>>, vector<1x1x16x512xbf16>
    %599 = vector.shape_cast %598 : vector<1x1x16x512xbf16> to vector<16x512xbf16>
    %c0_457 = arith.constant 0 : index
    %c1_458 = arith.constant 1 : index
    %c12_459 = arith.constant 12 : index
    %c0_460 = arith.constant 0 : index
    %c0_461 = arith.constant 0 : index
    %600 = vector.load %arg4[%c0_457, %c1_458, %c12_459, %c0_460, %c0_461] : memref<1x4x27x4x16xbf16, #tpu.memory_space<vmem>>, vector<1x1x1x4x16xbf16>
    %601 = vector.shape_cast %600 : vector<1x1x1x4x16xbf16> to vector<4x16xbf16>
    %cst_462 = arith.constant dense<0.000000e+00> : vector<4x512xf32>
    %602 = tpu.matmul %601, %599, %cst_462 {dimension_numbers = #tpu.dot_dimension_numbers<[1], [0], [0], [1], [0, 0, 1, 1], [], []>} : vector<4x16xbf16>, vector<16x512xbf16>, vector<4x512xf32> -> vector<4x512xf32>
    %c4_i32_463 = arith.constant 4 : i32
    %603 = vector.broadcast %c4_i32_463 : i32 to vector<1x512xi32>
    %604 = arith.cmpi sge, %5, %603 : vector<1x512xi32>
    %cst_464 = arith.constant 0.000000e+00 : f32
    %605 = vector.shape_cast %604 : vector<1x512xi1> to vector<1x512xi1>
    %606 = vector.broadcast %605 : vector<1x512xi1> to vector<4x512xi1>
    %607 = vector.broadcast %cst_464 : f32 to vector<4x512xf32>
    %608 = arith.select %606, %602, %607 : vector<4x512xi1>, vector<4x512xf32>
    %609 = arith.addf %597, %608 : vector<4x512xf32>
    %c0_465 = arith.constant 0 : index
    %c0_466 = arith.constant 0 : index
    %c0_467 = arith.constant 0 : index
    %c292_468 = arith.constant 292 : index
    %610 = vector.load %arg3[%c0_465, %c0_466, %c0_467, %c292_468] : memref<1x1x16x1152xbf16, #tpu.memory_space<vmem>>, vector<1x1x16x512xbf16>
    %611 = vector.shape_cast %610 : vector<1x1x16x512xbf16> to vector<16x512xbf16>
    %c0_469 = arith.constant 0 : index
    %c1_470 = arith.constant 1 : index
    %c13_471 = arith.constant 13 : index
    %c0_472 = arith.constant 0 : index
    %c0_473 = arith.constant 0 : index
    %612 = vector.load %arg4[%c0_469, %c1_470, %c13_471, %c0_472, %c0_473] : memref<1x4x27x4x16xbf16, #tpu.memory_space<vmem>>, vector<1x1x1x4x16xbf16>
    %613 = vector.shape_cast %612 : vector<1x1x1x4x16xbf16> to vector<4x16xbf16>
    %cst_474 = arith.constant dense<0.000000e+00> : vector<4x512xf32>
    %614 = tpu.matmul %613, %611, %cst_474 {dimension_numbers = #tpu.dot_dimension_numbers<[1], [0], [0], [1], [0, 0, 1, 1], [], []>} : vector<4x16xbf16>, vector<16x512xbf16>, vector<4x512xf32> -> vector<4x512xf32>
    %615 = arith.addf %609, %614 : vector<4x512xf32>
    %c0_475 = arith.constant 0 : index
    %c0_476 = arith.constant 0 : index
    %c0_477 = arith.constant 0 : index
    %c296 = arith.constant 296 : index
    %616 = vector.load %arg3[%c0_475, %c0_476, %c0_477, %c296] : memref<1x1x16x1152xbf16, #tpu.memory_space<vmem>>, vector<1x1x16x512xbf16>
    %617 = vector.shape_cast %616 : vector<1x1x16x512xbf16> to vector<16x512xbf16>
    %c0_478 = arith.constant 0 : index
    %c1_479 = arith.constant 1 : index
    %c14_480 = arith.constant 14 : index
    %c0_481 = arith.constant 0 : index
    %c0_482 = arith.constant 0 : index
    %618 = vector.load %arg4[%c0_478, %c1_479, %c14_480, %c0_481, %c0_482] : memref<1x4x27x4x16xbf16, #tpu.memory_space<vmem>>, vector<1x1x1x4x16xbf16>
    %619 = vector.shape_cast %618 : vector<1x1x1x4x16xbf16> to vector<4x16xbf16>
    %cst_483 = arith.constant dense<0.000000e+00> : vector<4x512xf32>
    %620 = tpu.matmul %619, %617, %cst_483 {dimension_numbers = #tpu.dot_dimension_numbers<[1], [0], [0], [1], [0, 0, 1, 1], [], []>} : vector<4x16xbf16>, vector<16x512xbf16>, vector<4x512xf32> -> vector<4x512xf32>
    %c4_i32_484 = arith.constant 4 : i32
    %621 = vector.broadcast %c4_i32_484 : i32 to vector<1x512xi32>
    %622 = arith.cmpi slt, %5, %621 : vector<1x512xi32>
    %cst_485 = arith.constant 0.000000e+00 : f32
    %623 = vector.shape_cast %622 : vector<1x512xi1> to vector<1x512xi1>
    %624 = vector.broadcast %623 : vector<1x512xi1> to vector<4x512xi1>
    %625 = vector.broadcast %cst_485 : f32 to vector<4x512xf32>
    %626 = arith.select %624, %620, %625 : vector<4x512xi1>, vector<4x512xf32>
    %627 = arith.addf %615, %626 : vector<4x512xf32>
    %c0_486 = arith.constant 0 : index
    %c0_487 = arith.constant 0 : index
    %c0_488 = arith.constant 0 : index
    %c320 = arith.constant 320 : index
    %628 = vector.load %arg3[%c0_486, %c0_487, %c0_488, %c320] : memref<1x1x16x1152xbf16, #tpu.memory_space<vmem>>, vector<1x1x16x512xbf16>
    %629 = vector.shape_cast %628 : vector<1x1x16x512xbf16> to vector<16x512xbf16>
    %c0_489 = arith.constant 0 : index
    %c1_490 = arith.constant 1 : index
    %c15_491 = arith.constant 15 : index
    %c0_492 = arith.constant 0 : index
    %c0_493 = arith.constant 0 : index
    %630 = vector.load %arg4[%c0_489, %c1_490, %c15_491, %c0_492, %c0_493] : memref<1x4x27x4x16xbf16, #tpu.memory_space<vmem>>, vector<1x1x1x4x16xbf16>
    %631 = vector.shape_cast %630 : vector<1x1x1x4x16xbf16> to vector<4x16xbf16>
    %cst_494 = arith.constant dense<0.000000e+00> : vector<4x512xf32>
    %632 = tpu.matmul %631, %629, %cst_494 {dimension_numbers = #tpu.dot_dimension_numbers<[1], [0], [0], [1], [0, 0, 1, 1], [], []>} : vector<4x16xbf16>, vector<16x512xbf16>, vector<4x512xf32> -> vector<4x512xf32>
    %c4_i32_495 = arith.constant 4 : i32
    %633 = vector.broadcast %c4_i32_495 : i32 to vector<1x512xi32>
    %634 = arith.cmpi slt, %4, %633 : vector<1x512xi32>
    %c4_i32_496 = arith.constant 4 : i32
    %635 = vector.broadcast %c4_i32_496 : i32 to vector<1x512xi32>
    %636 = arith.cmpi sge, %5, %635 : vector<1x512xi32>
    %637 = arith.andi %634, %636 : vector<1x512xi1>
    %cst_497 = arith.constant 0.000000e+00 : f32
    %638 = vector.shape_cast %637 : vector<1x512xi1> to vector<1x512xi1>
    %639 = vector.broadcast %638 : vector<1x512xi1> to vector<4x512xi1>
    %640 = vector.broadcast %cst_497 : f32 to vector<4x512xf32>
    %641 = arith.select %639, %632, %640 : vector<4x512xi1>, vector<4x512xf32>
    %642 = arith.addf %627, %641 : vector<4x512xf32>
    %c0_498 = arith.constant 0 : index
    %c0_499 = arith.constant 0 : index
    %c0_500 = arith.constant 0 : index
    %c324 = arith.constant 324 : index
    %643 = vector.load %arg3[%c0_498, %c0_499, %c0_500, %c324] : memref<1x1x16x1152xbf16, #tpu.memory_space<vmem>>, vector<1x1x16x512xbf16>
    %644 = vector.shape_cast %643 : vector<1x1x16x512xbf16> to vector<16x512xbf16>
    %c0_501 = arith.constant 0 : index
    %c1_502 = arith.constant 1 : index
    %c16_503 = arith.constant 16 : index
    %c0_504 = arith.constant 0 : index
    %c0_505 = arith.constant 0 : index
    %645 = vector.load %arg4[%c0_501, %c1_502, %c16_503, %c0_504, %c0_505] : memref<1x4x27x4x16xbf16, #tpu.memory_space<vmem>>, vector<1x1x1x4x16xbf16>
    %646 = vector.shape_cast %645 : vector<1x1x1x4x16xbf16> to vector<4x16xbf16>
    %cst_506 = arith.constant dense<0.000000e+00> : vector<4x512xf32>
    %647 = tpu.matmul %646, %644, %cst_506 {dimension_numbers = #tpu.dot_dimension_numbers<[1], [0], [0], [1], [0, 0, 1, 1], [], []>} : vector<4x16xbf16>, vector<16x512xbf16>, vector<4x512xf32> -> vector<4x512xf32>
    %c4_i32_507 = arith.constant 4 : i32
    %648 = vector.broadcast %c4_i32_507 : i32 to vector<1x512xi32>
    %649 = arith.cmpi slt, %4, %648 : vector<1x512xi32>
    %cst_508 = arith.constant 0.000000e+00 : f32
    %650 = vector.shape_cast %649 : vector<1x512xi1> to vector<1x512xi1>
    %651 = vector.broadcast %650 : vector<1x512xi1> to vector<4x512xi1>
    %652 = vector.broadcast %cst_508 : f32 to vector<4x512xf32>
    %653 = arith.select %651, %647, %652 : vector<4x512xi1>, vector<4x512xf32>
    %654 = arith.addf %642, %653 : vector<4x512xf32>
    %c0_509 = arith.constant 0 : index
    %c0_510 = arith.constant 0 : index
    %c0_511 = arith.constant 0 : index
    %c328 = arith.constant 328 : index
    %655 = vector.load %arg3[%c0_509, %c0_510, %c0_511, %c328] : memref<1x1x16x1152xbf16, #tpu.memory_space<vmem>>, vector<1x1x16x512xbf16>
    %656 = vector.shape_cast %655 : vector<1x1x16x512xbf16> to vector<16x512xbf16>
    %c0_512 = arith.constant 0 : index
    %c1_513 = arith.constant 1 : index
    %c17_514 = arith.constant 17 : index
    %c0_515 = arith.constant 0 : index
    %c0_516 = arith.constant 0 : index
    %657 = vector.load %arg4[%c0_512, %c1_513, %c17_514, %c0_515, %c0_516] : memref<1x4x27x4x16xbf16, #tpu.memory_space<vmem>>, vector<1x1x1x4x16xbf16>
    %658 = vector.shape_cast %657 : vector<1x1x1x4x16xbf16> to vector<4x16xbf16>
    %cst_517 = arith.constant dense<0.000000e+00> : vector<4x512xf32>
    %659 = tpu.matmul %658, %656, %cst_517 {dimension_numbers = #tpu.dot_dimension_numbers<[1], [0], [0], [1], [0, 0, 1, 1], [], []>} : vector<4x16xbf16>, vector<16x512xbf16>, vector<4x512xf32> -> vector<4x512xf32>
    %c4_i32_518 = arith.constant 4 : i32
    %660 = vector.broadcast %c4_i32_518 : i32 to vector<1x512xi32>
    %661 = arith.cmpi slt, %4, %660 : vector<1x512xi32>
    %c4_i32_519 = arith.constant 4 : i32
    %662 = vector.broadcast %c4_i32_519 : i32 to vector<1x512xi32>
    %663 = arith.cmpi slt, %5, %662 : vector<1x512xi32>
    %664 = arith.andi %661, %663 : vector<1x512xi1>
    %cst_520 = arith.constant 0.000000e+00 : f32
    %665 = vector.shape_cast %664 : vector<1x512xi1> to vector<1x512xi1>
    %666 = vector.broadcast %665 : vector<1x512xi1> to vector<4x512xi1>
    %667 = vector.broadcast %cst_520 : f32 to vector<4x512xf32>
    %668 = arith.select %666, %659, %667 : vector<4x512xi1>, vector<4x512xf32>
    %669 = arith.addf %654, %668 : vector<4x512xf32>
    %c0_521 = arith.constant 0 : index
    %c0_522 = arith.constant 0 : index
    %c0_523 = arith.constant 0 : index
    %c512 = arith.constant 512 : index
    %670 = vector.load %arg3[%c0_521, %c0_522, %c0_523, %c512] : memref<1x1x16x1152xbf16, #tpu.memory_space<vmem>>, vector<1x1x16x512xbf16>
    %671 = vector.shape_cast %670 : vector<1x1x16x512xbf16> to vector<16x512xbf16>
    %c0_524 = arith.constant 0 : index
    %c1_525 = arith.constant 1 : index
    %c18_526 = arith.constant 18 : index
    %c0_527 = arith.constant 0 : index
    %c0_528 = arith.constant 0 : index
    %672 = vector.load %arg4[%c0_524, %c1_525, %c18_526, %c0_527, %c0_528] : memref<1x4x27x4x16xbf16, #tpu.memory_space<vmem>>, vector<1x1x1x4x16xbf16>
    %673 = vector.shape_cast %672 : vector<1x1x1x4x16xbf16> to vector<4x16xbf16>
    %cst_529 = arith.constant dense<0.000000e+00> : vector<4x512xf32>
    %674 = tpu.matmul %673, %671, %cst_529 {dimension_numbers = #tpu.dot_dimension_numbers<[1], [0], [0], [1], [0, 0, 1, 1], [], []>} : vector<4x16xbf16>, vector<16x512xbf16>, vector<4x512xf32> -> vector<4x512xf32>
    %c4_i32_530 = arith.constant 4 : i32
    %675 = vector.broadcast %c4_i32_530 : i32 to vector<1x512xi32>
    %676 = arith.cmpi slt, %3, %675 : vector<1x512xi32>
    %c4_i32_531 = arith.constant 4 : i32
    %677 = vector.broadcast %c4_i32_531 : i32 to vector<1x512xi32>
    %678 = arith.cmpi sge, %4, %677 : vector<1x512xi32>
    %679 = arith.andi %676, %678 : vector<1x512xi1>
    %c4_i32_532 = arith.constant 4 : i32
    %680 = vector.broadcast %c4_i32_532 : i32 to vector<1x512xi32>
    %681 = arith.cmpi sge, %5, %680 : vector<1x512xi32>
    %682 = arith.andi %679, %681 : vector<1x512xi1>
    %cst_533 = arith.constant 0.000000e+00 : f32
    %683 = vector.shape_cast %682 : vector<1x512xi1> to vector<1x512xi1>
    %684 = vector.broadcast %683 : vector<1x512xi1> to vector<4x512xi1>
    %685 = vector.broadcast %cst_533 : f32 to vector<4x512xf32>
    %686 = arith.select %684, %674, %685 : vector<4x512xi1>, vector<4x512xf32>
    %687 = arith.addf %669, %686 : vector<4x512xf32>
    %c0_534 = arith.constant 0 : index
    %c0_535 = arith.constant 0 : index
    %c0_536 = arith.constant 0 : index
    %c516 = arith.constant 516 : index
    %688 = vector.load %arg3[%c0_534, %c0_535, %c0_536, %c516] : memref<1x1x16x1152xbf16, #tpu.memory_space<vmem>>, vector<1x1x16x512xbf16>
    %689 = vector.shape_cast %688 : vector<1x1x16x512xbf16> to vector<16x512xbf16>
    %c0_537 = arith.constant 0 : index
    %c1_538 = arith.constant 1 : index
    %c19_539 = arith.constant 19 : index
    %c0_540 = arith.constant 0 : index
    %c0_541 = arith.constant 0 : index
    %690 = vector.load %arg4[%c0_537, %c1_538, %c19_539, %c0_540, %c0_541] : memref<1x4x27x4x16xbf16, #tpu.memory_space<vmem>>, vector<1x1x1x4x16xbf16>
    %691 = vector.shape_cast %690 : vector<1x1x1x4x16xbf16> to vector<4x16xbf16>
    %cst_542 = arith.constant dense<0.000000e+00> : vector<4x512xf32>
    %692 = tpu.matmul %691, %689, %cst_542 {dimension_numbers = #tpu.dot_dimension_numbers<[1], [0], [0], [1], [0, 0, 1, 1], [], []>} : vector<4x16xbf16>, vector<16x512xbf16>, vector<4x512xf32> -> vector<4x512xf32>
    %c4_i32_543 = arith.constant 4 : i32
    %693 = vector.broadcast %c4_i32_543 : i32 to vector<1x512xi32>
    %694 = arith.cmpi slt, %3, %693 : vector<1x512xi32>
    %c4_i32_544 = arith.constant 4 : i32
    %695 = vector.broadcast %c4_i32_544 : i32 to vector<1x512xi32>
    %696 = arith.cmpi sge, %4, %695 : vector<1x512xi32>
    %697 = arith.andi %694, %696 : vector<1x512xi1>
    %cst_545 = arith.constant 0.000000e+00 : f32
    %698 = vector.shape_cast %697 : vector<1x512xi1> to vector<1x512xi1>
    %699 = vector.broadcast %698 : vector<1x512xi1> to vector<4x512xi1>
    %700 = vector.broadcast %cst_545 : f32 to vector<4x512xf32>
    %701 = arith.select %699, %692, %700 : vector<4x512xi1>, vector<4x512xf32>
    %702 = arith.addf %687, %701 : vector<4x512xf32>
    %c0_546 = arith.constant 0 : index
    %c0_547 = arith.constant 0 : index
    %c0_548 = arith.constant 0 : index
    %c520 = arith.constant 520 : index
    %703 = vector.load %arg3[%c0_546, %c0_547, %c0_548, %c520] : memref<1x1x16x1152xbf16, #tpu.memory_space<vmem>>, vector<1x1x16x512xbf16>
    %704 = vector.shape_cast %703 : vector<1x1x16x512xbf16> to vector<16x512xbf16>
    %c0_549 = arith.constant 0 : index
    %c1_550 = arith.constant 1 : index
    %c20_551 = arith.constant 20 : index
    %c0_552 = arith.constant 0 : index
    %c0_553 = arith.constant 0 : index
    %705 = vector.load %arg4[%c0_549, %c1_550, %c20_551, %c0_552, %c0_553] : memref<1x4x27x4x16xbf16, #tpu.memory_space<vmem>>, vector<1x1x1x4x16xbf16>
    %706 = vector.shape_cast %705 : vector<1x1x1x4x16xbf16> to vector<4x16xbf16>
    %cst_554 = arith.constant dense<0.000000e+00> : vector<4x512xf32>
    %707 = tpu.matmul %706, %704, %cst_554 {dimension_numbers = #tpu.dot_dimension_numbers<[1], [0], [0], [1], [0, 0, 1, 1], [], []>} : vector<4x16xbf16>, vector<16x512xbf16>, vector<4x512xf32> -> vector<4x512xf32>
    %c4_i32_555 = arith.constant 4 : i32
    %708 = vector.broadcast %c4_i32_555 : i32 to vector<1x512xi32>
    %709 = arith.cmpi slt, %3, %708 : vector<1x512xi32>
    %c4_i32_556 = arith.constant 4 : i32
    %710 = vector.broadcast %c4_i32_556 : i32 to vector<1x512xi32>
    %711 = arith.cmpi sge, %4, %710 : vector<1x512xi32>
    %712 = arith.andi %709, %711 : vector<1x512xi1>
    %c4_i32_557 = arith.constant 4 : i32
    %713 = vector.broadcast %c4_i32_557 : i32 to vector<1x512xi32>
    %714 = arith.cmpi slt, %5, %713 : vector<1x512xi32>
    %715 = arith.andi %712, %714 : vector<1x512xi1>
    %cst_558 = arith.constant 0.000000e+00 : f32
    %716 = vector.shape_cast %715 : vector<1x512xi1> to vector<1x512xi1>
    %717 = vector.broadcast %716 : vector<1x512xi1> to vector<4x512xi1>
    %718 = vector.broadcast %cst_558 : f32 to vector<4x512xf32>
    %719 = arith.select %717, %707, %718 : vector<4x512xi1>, vector<4x512xf32>
    %720 = arith.addf %702, %719 : vector<4x512xf32>
    %c0_559 = arith.constant 0 : index
    %c0_560 = arith.constant 0 : index
    %c0_561 = arith.constant 0 : index
    %c544 = arith.constant 544 : index
    %721 = vector.load %arg3[%c0_559, %c0_560, %c0_561, %c544] : memref<1x1x16x1152xbf16, #tpu.memory_space<vmem>>, vector<1x1x16x512xbf16>
    %722 = vector.shape_cast %721 : vector<1x1x16x512xbf16> to vector<16x512xbf16>
    %c0_562 = arith.constant 0 : index
    %c1_563 = arith.constant 1 : index
    %c21_564 = arith.constant 21 : index
    %c0_565 = arith.constant 0 : index
    %c0_566 = arith.constant 0 : index
    %723 = vector.load %arg4[%c0_562, %c1_563, %c21_564, %c0_565, %c0_566] : memref<1x4x27x4x16xbf16, #tpu.memory_space<vmem>>, vector<1x1x1x4x16xbf16>
    %724 = vector.shape_cast %723 : vector<1x1x1x4x16xbf16> to vector<4x16xbf16>
    %cst_567 = arith.constant dense<0.000000e+00> : vector<4x512xf32>
    %725 = tpu.matmul %724, %722, %cst_567 {dimension_numbers = #tpu.dot_dimension_numbers<[1], [0], [0], [1], [0, 0, 1, 1], [], []>} : vector<4x16xbf16>, vector<16x512xbf16>, vector<4x512xf32> -> vector<4x512xf32>
    %c4_i32_568 = arith.constant 4 : i32
    %726 = vector.broadcast %c4_i32_568 : i32 to vector<1x512xi32>
    %727 = arith.cmpi slt, %3, %726 : vector<1x512xi32>
    %c4_i32_569 = arith.constant 4 : i32
    %728 = vector.broadcast %c4_i32_569 : i32 to vector<1x512xi32>
    %729 = arith.cmpi sge, %5, %728 : vector<1x512xi32>
    %730 = arith.andi %727, %729 : vector<1x512xi1>
    %cst_570 = arith.constant 0.000000e+00 : f32
    %731 = vector.shape_cast %730 : vector<1x512xi1> to vector<1x512xi1>
    %732 = vector.broadcast %731 : vector<1x512xi1> to vector<4x512xi1>
    %733 = vector.broadcast %cst_570 : f32 to vector<4x512xf32>
    %734 = arith.select %732, %725, %733 : vector<4x512xi1>, vector<4x512xf32>
    %735 = arith.addf %720, %734 : vector<4x512xf32>
    %c0_571 = arith.constant 0 : index
    %c0_572 = arith.constant 0 : index
    %c0_573 = arith.constant 0 : index
    %c548 = arith.constant 548 : index
    %736 = vector.load %arg3[%c0_571, %c0_572, %c0_573, %c548] : memref<1x1x16x1152xbf16, #tpu.memory_space<vmem>>, vector<1x1x16x512xbf16>
    %737 = vector.shape_cast %736 : vector<1x1x16x512xbf16> to vector<16x512xbf16>
    %c0_574 = arith.constant 0 : index
    %c1_575 = arith.constant 1 : index
    %c22_576 = arith.constant 22 : index
    %c0_577 = arith.constant 0 : index
    %c0_578 = arith.constant 0 : index
    %738 = vector.load %arg4[%c0_574, %c1_575, %c22_576, %c0_577, %c0_578] : memref<1x4x27x4x16xbf16, #tpu.memory_space<vmem>>, vector<1x1x1x4x16xbf16>
    %739 = vector.shape_cast %738 : vector<1x1x1x4x16xbf16> to vector<4x16xbf16>
    %cst_579 = arith.constant dense<0.000000e+00> : vector<4x512xf32>
    %740 = tpu.matmul %739, %737, %cst_579 {dimension_numbers = #tpu.dot_dimension_numbers<[1], [0], [0], [1], [0, 0, 1, 1], [], []>} : vector<4x16xbf16>, vector<16x512xbf16>, vector<4x512xf32> -> vector<4x512xf32>
    %c4_i32_580 = arith.constant 4 : i32
    %741 = vector.broadcast %c4_i32_580 : i32 to vector<1x512xi32>
    %742 = arith.cmpi slt, %3, %741 : vector<1x512xi32>
    %cst_581 = arith.constant 0.000000e+00 : f32
    %743 = vector.shape_cast %742 : vector<1x512xi1> to vector<1x512xi1>
    %744 = vector.broadcast %743 : vector<1x512xi1> to vector<4x512xi1>
    %745 = vector.broadcast %cst_581 : f32 to vector<4x512xf32>
    %746 = arith.select %744, %740, %745 : vector<4x512xi1>, vector<4x512xf32>
    %747 = arith.addf %735, %746 : vector<4x512xf32>
    %c0_582 = arith.constant 0 : index
    %c0_583 = arith.constant 0 : index
    %c0_584 = arith.constant 0 : index
    %c552 = arith.constant 552 : index
    %748 = vector.load %arg3[%c0_582, %c0_583, %c0_584, %c552] : memref<1x1x16x1152xbf16, #tpu.memory_space<vmem>>, vector<1x1x16x512xbf16>
    %749 = vector.shape_cast %748 : vector<1x1x16x512xbf16> to vector<16x512xbf16>
    %c0_585 = arith.constant 0 : index
    %c1_586 = arith.constant 1 : index
    %c23_587 = arith.constant 23 : index
    %c0_588 = arith.constant 0 : index
    %c0_589 = arith.constant 0 : index
    %750 = vector.load %arg4[%c0_585, %c1_586, %c23_587, %c0_588, %c0_589] : memref<1x4x27x4x16xbf16, #tpu.memory_space<vmem>>, vector<1x1x1x4x16xbf16>
    %751 = vector.shape_cast %750 : vector<1x1x1x4x16xbf16> to vector<4x16xbf16>
    %cst_590 = arith.constant dense<0.000000e+00> : vector<4x512xf32>
    %752 = tpu.matmul %751, %749, %cst_590 {dimension_numbers = #tpu.dot_dimension_numbers<[1], [0], [0], [1], [0, 0, 1, 1], [], []>} : vector<4x16xbf16>, vector<16x512xbf16>, vector<4x512xf32> -> vector<4x512xf32>
    %c4_i32_591 = arith.constant 4 : i32
    %753 = vector.broadcast %c4_i32_591 : i32 to vector<1x512xi32>
    %754 = arith.cmpi slt, %3, %753 : vector<1x512xi32>
    %c4_i32_592 = arith.constant 4 : i32
    %755 = vector.broadcast %c4_i32_592 : i32 to vector<1x512xi32>
    %756 = arith.cmpi slt, %5, %755 : vector<1x512xi32>
    %757 = arith.andi %754, %756 : vector<1x512xi1>
    %cst_593 = arith.constant 0.000000e+00 : f32
    %758 = vector.shape_cast %757 : vector<1x512xi1> to vector<1x512xi1>
    %759 = vector.broadcast %758 : vector<1x512xi1> to vector<4x512xi1>
    %760 = vector.broadcast %cst_593 : f32 to vector<4x512xf32>
    %761 = arith.select %759, %752, %760 : vector<4x512xi1>, vector<4x512xf32>
    %762 = arith.addf %747, %761 : vector<4x512xf32>
    %c0_594 = arith.constant 0 : index
    %c0_595 = arith.constant 0 : index
    %c0_596 = arith.constant 0 : index
    %c576 = arith.constant 576 : index
    %763 = vector.load %arg3[%c0_594, %c0_595, %c0_596, %c576] : memref<1x1x16x1152xbf16, #tpu.memory_space<vmem>>, vector<1x1x16x512xbf16>
    %764 = vector.shape_cast %763 : vector<1x1x16x512xbf16> to vector<16x512xbf16>
    %c0_597 = arith.constant 0 : index
    %c1_598 = arith.constant 1 : index
    %c24_599 = arith.constant 24 : index
    %c0_600 = arith.constant 0 : index
    %c0_601 = arith.constant 0 : index
    %765 = vector.load %arg4[%c0_597, %c1_598, %c24_599, %c0_600, %c0_601] : memref<1x4x27x4x16xbf16, #tpu.memory_space<vmem>>, vector<1x1x1x4x16xbf16>
    %766 = vector.shape_cast %765 : vector<1x1x1x4x16xbf16> to vector<4x16xbf16>
    %cst_602 = arith.constant dense<0.000000e+00> : vector<4x512xf32>
    %767 = tpu.matmul %766, %764, %cst_602 {dimension_numbers = #tpu.dot_dimension_numbers<[1], [0], [0], [1], [0, 0, 1, 1], [], []>} : vector<4x16xbf16>, vector<16x512xbf16>, vector<4x512xf32> -> vector<4x512xf32>
    %c4_i32_603 = arith.constant 4 : i32
    %768 = vector.broadcast %c4_i32_603 : i32 to vector<1x512xi32>
    %769 = arith.cmpi slt, %3, %768 : vector<1x512xi32>
    %c4_i32_604 = arith.constant 4 : i32
    %770 = vector.broadcast %c4_i32_604 : i32 to vector<1x512xi32>
    %771 = arith.cmpi slt, %4, %770 : vector<1x512xi32>
    %772 = arith.andi %769, %771 : vector<1x512xi1>
    %c4_i32_605 = arith.constant 4 : i32
    %773 = vector.broadcast %c4_i32_605 : i32 to vector<1x512xi32>
    %774 = arith.cmpi sge, %5, %773 : vector<1x512xi32>
    %775 = arith.andi %772, %774 : vector<1x512xi1>
    %cst_606 = arith.constant 0.000000e+00 : f32
    %776 = vector.shape_cast %775 : vector<1x512xi1> to vector<1x512xi1>
    %777 = vector.broadcast %776 : vector<1x512xi1> to vector<4x512xi1>
    %778 = vector.broadcast %cst_606 : f32 to vector<4x512xf32>
    %779 = arith.select %777, %767, %778 : vector<4x512xi1>, vector<4x512xf32>
    %780 = arith.addf %762, %779 : vector<4x512xf32>
    %c0_607 = arith.constant 0 : index
    %c0_608 = arith.constant 0 : index
    %c0_609 = arith.constant 0 : index
    %c580 = arith.constant 580 : index
    %781 = vector.load %arg3[%c0_607, %c0_608, %c0_609, %c580] : memref<1x1x16x1152xbf16, #tpu.memory_space<vmem>>, vector<1x1x16x512xbf16>
    %782 = vector.shape_cast %781 : vector<1x1x16x512xbf16> to vector<16x512xbf16>
    %c0_610 = arith.constant 0 : index
    %c1_611 = arith.constant 1 : index
    %c25_612 = arith.constant 25 : index
    %c0_613 = arith.constant 0 : index
    %c0_614 = arith.constant 0 : index
    %783 = vector.load %arg4[%c0_610, %c1_611, %c25_612, %c0_613, %c0_614] : memref<1x4x27x4x16xbf16, #tpu.memory_space<vmem>>, vector<1x1x1x4x16xbf16>
    %784 = vector.shape_cast %783 : vector<1x1x1x4x16xbf16> to vector<4x16xbf16>
    %cst_615 = arith.constant dense<0.000000e+00> : vector<4x512xf32>
    %785 = tpu.matmul %784, %782, %cst_615 {dimension_numbers = #tpu.dot_dimension_numbers<[1], [0], [0], [1], [0, 0, 1, 1], [], []>} : vector<4x16xbf16>, vector<16x512xbf16>, vector<4x512xf32> -> vector<4x512xf32>
    %c4_i32_616 = arith.constant 4 : i32
    %786 = vector.broadcast %c4_i32_616 : i32 to vector<1x512xi32>
    %787 = arith.cmpi slt, %3, %786 : vector<1x512xi32>
    %c4_i32_617 = arith.constant 4 : i32
    %788 = vector.broadcast %c4_i32_617 : i32 to vector<1x512xi32>
    %789 = arith.cmpi slt, %4, %788 : vector<1x512xi32>
    %790 = arith.andi %787, %789 : vector<1x512xi1>
    %cst_618 = arith.constant 0.000000e+00 : f32
    %791 = vector.shape_cast %790 : vector<1x512xi1> to vector<1x512xi1>
    %792 = vector.broadcast %791 : vector<1x512xi1> to vector<4x512xi1>
    %793 = vector.broadcast %cst_618 : f32 to vector<4x512xf32>
    %794 = arith.select %792, %785, %793 : vector<4x512xi1>, vector<4x512xf32>
    %795 = arith.addf %780, %794 : vector<4x512xf32>
    %c0_619 = arith.constant 0 : index
    %c0_620 = arith.constant 0 : index
    %c0_621 = arith.constant 0 : index
    %c584 = arith.constant 584 : index
    %796 = vector.load %arg3[%c0_619, %c0_620, %c0_621, %c584] : memref<1x1x16x1152xbf16, #tpu.memory_space<vmem>>, vector<1x1x16x512xbf16>
    %797 = vector.shape_cast %796 : vector<1x1x16x512xbf16> to vector<16x512xbf16>
    %c0_622 = arith.constant 0 : index
    %c1_623 = arith.constant 1 : index
    %c26_624 = arith.constant 26 : index
    %c0_625 = arith.constant 0 : index
    %c0_626 = arith.constant 0 : index
    %798 = vector.load %arg4[%c0_622, %c1_623, %c26_624, %c0_625, %c0_626] : memref<1x4x27x4x16xbf16, #tpu.memory_space<vmem>>, vector<1x1x1x4x16xbf16>
    %799 = vector.shape_cast %798 : vector<1x1x1x4x16xbf16> to vector<4x16xbf16>
    %cst_627 = arith.constant dense<0.000000e+00> : vector<4x512xf32>
    %800 = tpu.matmul %799, %797, %cst_627 {dimension_numbers = #tpu.dot_dimension_numbers<[1], [0], [0], [1], [0, 0, 1, 1], [], []>} : vector<4x16xbf16>, vector<16x512xbf16>, vector<4x512xf32> -> vector<4x512xf32>
    %c4_i32_628 = arith.constant 4 : i32
    %801 = vector.broadcast %c4_i32_628 : i32 to vector<1x512xi32>
    %802 = arith.cmpi slt, %3, %801 : vector<1x512xi32>
    %c4_i32_629 = arith.constant 4 : i32
    %803 = vector.broadcast %c4_i32_629 : i32 to vector<1x512xi32>
    %804 = arith.cmpi slt, %4, %803 : vector<1x512xi32>
    %805 = arith.andi %802, %804 : vector<1x512xi1>
    %c4_i32_630 = arith.constant 4 : i32
    %806 = vector.broadcast %c4_i32_630 : i32 to vector<1x512xi32>
    %807 = arith.cmpi slt, %5, %806 : vector<1x512xi32>
    %808 = arith.andi %805, %807 : vector<1x512xi1>
    %cst_631 = arith.constant 0.000000e+00 : f32
    %809 = vector.shape_cast %808 : vector<1x512xi1> to vector<1x512xi1>
    %810 = vector.broadcast %809 : vector<1x512xi1> to vector<4x512xi1>
    %811 = vector.broadcast %cst_631 : f32 to vector<4x512xf32>
    %812 = arith.select %810, %800, %811 : vector<4x512xi1>, vector<4x512xf32>
    %813 = arith.addf %795, %812 : vector<4x512xf32>
    %c1_632 = arith.constant 1 : index
    %c0_633 = arith.constant 0 : index
    %c0_634 = arith.constant 0 : index
    %814 = vector.load %arg7[%c1_632, %c0_633, %c0_634] : memref<4x4x512xf32, #tpu.memory_space<vmem>>, vector<1x4x512xf32>
    %815 = vector.shape_cast %814 : vector<1x4x512xf32> to vector<4x512xf32>
    %816 = arith.addf %815, %813 : vector<4x512xf32>
    %c1_635 = arith.constant 1 : index
    %c0_636 = arith.constant 0 : index
    %c0_637 = arith.constant 0 : index
    %817 = vector.load %arg7[%c1_635, %c0_636, %c0_637] : memref<4x4x512xf32, #tpu.memory_space<vmem>>, vector<1x4x512xf32>
    %818 = vector.shape_cast %817 : vector<1x4x512xf32> to vector<4x512xf32>
    %819 = vector.shape_cast %816 : vector<4x512xf32> to vector<1x4x512xf32>
    tpu.vector_store %arg7[%c1_635, %c0_636, %c0_637], %819 {strides = array<i32>} : memref<4x4x512xf32, #tpu.memory_space<vmem>>, vector<1x4x512xf32>,
    %c0_638 = arith.constant 0 : index
    %c0_639 = arith.constant 0 : index
    %c0_640 = arith.constant 0 : index
    %c292_641 = arith.constant 292 : index
    %820 = vector.load %arg3[%c0_638, %c0_639, %c0_640, %c292_641] : memref<1x1x16x1152xbf16, #tpu.memory_space<vmem>>, vector<1x1x16x512xbf16>
    %821 = vector.shape_cast %820 : vector<1x1x16x512xbf16> to vector<16x512xbf16>
    %c0_642 = arith.constant 0 : index
    %c2_643 = arith.constant 2 : index
    %c13_644 = arith.constant 13 : index
    %c0_645 = arith.constant 0 : index
    %c0_646 = arith.constant 0 : index
    %822 = vector.load %arg4[%c0_642, %c2_643, %c13_644, %c0_645, %c0_646] : memref<1x4x27x4x16xbf16, #tpu.memory_space<vmem>>, vector<1x1x1x4x16xbf16>
    %823 = vector.shape_cast %822 : vector<1x1x1x4x16xbf16> to vector<4x16xbf16>
    %cst_647 = arith.constant dense<0.000000e+00> : vector<4x512xf32>
    %824 = tpu.matmul %823, %821, %cst_647 {dimension_numbers = #tpu.dot_dimension_numbers<[1], [0], [0], [1], [0, 0, 1, 1], [], []>} : vector<4x16xbf16>, vector<16x512xbf16>, vector<4x512xf32> -> vector<4x512xf32>
    %c2_648 = arith.constant 2 : index
    %c0_649 = arith.constant 0 : index
    %c0_650 = arith.constant 0 : index
    %825 = vector.load %arg7[%c2_648, %c0_649, %c0_650] : memref<4x4x512xf32, #tpu.memory_space<vmem>>, vector<1x4x512xf32>
    %826 = vector.shape_cast %825 : vector<1x4x512xf32> to vector<4x512xf32>
    %827 = arith.addf %826, %824 : vector<4x512xf32>
    %c2_651 = arith.constant 2 : index
    %c0_652 = arith.constant 0 : index
    %c0_653 = arith.constant 0 : index
    %828 = vector.load %arg7[%c2_651, %c0_652, %c0_653] : memref<4x4x512xf32, #tpu.memory_space<vmem>>, vector<1x4x512xf32>
    %829 = vector.shape_cast %828 : vector<1x4x512xf32> to vector<4x512xf32>
    %830 = vector.shape_cast %827 : vector<4x512xf32> to vector<1x4x512xf32>
    tpu.vector_store %arg7[%c2_651, %c0_652, %c0_653], %830 {strides = array<i32>} : memref<4x4x512xf32, #tpu.memory_space<vmem>>, vector<1x4x512xf32>,
    %c0_654 = arith.constant 0 : index
    %c0_655 = arith.constant 0 : index
    %c0_656 = arith.constant 0 : index
    %c292_657 = arith.constant 292 : index
    %831 = vector.load %arg3[%c0_654, %c0_655, %c0_656, %c292_657] : memref<1x1x16x1152xbf16, #tpu.memory_space<vmem>>, vector<1x1x16x512xbf16>
    %832 = vector.shape_cast %831 : vector<1x1x16x512xbf16> to vector<16x512xbf16>
    %c0_658 = arith.constant 0 : index
    %c3_659 = arith.constant 3 : index
    %c13_660 = arith.constant 13 : index
    %c0_661 = arith.constant 0 : index
    %c0_662 = arith.constant 0 : index
    %833 = vector.load %arg4[%c0_658, %c3_659, %c13_660, %c0_661, %c0_662] : memref<1x4x27x4x16xbf16, #tpu.memory_space<vmem>>, vector<1x1x1x4x16xbf16>
    %834 = vector.shape_cast %833 : vector<1x1x1x4x16xbf16> to vector<4x16xbf16>
    %cst_663 = arith.constant dense<0.000000e+00> : vector<4x512xf32>
    %835 = tpu.matmul %834, %832, %cst_663 {dimension_numbers = #tpu.dot_dimension_numbers<[1], [0], [0], [1], [0, 0, 1, 1], [], []>} : vector<4x16xbf16>, vector<16x512xbf16>, vector<4x512xf32> -> vector<4x512xf32>
    %c3_664 = arith.constant 3 : index
    %c0_665 = arith.constant 0 : index
    %c0_666 = arith.constant 0 : index
    %836 = vector.load %arg7[%c3_664, %c0_665, %c0_666] : memref<4x4x512xf32, #tpu.memory_space<vmem>>, vector<1x4x512xf32>
    %837 = vector.shape_cast %836 : vector<1x4x512xf32> to vector<4x512xf32>
    %838 = arith.addf %837, %835 : vector<4x512xf32>
    %c3_667 = arith.constant 3 : index
    %c0_668 = arith.constant 0 : index
    %c0_669 = arith.constant 0 : index
    %839 = vector.load %arg7[%c3_667, %c0_668, %c0_669] : memref<4x4x512xf32, #tpu.memory_space<vmem>>, vector<1x4x512xf32>
    %840 = vector.shape_cast %839 : vector<1x4x512xf32> to vector<4x512xf32>
    %841 = vector.shape_cast %838 : vector<4x512xf32> to vector<1x4x512xf32>
    tpu.vector_store %arg7[%c3_667, %c0_668, %c0_669], %841 {strides = array<i32>} : memref<4x4x512xf32, #tpu.memory_space<vmem>>, vector<1x4x512xf32>,
    %c1_i32_670 = arith.constant 1 : i32
    %842 = arith.cmpi eq, %arg1, %c1_i32_670 : i32
    %843 = arith.extui %842 : i1 to i32
    %c0_i32_671 = arith.constant 0 : i32
    %844 = arith.cmpi ne, %843, %c0_i32_671 : i32
    scf.if %844 {
      %c0_672 = arith.constant 0 : index
      %c0_673 = arith.constant 0 : index
      %c0_674 = arith.constant 0 : index
      %845 = vector.load %arg7[%c0_672, %c0_673, %c0_674] : memref<4x4x512xf32, #tpu.memory_space<vmem>>, vector<4x4x512xf32>
      %c0_675 = arith.constant 0 : index
      %c0_676 = arith.constant 0 : index
      %c0_677 = arith.constant 0 : index
      %846 = vector.load %arg5[%c0_675, %c0_676, %c0_677] : memref<4x4x1xf32, #tpu.memory_space<vmem>>, vector<4x4x1xf32>
      %847 = vector.broadcast %846 : vector<4x4x1xf32> to vector<4x4x512xf32>
      %848 = arith.addf %845, %847 : vector<4x4x512xf32>
      %cst_678 = arith.constant 0.000000e+00 : f32
      %849 = vector.broadcast %cst_678 : f32 to vector<4x4x512xf32>
      %850 = arith.maximumf %848, %849 : vector<4x4x512xf32>
      %851 = arith.truncf %850 : vector<4x4x512xf32> to vector<4x4x512xbf16>
      %c0_679 = arith.constant 0 : index
      %c0_680 = arith.constant 0 : index
      %c0_681 = arith.constant 0 : index
      %c0_682 = arith.constant 0 : index
      %852 = vector.load %arg6[%c0_679, %c0_680, %c0_681, %c0_682] : memref<1x4x4x512xbf16, #tpu.memory_space<vmem>>, vector<1x4x4x512xbf16>
      %853 = vector.shape_cast %852 : vector<1x4x4x512xbf16> to vector<4x4x512xbf16>
      %854 = vector.shape_cast %851 : vector<4x4x512xbf16> to vector<1x4x4x512xbf16>
      tpu.vector_store %arg6[%c0_679, %c0_680, %c0_681, %c0_682], %854 {strides = array<i32>} : memref<1x4x4x512xbf16, #tpu.memory_space<vmem>>, vector<1x4x4x512xbf16>,
    } else {
    }
    return
  }
  func.func @transform_0(%arg0: i32, %arg1: i32) -> (i32, i32) {
    %c0_i32 = arith.constant 0 : i32
    %c0_i32_0 = arith.constant 0 : i32
    %c0_i32_1 = arith.constant 0 : i32
    return %c0_i32, %c0_i32_0 : i32, i32
  }
  func.func @transform_1(%arg0: i32, %arg1: i32) -> (i32, i32, i32, i32) {
    %c0_i32 = arith.constant 0 : i32
    %c0_i32_0 = arith.constant 0 : i32
    %c0_i32_1 = arith.constant 0 : i32
    return %arg0, %arg1, %c0_i32, %c0_i32_0 : i32, i32, i32, i32
  }
  func.func @transform_2(%arg0: i32, %arg1: i32) -> (i32, i32, i32, i32, i32) {
    %c0_i32 = arith.constant 0 : i32
    %c0_i32_0 = arith.constant 0 : i32
    %c0_i32_1 = arith.constant 0 : i32
    %c0_i32_2 = arith.constant 0 : i32
    %c0_i32_3 = arith.constant 0 : i32
    return %arg1, %c0_i32, %c0_i32_0, %c0_i32_1, %c0_i32_2 : i32, i32, i32, i32, i32
  }
  func.func @transform_3(%arg0: i32, %arg1: i32) -> (i32, i32, i32) {
    %c0_i32 = arith.constant 0 : i32
    %c0_i32_0 = arith.constant 0 : i32
    %c0_i32_1 = arith.constant 0 : i32
    %c0_i32_2 = arith.constant 0 : i32
    return %c0_i32, %c0_i32_0, %c0_i32_1 : i32, i32, i32
  }
  func.func @transform_4(%arg0: i32, %arg1: i32) -> (i32, i32, i32, i32) {
    %c0_i32 = arith.constant 0 : i32
    %c0_i32_0 = arith.constant 0 : i32
    %c0_i32_1 = arith.constant 0 : i32
    %c0_i32_2 = arith.constant 0 : i32
    return %arg0, %c0_i32, %c0_i32_0, %c0_i32_1 : i32, i32, i32, i32
  }
}

</mosaic_0001>

<bundles_post_ra>
// kernel: multi_scale_attention_block.1
= control target key start
LH: loop header
LB: loop body
LE: loop exit
PB: predicated region body
PF: predicated region fallthrough
CT: control target
= control target key end

     0   :  { %s8748_s15 = smov 0   ;;  %s8750_s16 = smov 0   ;;  %s11703_s0 = inlined_call_operand.vmem [shape: s32[3,512], index: 0, kind: input, shape index: {}]   ;;  %s11704_s1 = inlined_call_operand.vmem [shape: bf16[2,2,16,1152], index: 1, kind: input, shape index: {}]   ;;  %s11705_s2 = inlined_call_operand.vmem [shape: bf16[2,4,27,4,16], index: 2, kind: input, shape index: {}]   ;;  %s11706_s3 = inlined_call_operand.vmem [shape: f32[4,4,1], index: 3, kind: input, shape index: {}]   ;;  %s11707_s4 = inlined_call_operand.vmem [shape: bf16[2,4,4,512], index: 4, kind: output, shape index: {}]  }
   0x1   :  { %s8752_s17 = smov 0   ;;  %s8754_s18 = smov 0  }
   0x2   :  { %s8756_s19 = smov 0  }
   0x3 LB: > { %s23_s20 = sadd.s32 1, %s8683_s17  ;;  %s26_s21 = sadd.s32 1, %s8687_s18  ;;  %s8691_s19 = sphi %s8756_s19, %s14_s19   ;;  %s8687_s18 = sphi %s8754_s18, %s12224_s18   ;;  %s8683_s17 = sphi %s8752_s17, %s12223_s17   ;;  %s8679_s16 = sphi %s8750_s16, %s12222_s16   ;;  %s8675_s15 = sphi %s8748_s15, %s12221_s15  }
   0x4   : > { %p24_p0 = scmp.ge.s32.totalorder %s23_s20, 2  ;;  %p8296_p1 = scmp.ge.s32.totalorder %s8691_s19, 1 }
   0x5   : > { %p190_p2 = scmp.lt.s32.totalorder %s8691_s19, 5 }
   0x6   : > { %s12226_s20 = smov (%p24_p0, %s23_s20), 0  ;;  %s12228_s21 = smov (!%p24_p0, %s26_s21), %s8687_s18 }
   0x7   : > { %p191_p3 = pnand %p8296_p1, %p190_p2  ;;  %p28_p4 = scmp.ge.s32.totalorder %s12228_s21, 2 }
   0x9   : > { %s12230_s21 = smov (%p28_p4, %s12228_s21), 0  ;;  %194 = sbr.rel (%p191_p3) target bundleno = 1031 (0x407), region = 36 }
   0xe   : > { %p225_p5 = scmp.lt.s32.totalorder %s8679_s16, 1  ;;  %p227_p6 = scmp.lt.s32.totalorder %s8675_s15, 1 }
   0xf   : > { %p8301_p7 = scmp.ne.s32.totalorder %s8675_s15, 0 }
  0x10   : > { %s12232_s16 = smov (!%p225_p5, %s8679_s16), 1 }
  0x11   : > { %s228_s22 = scalar_select %p227_p6, %s8675_s15, 1 }
  0x12   : > { %s8531_s23 = smul.u32 36, %s12232_s16  ;;  %s8529_s24 = sshll.u32 %s12232_s16, 5 }
  0x13   : > { %s8530_s25 = smul.u32 18, %s228_s22  ;;  %s8785_s28 = scalar_lea.vmem %s11707_s4, %s8529_s24 }
  0x14   : > { %s8532_s29 = smul.u32 216, %s228_s22 }
  0x15   : > { %s231_s30 = sadd.s32 %s8531_s23, %s8530_s25  ;;  %248 = sbr.rel (%p8301_p7) target bundleno = 31 (0x1f), region = 40 }
  0x16   : > { %s8297_s5 = sshll.u32 %s231_s30, 2  ;;  %s8790_s8 = scalar_lea.vmem %s11705_s2, %s8532_s29 }
  0x17   : > { %s8795_s11 = scalar_lea.vmem %s11704_s1, %s8297_s5 }
  0x1a   : > { %v8693_v0 = vmov 0.0  }
  0x1b   : > { %249 = vst [vmem:[#allocation2 + $0x30] sm:$0xff] %v8693_v0  ;;  %250 = vst [vmem:[#allocation2] sm:$0xff] %v8693_v0 }
  0x1c   : > { %251 = vst [vmem:[#allocation2 + $0x18] sm:$0xff] %v8693_v0  ;;  %252 = vst [vmem:[#allocation2 + $0x10] sm:$0xff] %v8693_v0 }
  0x1d   : > { %253 = vst [vmem:[#allocation2 + $0x8] sm:$0xff] %v8693_v0  ;;  %254 = vst [vmem:[#allocation2 + $0x20] sm:$0xff] %v8693_v0 }
  0x1e   : > { %255 = vst [vmem:[#allocation2 + $0x28] sm:$0xff] %v8693_v0  ;;  %256 = vst [vmem:[#allocation2 + $0x38] sm:$0xff] %v8693_v0 }
  0x1f PF: > { %v8603_v1 = vld [vmem:[%s8795_s11 + $0x10] ss:$36 sps:$4 sm:$0xff]   ;;  %v8605_v2 = vld [vmem:[%s8795_s11 + $0x8] ss:$36 sps:$4 sm:$0xff]   ;;  %s8694_s12 = smov 37   ;;  %v11722_v6 = vmov 0  }
  0x20   : > { %296 = vrot.lane.b32.xlu1 %v8603_v1, %s8694_s12  ;;  %v8607_v3 = vld [vmem:[%s8795_s11 + $0x14] ss:$36 sps:$4 sm:$0xff]   ;;  %292 = vrot.lane.b32.xlu0 %v8605_v2, %s8694_s12  ;;  %v8608_v4 = vld [vmem:[%s8795_s11 + $0xc] ss:$36 sps:$4 sm:$0xff]   ;;  %s8696_s13 = smov 36   ;;  %s8697_s14 = smov 35  }
  0x21   : > { %v8609_v5 = vld [vmem:[%s8795_s11 + $0x4] ss:$36 sps:$4 sm:$0xff]   ;;  %345 = vmatprep.mubr.bf16.mxu0 %v11722_v6  ;;  %386 = vmatprep.mubr.bf16.mxu1 %v11722_v6  ;;  %s8698_s16 = smov 29   ;;  %s8699_s22 = smov 28   ;;  %v8849_v7 = vld [vmem:[%s8795_s11 + $0xc] ss:$36 sps:$4 sm:$0xff]  }
  0x22   : > { %s8700_s23 = smov 27   ;;  %s8701_s24 = smov 21   ;;  %v8854_v8 = vld [vmem:[%s8795_s11 + $0x14] ss:$36 sps:$4 sm:$0xff]   ;;  %v8862_v10 = vld [vmem:[%s8795_s11 + $0x8] ss:$36 sps:$4 sm:$0xff]  }
  0x23   : > { %s8702_s25 = smov 20   ;;  %s8703_s26 = smov 19   ;;  %v8858_v9 = vld [vmem:[%s8795_s11 + $0x10] ss:$36 sps:$4 sm:$0xff]   ;;  %v8866_v11 = vld [vmem:[%s8795_s11 + $0x18] ss:$36 sps:$4 sm:$0xff]  }
  0x24   : > { %298 = vrot.lane.b32.xlu1 %v8607_v3, %s8694_s12  ;;  %294 = vrot.lane.b32.xlu0 %v8608_v4, %s8694_s12  ;;  %s8704_s27 = smov 101   ;;  %s8705_s29 = smov 100   ;;  %vm300_vm0 = vcmask 302080   ;;  %v268_v21 = vld [vmem:[%s8790_s8] sm:$0x3]  ;;  %vm11719_vm1 = vcmask 130048  }
  0x25   : > { %s8706_s30 = smov 99   ;;  %s8707_s5 = smov 93   ;;  %vm437_vm2 = vcmask 293888   ;;  %vm572_vm3 = vcmask 285696   ;;  %v8311_v33 = vld [vmem:[%s8790_s8 + $0x2] sm:$0x3] }
  0x26   : > { %s8708_s6 = smov 92   ;;  %s8709_s7 = smov 91   ;;  %v8314_v41 = vld [vmem:[%s8790_s8 + $0x4] sm:$0x3]  ;;  %vm709_vm4 = vcmask 236544   ;;  %vm845_vm5 = vcmask 228352  }
  0x27   : > { %s8710_s9 = smov 85   ;;  %v8317_v53 = vld [vmem:[%s8790_s8 + $0x6] sm:$0x3]  ;;  %s8711_s10 = smov 84   ;;  %v8320_v61 = vld [vmem:[%s8790_s8 + $0x8] sm:$0x3] }
  0x28   : > { %429 = vrot.lane.b32.xlu1 %v8605_v2, %s8696_s13  ;;  %290 = vrot.lane.b32.xlu0 %v8609_v5, %s8694_s12  ;;  %vm980_vm6 = vcmask 220160   ;;  %vm1116_vm7 = vcmask 171008   ;;  %vm1254_vm8 = vcmask 162816   ;;  %vm11710_vm9 = vcmask 154624   ;;  %p8518_p8 = scmp.ne.s32.totalorder %s8675_s15, 1 }
  0x29   : > { %vm1552_vm10 = vcmask 826368   ;;  %vm1688_vm11 = vcmask 818176   ;;  %vm1823_vm12 = vcmask 809984   ;;  %vm1959_vm13 = vcmask 760832  }
  0x2a   : > { %vm11708_vm14 = vcmask 752640   ;;  %vm2204_vm15 = vcmask 744448  }
  0x2c   : > { %433 = vrot.lane.b32.xlu1 %v8603_v1, %s8696_s13  ;;  %431 = vrot.lane.b32.xlu0 %v8608_v4, %s8696_s13 }
  0x30   : > { %427 = vrot.lane.b32.xlu1 %v8609_v5, %s8696_s13  ;;  %435 = vrot.lane.b32.xlu0 %v8607_v3, %s8696_s13 }
  0x34   : > { %566 = vrot.lane.b32.xlu1 %v8608_v4, %s8697_s14  ;;  %564 = vrot.lane.b32.xlu0 %v8605_v2, %s8697_s14 }
  0x38   : > { %570 = vrot.lane.b32.xlu1 %v8607_v3, %s8697_s14  ;;  %568 = vrot.lane.b32.xlu0 %v8603_v1, %s8697_s14 }
  0x3c   : > { %701 = vrot.lane.b32.xlu1 %v8605_v2, %s8698_s16  ;;  %562 = vrot.lane.b32.xlu0 %v8609_v5, %s8697_s14 }
  0x40   : > { %705 = vrot.lane.b32.xlu1 %v8603_v1, %s8698_s16  ;;  %703 = vrot.lane.b32.xlu0 %v8608_v4, %s8698_s16 }
  0x44   : > { %699 = vrot.lane.b32.xlu1 %v8609_v5, %s8698_s16  ;;  %707 = vrot.lane.b32.xlu0 %v8607_v3, %s8698_s16 }
  0x48   : > { %839 = vrot.lane.b32.xlu1 %v8608_v4, %s8699_s22  ;;  %837 = vrot.lane.b32.xlu0 %v8605_v2, %s8699_s22 }
  0x4c   : > { %843 = vrot.lane.b32.xlu1 %v8607_v3, %s8699_s22  ;;  %841 = vrot.lane.b32.xlu0 %v8603_v1, %s8699_s22 }
  0x50   : > { %972 = vrot.lane.b32.xlu1 %v8605_v2, %s8700_s23  ;;  %835 = vrot.lane.b32.xlu0 %v8609_v5, %s8699_s22 }
  0x54   : > { %976 = vrot.lane.b32.xlu1 %v8603_v1, %s8700_s23  ;;  %974 = vrot.lane.b32.xlu0 %v8608_v4, %s8700_s23 }
  0x58   : > { %970 = vrot.lane.b32.xlu1 %v8609_v5, %s8700_s23  ;;  %978 = vrot.lane.b32.xlu0 %v8607_v3, %s8700_s23 }
  0x5c   : > { %1110 = vrot.lane.b32.xlu1 %v8608_v4, %s8701_s24  ;;  %1108 = vrot.lane.b32.xlu0 %v8605_v2, %s8701_s24 }
  0x60   : > { %1114 = vrot.lane.b32.xlu1 %v8607_v3, %s8701_s24  ;;  %1112 = vrot.lane.b32.xlu0 %v8603_v1, %s8701_s24 }
  0x64   : > { %1246 = vrot.lane.b32.xlu1 %v8605_v2, %s8702_s25  ;;  %1106 = vrot.lane.b32.xlu0 %v8609_v5, %s8701_s24 }
  0x68   : > { %1250 = vrot.lane.b32.xlu1 %v8603_v1, %s8702_s25  ;;  %1248 = vrot.lane.b32.xlu0 %v8608_v4, %s8702_s25 }
  0x6c   : > { %1244 = vrot.lane.b32.xlu1 %v8609_v5, %s8702_s25  ;;  %1252 = vrot.lane.b32.xlu0 %v8607_v3, %s8702_s25 }
  0x70   : > { %1383 = vrot.lane.b32.xlu1 %v8608_v4, %s8703_s26  ;;  %1381 = vrot.lane.b32.xlu0 %v8605_v2, %s8703_s26 }
  0x74   : > { %1387 = vrot.lane.b32.xlu1 %v8607_v3, %s8703_s26  ;;  %1385 = vrot.lane.b32.xlu0 %v8603_v1, %s8703_s26 }
  0x78   : > { %1544 = vrot.lane.b32.xlu1 %v8849_v7, %s8704_s27  ;;  %1379 = vrot.lane.b32.xlu0 %v8609_v5, %s8703_s26 }
  0x7c   : > { %1548 = vrot.lane.b32.xlu1 %v8854_v8, %s8704_s27  ;;  %1546 = vrot.lane.b32.xlu0 %v8858_v9, %s8704_s27 }
  0x80   : > { %1542 = vrot.lane.b32.xlu1 %v8862_v10, %s8704_s27  ;;  %1550 = vrot.lane.b32.xlu0 %v8866_v11, %s8704_s27  ;;  %s8712_s27 = smov 83  }
  0x84   : > { %1682 = vrot.lane.b32.xlu1 %v8858_v9, %s8705_s29  ;;  %1680 = vrot.lane.b32.xlu0 %v8849_v7, %s8705_s29 }
  0x88   : > { %1686 = vrot.lane.b32.xlu1 %v8866_v11, %s8705_s29  ;;  %1684 = vrot.lane.b32.xlu0 %v8854_v8, %s8705_s29 }
  0x8c   : > { %1815 = vrot.lane.b32.xlu1 %v8849_v7, %s8706_s30  ;;  %1678 = vrot.lane.b32.xlu0 %v8862_v10, %s8705_s29 }
  0x90   : > { %1819 = vrot.lane.b32.xlu1 %v8854_v8, %s8706_s30  ;;  %1817 = vrot.lane.b32.xlu0 %v8858_v9, %s8706_s30 }
  0x92   : > { %v297_v12 = vpop.permute.xlu1 %296  ;;  %v293_v13 = vpop.permute.xlu0 %292 }
  0x94   : > { %1813 = vrot.lane.b32.xlu1 %v8862_v10, %s8706_s30  ;;  %1821 = vrot.lane.b32.xlu0 %v8866_v11, %s8706_s30  ;;  %s8717_s30 = smov 64  }
  0x96   : > { %v299_v14 = vpop.permute.xlu1 %298  ;;  %v295_v15 = vpop.permute.xlu0 %294 }
  0x97   : > { %v304_v16 = vsel %vm300_vm0, %v297_v12, %v299_v14  ;;  %v302_v17 = vsel %vm300_vm0, %v293_v13, %v295_v15  ;;  %v303_v18 = vsel %vm300_vm0, %v295_v15, %v297_v12  ;;  %v8323_v15 = vld [vmem:[%s8790_s8 + $0xa] sm:$0x3] }
  0x98   : > { %368 = vmatprep.subr.bf16.mxu1 %v304_v16  ;;  %1953 = vrot.lane.b32.xlu1 %v8858_v9, %s8707_s5 }
  0x99   : > { %327 = vmatprep.subr.bf16.mxu0 %v302_v17  ;;  %1951 = vrot.lane.b32.xlu0 %v8849_v7, %s8707_s5 }
  0x9a   : > { %369 = vmatpush1.bf16.msra.mxu1 %v303_v18  ;;  %v430_v19 = vpop.permute.xlu1 %429  ;;  %v291_v20 = vpop.permute.xlu0 %290 }
  0x9b   : > { %v301_v22 = vsel %vm300_vm0, %v291_v20, %v293_v13 }
  0x9c   : > { %1957 = vrot.lane.b32.xlu1 %v8866_v11, %s8707_s5  ;;  %328 = vmatpush1.bf16.msra.mxu0 %v301_v22 }
  0x9d   : > { %1955 = vrot.lane.b32.xlu0 %v8854_v8, %s8707_s5  ;;  %8310 = vmatmul.mubr.msk.bf16.vlgmr.msra.gmra.mxu1 %vm11719_vm1, %v268_v21 }
  0x9e   : > { %v434_v23 = vpop.permute.xlu1 %433  ;;  %v432_v24 = vpop.permute.xlu0 %431  ;;  %522 = vmatprep.mubr.bf16.mxu1 %v11722_v6 }
  0x9f   : > { %v439_v25 = vsel %vm437_vm2, %v430_v19, %v432_v24  ;;  %8309 = vmatmul.mubr.msk.bf16.vlgmr.msra.gmra.mxu0 %vm11719_vm1, %v268_v21  ;;  %v440_v30 = vsel %vm437_vm2, %v432_v24, %v434_v23 }
  0xa0   : > { %2086 = vrot.lane.b32.xlu1 %v8849_v7, %s8708_s6  ;;  %463 = vmatprep.subr.bf16.mxu0 %v439_v25 }
  0xa1   : > { %1949 = vrot.lane.b32.xlu0 %v8862_v10, %s8707_s5  ;;  %481 = vmatprep.mubr.bf16.mxu0 %v11722_v6  ;;  %s8718_s5 = smov 60  }
  0xa2   : > { %v428_v26 = vpop.permute.xlu1 %427  ;;  %v436_v28 = vpop.permute.xlu0 %435 }
  0xa3   : > { %v438_v27 = vsel %vm437_vm2, %v428_v26, %v430_v19  ;;  %v441_v29 = vsel %vm437_vm2, %v434_v23, %v436_v28  ;;  %v8326_v23 = vld [vmem:[%s8790_s8 + $0xc] sm:$0x3] }
  0xa4   : > { %2090 = vrot.lane.b32.xlu1 %v8854_v8, %s8708_s6  ;;  %464 = vmatpush1.bf16.msra.mxu0 %v438_v27 }
  0xa5   : > { %2088 = vrot.lane.b32.xlu0 %v8858_v9, %s8708_s6  ;;  %504 = vmatprep.subr.bf16.mxu1 %v441_v29 }
  0xa6   : > { %505 = vmatpush1.bf16.msra.mxu1 %v440_v30  ;;  %v567_v31 = vpop.permute.xlu1 %566  ;;  %v565_v32 = vpop.permute.xlu0 %564 }
  0xa7   : > { %v574_v34 = vsel %vm572_vm3, %v565_v32, %v567_v31  ;;  %8312 = vmatmul.mubr.msk.bf16.vlgmr.msra.gmra.mxu0 %vm11719_vm1, %v8311_v33 }
  0xa8   : > { %2084 = vrot.lane.b32.xlu1 %v8862_v10, %s8708_s6  ;;  %598 = vmatprep.subr.bf16.mxu0 %v574_v34 }
  0xa9   : > { %2092 = vrot.lane.b32.xlu0 %v8866_v11, %s8708_s6  ;;  %8313 = vmatmul.mubr.msk.bf16.vlgmr.msra.gmra.mxu1 %vm11719_vm1, %v8311_v33 }
  0xaa   : > { %v571_v35 = vpop.permute.xlu1 %570  ;;  %616 = vmatprep.mubr.bf16.mxu0 %v11722_v6  ;;  %v569_v36 = vpop.permute.xlu0 %568  ;;  %657 = vmatprep.mubr.bf16.mxu1 %v11722_v6 }
  0xab   : > { %v576_v37 = vsel %vm572_vm3, %v569_v36, %v571_v35  ;;  %v575_v38 = vsel %vm572_vm3, %v567_v31, %v569_v36  ;;  %v8329_v35 = vld [vmem:[%s8790_s8 + $0xe] sm:$0x3] }
  0xac   : > { %2198 = vrot.lane.b32.xlu1 %v8858_v9, %s8709_s7  ;;  %639 = vmatprep.subr.bf16.mxu1 %v576_v37 }
  0xad   : > { %2196 = vrot.lane.b32.xlu0 %v8849_v7, %s8709_s7  ;;  %640 = vmatpush1.bf16.msra.mxu1 %v575_v38 }
  0xae   : > { %v702_v39 = vpop.permute.xlu1 %701  ;;  %v563_v40 = vpop.permute.xlu0 %562 }
  0xaf   : > { %v573_v42 = vsel %vm572_vm3, %v563_v40, %v565_v32 }
  0xb0   : > { %2202 = vrot.lane.b32.xlu1 %v8866_v11, %s8709_s7  ;;  %599 = vmatpush1.bf16.msra.mxu0 %v573_v42 }
  0xb1   : > { %2200 = vrot.lane.b32.xlu0 %v8854_v8, %s8709_s7  ;;  %8316 = vmatmul.mubr.msk.bf16.vlgmr.msra.gmra.mxu1 %vm11719_vm1, %v8314_v41 }
  0xb2   : > { %v706_v43 = vpop.permute.xlu1 %705  ;;  %v704_v44 = vpop.permute.xlu0 %703  ;;  %794 = vmatprep.mubr.bf16.mxu1 %v11722_v6 }
  0xb3   : > { %v711_v45 = vsel %vm709_vm4, %v702_v39, %v704_v44  ;;  %8315 = vmatmul.mubr.msk.bf16.vlgmr.msra.gmra.mxu0 %vm11719_vm1, %v8314_v41  ;;  %v712_v50 = vsel %vm709_vm4, %v704_v44, %v706_v43 }
  0xb4   : > { %2331 = vrot.lane.b32.xlu1 %v8849_v7, %s8710_s9  ;;  %735 = vmatprep.subr.bf16.mxu0 %v711_v45 }
  0xb5   : > { %2194 = vrot.lane.b32.xlu0 %v8862_v10, %s8709_s7  ;;  %753 = vmatprep.mubr.bf16.mxu0 %v11722_v6  ;;  %s8719_s7 = smov 56  }
  0xb6   : > { %v700_v46 = vpop.permute.xlu1 %699  ;;  %v708_v48 = vpop.permute.xlu0 %707 }
  0xb7   : > { %v710_v47 = vsel %vm709_vm4, %v700_v46, %v702_v39  ;;  %v713_v49 = vsel %vm709_vm4, %v706_v43, %v708_v48  ;;  %v8332_v43 = vld [vmem:[%s8790_s8 + $0x10] sm:$0x3] }
  0xb8   : > { %2335 = vrot.lane.b32.xlu1 %v8854_v8, %s8710_s9  ;;  %736 = vmatpush1.bf16.msra.mxu0 %v710_v47 }
  0xb9   : > { %2333 = vrot.lane.b32.xlu0 %v8858_v9, %s8710_s9  ;;  %776 = vmatprep.subr.bf16.mxu1 %v713_v49 }
  0xba   : > { %777 = vmatpush1.bf16.msra.mxu1 %v712_v50  ;;  %v840_v51 = vpop.permute.xlu1 %839  ;;  %v838_v52 = vpop.permute.xlu0 %837 }
  0xbb   : > { %v847_v54 = vsel %vm845_vm5, %v838_v52, %v840_v51  ;;  %8318 = vmatmul.mubr.msk.bf16.vlgmr.msra.gmra.mxu0 %vm11719_vm1, %v8317_v53 }
  0xbc   : > { %2329 = vrot.lane.b32.xlu1 %v8862_v10, %s8710_s9  ;;  %871 = vmatprep.subr.bf16.mxu0 %v847_v54 }
  0xbd   : > { %2337 = vrot.lane.b32.xlu0 %v8866_v11, %s8710_s9  ;;  %8319 = vmatmul.mubr.msk.bf16.vlgmr.msra.gmra.mxu1 %vm11719_vm1, %v8317_v53 }
  0xbe   : > { %v844_v55 = vpop.permute.xlu1 %843  ;;  %889 = vmatprep.mubr.bf16.mxu0 %v11722_v6  ;;  %v842_v56 = vpop.permute.xlu0 %841  ;;  %930 = vmatprep.mubr.bf16.mxu1 %v11722_v6 }
  0xbf   : > { %v849_v57 = vsel %vm845_vm5, %v842_v56, %v844_v55  ;;  %v848_v58 = vsel %vm845_vm5, %v840_v51, %v842_v56  ;;  %v8335_v55 = vld [vmem:[%s8790_s8 + $0x12] sm:$0x3] }
  0xc0   : > { %2469 = vrot.lane.b32.xlu1 %v8858_v9, %s8711_s10  ;;  %912 = vmatprep.subr.bf16.mxu1 %v849_v57 }
  0xc1   : > { %2467 = vrot.lane.b32.xlu0 %v8849_v7, %s8711_s10  ;;  %913 = vmatpush1.bf16.msra.mxu1 %v848_v58 }
  0xc2   : > { %v973_v59 = vpop.permute.xlu1 %972  ;;  %v836_v60 = vpop.permute.xlu0 %835 }
  0xc3   : > { %v846_v62 = vsel %vm845_vm5, %v836_v60, %v838_v52 }
  0xc4   : > { %2473 = vrot.lane.b32.xlu1 %v8866_v11, %s8711_s10  ;;  %872 = vmatpush1.bf16.msra.mxu0 %v846_v62 }
  0xc5   : > { %2471 = vrot.lane.b32.xlu0 %v8854_v8, %s8711_s10  ;;  %8322 = vmatmul.mubr.msk.bf16.vlgmr.msra.gmra.mxu1 %vm11719_vm1, %v8320_v61 }
  0xc6   : > { %v977_v63 = vpop.permute.xlu1 %976  ;;  %v975_v0 = vpop.permute.xlu0 %974  ;;  %1065 = vmatprep.mubr.bf16.mxu1 %v11722_v6 }
  0xc7   : > { %v982_v1 = vsel %vm980_vm6, %v973_v59, %v975_v0  ;;  %8321 = vmatmul.mubr.msk.bf16.vlgmr.msra.gmra.mxu0 %vm11719_vm1, %v8320_v61  ;;  %v983_v12 = vsel %vm980_vm6, %v975_v0, %v977_v63 }
  0xc8   : > { %2602 = vrot.lane.b32.xlu1 %v8849_v7, %s8712_s27  ;;  %1006 = vmatprep.subr.bf16.mxu0 %v982_v1 }
  0xc9   : > { %2465 = vrot.lane.b32.xlu0 %v8862_v10, %s8711_s10  ;;  %1024 = vmatprep.mubr.bf16.mxu0 %v11722_v6 }
  0xca   : > { %v971_v2 = vpop.permute.xlu1 %970  ;;  %v979_v4 = vpop.permute.xlu0 %978 }
  0xcb   : > { %v981_v3 = vsel %vm980_vm6, %v971_v2, %v973_v59  ;;  %v984_v5 = vsel %vm980_vm6, %v977_v63, %v979_v4  ;;  %v8343_v63 = vld [vmem:[%s8790_s8 + $0x14] sm:$0x3] }
  0xcc   : > { %2606 = vrot.lane.b32.xlu1 %v8854_v8, %s8712_s27  ;;  %1007 = vmatpush1.bf16.msra.mxu0 %v981_v3 }
  0xcd   : > { %2604 = vrot.lane.b32.xlu0 %v8858_v9, %s8712_s27  ;;  %1047 = vmatprep.subr.bf16.mxu1 %v984_v5 }
  0xce   : > { %1048 = vmatpush1.bf16.msra.mxu1 %v983_v12  ;;  %v1111_v13 = vpop.permute.xlu1 %1110  ;;  %v1109_v14 = vpop.permute.xlu0 %1108 }
  0xcf   : > { %v1118_v16 = vsel %vm1116_vm7, %v1109_v14, %v1111_v13  ;;  %8324 = vmatmul.mubr.msk.bf16.vlgmr.msra.gmra.mxu0 %vm11719_vm1, %v8323_v15 }
  0xd0   : > { %2600 = vrot.lane.b32.xlu1 %v8862_v10, %s8712_s27  ;;  %1142 = vmatprep.subr.bf16.mxu0 %v1118_v16 }
  0xd1   : > { %2608 = vrot.lane.b32.xlu0 %v8866_v11, %s8712_s27  ;;  %8325 = vmatmul.mubr.msk.bf16.vlgmr.msra.gmra.mxu1 %vm11719_vm1, %v8323_v15  ;;  %v8346_v15 = vld [vmem:[%s8790_s8 + $0x16] sm:$0x3] }
  0xd2   : > { %v1115_v17 = vpop.permute.xlu1 %1114  ;;  %1160 = vmatprep.mubr.bf16.mxu0 %v11722_v6  ;;  %v1113_v18 = vpop.permute.xlu0 %1112  ;;  %1201 = vmatprep.mubr.bf16.mxu1 %v11722_v6 }
  0xd3   : > { %v1120_v19 = vsel %vm1116_vm7, %v1113_v18, %v1115_v17  ;;  %v1119_v20 = vsel %vm1116_vm7, %v1111_v13, %v1113_v18 }
  0xd4   : > { %2740 = vrot.lane.b32.xlu1 %v8858_v9, %s8694_s12  ;;  %1183 = vmatprep.subr.bf16.mxu1 %v1120_v19 }
  0xd5   : > { %2738 = vrot.lane.b32.xlu0 %v8849_v7, %s8694_s12  ;;  %1184 = vmatpush1.bf16.msra.mxu1 %v1119_v20 }
  0xd6   : > { %v1247_v21 = vpop.permute.xlu1 %1246  ;;  %v1107_v22 = vpop.permute.xlu0 %1106 }
  0xd7   : > { %v1117_v24 = vsel %vm1116_vm7, %v1107_v22, %v1109_v14 }
  0xd8   : > { %2744 = vrot.lane.b32.xlu1 %v8866_v11, %s8694_s12  ;;  %1143 = vmatpush1.bf16.msra.mxu0 %v1117_v24 }
  0xd9   : > { %2742 = vrot.lane.b32.xlu0 %v8854_v8, %s8694_s12  ;;  %8328 = vmatmul.mubr.msk.bf16.vlgmr.msra.gmra.mxu1 %vm11719_vm1, %v8326_v23 }
  0xda   : > { %v1251_v25 = vpop.permute.xlu1 %1250  ;;  %v1249_v26 = vpop.permute.xlu0 %1248  ;;  %1339 = vmatprep.mubr.bf16.mxu1 %v11722_v6 }
  0xdb   : > { %v1256_v27 = vsel %vm1254_vm8, %v1247_v21, %v1249_v26  ;;  %8327 = vmatmul.mubr.msk.bf16.vlgmr.msra.gmra.mxu0 %vm11719_vm1, %v8326_v23  ;;  %v1257_v32 = vsel %vm1254_vm8, %v1249_v26, %v1251_v25 }
  0xdc   : > { %2875 = vrot.lane.b32.xlu1 %v8849_v7, %s8696_s13  ;;  %1280 = vmatprep.subr.bf16.mxu0 %v1256_v27 }
  0xdd   : > { %2736 = vrot.lane.b32.xlu0 %v8862_v10, %s8694_s12  ;;  %1298 = vmatprep.mubr.bf16.mxu0 %v11722_v6  ;;  %s8713_s12 = smov 124  }
  0xde   : > { %v1245_v28 = vpop.permute.xlu1 %1244  ;;  %v1253_v30 = vpop.permute.xlu0 %1252 }
  0xdf   : > { %v1255_v29 = vsel %vm1254_vm8, %v1245_v28, %v1247_v21  ;;  %v1258_v31 = vsel %vm1254_vm8, %v1251_v25, %v1253_v30  ;;  %v8349_v25 = vld [vmem:[%s8790_s8 + $0x18] sm:$0x3] }
  0xe0   : > { %2879 = vrot.lane.b32.xlu1 %v8854_v8, %s8696_s13  ;;  %1281 = vmatpush1.bf16.msra.mxu0 %v1255_v29 }
  0xe1   : > { %2877 = vrot.lane.b32.xlu0 %v8858_v9, %s8696_s13  ;;  %1321 = vmatprep.subr.bf16.mxu1 %v1258_v31 }
  0xe2   : > { %1322 = vmatpush1.bf16.msra.mxu1 %v1257_v32  ;;  %v1384_v33 = vpop.permute.xlu1 %1383  ;;  %v1382_v34 = vpop.permute.xlu0 %1381 }
  0xe3   : > { %v1391_v36 = vsel %vm11710_vm9, %v1382_v34, %v1384_v33  ;;  %8330 = vmatmul.mubr.msk.bf16.vlgmr.msra.gmra.mxu0 %vm11719_vm1, %v8329_v35 }
  0xe4   : > { %2873 = vrot.lane.b32.xlu1 %v8862_v10, %s8696_s13  ;;  %1415 = vmatprep.subr.bf16.mxu0 %v1391_v36 }
  0xe5   : > { %2881 = vrot.lane.b32.xlu0 %v8866_v11, %s8696_s13  ;;  %8331 = vmatmul.mubr.msk.bf16.vlgmr.msra.gmra.mxu1 %vm11719_vm1, %v8329_v35  ;;  %v8352_v35 = vld [vmem:[%s8790_s8 + $0x1a] sm:$0x3]  ;;  %s8714_s13 = smov 120  }
  0xe6   : > { %v1388_v37 = vpop.permute.xlu1 %1387  ;;  %1433 = vmatprep.mubr.bf16.mxu0 %v11722_v6  ;;  %v1386_v38 = vpop.permute.xlu0 %1385  ;;  %1474 = vmatprep.mubr.bf16.mxu1 %v11722_v6 }
  0xe7   : > { %v1393_v39 = vsel %vm11710_vm9, %v1386_v38, %v1388_v37  ;;  %v1392_v40 = vsel %vm11710_vm9, %v1384_v33, %v1386_v38 }
  0xe8   : > { %3011 = vrot.lane.b32.xlu1 %v8858_v9, %s8697_s14  ;;  %1456 = vmatprep.subr.bf16.mxu1 %v1393_v39 }
  0xe9   : > { %3009 = vrot.lane.b32.xlu0 %v8849_v7, %s8697_s14  ;;  %1457 = vmatpush1.bf16.msra.mxu1 %v1392_v40 }
  0xea   : > { %v1545_v41 = vpop.permute.xlu1 %1544  ;;  %v1380_v42 = vpop.permute.xlu0 %1379 }
  0xeb   : > { %v1390_v44 = vsel %vm11710_vm9, %v1380_v42, %v1382_v34 }
  0xec   : > { %3015 = vrot.lane.b32.xlu1 %v8866_v11, %s8697_s14  ;;  %1416 = vmatpush1.bf16.msra.mxu0 %v1390_v44 }
  0xed   : > { %3013 = vrot.lane.b32.xlu0 %v8854_v8, %s8697_s14  ;;  %8334 = vmatmul.mubr.msk.bf16.vlgmr.msra.gmra.mxu1 %vm11719_vm1, %v8332_v43 }
  0xee   : > { %v1549_v45 = vpop.permute.xlu1 %1548  ;;  %v1547_v46 = vpop.permute.xlu0 %1546  ;;  %1637 = vmatprep.mubr.bf16.mxu1 %v11722_v6 }
  0xef   : > { %v1554_v47 = vsel %vm1552_vm10, %v1545_v41, %v1547_v46  ;;  %8333 = vmatmul.mubr.msk.bf16.vlgmr.msra.gmra.mxu0 %vm11719_vm1, %v8332_v43  ;;  %v1555_v52 = vsel %vm1552_vm10, %v1547_v46, %v1549_v45 }
  0xf0   : > { %3144 = vrot.lane.b32.xlu1 %v8849_v7, %s8698_s16  ;;  %1578 = vmatprep.subr.bf16.mxu0 %v1554_v47  ;;  %v9133_v47 = vld [vmem:[%s8795_s11 + $0x4] ss:$36 sps:$4 sm:$0xff]  }
  0xf1   : > { %3007 = vrot.lane.b32.xlu0 %v8862_v10, %s8697_s14  ;;  %1596 = vmatprep.mubr.bf16.mxu0 %v11722_v6  ;;  %s8715_s14 = smov 96  }
  0xf2   : > { %v1543_v48 = vpop.permute.xlu1 %1542  ;;  %v1551_v50 = vpop.permute.xlu0 %1550 }
  0xf3   : > { %v1553_v49 = vsel %vm1552_vm10, %v1543_v48, %v1545_v41  ;;  %v1556_v51 = vsel %vm1552_vm10, %v1549_v45, %v1551_v50  ;;  %v8355_v45 = vld [vmem:[%s8790_s8 + $0x1c] sm:$0x3]  ;;  %vm2339_vm10 = vcmask 695296  }
  0xf4   : > { %3148 = vrot.lane.b32.xlu1 %v8854_v8, %s8698_s16  ;;  %1579 = vmatpush1.bf16.msra.mxu0 %v1553_v49 }
  0xf5   : > { %3146 = vrot.lane.b32.xlu0 %v8858_v9, %s8698_s16  ;;  %1619 = vmatprep.subr.bf16.mxu1 %v1556_v51 }
  0xf6   : > { %1620 = vmatpush1.bf16.msra.mxu1 %v1555_v52  ;;  %v1683_v53 = vpop.permute.xlu1 %1682  ;;  %v1681_v54 = vpop.permute.xlu0 %1680  ;;  %v9151_v52 = vld [vmem:[%s8795_s11] ss:$36 sps:$4 sm:$0xff]  }
  0xf7   : > { %v1690_v56 = vsel %vm1688_vm11, %v1681_v54, %v1683_v53  ;;  %8341 = vmatmul.mubr.msk.bf16.vlgmr.msra.gmra.mxu0 %vm11719_vm1, %v8335_v55 }
  0xf8   : > { %3142 = vrot.lane.b32.xlu1 %v8862_v10, %s8698_s16  ;;  %1714 = vmatprep.subr.bf16.mxu0 %v1690_v56 }
  0xf9   : > { %3150 = vrot.lane.b32.xlu0 %v8866_v11, %s8698_s16  ;;  %8342 = vmatmul.mubr.msk.bf16.vlgmr.msra.gmra.mxu1 %vm11719_vm1, %v8335_v55  ;;  %v9158_v55 = vld [vmem:[%s8795_s11 + $0x10] ss:$36 sps:$4 sm:$0xff]  }
  0xfa   : > { %v1687_v57 = vpop.permute.xlu1 %1686  ;;  %1732 = vmatprep.mubr.bf16.mxu0 %v11722_v6  ;;  %v1685_v58 = vpop.permute.xlu0 %1684  ;;  %1773 = vmatprep.mubr.bf16.mxu1 %v11722_v6 }
  0xfb   : > { %v1692_v59 = vsel %vm1688_vm11, %v1685_v58, %v1687_v57  ;;  %v1691_v60 = vsel %vm1688_vm11, %v1683_v53, %v1685_v58 }
  0xfc   : > { %3281 = vrot.lane.b32.xlu1 %v8858_v9, %s8699_s22  ;;  %1755 = vmatprep.subr.bf16.mxu1 %v1692_v59 }
  0xfd   : > { %3279 = vrot.lane.b32.xlu0 %v8849_v7, %s8699_s22  ;;  %1756 = vmatpush1.bf16.msra.mxu1 %v1691_v60 }
  0xfe   : > { %v1816_v61 = vpop.permute.xlu1 %1815  ;;  %v1679_v62 = vpop.permute.xlu0 %1678 }
  0xff   : > { %v1689_v0 = vsel %vm1688_vm11, %v1679_v62, %v1681_v54  ;;  %v8358_v54 = vld [vmem:[%s8790_s8 + $0x1e] sm:$0x3]  ;;  %vm2475_vm11 = vcmask 687104  }
 0x100   : > { %3285 = vrot.lane.b32.xlu1 %v8866_v11, %s8699_s22  ;;  %1715 = vmatpush1.bf16.msra.mxu0 %v1689_v0 }
 0x101   : > { %3283 = vrot.lane.b32.xlu0 %v8854_v8, %s8699_s22  ;;  %8345 = vmatmul.mubr.msk.bf16.vlgmr.msra.gmra.mxu1 %vm11719_vm1, %v8343_v63 }
 0x102   : > { %v1820_v1 = vpop.permute.xlu1 %1819  ;;  %v1818_v2 = vpop.permute.xlu0 %1817  ;;  %1908 = vmatprep.mubr.bf16.mxu1 %v11722_v6 }
 0x103   : > { %8344 = vmatmul.mubr.msk.bf16.vlgmr.msra.gmra.mxu0 %vm11719_vm1, %v8343_v63  ;;  %v1825_v3 = vsel %vm1823_vm12, %v1816_v61, %v1818_v2  ;;  %v1826_v14 = vsel %vm1823_vm12, %v1818_v2, %v1820_v1 }
 0x104   : > { %3413 = vrot.lane.b32.xlu1 %v8849_v7, %s8700_s23  ;;  %1849 = vmatprep.subr.bf16.mxu0 %v1825_v3 }
 0x105   : > { %3277 = vrot.lane.b32.xlu0 %v8862_v10, %s8699_s22  ;;  %1867 = vmatprep.mubr.bf16.mxu0 %v11722_v6 }
 0x106   : > { %v1814_v4 = vpop.permute.xlu1 %1813  ;;  %v1822_v12 = vpop.permute.xlu0 %1821 }
 0x107   : > { %v1824_v5 = vsel %vm1823_vm12, %v1814_v4, %v1816_v61  ;;  %v1827_v13 = vsel %vm1823_vm12, %v1820_v1, %v1822_v12  ;;  %v8361_v1 = vld [vmem:[%s8790_s8 + $0x20] sm:$0x3]  ;;  %vm2610_vm12 = vcmask 678912  }
 0x108   : > { %3417 = vrot.lane.b32.xlu1 %v8854_v8, %s8700_s23  ;;  %1850 = vmatpush1.bf16.msra.mxu0 %v1824_v5 }
 0x109   : > { %3415 = vrot.lane.b32.xlu0 %v8858_v9, %s8700_s23  ;;  %1890 = vmatprep.subr.bf16.mxu1 %v1827_v13 }
 0x10a   : > { %1891 = vmatpush1.bf16.msra.mxu1 %v1826_v14  ;;  %v1954_v16 = vpop.permute.xlu1 %1953 }
 0x10b   : > { %v1952_v17 = vpop.permute.xlu0 %1951  ;;  %8347 = vmatmul.mubr.msk.bf16.vlgmr.msra.gmra.mxu0 %vm11719_vm1, %v8346_v15 }
 0x10c   : > { %3411 = vrot.lane.b32.xlu1 %v8862_v10, %s8700_s23  ;;  %v1961_v18 = vsel %vm1959_vm13, %v1952_v17, %v1954_v16  ;;  %2003 = vmatprep.mubr.bf16.mxu0 %v11722_v6 }
 0x10d   : > { %3419 = vrot.lane.b32.xlu0 %v8866_v11, %s8700_s23  ;;  %8348 = vmatmul.mubr.msk.bf16.vlgmr.msra.gmra.mxu1 %vm11719_vm1, %v8346_v15 }
 0x10e   : > { %1985 = vmatprep.subr.bf16.mxu0 %v1961_v18  ;;  %v1958_v19 = vpop.permute.xlu1 %1957  ;;  %2044 = vmatprep.mubr.bf16.mxu1 %v11722_v6 }
 0x10f   : > { %v1956_v20 = vpop.permute.xlu0 %1955 }
 0x110   : > { %3550 = vrot.lane.b32.xlu1 %v8858_v9, %s8701_s24  ;;  %v1963_v21 = vsel %vm1959_vm13, %v1956_v20, %v1958_v19  ;;  %v1962_v22 = vsel %vm1959_vm13, %v1954_v16, %v1956_v20 }
 0x111   : > { %3548 = vrot.lane.b32.xlu0 %v8849_v7, %s8701_s24  ;;  %2026 = vmatprep.subr.bf16.mxu1 %v1963_v21 }
 0x112   : > { %2027 = vmatpush1.bf16.msra.mxu1 %v1962_v22  ;;  %v2087_v23 = vpop.permute.xlu1 %2086 }
 0x113   : > { %v1950_v24 = vpop.permute.xlu0 %1949 }
 0x114   : > { %v1960_v26 = vsel %vm1959_vm13, %v1950_v24, %v1952_v17  ;;  %3554 = vrot.lane.b32.xlu1 %v8866_v11, %s8701_s24  ;;  %v8364_v17 = vld [vmem:[%s8790_s8 + $0x22] sm:$0x3] }
 0x115   : > { %3552 = vrot.lane.b32.xlu0 %v8854_v8, %s8701_s24  ;;  %1986 = vmatpush1.bf16.msra.mxu0 %v1960_v26 }
 0x116   : > { %8351 = vmatmul.mubr.msk.bf16.vlgmr.msra.gmra.mxu1 %vm11719_vm1, %v8349_v25  ;;  %v2091_v27 = vpop.permute.xlu1 %2090 }
 0x117   : > { %v2089_v28 = vpop.permute.xlu0 %2088  ;;  %2179 = vmatprep.mubr.bf16.mxu1 %v11722_v6 }
 0x118   : > { %8350 = vmatmul.mubr.msk.bf16.vlgmr.msra.gmra.mxu0 %vm11719_vm1, %v8349_v25  ;;  %3684 = vrot.lane.b32.xlu1 %v8849_v7, %s8702_s25  ;;  %v2096_v29 = vsel %vm11708_vm14, %v2087_v23, %v2089_v28  ;;  %v2097_v34 = vsel %vm11708_vm14, %v2089_v28, %v2091_v27 }
 0x119   : > { %3546 = vrot.lane.b32.xlu0 %v8862_v10, %s8701_s24  ;;  %2120 = vmatprep.subr.bf16.mxu0 %v2096_v29  ;;  %v9222_v29 = vld [vmem:[%s11703_s0] ss:$4 sm:$0xf] }
 0x11a   : > { %v2085_v30 = vpop.permute.xlu1 %2084  ;;  %2138 = vmatprep.mubr.bf16.mxu0 %v11722_v6 }
 0x11b   : > { %v2095_v31 = vsel %vm11708_vm14, %v2085_v30, %v2087_v23  ;;  %v2093_v32 = vpop.permute.xlu0 %2092  ;;  %v9227_v30 = vld [vmem:[%s11703_s0 + $0x1] ss:$4 sm:$0xf] }
 0x11c   : > { %3688 = vrot.lane.b32.xlu1 %v8854_v8, %s8702_s25  ;;  %2121 = vmatpush1.bf16.msra.mxu0 %v2095_v31  ;;  %v2098_v33 = vsel %vm11708_vm14, %v2091_v27, %v2093_v32  ;;  %v8367_v27 = vld [vmem:[%s8790_s8 + $0x24] sm:$0x3]  ;;  %vm11709_vm13 = vcmp.ge.s32.totalorder %v9227_v30, 1 }
 0x11d   : > { %3686 = vrot.lane.b32.xlu0 %v8858_v9, %s8702_s25  ;;  %2161 = vmatprep.subr.bf16.mxu1 %v2098_v33 }
 0x11e   : > { %2162 = vmatpush1.bf16.msra.mxu1 %v2097_v34  ;;  %v2199_v36 = vpop.permute.xlu1 %2198  ;;  %v9238_v34 = vld [vmem:[%s11703_s0 + $0x2] ss:$4 sm:$0xf] }
 0x11f   : > { %v2197_v37 = vpop.permute.xlu0 %2196 }
 0x120   : > { %8353 = vmatmul.mubr.msk.bf16.vlgmr.msra.gmra.mxu0 %vm11719_vm1, %v8352_v35  ;;  %3682 = vrot.lane.b32.xlu1 %v8862_v10, %s8702_s25  ;;  %v2206_v38 = vsel %vm2204_vm15, %v2197_v37, %v2199_v36 }
 0x121   : > { %3690 = vrot.lane.b32.xlu0 %v8866_v11, %s8702_s25  ;;  %8354 = vmatmul.mubr.msk.bf16.vlgmr.msra.gmra.mxu1 %vm11719_vm1, %v8352_v35  ;;  %s8716_s25 = smov 88   ;;  %v401_v35 = vlaneseq }
 0x122   : > { %2230 = vmatprep.subr.bf16.mxu0 %v2206_v38  ;;  %v2203_v39 = vpop.permute.xlu1 %2202  ;;  %2289 = vmatprep.mubr.bf16.mxu1 %v11722_v6 }
 0x123   : > { %v2201_v40 = vpop.permute.xlu0 %2200  ;;  %2248 = vmatprep.mubr.bf16.mxu0 %v11722_v6 }
 0x124   : > { %3820 = vrot.lane.b32.xlu1 %v8858_v9, %s8703_s26  ;;  %v2208_v41 = vsel %vm2204_vm15, %v2201_v40, %v2203_v39  ;;  %v2207_v42 = vsel %vm2204_vm15, %v2199_v36, %v2201_v40 }
 0x125   : > { %3818 = vrot.lane.b32.xlu0 %v8849_v7, %s8703_s26  ;;  %2271 = vmatprep.subr.bf16.mxu1 %v2208_v41  ;;  %v9258_v41 = vshrl.u32 %v401_v35, 7 }
 0x126   : > { %2272 = vmatpush1.bf16.msra.mxu1 %v2207_v42  ;;  %v2332_v43 = vpop.permute.xlu1 %2331 }
 0x127   : > { %v2195_v44 = vpop.permute.xlu0 %2194  ;;  %11728 = vst [vmem:[#allocation3_spill] sm:$0xff] %v9258_v41 }
 0x128   : > { %v2205_v46 = vsel %vm2204_vm15, %v2195_v44, %v2197_v37  ;;  %3824 = vrot.lane.b32.xlu1 %v8866_v11, %s8703_s26 }
 0x129   : > { %3822 = vrot.lane.b32.xlu0 %v8854_v8, %s8703_s26  ;;  %2231 = vmatpush1.bf16.msra.mxu0 %v2205_v46 }
 0x12a   : > { %8357 = vmatmul.mubr.msk.bf16.vlgmr.msra.gmra.mxu1 %vm11719_vm1, %v8355_v45  ;;  %v2336_v9 = vpop.permute.xlu1 %2335 }
 0x12b   : > { %v2334_v48 = vpop.permute.xlu0 %2333  ;;  %2424 = vmatprep.mubr.bf16.mxu1 %v11722_v6 }
 0x12c   : > { %8356 = vmatmul.mubr.msk.bf16.vlgmr.msra.gmra.mxu0 %vm11719_vm1, %v8355_v45  ;;  %4135 = vrot.lane.b32.xlu1 %v9133_v47, %s8713_s12  ;;  %v2341_v11 = vsel %vm2339_vm10, %v2332_v43, %v2334_v48  ;;  %v2342_v53 = vsel %vm2339_vm10, %v2334_v48, %v2336_v9  ;;  %v9273_v45 = vsub.s32 0, %v9258_v41 }
 0x12d   : > { %3816 = vrot.lane.b32.xlu0 %v8862_v10, %s8703_s26  ;;  %2365 = vmatprep.subr.bf16.mxu0 %v2341_v11  ;;  %v9283_v11 = vsub.s32 2, %v9258_v41 }
 0x12e   : > { %v2330_v8 = vpop.permute.xlu1 %2329  ;;  %2383 = vmatprep.mubr.bf16.mxu0 %v11722_v6 }
 0x12f   : > { %v2340_v49 = vsel %vm2339_vm10, %v2330_v8, %v2332_v43  ;;  %v2338_v50 = vpop.permute.xlu0 %2337  ;;  %v8370_v43 = vld [vmem:[%s8790_s8 + $0x26] sm:$0x3] }
 0x130   : > { %4139 = vrot.lane.b32.xlu1 %v8849_v7, %s8713_s12  ;;  %2366 = vmatpush1.bf16.msra.mxu0 %v2340_v49  ;;  %v2343_v51 = vsel %vm2339_vm10, %v2336_v9, %v2338_v50  ;;  %vm398_vm10 = vcmp.ge.s32.totalorder %v9238_v34, 1  ;;  %v9287_v49 = vsub.s32 1, %v9258_v41 }
 0x131   : > { %4137 = vrot.lane.b32.xlu0 %v8862_v10, %s8713_s12  ;;  %2406 = vmatprep.subr.bf16.mxu1 %v2343_v51  ;;  %v9293_v51 = vld [vmem:[%s8795_s11 + $0x8] ss:$36 sps:$4 sm:$0xff]  }
 0x132   : > { %2407 = vmatpush1.bf16.msra.mxu1 %v2342_v53  ;;  %v2470_v56 = vpop.permute.xlu1 %2469 }
 0x133   : > { %v2468_v57 = vpop.permute.xlu0 %2467 }
 0x134   : > { %8359 = vmatmul.mubr.msk.bf16.vlgmr.msra.gmra.mxu0 %vm11719_vm1, %v8358_v54  ;;  %4133 = vrot.lane.b32.xlu1 %v9151_v52, %s8713_s12  ;;  %v2477_v58 = vsel %vm2475_vm11, %v2468_v57, %v2470_v56 }
 0x135   : > { %4141 = vrot.lane.b32.xlu0 %v9158_v55, %s8713_s12  ;;  %8360 = vmatmul.mubr.msk.bf16.vlgmr.msra.gmra.mxu1 %vm11719_vm1, %v8358_v54 }
 0x136   : > { %2501 = vmatprep.subr.bf16.mxu0 %v2477_v58  ;;  %v2474_v59 = vpop.permute.xlu1 %2473  ;;  %2560 = vmatprep.mubr.bf16.mxu1 %v11722_v6 }
 0x137   : > { %v2472_v60 = vpop.permute.xlu0 %2471  ;;  %2519 = vmatprep.mubr.bf16.mxu0 %v11722_v6 }
 0x138   : > { %4272 = vrot.lane.b32.xlu1 %v8862_v10, %s8714_s13  ;;  %v2479_v61 = vsel %vm2475_vm11, %v2472_v60, %v2474_v59  ;;  %v2478_v62 = vsel %vm2475_vm11, %v2470_v56, %v2472_v60  ;;  %v9303_v59 = vsub.s32 3, %v9258_v41 }
 0x139   : > { %4270 = vrot.lane.b32.xlu0 %v9133_v47, %s8714_s13  ;;  %2542 = vmatprep.subr.bf16.mxu1 %v2479_v61 }
 0x13a   : > { %2543 = vmatpush1.bf16.msra.mxu1 %v2478_v62  ;;  %v2603_v63 = vpop.permute.xlu1 %2602 }
 0x13b   : > { %v2466_v0 = vpop.permute.xlu0 %2465 }
 0x13c   : > { %v2476_v2 = vsel %vm2475_vm11, %v2466_v0, %v2468_v57  ;;  %4276 = vrot.lane.b32.xlu1 %v9158_v55, %s8714_s13 }
 0x13d   : > { %4274 = vrot.lane.b32.xlu0 %v8849_v7, %s8714_s13  ;;  %2502 = vmatpush1.bf16.msra.mxu0 %v2476_v2 }
 0x13e   : > { %8363 = vmatmul.mubr.msk.bf16.vlgmr.msra.gmra.mxu1 %vm11719_vm1, %v8361_v1  ;;  %v2607_v3 = vpop.permute.xlu1 %2606 }
 0x13f   : > { %v2605_v4 = vpop.permute.xlu0 %2604  ;;  %2695 = vmatprep.mubr.bf16.mxu1 %v11722_v6 }
 0x140   : > { %8362 = vmatmul.mubr.msk.bf16.vlgmr.msra.gmra.mxu0 %vm11719_vm1, %v8361_v1  ;;  %4407 = vrot.lane.b32.xlu1 %v9133_v47, %s8715_s14  ;;  %v2612_v5 = vsel %vm2610_vm12, %v2603_v63, %v2605_v4  ;;  %v2613_v16 = vsel %vm2610_vm12, %v2605_v4, %v2607_v3  ;;  %v8373_v1 = vld [vmem:[%s8790_s8 + $0x28] sm:$0x3] }
 0x141   : > { %4268 = vrot.lane.b32.xlu0 %v9151_v52, %s8714_s13  ;;  %2636 = vmatprep.subr.bf16.mxu0 %v2612_v5 }
 0x142   : > { %v2601_v12 = vpop.permute.xlu1 %2600  ;;  %2654 = vmatprep.mubr.bf16.mxu0 %v11722_v6 }
 0x143   : > { %v2611_v13 = vsel %vm2610_vm12, %v2601_v12, %v2603_v63  ;;  %v2609_v14 = vpop.permute.xlu0 %2608 }
 0x144   : > { %4411 = vrot.lane.b32.xlu1 %v8849_v7, %s8715_s14  ;;  %2637 = vmatpush1.bf16.msra.mxu0 %v2611_v13  ;;  %v2614_v15 = vsel %vm2610_vm12, %v2607_v3, %v2609_v14 }
 0x145   : > { %4409 = vrot.lane.b32.xlu0 %v8862_v10, %s8715_s14  ;;  %2677 = vmatprep.subr.bf16.mxu1 %v2614_v15  ;;  %v9324_v15 = vld [vmem:[%s8795_s11 + $0xc] ss:$36 sps:$4 sm:$0xff]  }
 0x146   : > { %2678 = vmatpush1.bf16.msra.mxu1 %v2613_v16  ;;  %v2741_v18 = vpop.permute.xlu1 %2740 }
 0x147   : > { %v2739_v19 = vpop.permute.xlu0 %2738 }
 0x148   : > { %8365 = vmatmul.mubr.msk.bf16.vlgmr.msra.gmra.mxu0 %vm11719_vm1, %v8364_v17  ;;  %4405 = vrot.lane.b32.xlu1 %v9151_v52, %s8715_s14  ;;  %v2747_v20 = vsel %vm300_vm0, %v2739_v19, %v2741_v18 }
 0x149   : > { %4413 = vrot.lane.b32.xlu0 %v9158_v55, %s8715_s14  ;;  %8366 = vmatmul.mubr.msk.bf16.vlgmr.msra.gmra.mxu1 %vm11719_vm1, %v8364_v17 }
 0x14a   : > { %2771 = vmatprep.subr.bf16.mxu0 %v2747_v20  ;;  %v2745_v21 = vpop.permute.xlu1 %2744  ;;  %2830 = vmatprep.mubr.bf16.mxu1 %v11722_v6 }
 0x14b   : > { %v2743_v22 = vpop.permute.xlu0 %2742  ;;  %2789 = vmatprep.mubr.bf16.mxu0 %v11722_v6 }
 0x14c   : > { %4545 = vrot.lane.b32.xlu1 %v8862_v10, %s8708_s6  ;;  %v2749_v23 = vsel %vm300_vm0, %v2743_v22, %v2745_v21  ;;  %v2748_v24 = vsel %vm300_vm0, %v2741_v18, %v2743_v22 }
 0x14d   : > { %4543 = vrot.lane.b32.xlu0 %v9133_v47, %s8708_s6  ;;  %2812 = vmatprep.subr.bf16.mxu1 %v2749_v23 }
 0x14e   : > { %2813 = vmatpush1.bf16.msra.mxu1 %v2748_v24  ;;  %v2876_v25 = vpop.permute.xlu1 %2875 }
 0x14f   : > { %v2737_v26 = vpop.permute.xlu0 %2736 }
 0x150   : > { %v2746_v28 = vsel %vm300_vm0, %v2737_v26, %v2739_v19  ;;  %4549 = vrot.lane.b32.xlu1 %v9158_v55, %s8708_s6  ;;  %vm395_vm0 = vcmp.ge.s32.totalorder %v9222_v29, 1 }
 0x151   : > { %4547 = vrot.lane.b32.xlu0 %v8849_v7, %s8708_s6  ;;  %2772 = vmatpush1.bf16.msra.mxu0 %v2746_v28  ;;  %vm9250_vm15 = vmand %vm395_vm0, %vm11709_vm13 }
 0x152   : > { %8369 = vmatmul.mubr.msk.bf16.vlgmr.msra.gmra.mxu1 %vm11719_vm1, %v8367_v27  ;;  %v2880_v31 = vpop.permute.xlu1 %2879  ;;  %vm399_vm11 = vmand %vm9250_vm15, %vm398_vm10  ;;  %v531_v50 = vsel %vm9250_vm15, 1, %v11722_v6 }
 0x153   : > { %v2878_v32 = vpop.permute.xlu0 %2877  ;;  %2967 = vmatprep.mubr.bf16.mxu1 %v11722_v6  ;;  %v400_v46 = vsel %vm399_vm11, 1, %v11722_v6  ;;  %v535_v63 = vrot.slane %v531_v50, %v9273_v45  ;;  %v543_v14 = vrot.slane %v531_v50, %v9283_v11  ;;  %v539_v17 = vrot.slane %v531_v50, %v9287_v49 }
 0x154   : > { %8368 = vmatmul.mubr.msk.bf16.vlgmr.msra.gmra.mxu0 %vm11719_vm1, %v8367_v27  ;;  %4677 = vrot.lane.b32.xlu1 %v9133_v47, %s8716_s25  ;;  %v2884_v33 = vsel %vm437_vm2, %v2876_v25, %v2878_v32  ;;  %v2885_v42 = vsel %vm437_vm2, %v2878_v32, %v2880_v31  ;;  %v404_v57 = vrot.slane %v400_v46, %v9273_v45 }
 0x155   : > { %4541 = vrot.lane.b32.xlu0 %v9151_v52, %s8708_s6  ;;  %2908 = vmatprep.subr.bf16.mxu0 %v2884_v33  ;;  %v412_v61 = vrot.slane %v400_v46, %v9283_v11  ;;  %v408_v2 = vrot.slane %v400_v46, %v9287_v49  ;;  %v416_v12 = vrot.slane %v400_v46, %v9303_v59  ;;  %vm9334_vm11 = vcmp.eq.s32.totalorder %v535_v63, 1 }
 0x156   : > { %v2874_v36 = vpop.permute.xlu1 %2873  ;;  %2926 = vmatprep.mubr.bf16.mxu0 %v11722_v6  ;;  %vm9317_vm12 = vcmp.eq.s32.totalorder %v404_v57, 1  ;;  %v547_v22 = vrot.slane %v531_v50, %v9303_v59  ;;  %vm9362_vm9 = vcmp.eq.s32.totalorder %v543_v14, 1  ;;  %v8376_v57 = vld [vmem:[%s8790_s8 + $0x2a] sm:$0x3] }
 0x157   : > { %v2883_v37 = vsel %vm437_vm2, %v2874_v36, %v2876_v25  ;;  %v2882_v38 = vpop.permute.xlu0 %2881  ;;  %vm9350_vm13 = vcmp.eq.s32.totalorder %v408_v2, 1 }
 0x158   : > { %4681 = vrot.lane.b32.xlu1 %v8849_v7, %s8716_s25  ;;  %2909 = vmatpush1.bf16.msra.mxu0 %v2883_v37  ;;  %v2886_v40 = vsel %vm437_vm2, %v2880_v31, %v2882_v38  ;;  %vm11718_vm2 = vcmp.lt.s32.totalorder %v9238_v34, 7 }
 0x159   : > { %4679 = vrot.lane.b32.xlu0 %v8862_v10, %s8716_s25  ;;  %2949 = vmatprep.subr.bf16.mxu1 %v2886_v40  ;;  %vm9343_vm14 = vmand %vm9250_vm15, %vm11718_vm2  ;;  %vm9358_vm15 = vcmp.eq.s32.totalorder %v416_v12, 1 }
 0x15a   : > { %2950 = vmatpush1.bf16.msra.mxu1 %v2885_v42  ;;  %v3012_v44 = vpop.permute.xlu1 %3011  ;;  %v668_v37 = vsel %vm9343_vm14, 1, %v11722_v6 }
 0x15b   : > { %v3010_v7 = vpop.permute.xlu0 %3009  ;;  %v684_v2 = vrot.slane %v668_v37, %v9303_v59  ;;  %v676_v14 = vrot.slane %v668_v37, %v9287_v49 }
 0x15c   : > { %8371 = vmatmul.mubr.msk.bf16.vlgmr.msra.gmra.mxu0 %vm11719_vm1, %v8370_v43  ;;  %4675 = vrot.lane.b32.xlu1 %v9151_v52, %s8716_s25  ;;  %v3018_v10 = vsel %vm572_vm3, %v3010_v7, %v3012_v44 }
 0x15d   : > { %4683 = vrot.lane.b32.xlu0 %v9158_v55, %s8716_s25  ;;  %8372 = vmatmul.mubr.msk.bf16.vlgmr.msra.gmra.mxu1 %vm11719_vm1, %v8370_v43  ;;  %v9280_v48 = vpop.f32.mrf.mxu1 }
 0x15e   : > { %3042 = vmatprep.subr.bf16.mxu0 %v3018_v10  ;;  %v3016_v9 = vpop.permute.xlu1 %3015  ;;  %3101 = vmatprep.mubr.bf16.mxu1 %v11722_v6 }
 0x15f   : > { %v3014_v8 = vpop.permute.xlu0 %3013  ;;  %3060 = vmatprep.mubr.bf16.mxu0 %v11722_v6  ;;  %v347_v56 = vpop.f32.mrf.mxu0 }
 0x160   : > { %4815 = vrot.lane.b32.xlu1 %v9293_v51, %s8717_s30  ;;  %v3020_v53 = vsel %vm572_vm3, %v3014_v8, %v3016_v9  ;;  %v3019_v54 = vsel %vm572_vm3, %v3012_v44, %v3014_v8  ;;  %v9300_v58 = vpop.f32.mrf.mxu1  ;;  %v421_v25 = vsel %vm9317_vm12, %v347_v56, 0.0  ;;  %vm9373_vm12 = vcmp.eq.s32.totalorder %v539_v17, 1 }
 0x161   : > { %4813 = vrot.lane.b32.xlu0 %v9133_v47, %s8717_s30  ;;  %3083 = vmatprep.subr.bf16.mxu1 %v3020_v53  ;;  %v9308_v62 = vpop.f32.mrf.mxu0  ;;  %v424_v10 = vsel %vm9358_vm15, %v9300_v58, 0.0 }
 0x162   : > { %3084 = vmatpush1.bf16.msra.mxu1 %v3019_v54  ;;  %v3145_v60 = vpop.permute.xlu1 %3144  ;;  %v392_v3 = vpop.f32.mrf.mxu1  ;;  %v422_v39 = vsel %vm9350_vm13, %v9308_v62, 0.0  ;;  %v680_v54 = vrot.slane %v668_v37, %v9283_v11  ;;  %vm9431_vm13 = vcmp.eq.s32.totalorder %v684_v2, 1 }
 0x163   : > { %v3008_v0 = vpop.permute.xlu0 %3007  ;;  %v351_v13 = vpop.f32.mrf.mxu0 }
 0x164   : > { %v3017_v4 = vsel %vm572_vm3, %v3008_v0, %v3010_v7  ;;  %4819 = vrot.lane.b32.xlu1 %v9158_v55, %s8717_s30  ;;  %v393_v16 = vpop.f32.mrf.mxu1  ;;  %vm9330_vm3 = vcmp.eq.s32.totalorder %v412_v61, 1 }
 0x165   : > { %4817 = vrot.lane.b32.xlu0 %v9324_v15, %s8717_s30  ;;  %3043 = vmatpush1.bf16.msra.mxu0 %v3017_v4  ;;  %v352_v20 = vpop.f32.mrf.mxu0  ;;  %v423_v33 = vsel %vm9330_vm3, %v9280_v48, 0.0  ;;  %vm9386_vm3 = vcmp.eq.s32.totalorder %v547_v22, 1 }
 0x166   : > { %8375 = vmatmul.mubr.msk.bf16.vlgmr.msra.gmra.mxu1 %vm11719_vm1, %v8373_v1  ;;  %v3149_v18 = vpop.permute.xlu1 %3148 }
 0x167   : > { %v3147_v24 = vpop.permute.xlu0 %3146  ;;  %3236 = vmatprep.mubr.bf16.mxu1 %v11722_v6  ;;  %v483_v31 = vpop.f32.mrf.mxu0 }
 0x168   : > { %8374 = vmatmul.mubr.msk.bf16.vlgmr.msra.gmra.mxu0 %vm11719_vm1, %v8373_v1  ;;  %4951 = vrot.lane.b32.xlu1 %v9133_v47, %s8718_s5  ;;  %v3153_v27 = vsel %vm709_vm4, %v3145_v60, %v3147_v24  ;;  %v552_v35 = vsel %vm9334_vm11, %v483_v31, 0.0  ;;  %v3154_v56 = vsel %vm709_vm4, %v3147_v24, %v3149_v18  ;;  %v672_v1 = vrot.slane %v668_v37, %v9273_v45 }
 0x169   : > { %4811 = vrot.lane.b32.xlu0 %v9151_v52, %s8717_s30  ;;  %3177 = vmatprep.subr.bf16.mxu0 %v3153_v27  ;;  %v9384_v40 = vadd.f32 %v552_v35, %v421_v25  ;;  %v524_v42 = vpop.f32.mrf.mxu1  ;;  %v485_v9 = vpop.f32.mrf.mxu0  ;;  %vm9443_vm11 = vcmp.eq.s32.totalorder %v676_v14, 1 }
 0x16a   : > { %v3143_v38 = vpop.permute.xlu1 %3142  ;;  %3195 = vmatprep.mubr.bf16.mxu0 %v11722_v6  ;;  %v554_v46 = vsel %vm9362_vm9, %v524_v42, 0.0  ;;  %v553_v50 = vsel %vm9373_vm12, %v485_v9, 0.0  ;;  %vm803_vm9 = vmand %vm395_vm0, %vm398_vm10  ;;  %vm9427_vm14 = vcmp.eq.s32.totalorder %v672_v1, 1 }
 0x16b   : > { %v3152_v44 = vsel %vm709_vm4, %v3143_v38, %v3145_v60  ;;  %v3151_v7 = vpop.permute.xlu0 %3150  ;;  %v558_v8 = vadd.f32 %v554_v46, %v423_v33  ;;  %v526_v53 = vpop.f32.mrf.mxu1  ;;  %v557_v58 = vadd.f32 %v553_v50, %v422_v39  ;;  %v804_v22 = vsel %vm803_vm9, 1, %v11722_v6  ;;  %v8379_v39 = vld [vmem:[%s8790_s8 + $0x2c] sm:$0x3] }
 0x16c   : > { %4955 = vrot.lane.b32.xlu1 %v9324_v15, %s8718_s5  ;;  %3178 = vmatpush1.bf16.msra.mxu0 %v3152_v44  ;;  %v3155_v48 = vsel %vm709_vm4, %v3149_v18, %v3151_v7  ;;  %v555_v60 = vsel %vm9386_vm3, %v526_v53, 0.0  ;;  %v487_v61 = vpop.f32.mrf.mxu0  ;;  %vm9414_vm4 = vcmp.eq.s32.totalorder %v680_v54, 1  ;;  %v808_v37 = vrot.slane %v804_v22, %v9273_v45  ;;  %v9462_v7 = vld [vmem:[%s8795_s11 + $0xc] ss:$36 sps:$4 sm:$0xff]  }
 0x16d   : > { %4953 = vrot.lane.b32.xlu0 %v9293_v51, %s8718_s5  ;;  %3218 = vmatprep.subr.bf16.mxu1 %v3155_v48  ;;  %v559_v63 = vadd.f32 %v555_v60, %v424_v10  ;;  %v528_v0 = vpop.f32.mrf.mxu1  ;;  %v812_v48 = vrot.slane %v804_v22, %v9287_v49  ;;  %v820_v53 = vrot.slane %v804_v22, %v9303_v59  ;;  %v9489_v60 = vld [vmem:[%s8795_s11 + $0x10] ss:$36 sps:$4 sm:$0xff]  }
 0x16e   : > { %3219 = vmatpush1.bf16.msra.mxu1 %v3154_v56  ;;  %v3282_v62 = vpop.permute.xlu1 %3281  ;;  %v488_v4 = vpop.f32.mrf.mxu0  ;;  %v9480_v56 = vld [vmem:[%s8795_s11 + $0x14] ss:$36 sps:$4 sm:$0xff]  }
 0x16f   : > { %v3280_v3 = vpop.permute.xlu0 %3279  ;;  %v529_v12 = vpop.f32.mrf.mxu1  ;;  %vm9493_vm12 = vcmp.eq.s32.totalorder %v812_v48, 1  ;;  %vm9503_vm3 = vcmp.eq.s32.totalorder %v820_v53, 1 }
 0x170   : > { %8377 = vmatmul.mubr.msk.bf16.vlgmr.msra.gmra.mxu0 %vm11719_vm1, %v8376_v57  ;;  %4949 = vrot.lane.b32.xlu1 %v9151_v52, %s8718_s5  ;;  %v3288_v5 = vsel %vm845_vm5, %v3280_v3, %v3282_v62 }
 0x171   : > { %4957 = vrot.lane.b32.xlu0 %v9158_v55, %s8718_s5  ;;  %8378 = vmatmul.mubr.msk.bf16.vlgmr.msra.gmra.mxu1 %vm11719_vm1, %v8376_v57  ;;  %v659_v18 = vpop.f32.mrf.mxu1 }
 0x172   : > { %3312 = vmatprep.subr.bf16.mxu0 %v3288_v5  ;;  %v3286_v16 = vpop.permute.xlu1 %3285  ;;  %3371 = vmatprep.mubr.bf16.mxu1 %v11722_v6  ;;  %v691_v21 = vsel %vm9414_vm4, %v659_v18, 0.0  ;;  %vm1074_vm4 = vmand %vm395_vm0, %vm11718_vm2 }
 0x173   : > { %v3284_v20 = vpop.permute.xlu0 %3283  ;;  %3330 = vmatprep.mubr.bf16.mxu0 %v11722_v6  ;;  %v618_v25 = vpop.f32.mrf.mxu0  ;;  %v695_v26 = vadd.f32 %v691_v21, %v558_v8  ;;  %v1075_v48 = vsel %vm1074_vm4, 1, %v11722_v6 }
 0x174   : > { %5088 = vrot.lane.b32.xlu1 %v9293_v51, %s8719_s7  ;;  %v3290_v23 = vsel %vm845_vm5, %v3284_v20, %v3286_v16  ;;  %v3289_v24 = vsel %vm845_vm5, %v3282_v62, %v3284_v20  ;;  %v661_v28 = vpop.f32.mrf.mxu1  ;;  %v689_v51 = vsel %vm9427_vm14, %v618_v25, 0.0  ;;  %v9514_v16 = vld [vmem:[%s8795_s11 + $0x8] ss:$36 sps:$4 sm:$0xff]   ;;  %v1083_v29 = vrot.slane %v1075_v48, %v9287_v49 }
 0x175   : > { %5086 = vrot.lane.b32.xlu0 %v9133_v47, %s8719_s7  ;;  %3353 = vmatprep.subr.bf16.mxu1 %v3290_v23  ;;  %v692_v31 = vsel %vm9431_vm13, %v661_v28, 0.0  ;;  %v693_v33 = vadd.f32 %v689_v51, %v9384_v40  ;;  %v620_v35 = vpop.f32.mrf.mxu0  ;;  %v816_v40 = vrot.slane %v804_v22, %v9283_v11  ;;  %v8382_v22 = vld [vmem:[%s8790_s8 + $0x2e] sm:$0x3]  ;;  %v9524_v23 = vld [vmem:[%s8795_s11 + $0x18] ss:$36 sps:$4 sm:$0xff]  }
 0x176   : > { %3354 = vmatpush1.bf16.msra.mxu1 %v3289_v24  ;;  %v3414_v32 = vpop.permute.xlu1 %3413  ;;  %v696_v36 = vadd.f32 %v692_v31, %v559_v63  ;;  %v690_v42 = vsel %vm9443_vm11, %v620_v35, 0.0  ;;  %v663_v43 = vpop.f32.mrf.mxu1  ;;  %v939_v63 = vsel %vm395_vm0, 1, %v11722_v6  ;;  %vm11712_vm11 = vcmp.lt.s32.totalorder %v9227_v30, 7 }
 0x177   : > { %v3278_v38 = vpop.permute.xlu0 %3277  ;;  %v694_v10 = vadd.f32 %v690_v42, %v557_v58  ;;  %v622_v46 = vpop.f32.mrf.mxu0  ;;  %vm9482_vm15 = vcmp.eq.s32.totalorder %v816_v40, 1  ;;  %v951_v20 = vrot.slane %v939_v63, %v9283_v11  ;;  %v943_v31 = vrot.slane %v939_v63, %v9273_v45 }
 0x178   : > { %v3287_v44 = vsel %vm845_vm5, %v3278_v38, %v3280_v3  ;;  %5092 = vrot.lane.b32.xlu1 %v9158_v55, %s8719_s7  ;;  %v664_v9 = vpop.f32.mrf.mxu1  ;;  %vm9469_vm5 = vcmp.eq.s32.totalorder %v808_v37, 1  ;;  %v947_v37 = vrot.slane %v939_v63, %v9287_v49  ;;  %v8385_v3 = vld [vmem:[%s8790_s8 + $0x30] sm:$0x3] }
 0x179   : > { %5090 = vrot.lane.b32.xlu0 %v9324_v15, %s8719_s7  ;;  %3313 = vmatpush1.bf16.msra.mxu0 %v3287_v44  ;;  %v623_v50 = vpop.f32.mrf.mxu0  ;;  %vm9547_vm9 = vcmp.eq.s32.totalorder %v943_v31, 1 }
 0x17a   : > { %8381 = vmatmul.mubr.msk.bf16.vlgmr.msra.gmra.mxu1 %vm11719_vm1, %v8379_v39  ;;  %v3418_v8 = vpop.permute.xlu1 %3417  ;;  %vm9558_vm13 = vcmp.eq.s32.totalorder %v947_v37, 1  ;;  %v8391_v37 = vld [vmem:[%s8790_s8 + $0x34] sm:$0x3] }
 0x17b   : > { %v3416_v54 = vpop.permute.xlu0 %3415  ;;  %3505 = vmatprep.mubr.bf16.mxu1 %v11722_v6  ;;  %v755_v57 = vpop.f32.mrf.mxu0 }
 0x17c   : > { %8380 = vmatmul.mubr.msk.bf16.vlgmr.msra.gmra.mxu0 %vm11719_vm1, %v8379_v39  ;;  %5390 = vrot.lane.b32.xlu1 %v9462_v7, %s8713_s12  ;;  %v3422_v15 = vsel %vm980_vm6, %v3414_v32, %v3416_v54  ;;  %v825_v61 = vsel %vm9469_vm5, %v755_v57, 0.0  ;;  %v3423_v21 = vsel %vm980_vm6, %v3416_v54, %v3418_v8  ;;  %vm9583_vm5 = vmand %vm395_vm0, %vm11712_vm11 }
 0x17d   : > { %5084 = vrot.lane.b32.xlu0 %v9151_v52, %s8719_s7  ;;  %3446 = vmatprep.subr.bf16.mxu0 %v3422_v15  ;;  %v9501_v1 = vadd.f32 %v825_v61, %v693_v33  ;;  %v796_v2 = vpop.f32.mrf.mxu1  ;;  %v757_v13 = vpop.f32.mrf.mxu0 }
 0x17e   : > { %v3412_v0 = vpop.permute.xlu1 %3411  ;;  %3464 = vmatprep.mubr.bf16.mxu0 %v11722_v6  ;;  %v827_v12 = vsel %vm9482_vm15, %v796_v2, 0.0  ;;  %v826_v18 = vsel %vm9493_vm12, %v757_v13, 0.0  ;;  %vm9617_vm12 = vcmp.eq.s32.totalorder %v1083_v29, 1 }
 0x17f   : > { %v3421_v4 = vsel %vm980_vm6, %v3412_v0, %v3414_v32  ;;  %v3420_v5 = vpop.permute.xlu0 %3419  ;;  %v831_v17 = vadd.f32 %v827_v12, %v695_v26  ;;  %v798_v19 = vpop.f32.mrf.mxu1  ;;  %v830_v24 = vadd.f32 %v826_v18, %v694_v10  ;;  %v955_v32 = vrot.slane %v939_v63, %v9303_v59 }
 0x180   : > { %5394 = vrot.lane.b32.xlu1 %v9480_v56, %s8713_s12  ;;  %3447 = vmatpush1.bf16.msra.mxu0 %v3421_v4  ;;  %v3424_v14 = vsel %vm980_vm6, %v3418_v8, %v3420_v5  ;;  %v828_v25 = vsel %vm9503_vm3, %v798_v19, 0.0  ;;  %v759_v26 = vpop.f32.mrf.mxu0  ;;  %vm9535_vm6 = vcmp.eq.s32.totalorder %v951_v20, 1  ;;  %v1079_v0 = vrot.slane %v1075_v48, %v9273_v45 }
 0x181   : > { %5392 = vrot.lane.b32.xlu0 %v9489_v60, %s8713_s12  ;;  %3487 = vmatprep.subr.bf16.mxu1 %v3424_v14  ;;  %v832_v28 = vadd.f32 %v828_v25, %v696_v36  ;;  %v800_v51 = vpop.f32.mrf.mxu1  ;;  %vm9551_vm14 = vcmp.eq.s32.totalorder %v955_v32, 1 }
 0x182   : > { %3488 = vmatpush1.bf16.msra.mxu1 %v3423_v21  ;;  %v3551_v27 = vpop.permute.xlu1 %3550  ;;  %v760_v35 = vpop.f32.mrf.mxu0  ;;  %vm9595_vm0 = vcmp.eq.s32.totalorder %v1079_v0, 1 }
 0x183   : > { %v3549_v33 = vpop.permute.xlu0 %3548  ;;  %v801_v39 = vpop.f32.mrf.mxu1 }
 0x184   : > { %8383 = vmatmul.mubr.msk.bf16.vlgmr.msra.gmra.mxu0 %vm11719_vm1, %v8382_v22  ;;  %5388 = vrot.lane.b32.xlu1 %v9514_v16, %s8713_s12  ;;  %v3557_v38 = vsel %vm1116_vm7, %v3549_v33, %v3551_v27 }
 0x185   : > { %5396 = vrot.lane.b32.xlu0 %v9524_v23, %s8713_s12  ;;  %8384 = vmatmul.mubr.msk.bf16.vlgmr.msra.gmra.mxu1 %vm11719_vm1, %v8382_v22  ;;  %v932_v44 = vpop.f32.mrf.mxu1  ;;  %v1091_v22 = vrot.slane %v1075_v48, %v9303_v59 }
 0x186   : > { %3581 = vmatprep.subr.bf16.mxu0 %v3557_v38  ;;  %v3555_v36 = vpop.permute.xlu1 %3554  ;;  %3640 = vmatprep.mubr.bf16.mxu1 %v11722_v6  ;;  %v962_v40 = vsel %vm9535_vm6, %v932_v44, 0.0 }
 0x187   : > { %v3553_v46 = vpop.permute.xlu0 %3552  ;;  %3599 = vmatprep.mubr.bf16.mxu0 %v11722_v6  ;;  %v891_v55 = vpop.f32.mrf.mxu0  ;;  %v966_v53 = vadd.f32 %v962_v40, %v831_v17  ;;  %v1087_v17 = vrot.slane %v1075_v48, %v9283_v11  ;;  %vm9623_vm3 = vcmp.eq.s32.totalorder %v1091_v22, 1  ;;  %v8388_v48 = vld [vmem:[%s8790_s8 + $0x32] sm:$0x3] }
 0x188   : > { %5526 = vrot.lane.b32.xlu1 %v9489_v60, %s8714_s13  ;;  %v3559_v8 = vsel %vm1116_vm7, %v3553_v46, %v3555_v36  ;;  %v3558_v50 = vsel %vm1116_vm7, %v3551_v27, %v3553_v46  ;;  %v934_v54 = vpop.f32.mrf.mxu1  ;;  %v960_v15 = vsel %vm9547_vm9, %v891_v55, 0.0 }
 0x189   : > { %5524 = vrot.lane.b32.xlu0 %v9462_v7, %s8714_s13  ;;  %3622 = vmatprep.subr.bf16.mxu1 %v3559_v8  ;;  %v963_v57 = vsel %vm9551_vm14, %v934_v54, 0.0  ;;  %v964_v61 = vadd.f32 %v960_v15, %v9501_v1  ;;  %v893_v62 = vpop.f32.mrf.mxu0  ;;  %vm9609_vm15 = vcmp.eq.s32.totalorder %v1087_v17, 1 }
 0x18a   : > { %3623 = vmatpush1.bf16.msra.mxu1 %v3558_v50  ;;  %v3685_v58 = vpop.permute.xlu1 %3684  ;;  %v967_v63 = vadd.f32 %v963_v57, %v832_v28  ;;  %v961_v4 = vsel %vm9558_vm13, %v893_v62, 0.0  ;;  %v936_v5 = vpop.f32.mrf.mxu1 }
 0x18b   : > { %v3547_v2 = vpop.permute.xlu0 %3546  ;;  %v965_v13 = vadd.f32 %v961_v4, %v830_v24  ;;  %v895_v14 = vpop.f32.mrf.mxu0 }
 0x18c   : > { %v3556_v1 = vsel %vm1116_vm7, %v3547_v2, %v3549_v33  ;;  %5530 = vrot.lane.b32.xlu1 %v9524_v23, %s8714_s13  ;;  %v937_v18 = vpop.f32.mrf.mxu1  ;;  %vm1212_vm7 = vmand %vm9583_vm5, %vm398_vm10 }
 0x18d   : > { %5528 = vrot.lane.b32.xlu0 %v9480_v56, %s8714_s13  ;;  %3582 = vmatpush1.bf16.msra.mxu0 %v3556_v1  ;;  %v896_v20 = vpop.f32.mrf.mxu0  ;;  %v1213_v31 = vsel %vm1212_vm7, 1, %v11722_v6  ;;  %v1348_v18 = vsel %vm9583_vm5, 1, %v11722_v6 }
 0x18e   : > { %8387 = vmatmul.mubr.msk.bf16.vlgmr.msra.gmra.mxu1 %vm11719_vm1, %v8385_v3  ;;  %v3689_v19 = vpop.permute.xlu1 %3688  ;;  %v1225_v40 = vrot.slane %v1213_v31, %v9283_v11  ;;  %v1217_v57 = vrot.slane %v1213_v31, %v9273_v45 }
 0x18f   : > { %v3687_v24 = vpop.permute.xlu0 %3686  ;;  %3776 = vmatprep.mubr.bf16.mxu1 %v11722_v6  ;;  %v1026_v26 = vpop.f32.mrf.mxu0 }
 0x190   : > { %8386 = vmatmul.mubr.msk.bf16.vlgmr.msra.gmra.mxu0 %vm11719_vm1, %v8385_v3  ;;  %5659 = vrot.lane.b32.xlu1 %v9462_v7, %s8715_s14  ;;  %v3693_v25 = vsel %vm1254_vm8, %v3685_v58, %v3687_v24  ;;  %v1096_v28 = vsel %vm9595_vm0, %v1026_v26, 0.0  ;;  %v3694_v9 = vsel %vm1254_vm8, %v3687_v24, %v3689_v19  ;;  %vm9648_vm6 = vcmp.eq.s32.totalorder %v1225_v40, 1 }
 0x191   : > { %5522 = vrot.lane.b32.xlu0 %v9514_v16, %s8714_s13  ;;  %3717 = vmatprep.subr.bf16.mxu0 %v3693_v25  ;;  %v1100_v33 = vadd.f32 %v1096_v28, %v964_v61  ;;  %v1067_v35 = vpop.f32.mrf.mxu1  ;;  %v1028_v36 = vpop.f32.mrf.mxu0  ;;  %vm9657_vm4 = vcmp.eq.s32.totalorder %v1217_v57, 1 }
 0x192   : > { %v3683_v32 = vpop.permute.xlu1 %3682  ;;  %3735 = vmatprep.mubr.bf16.mxu0 %v11722_v6  ;;  %v1098_v42 = vsel %vm9609_vm15, %v1067_v35, 0.0  ;;  %v1097_v10 = vsel %vm9617_vm12, %v1028_v36, 0.0  ;;  %vm4143_vm15 = vcmask 1014784  }
 0x193   : > { %v3692_v38 = vsel %vm1254_vm8, %v3683_v32, %v3685_v58  ;;  %v3691_v39 = vpop.permute.xlu0 %3690  ;;  %v1102_v44 = vadd.f32 %v1098_v42, %v966_v53  ;;  %v1069_v46 = vpop.f32.mrf.mxu1  ;;  %v1101_v8 = vadd.f32 %v1097_v10, %v965_v13  ;;  %v1229_v58 = vrot.slane %v1213_v31, %v9303_v59 }
 0x194   : > { %5663 = vrot.lane.b32.xlu1 %v9480_v56, %s8715_s14  ;;  %3718 = vmatpush1.bf16.msra.mxu0 %v3692_v38  ;;  %v3695_v43 = vsel %vm1254_vm8, %v3689_v19, %v3691_v39  ;;  %v1099_v50 = vsel %vm9623_vm3, %v1069_v46, 0.0  ;;  %v1030_v55 = vpop.f32.mrf.mxu0  ;;  %vm11781_vm8 = vcmask 154624   ;;  %v1352_v32 = vrot.slane %v1348_v18, %v9273_v45  ;;  %vm1483_vm3 = vmand %vm9583_vm5, %vm11718_vm2 }
 0x195   : > { %5661 = vrot.lane.b32.xlu0 %v9489_v60, %s8715_s14  ;;  %3758 = vmatprep.subr.bf16.mxu1 %v3695_v43  ;;  %v1103_v54 = vadd.f32 %v1099_v50, %v967_v63  ;;  %v1071_v15 = vpop.f32.mrf.mxu1  ;;  %v1221_v63 = vrot.slane %v1213_v31, %v9287_v49  ;;  %vm9661_vm9 = vcmp.eq.s32.totalorder %v1229_v58, 1  ;;  %vm11788_vm14 = vmmov %vm11781_vm8  ;;  %v1356_v10 = vrot.slane %v1348_v18, %v9287_v49 }
 0x196   : > { %3759 = vmatpush1.bf16.msra.mxu1 %v3694_v9  ;;  %v3821_v53 = vpop.permute.xlu1 %3820  ;;  %v1031_v62 = vpop.f32.mrf.mxu0  ;;  %vm11789_vm13 = vmmov %vm11781_vm8  ;;  %vm9701_vm12 = vcmp.eq.s32.totalorder %v1352_v32, 1 }
 0x197   : > { %v3819_v61 = vpop.permute.xlu0 %3818  ;;  %v1072_v2 = vpop.f32.mrf.mxu1  ;;  %vm9675_vm0 = vcmp.eq.s32.totalorder %v1221_v63, 1  ;;  %vm11792_vm7 = vmmov %vm11781_vm8  ;;  %vm9726_vm5 = vcmp.eq.s32.totalorder %v1356_v10, 1  ;;  %v8394_v62 = vld [vmem:[%s8790_s8 + $0x36] sm:$0x3] }
 0x198   : > { %8389 = vmatmul.mubr.msk.bf16.vlgmr.msra.gmra.mxu0 %vm11719_vm1, %v8388_v48  ;;  %5657 = vrot.lane.b32.xlu1 %v9514_v16, %s8715_s14  ;;  %v3827_v0 = vsel %vm11781_vm8, %v3819_v61, %v3821_v53 }
 0x199   : > { %5665 = vrot.lane.b32.xlu0 %v9524_v23, %s8715_s14  ;;  %8390 = vmatmul.mubr.msk.bf16.vlgmr.msra.gmra.mxu1 %vm11719_vm1, %v8388_v48  ;;  %v1203_v1 = vpop.f32.mrf.mxu1  ;;  %v1364_v48 = vrot.slane %v1348_v18, %v9303_v59 }
 0x19a   : > { %3851 = vmatprep.subr.bf16.mxu0 %v3827_v0  ;;  %v3825_v4 = vpop.permute.xlu1 %3824  ;;  %3910 = vmatprep.mubr.bf16.mxu1 %v11722_v6  ;;  %v1236_v17 = vsel %vm9648_vm6, %v1203_v1, 0.0 }
 0x19b   : > { %v3823_v14 = vpop.permute.xlu0 %3822  ;;  %3869 = vmatprep.mubr.bf16.mxu0 %v11722_v6  ;;  %v1162_v20 = vpop.f32.mrf.mxu0  ;;  %v1240_v21 = vadd.f32 %v1236_v17, %v1102_v44  ;;  %vm9734_vm6 = vcmp.eq.s32.totalorder %v1364_v48, 1 }
 0x19c   : > { %5795 = vrot.lane.b32.xlu1 %v9489_v60, %s8708_s6  ;;  %v3829_v29 = vsel %vm11788_vm14, %v3823_v14, %v3825_v4  ;;  %v3828_v19 = vsel %vm11789_vm13, %v3821_v53, %v3823_v14  ;;  %v1205_v24 = vpop.f32.mrf.mxu1  ;;  %v1234_v25 = vsel %vm9657_vm4, %v1162_v20, 0.0  ;;  %vm11711_vm4 = vcmask 982016  }
 0x19d   : > { %5793 = vrot.lane.b32.xlu0 %v9462_v7, %s8708_s6  ;;  %3892 = vmatprep.subr.bf16.mxu1 %v3829_v29  ;;  %v1237_v26 = vsel %vm9661_vm9, %v1205_v24, 0.0  ;;  %v1238_v28 = vadd.f32 %v1234_v25, %v1100_v33  ;;  %v1164_v51 = vpop.f32.mrf.mxu0  ;;  %v1360_v33 = vrot.slane %v1348_v18, %v9283_v11  ;;  %vm11803_vm14 = vcmp.ge.s32.totalorder %v9227_v30, 1 }
 0x19e   : > { %3893 = vmatpush1.bf16.msra.mxu1 %v3828_v19  ;;  %v9685_v27 = vpop.permute.xlu1 %4135  ;;  %v1241_v31 = vadd.f32 %v1237_v26, %v1103_v54  ;;  %v1235_v38 = vsel %vm9675_vm0, %v1164_v51, 0.0  ;;  %v1207_v39 = vpop.f32.mrf.mxu1  ;;  %v1484_v54 = vsel %vm1483_vm3, 1, %v11722_v6  ;;  %vm1646_vm13 = vmand %vm11803_vm14, %vm398_vm10  ;;  %vm11717_vm3 = vcmask 785408  }
 0x19f   : > { %v3817_v35 = vpop.permute.xlu0 %3816  ;;  %4047 = vmatprep.subr.bf16.mxu1 %v9462_v7  ;;  %v1239_v36 = vadd.f32 %v1235_v38, %v1101_v8  ;;  %v1166_v43 = vpop.f32.mrf.mxu0  ;;  %vm9717_vm8 = vcmp.eq.s32.totalorder %v1360_v33, 1  ;;  %v1496_v1 = vrot.slane %v1484_v54, %v9283_v11  ;;  %v1500_v22 = vrot.slane %v1484_v54, %v9303_v59 }
 0x1a0   : > { %v3826_v42 = vsel %vm11792_vm7, %v3817_v35, %v3819_v61  ;;  %5799 = vrot.lane.b32.xlu1 %v9524_v23, %s8708_s6  ;;  %v1208_v44 = vpop.f32.mrf.mxu1  ;;  %v1492_v32 = vrot.slane %v1484_v54, %v9287_v49  ;;  %v1647_v43 = vsel %vm1646_vm13, 1, %v11722_v6  ;;  %vm11817_vm13 = vcmask 752640  }
 0x1a1   : > { %5797 = vrot.lane.b32.xlu0 %v9480_v56, %s8708_s6  ;;  %3852 = vmatpush1.bf16.msra.mxu0 %v3826_v42  ;;  %v1167_v40 = vpop.f32.mrf.mxu0  ;;  %vm9762_vm9 = vcmp.eq.s32.totalorder %v1496_v1, 1  ;;  %vm9778_vm7 = vcmp.eq.s32.totalorder %v1500_v22, 1  ;;  %v8401_v42 = vld [vmem:[%s8790_s8 + $0x38] sm:$0x3]  ;;  %v1651_v53 = vrot.slane %v1647_v43, %v9273_v45  ;;  %v8409_v1 = vld [vmem:[%s8790_s8 + $0x3a] sm:$0x3] }
 0x1a2   : > { %8393 = vmatmul.mubr.msk.bf16.vlgmr.msra.gmra.mxu1 %vm11719_vm1, %v8391_v37  ;;  %v4140_v46 = vpop.permute.xlu1 %4139  ;;  %4006 = vmatprep.subr.bf16.mxu0 %v9133_v47 }
 0x1a3   : > { %v4138_v8 = vpop.permute.xlu0 %4137  ;;  %4048 = vmatpush1.bf16.msra.mxu1 %v9514_v16  ;;  %4065 = vmatprep.mubr.bf16.mxu1 %v11722_v6  ;;  %v1300_v50 = vpop.f32.mrf.mxu0 }
 0x1a4   : > { %8392 = vmatmul.mubr.msk.bf16.vlgmr.msra.gmra.mxu0 %vm11719_vm1, %v8391_v37  ;;  %5902 = vrot.lane.b32.xlu1 %v9462_v7, %s8716_s25  ;;  %v4145_v47 = vsel %vm4143_vm15, %v9685_v27, %v4138_v8  ;;  %v1369_v12 = vsel %vm9701_vm12, %v1300_v50, 0.0  ;;  %v4146_v18 = vsel %vm4143_vm15, %v4138_v8, %v4140_v46  ;;  %vm9790_vm12 = vcmp.eq.s32.totalorder %v1492_v32, 1 }
 0x1a5   : > { %5791 = vrot.lane.b32.xlu0 %v9514_v16, %s8708_s6  ;;  %4007 = vmatpush1.bf16.msra.mxu0 %v9151_v52  ;;  %v9732_v57 = vadd.f32 %v1369_v12, %v1238_v28  ;;  %v1341_v58 = vpop.f32.mrf.mxu1  ;;  %v1302_v2 = vpop.f32.mrf.mxu0 }
 0x1a6   : > { %4169 = vmatprep.subr.bf16.mxu0 %v4145_v47  ;;  %v4134_v15 = vpop.permute.xlu1 %4133  ;;  %4024 = vmatprep.mubr.bf16.mxu0 %v11722_v6  ;;  %v1371_v0 = vsel %vm9717_vm8, %v1341_v58, 0.0  ;;  %v1370_v4 = vsel %vm9726_vm5, %v1302_v2, 0.0  ;;  %v1655_v2 = vrot.slane %v1647_v43, %v9287_v49  ;;  %vm1664_vm8 = vcmp.eq.s32.totalorder %v1651_v53, 1 }
 0x1a7   : > { %v4142_v52 = vpop.permute.xlu0 %4141  ;;  %v1375_v63 = vadd.f32 %v1371_v0, %v1240_v21  ;;  %v1343_v5 = vpop.f32.mrf.mxu1  ;;  %v1374_v13 = vadd.f32 %v1370_v4, %v1239_v36  ;;  %v1488_v21 = vrot.slane %v1484_v54, %v9273_v45  ;;  %v4144_v26 = vsel %vm4143_vm15, %v4134_v15, %v9685_v27 }
 0x1a8   : > { %5906 = vrot.lane.b32.xlu1 %v9480_v56, %s8716_s25  ;;  %v4147_v3 = vsel %vm4143_vm15, %v4140_v46, %v4142_v52  ;;  %v1372_v14 = vsel %vm9734_vm6, %v1343_v5, 0.0  ;;  %v1304_v17 = vpop.f32.mrf.mxu0  ;;  %v1663_v4 = vrot.slane %v1647_v43, %v9303_v59  ;;  %vm9826_vm6 = vcmp.eq.s32.totalorder %v1655_v2, 1 }
 0x1a9   : > { %5904 = vrot.lane.b32.xlu0 %v9489_v60, %s8716_s25  ;;  %4210 = vmatprep.subr.bf16.mxu1 %v4147_v3  ;;  %v1376_v19 = vadd.f32 %v1372_v14, %v1241_v31  ;;  %v1345_v20 = vpop.f32.mrf.mxu1  ;;  %vm9774_vm0 = vcmp.eq.s32.totalorder %v1488_v21, 1 }
 0x1aa   : > { %8400 = vmatmul.mubr.msk.bf16.vlgmr.msra.gmra.mxu1 %vm11719_vm1, %v8394_v62  ;;  %v4273_v29 = vpop.permute.xlu1 %4272  ;;  %v1305_v25 = vpop.f32.mrf.mxu0 }
 0x1ab   : > { %4211 = vmatpush1.bf16.msra.mxu1 %v4146_v18  ;;  %v4271_v24 = vpop.permute.xlu0 %4270  ;;  %4228 = vmatprep.mubr.bf16.mxu1 %v11722_v6  ;;  %v1346_v51 = vpop.f32.mrf.mxu1 }
 0x1ac   : > { %8399 = vmatmul.mubr.msk.bf16.vlgmr.msra.gmra.mxu0 %vm11719_vm1, %v8394_v62  ;;  %5900 = vrot.lane.b32.xlu1 %v9514_v16, %s8716_s25  ;;  %v4280_v28 = vsel %vm11711_vm4, %v4271_v24, %v4273_v29  ;;  %v1659_v62 = vrot.slane %v1647_v43, %v9283_v11 }
 0x1ad   : > { %4170 = vmatpush1.bf16.msra.mxu0 %v4144_v26  ;;  %5908 = vrot.lane.b32.xlu0 %v9524_v23, %s8716_s25  ;;  %v1476_v37 = vpop.f32.mrf.mxu1 }
 0x1ae   : > { %4304 = vmatprep.subr.bf16.mxu0 %v4280_v28  ;;  %v4277_v27 = vpop.permute.xlu1 %4276  ;;  %4187 = vmatprep.mubr.bf16.mxu0 %v11722_v6  ;;  %v1507_v36 = vsel %vm9762_vm9, %v1476_v37, 0.0  ;;  %vm9820_vm5 = vcmp.eq.s32.totalorder %v1659_v62, 1  ;;  %vm11814_vm9 = vmmov %vm11803_vm14  ;;  %vm9834_vm14 = vcmp.eq.s32.totalorder %v1663_v4, 1 }
 0x1af   : > { %v4275_v39 = vpop.permute.xlu0 %4274  ;;  %v1435_v10 = vpop.f32.mrf.mxu0  ;;  %v1511_v46 = vadd.f32 %v1507_v36, %v1375_v63 }
 0x1b0   : > { %6038 = vrot.lane.b32.xlu1 %v9489_v60, %s8717_s30  ;;  %v4282_v33 = vsel %vm11711_vm4, %v4275_v39, %v4277_v27  ;;  %v4281_v44 = vsel %vm11711_vm4, %v4273_v29, %v4275_v39  ;;  %v1478_v9 = vpop.f32.mrf.mxu1  ;;  %v1505_v48 = vsel %vm9774_vm0, %v1435_v10, 0.0 }
 0x1b1   : > { %6036 = vrot.lane.b32.xlu0 %v9462_v7, %s8717_s30  ;;  %4345 = vmatprep.subr.bf16.mxu1 %v4282_v33  ;;  %v1508_v8 = vsel %vm9778_vm7, %v1478_v9, 0.0  ;;  %v1509_v50 = vadd.f32 %v1505_v48, %v9732_v57  ;;  %v1437_v55 = vpop.f32.mrf.mxu0  ;;  %v8412_v48 = vld [vmem:[%s8790_s8 + $0x3c] sm:$0x3]  ;;  %vm11820_vm7 = vmmov %vm11814_vm9 }
 0x1b2   : > { %8408 = vmatmul.mubr.msk.bf16.vlgmr.msra.gmra.mxu1 %vm11719_vm1, %v8401_v42  ;;  %v4408_v47 = vpop.permute.xlu1 %4407  ;;  %v1512_v12 = vadd.f32 %v1508_v8, %v1376_v19  ;;  %v1506_v15 = vsel %vm9790_vm12, %v1437_v55, 0.0  ;;  %v1480_v58 = vpop.f32.mrf.mxu1  ;;  %v1782_v19 = vsel %vm11814_vm9, 1, %v11722_v6  ;;  %vm1917_vm12 = vmand %vm11820_vm7, %vm11718_vm2 }
 0x1b3   : > { %4346 = vmatpush1.bf16.msra.mxu1 %v4281_v44  ;;  %v4269_v54 = vpop.permute.xlu0 %4268  ;;  %4363 = vmatprep.mubr.bf16.mxu1 %v11722_v6  ;;  %v1510_v57 = vadd.f32 %v1506_v15, %v1374_v13  ;;  %v1439_v52 = vpop.f32.mrf.mxu0  ;;  %v1794_v37 = vrot.slane %v1782_v19, %v9283_v11  ;;  %v1798_v36 = vrot.slane %v1782_v19, %v9303_v59 }
 0x1b4   : > { %v4279_v61 = vsel %vm11711_vm4, %v4269_v54, %v4271_v24  ;;  %8407 = vmatmul.mubr.msk.bf16.vlgmr.msra.gmra.mxu0 %vm11719_vm1, %v8401_v42  ;;  %6042 = vrot.lane.b32.xlu1 %v9524_v23, %s8717_s30  ;;  %v1481_v0 = vpop.f32.mrf.mxu1  ;;  %v1790_v55 = vrot.slane %v1782_v19, %v9287_v49 }
 0x1b5   : > { %6040 = vrot.lane.b32.xlu0 %v9480_v56, %s8717_s30  ;;  %4305 = vmatpush1.bf16.msra.mxu0 %v4279_v61  ;;  %v1440_v63 = vpop.f32.mrf.mxu0  ;;  %vm9861_vm0 = vcmp.eq.s32.totalorder %v1794_v37, 1 }
 0x1b6   : > { %v4412_v3 = vpop.permute.xlu1 %4411  ;;  %4322 = vmatprep.mubr.bf16.mxu0 %v11722_v6  ;;  %vm9889_vm9 = vcmp.eq.s32.totalorder %v1790_v55, 1 }
 0x1b7   : > { %v4410_v5 = vpop.permute.xlu0 %4409  ;;  %v1598_v14 = vpop.f32.mrf.mxu0 }
 0x1b8   : > { %6171 = vrot.lane.b32.xlu1 %v9462_v7, %s8718_s5  ;;  %v4417_v13 = vsel %vm11717_vm3, %v4408_v47, %v4410_v5  ;;  %v1668_v18 = vsel %vm1664_vm8, %v1598_v14, 0.0  ;;  %v4418_v43 = vsel %vm11717_vm3, %v4410_v5, %v4412_v3 }
 0x1b9   : > { %6034 = vrot.lane.b32.xlu0 %v9514_v16, %s8717_s30  ;;  %4441 = vmatprep.subr.bf16.mxu0 %v4417_v13  ;;  %v1672_v21 = vadd.f32 %v1668_v18, %v1509_v50  ;;  %v1639_v22 = vpop.f32.mrf.mxu1  ;;  %v1600_v51 = vpop.f32.mrf.mxu0 }
 0x1ba   : > { %v4406_v20 = vpop.permute.xlu1 %4405  ;;  %8411 = vmatmul.mubr.msk.bf16.vlgmr.msra.gmra.mxu1 %vm11719_vm1, %v8409_v1  ;;  %v1670_v28 = vsel %vm9820_vm5, %v1639_v22, 0.0  ;;  %v1669_v27 = vsel %vm9826_vm6, %v1600_v51, 0.0  ;;  %vm9877_vm5 = vcmp.eq.s32.totalorder %v1798_v36, 1  ;;  %vm11825_vm6 = vmmov %vm11817_vm13  ;;  %v8415_v22 = vld [vmem:[%s8790_s8 + $0x3e] sm:$0x3] }
 0x1bb   : > { %v4416_v25 = vsel %vm11717_vm3, %v4406_v20, %v4408_v47  ;;  %v4414_v26 = vpop.permute.xlu0 %4413  ;;  %4500 = vmatprep.mubr.bf16.mxu1 %v11722_v6  ;;  %v1674_v31 = vadd.f32 %v1670_v28, %v1511_v46  ;;  %v1641_v35 = vpop.f32.mrf.mxu1  ;;  %v1673_v38 = vadd.f32 %v1669_v27, %v1510_v57  ;;  %v1786_v46 = vrot.slane %v1782_v19, %v9273_v45 }
 0x1bc   : > { %8410 = vmatmul.mubr.msk.bf16.vlgmr.msra.gmra.mxu0 %vm11719_vm1, %v8409_v1  ;;  %6175 = vrot.lane.b32.xlu1 %v9480_v56, %s8718_s5  ;;  %v4419_v32 = vsel %vm11717_vm3, %v4412_v3, %v4414_v26  ;;  %v1671_v39 = vsel %vm9834_vm14, %v1641_v35, 0.0  ;;  %v1602_v42 = vpop.f32.mrf.mxu0  ;;  %v1918_v57 = vsel %vm1917_vm12, 1, %v11722_v6  ;;  %vm11828_vm14 = vmmov %vm11825_vm6 }
 0x1bd   : > { %6173 = vrot.lane.b32.xlu0 %v9489_v60, %s8718_s5  ;;  %4442 = vmatpush1.bf16.msra.mxu0 %v4416_v25  ;;  %v1675_v44 = vadd.f32 %v1671_v39, %v1512_v12  ;;  %v1643_v10 = vpop.f32.mrf.mxu1  ;;  %vm9872_vm8 = vcmp.eq.s32.totalorder %v1786_v46, 1  ;;  %v1922_v18 = vrot.slane %v1918_v57, %v9273_v45  ;;  %v1926_v26 = vrot.slane %v1918_v57, %v9287_v49  ;;  %v9932_v42 = vld [vmem:[%s8795_s11 + $0x1c] ss:$36 sps:$4 sm:$0xff]  }
 0x1be   : > { %4482 = vmatprep.subr.bf16.mxu1 %v4419_v32  ;;  %v4546_v33 = vpop.permute.xlu1 %4545  ;;  %4459 = vmatprep.mubr.bf16.mxu0 %v11722_v6  ;;  %v1603_v9 = vpop.f32.mrf.mxu0  ;;  %v1934_v51 = vrot.slane %v1918_v57, %v9303_v59  ;;  %v2053_v10 = vsel %vm398_vm10, 1, %v11722_v6  ;;  %v8421_v39 = vld [vmem:[%s8790_s8 + $0x42] sm:$0x3] }
 0x1bf   : > { %4483 = vmatpush1.bf16.msra.mxu1 %v4418_v43  ;;  %v4544_v40 = vpop.permute.xlu0 %4543  ;;  %v1644_v47 = vpop.f32.mrf.mxu1  ;;  %vm9913_vm7 = vcmp.eq.s32.totalorder %v1922_v18, 1 }
 0x1c0   : > { %6169 = vrot.lane.b32.xlu1 %v9514_v16, %s8718_s5  ;;  %v4552_v8 = vsel %vm11817_vm13, %v4544_v40, %v4546_v33  ;;  %vm11829_vm13 = vmmov %vm11825_vm6 }
 0x1c1   : > { %6177 = vrot.lane.b32.xlu0 %v9524_v23, %s8718_s5  ;;  %4576 = vmatprep.subr.bf16.mxu0 %v4552_v8  ;;  %v1775_v54 = vpop.f32.mrf.mxu1 }
 0x1c2   : > { %v4550_v12 = vpop.permute.xlu1 %4549  ;;  %8414 = vmatmul.mubr.msk.bf16.vlgmr.msra.gmra.mxu1 %vm11719_vm1, %v8412_v48  ;;  %v1805_v61 = vsel %vm9861_vm0, %v1775_v54, 0.0  ;;  %vm11716_vm0 = vcmask 719872  }
 0x1c3   : > { %v4548_v58 = vpop.permute.xlu0 %4547  ;;  %4635 = vmatprep.mubr.bf16.mxu1 %v11722_v6  ;;  %v1734_v52 = vpop.f32.mrf.mxu0  ;;  %v1809_v62 = vadd.f32 %v1805_v61, %v1674_v31 }
 0x1c4   : > { %8413 = vmatmul.mubr.msk.bf16.vlgmr.msra.gmra.mxu0 %vm11719_vm1, %v8412_v48  ;;  %6307 = vrot.lane.b32.xlu1 %v9489_v60, %s8719_s7  ;;  %v4554_v0 = vsel %vm11825_vm6, %v4548_v58, %v4550_v12  ;;  %v4553_v3 = vsel %vm11828_vm14, %v4546_v33, %v4548_v58  ;;  %v1777_v63 = vpop.f32.mrf.mxu1  ;;  %v1803_v4 = vsel %vm9872_vm8, %v1734_v52, 0.0  ;;  %vm9927_vm8 = vcmp.eq.s32.totalorder %v1926_v26, 1 }
 0x1c5   : > { %6305 = vrot.lane.b32.xlu0 %v9462_v7, %s8719_s7  ;;  %4617 = vmatprep.subr.bf16.mxu1 %v4554_v0  ;;  %v1806_v5 = vsel %vm9877_vm5, %v1777_v63, 0.0  ;;  %v1807_v1 = vadd.f32 %v1803_v4, %v1672_v21  ;;  %v1736_v13 = vpop.f32.mrf.mxu0  ;;  %v1930_v7 = vrot.slane %v1918_v57, %v9283_v11  ;;  %vm9938_vm5 = vcmp.eq.s32.totalorder %v1934_v51, 1  ;;  %v9965_v0 = vld [vmem:[%s8795_s11 + $0x20] ss:$36 sps:$4 sm:$0xff]  }
 0x1c6   : > { %4618 = vmatpush1.bf16.msra.mxu1 %v4553_v3  ;;  %v4678_v14 = vpop.permute.xlu1 %4677  ;;  %v1810_v17 = vadd.f32 %v1806_v5, %v1675_v44  ;;  %4594 = vmatprep.mubr.bf16.mxu0 %v11722_v6  ;;  %v1804_v29 = vsel %vm9889_vm9, %v1736_v13, 0.0  ;;  %v1779_v20 = vpop.f32.mrf.mxu1  ;;  %v9943_v44 = vld [vmem:[%s8795_s11 + $0x18] ss:$36 sps:$4 sm:$0xff]   ;;  %v2065_v58 = vrot.slane %v2053_v10, %v9283_v11  ;;  %vm11715_vm6 = vcmask 523264  }
 0x1c7   : > { %v4542_v19 = vpop.permute.xlu0 %4541  ;;  %v1808_v24 = vadd.f32 %v1804_v29, %v1673_v38  ;;  %v1738_v21 = vpop.f32.mrf.mxu0  ;;  %vm9918_vm12 = vcmp.eq.s32.totalorder %v1930_v7, 1  ;;  %v2069_v63 = vrot.slane %v2053_v10, %v9303_v59  ;;  %v2057_v4 = vrot.slane %v2053_v10, %v9273_v45 }
 0x1c8   : > { %v4551_v25 = vsel %vm11829_vm13, %v4542_v19, %v4544_v40  ;;  %6311 = vrot.lane.b32.xlu1 %v9524_v23, %s8719_s7  ;;  %v1780_v28 = vpop.f32.mrf.mxu1  ;;  %vm2072_vm9 = vcmp.eq.s32.totalorder %v2065_v58, 1 }
 0x1c9   : > { %6309 = vrot.lane.b32.xlu0 %v9480_v56, %s8719_s7  ;;  %4577 = vmatpush1.bf16.msra.mxu0 %v4551_v25  ;;  %v1739_v31 = vpop.f32.mrf.mxu0  ;;  %vm9977_vm14 = vcmp.eq.s32.totalorder %v2069_v63, 1  ;;  %vm9981_vm13 = vcmp.eq.s32.totalorder %v2057_v4, 1 }
 0x1ca   : > { %v4682_v32 = vpop.permute.xlu1 %4681  ;;  %8417 = vmatmul.mubr.msk.bf16.vlgmr.msra.gmra.mxu1 %vm11719_vm1, %v8415_v22 }
 0x1cb   : > { %v4680_v23 = vpop.permute.xlu0 %4679  ;;  %4770 = vmatprep.mubr.bf16.mxu1 %v11722_v6  ;;  %v1869_v37 = vpop.f32.mrf.mxu0 }
 0x1cc   : > { %8416 = vmatmul.mubr.msk.bf16.vlgmr.msra.gmra.mxu0 %vm11719_vm1, %v8415_v22  ;;  %6610 = vrot.lane.b32.xlu1 %v9480_v56, %s8713_s12  ;;  %v4687_v38 = vsel %vm11716_vm0, %v4678_v14, %v4680_v23  ;;  %v1939_v36 = vsel %vm9913_vm7, %v1869_v37, 0.0  ;;  %v4688_v52 = vsel %vm11716_vm0, %v4680_v23, %v4682_v32 }
 0x1cd   : > { %v1910_v43 = vpop.f32.mrf.mxu1  ;;  %6303 = vrot.lane.b32.xlu0 %v9514_v16, %s8719_s7  ;;  %4711 = vmatprep.subr.bf16.mxu0 %v4687_v38  ;;  %v1943_v46 = vadd.f32 %v1939_v36, %v1807_v1  ;;  %v1871_v9 = vpop.f32.mrf.mxu0 }
 0x1ce   : > { %v1941_v40 = vsel %vm9918_vm12, %v1910_v43, 0.0  ;;  %v4676_v48 = vpop.permute.xlu1 %4675  ;;  %4729 = vmatprep.mubr.bf16.mxu0 %v11722_v6  ;;  %v1940_v8 = vsel %vm9927_vm8, %v1871_v9, 0.0  ;;  %vm11714_vm12 = vcmask 490496   ;;  %vm11713_vm8 = vcmask 457728  }
 0x1cf   : > { %v1945_v16 = vadd.f32 %v1941_v40, %v1809_v62  ;;  %v4686_v47 = vsel %vm11716_vm0, %v4676_v48, %v4678_v14  ;;  %v1912_v50 = vpop.f32.mrf.mxu1  ;;  %v4684_v55 = vpop.permute.xlu0 %4683  ;;  %v1944_v12 = vadd.f32 %v1940_v8, %v1808_v24  ;;  %v8418_v62 = vld [vmem:[%s8790_s8 + $0x40] sm:$0x3]  ;;  %v2061_v14 = vrot.slane %v2053_v10, %v9287_v49 }
 0x1d0   : > { %v1942_v53 = vsel %vm9938_vm5, %v1912_v50, 0.0  ;;  %6614 = vrot.lane.b32.xlu1 %v9932_v42, %s8713_s12  ;;  %4712 = vmatpush1.bf16.msra.mxu0 %v4686_v47  ;;  %v4689_v54 = vsel %vm11716_vm0, %v4682_v32, %v4684_v55  ;;  %v1873_v15 = vpop.f32.mrf.mxu0  ;;  %v2298_v50 = vsel %vm11718_vm2, 1, %v11722_v6 }
 0x1d1   : > { %v1946_v61 = vadd.f32 %v1942_v53, %v1810_v17  ;;  %v1914_v57 = vpop.f32.mrf.mxu1  ;;  %6612 = vrot.lane.b32.xlu0 %v9943_v44, %s8713_s12  ;;  %4752 = vmatprep.subr.bf16.mxu1 %v4689_v54  ;;  %vm2071_vm7 = vcmp.eq.s32.totalorder %v2061_v14, 1  ;;  %v2306_v19 = vrot.slane %v2298_v50, %v9287_v49 }
 0x1d2   : > { %4753 = vmatpush1.bf16.msra.mxu1 %v4688_v52  ;;  %v4816_v2 = vpop.permute.xlu1 %4815  ;;  %v1874_v3 = vpop.f32.mrf.mxu0  ;;  %v2310_v52 = vrot.slane %v2298_v50, %v9283_v11 }
 0x1d3   : > { %v1915_v5 = vpop.f32.mrf.mxu1  ;;  %v4814_v1 = vpop.permute.xlu0 %4813  ;;  %v8424_v3 = vld [vmem:[%s8790_s8 + $0x44] sm:$0x3] }
 0x1d4   : > { %8419 = vmatmul.mubr.msk.bf16.vlgmr.msra.gmra.mxu0 %vm11719_vm1, %v8418_v62  ;;  %6608 = vrot.lane.b32.xlu1 %v9489_v60, %s8713_s12  ;;  %v4823_v13 = vsel %vm11715_vm6, %v4814_v1, %v4816_v2  ;;  %v2314_v5 = vrot.slane %v2298_v50, %v9303_v59  ;;  %vm10036_vm5 = vcmp.eq.s32.totalorder %v2310_v52, 1 }
 0x1d5   : > { %6616 = vrot.lane.b32.xlu0 %v9965_v0, %s8713_s12  ;;  %8420 = vmatmul.mubr.msk.bf16.vlgmr.msra.gmra.mxu1 %vm11719_vm1, %v8418_v62 }
 0x1d6   : > { %v2046_v17 = vpop.f32.mrf.mxu1  ;;  %4847 = vmatprep.subr.bf16.mxu0 %v4823_v13  ;;  %v4820_v18 = vpop.permute.xlu1 %4819  ;;  %4906 = vmatprep.mubr.bf16.mxu1 %v11722_v6 }
 0x1d7   : > { %v2076_v20 = vsel %vm2072_vm9, %v2046_v17, 0.0  ;;  %v4818_v22 = vpop.permute.xlu0 %4817  ;;  %4865 = vmatprep.mubr.bf16.mxu0 %v11722_v6  ;;  %v10032_v17 = vld [vmem:[%s8795_s11 + $0x10] ss:$36 sps:$4 sm:$0xff]   ;;  %vm2433_vm9 = vmand %vm11712_vm11, %vm398_vm10 }
 0x1d8   : > { %v2080_v7 = vadd.f32 %v2076_v20, %v1945_v16  ;;  %v2048_v24 = vpop.f32.mrf.mxu1  ;;  %v2005_v25 = vpop.f32.mrf.mxu0  ;;  %6746 = vrot.lane.b32.xlu1 %v9943_v44, %s8714_s13  ;;  %v4825_v21 = vsel %vm11715_vm6, %v4818_v22, %v4820_v18  ;;  %v4824_v26 = vsel %vm11715_vm6, %v4816_v2, %v4818_v22 }
 0x1d9   : > { %v2077_v28 = vsel %vm9977_vm14, %v2048_v24, 0.0  ;;  %v2074_v51 = vsel %vm9981_vm13, %v2005_v25, 0.0  ;;  %6744 = vrot.lane.b32.xlu0 %v9480_v56, %s8714_s13  ;;  %4888 = vmatprep.subr.bf16.mxu1 %v4825_v21  ;;  %vm10049_vm14 = vcmp.eq.s32.totalorder %v2314_v5, 1 }
 0x1da   : > { %v2081_v31 = vadd.f32 %v2077_v28, %v1946_v61  ;;  %v2078_v32 = vadd.f32 %v2074_v51, %v1943_v46  ;;  %v2007_v27 = vpop.f32.mrf.mxu0  ;;  %4889 = vmatpush1.bf16.msra.mxu1 %v4824_v26  ;;  %v4952_v23 = vpop.permute.xlu1 %4951  ;;  %v2434_v26 = vsel %vm2433_vm9, 1, %v11722_v6  ;;  %v10063_v28 = vld [vmem:[%s8795_s11 + $0x14] ss:$36 sps:$4 sm:$0xff]  }
 0x1db   : > { %v2075_v35 = vsel %vm2071_vm7, %v2007_v27, 0.0  ;;  %v4812_v37 = vpop.permute.xlu0 %4811  ;;  %v2050_v38 = vpop.f32.mrf.mxu1  ;;  %vm10069_vm7 = vcmp.eq.s32.totalorder %v2306_v19, 1 }
 0x1dc   : > { %v2079_v36 = vadd.f32 %v2075_v35, %v1944_v12  ;;  %v4822_v43 = vsel %vm11715_vm6, %v4812_v37, %v4814_v1  ;;  %v2009_v33 = vpop.f32.mrf.mxu0  ;;  %6750 = vrot.lane.b32.xlu1 %v9965_v0, %s8714_s13  ;;  %v2302_v1 = vrot.slane %v2298_v50, %v9273_v45  ;;  %v2446_v50 = vrot.slane %v2434_v26, %v9283_v11 }
 0x1dd   : > { %6748 = vrot.lane.b32.xlu0 %v9932_v42, %s8714_s13  ;;  %4848 = vmatpush1.bf16.msra.mxu0 %v4822_v43  ;;  %v2051_v10 = vpop.f32.mrf.mxu1 }
 0x1de   : > { %8423 = vmatmul.mubr.msk.bf16.vlgmr.msra.gmra.mxu1 %vm11719_vm1, %v8421_v39  ;;  %v2010_v46 = vpop.f32.mrf.mxu0  ;;  %v4956_v40 = vpop.permute.xlu1 %4955  ;;  %vm10053_vm13 = vcmp.eq.s32.totalorder %v2302_v1, 1  ;;  %vm10114_vm9 = vcmp.eq.s32.totalorder %v2446_v50, 1 }
 0x1df   : > { %v4954_v9 = vpop.permute.xlu0 %4953  ;;  %5044 = vmatprep.mubr.bf16.mxu1 %v11722_v6  ;;  %v2438_v46 = vrot.slane %v2434_v26, %v9273_v45 }
 0x1e0   : > { %v2140_v48 = vpop.f32.mrf.mxu0  ;;  %8422 = vmatmul.mubr.msk.bf16.vlgmr.msra.gmra.mxu0 %vm11719_vm1, %v8421_v39  ;;  %6879 = vrot.lane.b32.xlu1 %v9480_v56, %s8715_s14  ;;  %v4961_v16 = vsel %vm11714_vm12, %v4952_v23, %v4954_v9  ;;  %v4962_v2 = vsel %vm11714_vm12, %v4954_v9, %v4956_v40  ;;  %v10078_v39 = vld [vmem:[%s8795_s11 + $0x14] ss:$36 sps:$4 sm:$0xff]  }
 0x1e1   : > { %v10009_v8 = vadd.f32 %v2140_v48, %v2078_v32  ;;  %v2181_v47 = vpop.f32.mrf.mxu1  ;;  %6742 = vrot.lane.b32.xlu0 %v9489_v60, %s8714_s13  ;;  %4985 = vmatprep.subr.bf16.mxu0 %v4961_v16 }
 0x1e2   : > { %v2190_v55 = vadd.f32 %v2181_v47, %v2080_v7  ;;  %v2142_v12 = vpop.f32.mrf.mxu0  ;;  %v4950_v53 = vpop.permute.xlu1 %4949  ;;  %5003 = vmatprep.mubr.bf16.mxu0 %v11722_v6  ;;  %v8427_v47 = vld [vmem:[%s8790_s8 + $0x46] sm:$0x3] }
 0x1e3   : > { %v10017_v56 = vadd.f32 %v2142_v12, %v2079_v36  ;;  %v4960_v54 = vsel %vm11714_vm12, %v4950_v53, %v4952_v23  ;;  %v2183_v15 = vpop.f32.mrf.mxu1  ;;  %v4958_v58 = vpop.permute.xlu0 %4957 }
 0x1e4   : > { %v2191_v61 = vadd.f32 %v2183_v15, %v2081_v31  ;;  %6883 = vrot.lane.b32.xlu1 %v9932_v42, %s8715_s14  ;;  %4986 = vmatpush1.bf16.msra.mxu0 %v4960_v54  ;;  %v4963_v60 = vsel %vm11714_vm12, %v4956_v40, %v4958_v58  ;;  %v2144_v57 = vpop.f32.mrf.mxu0  ;;  %v10087_v40 = vld [vmem:[%s8795_s11 + $0xc] ss:$36 sps:$4 sm:$0xff]   ;;  %v2442_v54 = vrot.slane %v2434_v26, %v9287_v49 }
 0x1e5   : > { %v2185_v62 = vpop.f32.mrf.mxu1  ;;  %6881 = vrot.lane.b32.xlu0 %v9943_v44, %s8715_s14  ;;  %5026 = vmatprep.subr.bf16.mxu1 %v4963_v60  ;;  %v10105_v58 = vld [vmem:[%s8795_s11 + $0x8] ss:$36 sps:$4 sm:$0xff]  }
 0x1e6   : > { %5027 = vmatpush1.bf16.msra.mxu1 %v4962_v2  ;;  %v5089_v63 = vpop.permute.xlu1 %5088  ;;  %v2145_v4 = vpop.f32.mrf.mxu0 }
 0x1e7   : > { %v2186_v13 = vpop.f32.mrf.mxu1  ;;  %v5087_v14 = vpop.permute.xlu0 %5086 }
 0x1e8   : > { %8425 = vmatmul.mubr.msk.bf16.vlgmr.msra.gmra.mxu0 %vm11719_vm1, %v8424_v3  ;;  %6877 = vrot.lane.b32.xlu1 %v10032_v17, %s8715_s14  ;;  %v5096_v29 = vsel %vm11713_vm8, %v5087_v14, %v5089_v63  ;;  %v2569_v13 = vsel %vm11712_vm11, 1, %v11722_v6 }
 0x1e9   : > { %6885 = vrot.lane.b32.xlu0 %v9965_v0, %s8715_s14  ;;  %8426 = vmatmul.mubr.msk.bf16.vlgmr.msra.gmra.mxu1 %vm11719_vm1, %v8424_v3  ;;  %v10205_v3 = vld [vmem:[%s11703_s0] ss:$4 sm:$0xf] }
 0x1ea   : > { %v2291_v20 = vpop.f32.mrf.mxu1  ;;  %5120 = vmatprep.subr.bf16.mxu0 %v5096_v29  ;;  %v5093_v22 = vpop.permute.xlu1 %5092  ;;  %5179 = vmatprep.mubr.bf16.mxu1 %v11722_v6 }
 0x1eb   : > { %v2321_v25 = vsel %vm10036_vm5, %v2291_v20, 0.0  ;;  %v5091_v21 = vpop.permute.xlu0 %5090  ;;  %5138 = vmatprep.mubr.bf16.mxu0 %v11722_v6  ;;  %vm10109_vm5 = vcmp.eq.s32.totalorder %v2438_v46, 1 }
 0x1ec   : > { %v2325_v51 = vadd.f32 %v2321_v25, %v2190_v55  ;;  %v2293_v31 = vpop.f32.mrf.mxu1  ;;  %v5097_v32 = vsel %vm11713_vm8, %v5089_v63, %v5091_v21  ;;  %v2250_v27 = vpop.f32.mrf.mxu0  ;;  %7016 = vrot.lane.b32.xlu1 %v9943_v44, %s8708_s6  ;;  %v5098_v23 = vsel %vm11713_vm8, %v5091_v21, %v5093_v22  ;;  %v10094_v55 = vld [vmem:[%s8795_s11 + $0x10] ss:$36 sps:$4 sm:$0xff]   ;;  %v8430_v25 = vld [vmem:[%s8790_s8 + $0x48] sm:$0x3] }
 0x1ed   : > { %v2322_v37 = vsel %vm10049_vm14, %v2293_v31, 0.0  ;;  %v2319_v38 = vsel %vm10053_vm13, %v2250_v27, 0.0  ;;  %7014 = vrot.lane.b32.xlu0 %v10078_v39, %s8708_s6  ;;  %5161 = vmatprep.subr.bf16.mxu1 %v5098_v23  ;;  %vm10123_vm14 = vcmp.eq.s32.totalorder %v2442_v54, 1  ;;  %v2581_v27 = vrot.slane %v2569_v13, %v9283_v11 }
 0x1ee   : > { %v2326_v36 = vadd.f32 %v2322_v37, %v2191_v61  ;;  %v2323_v43 = vadd.f32 %v2319_v38, %v10009_v8  ;;  %v2252_v33 = vpop.f32.mrf.mxu0  ;;  %5162 = vmatpush1.bf16.msra.mxu1 %v5097_v32  ;;  %v10083_v10 = vpop.permute.xlu1 %5390  ;;  %v2450_v61 = vrot.slane %v2434_v26, %v9303_v59 }
 0x1ef   : > { %v2320_v9 = vsel %vm10069_vm7, %v2252_v33, 0.0  ;;  %v5085_v48 = vpop.permute.xlu0 %5084  ;;  %v2295_v16 = vpop.f32.mrf.mxu1  ;;  %5302 = vmatprep.subr.bf16.mxu1 %v10063_v28  ;;  %v2573_v33 = vrot.slane %v2569_v13, %v9273_v45  ;;  %vm10170_vm7 = vcmp.eq.s32.totalorder %v2581_v27, 1 }
 0x1f0   : > { %v2324_v8 = vadd.f32 %v2320_v9, %v10017_v56  ;;  %v5095_v12 = vsel %vm11713_vm8, %v5085_v48, %v5087_v14  ;;  %v2254_v53 = vpop.f32.mrf.mxu0  ;;  %7020 = vrot.lane.b32.xlu1 %v9965_v0, %s8708_s6  ;;  %vm10134_vm13 = vcmp.eq.s32.totalorder %v2450_v61, 1 }
 0x1f1   : > { %7018 = vrot.lane.b32.xlu0 %v9932_v42, %s8708_s6  ;;  %5121 = vmatpush1.bf16.msra.mxu0 %v5095_v12  ;;  %v2296_v15 = vpop.f32.mrf.mxu1 }
 0x1f2   : > { %8429 = vmatmul.mubr.msk.bf16.vlgmr.msra.gmra.mxu1 %vm11719_vm1, %v8427_v47  ;;  %v2255_v56 = vpop.f32.mrf.mxu0  ;;  %v5395_v60 = vpop.permute.xlu1 %5394  ;;  %5261 = vmatprep.subr.bf16.mxu0 %v10087_v40  ;;  %v8437_v15 = vld [vmem:[%s8790_s8 + $0x4a] sm:$0x3] }
 0x1f3   : > { %v5393_v52 = vpop.permute.xlu0 %5392  ;;  %5303 = vmatpush1.bf16.msra.mxu1 %v10094_v55  ;;  %5320 = vmatprep.mubr.bf16.mxu1 %v11722_v6 }
 0x1f4   : > { %v2385_v2 = vpop.f32.mrf.mxu0  ;;  %8428 = vmatmul.mubr.msk.bf16.vlgmr.msra.gmra.mxu0 %vm11719_vm1, %v8427_v47  ;;  %7148 = vrot.lane.b32.xlu1 %v10078_v39, %s8716_s25  ;;  %v5399_v63 = vsel %vm4143_vm15, %v10083_v10, %v5393_v52  ;;  %v5400_v35 = vsel %vm4143_vm15, %v5393_v52, %v5395_v60 }
 0x1f5   : > { %v2455_v4 = vsel %vm10109_vm5, %v2385_v2, 0.0  ;;  %v2426_v5 = vpop.f32.mrf.mxu1  ;;  %7012 = vrot.lane.b32.xlu0 %v10032_v17, %s8708_s6  ;;  %5262 = vmatpush1.bf16.msra.mxu0 %v10105_v58  ;;  %vm2704_vm5 = vmand %vm11712_vm11, %vm11718_vm2 }
 0x1f6   : > { %v10141_v14 = vadd.f32 %v2455_v4, %v2323_v43  ;;  %v2457_v18 = vsel %vm10114_vm9, %v2426_v5, 0.0  ;;  %v2387_v29 = vpop.f32.mrf.mxu0  ;;  %5423 = vmatprep.subr.bf16.mxu0 %v5399_v63  ;;  %v5389_v19 = vpop.permute.xlu1 %5388  ;;  %5279 = vmatprep.mubr.bf16.mxu0 %v11722_v6  ;;  %v2585_v43 = vrot.slane %v2569_v13, %v9303_v59  ;;  %v2705_v56 = vsel %vm2704_vm5, 1, %v11722_v6 }
 0x1f7   : > { %v2461_v20 = vadd.f32 %v2457_v18, %v2325_v51  ;;  %v2456_v22 = vsel %vm10123_vm14, %v2387_v29, 0.0  ;;  %v2428_v7 = vpop.f32.mrf.mxu1  ;;  %v5397_v24 = vpop.permute.xlu0 %5396  ;;  %v5398_v48 = vsel %vm4143_vm15, %v5389_v19, %v10083_v10  ;;  %vm10185_vm14 = vcmp.eq.s32.totalorder %v2573_v33, 1 }
 0x1f8   : > { %v10149_v21 = vadd.f32 %v2456_v22, %v2324_v8  ;;  %v2458_v26 = vsel %vm10134_vm13, %v2428_v7, 0.0  ;;  %7152 = vrot.lane.b32.xlu1 %v9932_v42, %s8716_s25  ;;  %v5401_v31 = vsel %vm4143_vm15, %v5395_v60, %v5397_v24  ;;  %v2389_v32 = vpop.f32.mrf.mxu0  ;;  %vm10181_vm9 = vcmp.eq.s32.totalorder %v2585_v43, 1 }
 0x1f9   : > { %v2462_v51 = vadd.f32 %v2458_v26, %v2326_v36  ;;  %v2430_v23 = vpop.f32.mrf.mxu1  ;;  %7150 = vrot.lane.b32.xlu0 %v9943_v44, %s8716_s25  ;;  %5464 = vmatprep.subr.bf16.mxu1 %v5401_v31  ;;  %v2577_v36 = vrot.slane %v2569_v13, %v9287_v49  ;;  %v2709_v29 = vrot.slane %v2705_v56, %v9273_v45  ;;  %vm11866_vm5 = vcmp.ge.s32.totalorder %v9227_v30, 1 }
 0x1fa   : > { %8436 = vmatmul.mubr.msk.bf16.vlgmr.msra.gmra.mxu1 %vm11719_vm1, %v8430_v25  ;;  %v5527_v37 = vpop.permute.xlu1 %5526  ;;  %v2390_v38 = vpop.f32.mrf.mxu0  ;;  %v2717_v7 = vrot.slane %v2705_v56, %v9283_v11  ;;  %v2713_v31 = vrot.slane %v2705_v56, %v9287_v49  ;;  %v2721_v27 = vrot.slane %v2705_v56, %v9303_v59 }
 0x1fb   : > { %5465 = vmatpush1.bf16.msra.mxu1 %v5400_v35  ;;  %v2431_v46 = vpop.f32.mrf.mxu1  ;;  %v5525_v9 = vpop.permute.xlu0 %5524  ;;  %5482 = vmatprep.mubr.bf16.mxu1 %v11722_v6  ;;  %vm10193_vm13 = vcmp.eq.s32.totalorder %v2577_v36, 1  ;;  %v8445_v38 = vld [vmem:[%s8790_s8 + $0x4c] sm:$0x3] }
 0x1fc   : > { %8435 = vmatmul.mubr.msk.bf16.vlgmr.msra.gmra.mxu0 %vm11719_vm1, %v8430_v25  ;;  %7146 = vrot.lane.b32.xlu1 %v10032_v17, %s8716_s25  ;;  %v5533_v47 = vsel %vm11711_vm4, %v5525_v9, %v5527_v37  ;;  %vm10263_vm11 = vcmp.eq.s32.totalorder %v2721_v27, 1  ;;  %v8451_v46 = vld [vmem:[%s8790_s8 + $0x50] sm:$0x3] }
 0x1fd   : > { %5424 = vmatpush1.bf16.msra.mxu0 %v5398_v48  ;;  %7154 = vrot.lane.b32.xlu0 %v9965_v0, %s8716_s25 }
 0x1fe   : > { %v2562_v10 = vpop.f32.mrf.mxu1  ;;  %5557 = vmatprep.subr.bf16.mxu0 %v5533_v47  ;;  %v5531_v50 = vpop.permute.xlu1 %5530  ;;  %5441 = vmatprep.mubr.bf16.mxu0 %v11722_v6 }
 0x1ff   : > { %v2592_v53 = vsel %vm10170_vm7, %v2562_v10, 0.0  ;;  %v5529_v54 = vpop.permute.xlu0 %5528  ;;  %vm2839_vm7 = vcmp.lt.s32.totalorder %v10205_v3, 7 }
 0x200   : > { %v2596_v60 = vadd.f32 %v2592_v53, %v2461_v20  ;;  %v2564_v57 = vpop.f32.mrf.mxu1  ;;  %v5534_v52 = vsel %vm11711_vm4, %v5527_v37, %v5529_v54  ;;  %v2521_v62 = vpop.f32.mrf.mxu0  ;;  %7285 = vrot.lane.b32.xlu1 %v9943_v44, %s8717_s30  ;;  %v5535_v2 = vsel %vm11711_vm4, %v5529_v54, %v5531_v50 }
 0x201   : > { %v2593_v63 = vsel %vm10181_vm9, %v2564_v57, 0.0  ;;  %v2590_v4 = vsel %vm10185_vm14, %v2521_v62, 0.0  ;;  %7283 = vrot.lane.b32.xlu0 %v10078_v39, %s8717_s30  ;;  %5598 = vmatprep.subr.bf16.mxu1 %v5535_v2  ;;  %vm10225_vm9 = vmand %vm2839_vm7, %vm11866_vm5  ;;  %vm10238_vm14 = vcmp.eq.s32.totalorder %v2709_v29, 1  ;;  %vm10247_vm5 = vcmp.eq.s32.totalorder %v2717_v7, 1 }
 0x202   : > { %v2597_v5 = vadd.f32 %v2593_v63, %v2462_v51  ;;  %v2594_v1 = vadd.f32 %v2590_v4, %v10141_v14  ;;  %8444 = vmatmul.mubr.msk.bf16.vlgmr.msra.gmra.mxu1 %vm11719_vm1, %v8437_v15  ;;  %v2523_v13 = vpop.f32.mrf.mxu0  ;;  %v5660_v18 = vpop.permute.xlu1 %5659 }
 0x203   : > { %v2591_v19 = vsel %vm10193_vm13, %v2523_v13, 0.0  ;;  %5599 = vmatpush1.bf16.msra.mxu1 %v5534_v52  ;;  %v5523_v20 = vpop.permute.xlu0 %5522  ;;  %v2566_v22 = vpop.f32.mrf.mxu1  ;;  %5616 = vmatprep.mubr.bf16.mxu1 %v11722_v6  ;;  %vm2841_vm13 = vmand %vm10225_vm9, %vm398_vm10 }
 0x204   : > { %v2595_v24 = vadd.f32 %v2591_v19, %v10149_v21  ;;  %v5532_v25 = vsel %vm11711_vm4, %v5523_v20, %v5525_v9  ;;  %v2525_v26 = vpop.f32.mrf.mxu0  ;;  %8443 = vmatmul.mubr.msk.bf16.vlgmr.msra.gmra.mxu0 %vm11719_vm1, %v8437_v15  ;;  %7289 = vrot.lane.b32.xlu1 %v9965_v0, %s8717_s30  ;;  %vm10255_vm4 = vcmp.eq.s32.totalorder %v2713_v31, 1  ;;  %v10268_v16 = vsel %vm2841_vm13, 1, %v11722_v6 }
 0x205   : > { %7287 = vrot.lane.b32.xlu0 %v9932_v42, %s8717_s30  ;;  %5558 = vmatpush1.bf16.msra.mxu0 %v5532_v25  ;;  %v2567_v32 = vpop.f32.mrf.mxu1  ;;  %v2854_v62 = vrot.slane %v10268_v16, %v9283_v11  ;;  %v2850_v22 = vrot.slane %v10268_v16, %v9287_v49 }
 0x206   : > { %v2526_v51 = vpop.f32.mrf.mxu0  ;;  %v5664_v21 = vpop.permute.xlu1 %5663  ;;  %5575 = vmatprep.mubr.bf16.mxu0 %v11722_v6 }
 0x207   : > { %v5662_v35 = vpop.permute.xlu0 %5661 }
 0x208   : > { %v2656_v43 = vpop.f32.mrf.mxu0  ;;  %7419 = vrot.lane.b32.xlu1 %v10078_v39, %s8718_s5  ;;  %v5668_v33 = vsel %vm11717_vm3, %v5660_v18, %v5662_v35  ;;  %v5669_v4 = vsel %vm11717_vm3, %v5662_v35, %v5664_v21 }
 0x209   : > { %v2726_v9 = vsel %vm10238_vm14, %v2656_v43, 0.0  ;;  %v2697_v36 = vpop.f32.mrf.mxu1  ;;  %7281 = vrot.lane.b32.xlu0 %v10032_v17, %s8717_s30  ;;  %5692 = vmatprep.subr.bf16.mxu0 %v5668_v33 }
 0x20a   : > { %v2730_v47 = vadd.f32 %v2726_v9, %v2594_v1  ;;  %v2728_v10 = vsel %vm10247_vm5, %v2697_v36, 0.0  ;;  %8447 = vmatmul.mubr.msk.bf16.vlgmr.msra.gmra.mxu1 %vm11719_vm1, %v8445_v38  ;;  %v2658_v50 = vpop.f32.mrf.mxu0  ;;  %v5658_v8 = vpop.permute.xlu1 %5657 }
 0x20b   : > { %v2732_v12 = vadd.f32 %v2728_v10, %v2596_v60  ;;  %v2727_v53 = vsel %vm10255_vm4, %v2658_v50, 0.0  ;;  %v5667_v54 = vsel %vm11717_vm3, %v5658_v8, %v5660_v18  ;;  %v2699_v15 = vpop.f32.mrf.mxu1  ;;  %v5666_v61 = vpop.permute.xlu0 %5665  ;;  %5751 = vmatprep.mubr.bf16.mxu1 %v11722_v6  ;;  %v2846_v18 = vrot.slane %v10268_v16, %v9273_v45 }
 0x20c   : > { %v2731_v56 = vadd.f32 %v2727_v53, %v2595_v24  ;;  %v2729_v57 = vsel %vm10263_vm11, %v2699_v15, 0.0  ;;  %8446 = vmatmul.mubr.msk.bf16.vlgmr.msra.gmra.mxu0 %vm11719_vm1, %v8445_v38  ;;  %7423 = vrot.lane.b32.xlu1 %v9932_v42, %s8718_s5  ;;  %v5670_v60 = vsel %vm11717_vm3, %v5664_v21, %v5666_v61  ;;  %v2660_v52 = vpop.f32.mrf.mxu0  ;;  %vm2861_vm11 = vcmp.eq.s32.totalorder %v2854_v62, 1  ;;  %v8638_v62 = vld [vmem:[%s8795_s11 + $0x18] ss:$36 sps:$4 sm:$0xff]  }
 0x20d   : > { %v10285_v2 = vadd.f32 %v2729_v57, %v2597_v5  ;;  %v2701_v63 = vpop.f32.mrf.mxu1  ;;  %7421 = vrot.lane.b32.xlu0 %v9943_v44, %s8718_s5  ;;  %5693 = vmatpush1.bf16.msra.mxu0 %v5667_v54  ;;  %v8448_v5 = vld [vmem:[%s8790_s8 + $0x4e] sm:$0x3]  ;;  %vm11877_vm4 = vcmask 752640   ;;  %vm2859_vm14 = vcmp.eq.s32.totalorder %v2846_v18, 1  ;;  %v8454_v52 = vld [vmem:[%s8790_s8 + $0x52] sm:$0x3] }
 0x20e   : > { %5733 = vmatprep.subr.bf16.mxu1 %v5670_v60  ;;  %v5796_v1 = vpop.permute.xlu1 %5795  ;;  %v2661_v13 = vpop.f32.mrf.mxu0  ;;  %5710 = vmatprep.mubr.bf16.mxu0 %v11722_v6  ;;  %vm11878_vm13 = vmmov %vm11877_vm4 }
 0x20f   : > { %5734 = vmatpush1.bf16.msra.mxu1 %v5669_v4  ;;  %v2702_v29 = vpop.f32.mrf.mxu1  ;;  %v5794_v19 = vpop.permute.xlu0 %5793  ;;  %vm11879_vm5 = vmmov %vm11877_vm4 }
 0x210   : > { %7417 = vrot.lane.b32.xlu1 %v10032_v17, %s8718_s5  ;;  %v5802_v20 = vsel %vm11877_vm4, %v5794_v19, %v5796_v1  ;;  %vm2860_vm4 = vcmp.eq.s32.totalorder %v2850_v22, 1 }
 0x211   : > { %7425 = vrot.lane.b32.xlu0 %v9965_v0, %s8718_s5  ;;  %5826 = vmatprep.subr.bf16.mxu0 %v5802_v20 }
 0x212   : > { %v2832_v7 = vpop.f32.mrf.mxu1  ;;  %8450 = vmatmul.mubr.msk.bf16.vlgmr.msra.gmra.mxu1 %vm11719_vm1, %v8448_v5  ;;  %v5800_v24 = vpop.permute.xlu1 %5799 }
 0x213   : > { %v2865_v25 = vsel %vm2861_vm11, %v2832_v7, 0.0  ;;  %v5798_v26 = vpop.permute.xlu0 %5797  ;;  %5885 = vmatprep.mubr.bf16.mxu1 %v11722_v6  ;;  %vm11880_vm11 = vmmov %vm11879_vm5 }
 0x214   : > { %v10303_v31 = vadd.f32 %v2865_v25, %v2732_v12  ;;  %v5803_v32 = vsel %vm11878_vm13, %v5796_v1, %v5798_v26  ;;  %v2791_v27 = vpop.f32.mrf.mxu0  ;;  %8449 = vmatmul.mubr.msk.bf16.vlgmr.msra.gmra.mxu0 %vm11719_vm1, %v8448_v5  ;;  %7555 = vrot.lane.b32.xlu1 %v9943_v44, %s8719_s7  ;;  %v5804_v51 = vsel %vm11879_vm5, %v5798_v26, %v5800_v24  ;;  %v10310_v21 = vpop.f32.mrf.mxu1  ;;  %v8639_v24 = vld [vmem:[%s8795_s11 + $0x18] ss:$36 sps:$4 sm:$0xff]   ;;  %vm3245_vm13 = vmand %vm2839_vm7, %vm398_vm10 }
 0x215   : > { %v2863_v23 = vsel %vm2859_vm14, %v2791_v27, 0.0  ;;  %7553 = vrot.lane.b32.xlu0 %v10078_v39, %s8719_s7  ;;  %5867 = vmatprep.subr.bf16.mxu1 %v5804_v51  ;;  %vm3110_vm14 = vmand %vm10225_vm9, %vm11718_vm2 }
 0x216   : > { %v10314_v35 = vadd.f32 %v2863_v23, %v2730_v47  ;;  %v2793_v37 = vpop.f32.mrf.mxu0  ;;  %5868 = vmatpush1.bf16.msra.mxu1 %v5803_v32  ;;  %v5903_v38 = vpop.permute.xlu1 %5902  ;;  %5844 = vmatprep.mubr.bf16.mxu0 %v11722_v6  ;;  %v8457_v23 = vld [vmem:[%s8790_s8 + $0x54] sm:$0x3] }
 0x217   : > { %v2864_v43 = vsel %vm2860_vm4, %v2793_v37, 0.0  ;;  %v5792_v33 = vpop.permute.xlu0 %5791  ;;  %v2836_v44 = vpop.f32.mrf.mxu1 }
 0x218   : > { %v10318_v9 = vadd.f32 %v2864_v43, %v2731_v56  ;;  %v5801_v36 = vsel %vm11880_vm11, %v5792_v33, %v5794_v19  ;;  %v2795_v48 = vpop.f32.mrf.mxu0  ;;  %7559 = vrot.lane.b32.xlu1 %v9965_v0, %s8719_s7  ;;  %vm10472_vm11 = vmand %vm2839_vm7, %vm11718_vm2 }
 0x219   : > { %7557 = vrot.lane.b32.xlu0 %v9932_v42, %s8719_s7  ;;  %5827 = vmatpush1.bf16.msra.mxu0 %v5801_v36  ;;  %v2837_v39 = vpop.f32.mrf.mxu1 }
 0x21a   : > { %8453 = vmatmul.mubr.msk.bf16.vlgmr.msra.gmra.mxu1 %vm11719_vm1, %v8451_v46  ;;  %v2796_v47 = vpop.f32.mrf.mxu0  ;;  %v5907_v10 = vpop.permute.xlu1 %5906 }
 0x21b   : > { %v5905_v50 = vpop.permute.xlu0 %5904  ;;  %5994 = vmatprep.mubr.bf16.mxu1 %v11722_v6 }
 0x21c   : > { %v10327_v8 = vpop.f32.mrf.mxu0  ;;  %8452 = vmatmul.mubr.msk.bf16.vlgmr.msra.gmra.mxu0 %vm11719_vm1, %v8451_v46  ;;  %7730 = vrot.lane.b32.xlu1 %v10087_v40, %s8708_s6  ;;  %v5911_v0 = vsel %vm11716_vm0, %v5903_v38, %v5905_v50  ;;  %v5912_v57 = vsel %vm11716_vm0, %v5905_v50, %v5907_v10 }
 0x21d   : > { %v10333_v12 = vpop.f32.mrf.mxu1  ;;  %7551 = vrot.lane.b32.xlu0 %v10032_v17, %s8719_s7  ;;  %5935 = vmatprep.subr.bf16.mxu0 %v5911_v0 }
 0x21e   : > { %v10337_v42 = vpop.f32.mrf.mxu0  ;;  %v5901_v53 = vpop.permute.xlu1 %5900  ;;  %5953 = vmatprep.mubr.bf16.mxu0 %v11722_v6 }
 0x21f   : > { %v5910_v54 = vsel %vm11716_vm0, %v5901_v53, %v5903_v38  ;;  %v10341_v15 = vpop.f32.mrf.mxu1  ;;  %v5909_v61 = vpop.permute.xlu0 %5908 }
 0x220   : > { %7734 = vrot.lane.b32.xlu1 %v10063_v28, %s8708_s6  ;;  %5936 = vmatpush1.bf16.msra.mxu0 %v5910_v54  ;;  %v5913_v56 = vsel %vm11716_vm0, %v5907_v10, %v5909_v61  ;;  %v2932_v17 = vpop.f32.mrf.mxu0  ;;  %vm11911_vm0 = vcmask 982016  }
 0x221   : > { %v2973_v60 = vpop.f32.mrf.mxu1  ;;  %7732 = vrot.lane.b32.xlu0 %v10094_v55, %s8708_s6  ;;  %5976 = vmatprep.subr.bf16.mxu1 %v5913_v56 }
 0x222   : > { %5977 = vmatpush1.bf16.msra.mxu1 %v5912_v57  ;;  %v6039_v63 = vpop.permute.xlu1 %6038  ;;  %v2933_v4 = vpop.f32.mrf.mxu0 }
 0x223   : > { %v2974_v1 = vpop.f32.mrf.mxu1  ;;  %v6037_v13 = vpop.permute.xlu0 %6036 }
 0x224   : > { %8455 = vmatmul.mubr.msk.bf16.vlgmr.msra.gmra.mxu0 %vm11719_vm1, %v8454_v52  ;;  %7728 = vrot.lane.b32.xlu1 %v10105_v58, %s8708_s6  ;;  %v6045_v18 = vsel %vm11715_vm6, %v6037_v13, %v6039_v63 }
 0x225   : > { %7736 = vrot.lane.b32.xlu0 %v8638_v62, %s8708_s6  ;;  %8456 = vmatmul.mubr.msk.bf16.vlgmr.msra.gmra.mxu1 %vm11719_vm1, %v8454_v52 }
 0x226   : > { %v10357_v29 = vpop.f32.mrf.mxu1  ;;  %6069 = vmatprep.subr.bf16.mxu0 %v6045_v18  ;;  %v6043_v19 = vpop.permute.xlu1 %6042  ;;  %6128 = vmatprep.mubr.bf16.mxu1 %v11722_v6 }
 0x227   : > { %v6041_v5 = vpop.permute.xlu0 %6040  ;;  %6087 = vmatprep.mubr.bf16.mxu0 %v11722_v6 }
 0x228   : > { %v6046_v20 = vsel %vm11715_vm6, %v6039_v63, %v6041_v5  ;;  %v10362_v22 = vpop.f32.mrf.mxu0  ;;  %7879 = vrot.lane.b32.xlu1 %v10094_v55, %s8708_s6  ;;  %v6047_v7 = vsel %vm11715_vm6, %v6041_v5, %v6043_v19  ;;  %v10368_v25 = vpop.f32.mrf.mxu1 }
 0x229   : > { %7877 = vrot.lane.b32.xlu0 %v10087_v40, %s8708_s6  ;;  %6110 = vmatprep.subr.bf16.mxu1 %v6047_v7 }
 0x22a   : > { %v10372_v26 = vpop.f32.mrf.mxu0  ;;  %6111 = vmatpush1.bf16.msra.mxu1 %v6046_v20  ;;  %v6172_v32 = vpop.permute.xlu1 %6171 }
 0x22b   : > { %v6035_v27 = vpop.permute.xlu0 %6034  ;;  %v3107_v51 = vpop.f32.mrf.mxu1 }
 0x22c   : > { %v6044_v37 = vsel %vm11715_vm6, %v6035_v27, %v6037_v13  ;;  %v3066_v38 = vpop.f32.mrf.mxu0  ;;  %7883 = vrot.lane.b32.xlu1 %v8639_v24, %s8708_s6  ;;  %v8642_v13 = vld [vmem:[%s8795_s11 + $0x1c] ss:$36 sps:$4 sm:$0xff]  }
 0x22d   : > { %7881 = vrot.lane.b32.xlu0 %v10063_v28, %s8708_s6  ;;  %6070 = vmatpush1.bf16.msra.mxu0 %v6044_v37  ;;  %v3108_v43 = vpop.f32.mrf.mxu1  ;;  %v8640_v27 = vld [vmem:[%s8795_s11 + $0x18] ss:$36 sps:$4 sm:$0xff]  }
 0x22e   : > { %8459 = vmatmul.mubr.msk.bf16.vlgmr.msra.gmra.mxu1 %vm11719_vm1, %v8457_v23  ;;  %v3067_v40 = vpop.f32.mrf.mxu0  ;;  %v6176_v33 = vpop.permute.xlu1 %6175  ;;  %v2976_v43 = vsel %vm10225_vm9, 1, %v11722_v6  ;;  %vm11885_vm9 = vcmp.lt.s32.totalorder %v9227_v30, 7 }
 0x22f   : > { %v6174_v44 = vpop.permute.xlu0 %6173  ;;  %6263 = vmatprep.mubr.bf16.mxu1 %v11722_v6  ;;  %vm10458_vm5 = vmand %vm2839_vm7, %vm11885_vm9 }
 0x230   : > { %v10381_v46 = vpop.f32.mrf.mxu0  ;;  %8458 = vmatmul.mubr.msk.bf16.vlgmr.msra.gmra.mxu0 %vm11719_vm1, %v8457_v23  ;;  %v6180_v36 = vsel %vm11714_vm12, %v6172_v32, %v6174_v44  ;;  %v6181_v61 = vsel %vm11714_vm12, %v6174_v44, %v6176_v33 }
 0x231   : > { %v10385_v48 = vpop.f32.mrf.mxu1  ;;  %7875 = vrot.lane.b32.xlu0 %v10105_v58, %s8708_s6  ;;  %6204 = vmatprep.subr.bf16.mxu0 %v6180_v36  ;;  %v8460_v58 = vld [vmem:[%s8790_s8 + $0x56] sm:$0x3]  ;;  %v2858_v36 = vrot.slane %v10268_v16, %v9303_v59 }
 0x232   : > { %v10389_v39 = vpop.f32.mrf.mxu0  ;;  %v6170_v47 = vpop.permute.xlu1 %6169  ;;  %6222 = vmatprep.mubr.bf16.mxu0 %v11722_v6 }
 0x233   : > { %v6179_v10 = vsel %vm11714_vm12, %v6170_v47, %v6172_v32  ;;  %v10393_v50 = vpop.f32.mrf.mxu1  ;;  %v6178_v0 = vpop.permute.xlu0 %6177  ;;  %v8463_v32 = vld [vmem:[%s8790_s8 + $0x58] sm:$0x3]  ;;  %v3111_v47 = vsel %vm3110_vm14, 1, %v11722_v6  ;;  %vm10462_vm4 = vcmp.eq.s32.totalorder %v2858_v36, 1 }
 0x234   : > { %6205 = vmatpush1.bf16.msra.mxu0 %v6179_v10  ;;  %v6182_v53 = vsel %vm11714_vm12, %v6176_v33, %v6178_v0  ;;  %v3201_v54 = vpop.f32.mrf.mxu0  ;;  %v2980_v10 = vrot.slane %v2976_v43, %v9273_v45  ;;  %v2988_v0 = vrot.slane %v2976_v43, %v9283_v11 }
 0x235   : > { %v3242_v56 = vpop.f32.mrf.mxu1  ;;  %6245 = vmatprep.subr.bf16.mxu1 %v6182_v53  ;;  %v2992_v53 = vrot.slane %v2976_v43, %v9303_v59 }
 0x236   : > { %6246 = vmatpush1.bf16.msra.mxu1 %v6181_v61  ;;  %v6308_v17 = vpop.permute.xlu1 %6307  ;;  %v3202_v57 = vpop.f32.mrf.mxu0  ;;  %v2984_v61 = vrot.slane %v2976_v43, %v9287_v49  ;;  %v3123_v56 = vrot.slane %v3111_v47, %v9283_v11  ;;  %vm10478_vm14 = vcmp.eq.s32.totalorder %v2980_v10, 1 }
 0x237   : > { %v3243_v60 = vpop.f32.mrf.mxu1  ;;  %v6306_v52 = vpop.permute.xlu0 %6305  ;;  %vm10491_vm9 = vcmp.eq.s32.totalorder %v2992_v53, 1 }
 0x238   : > { %8461 = vmatmul.mubr.msk.bf16.vlgmr.msra.gmra.mxu0 %vm11719_vm1, %v8460_v58  ;;  %v6314_v62 = vsel %vm11713_vm8, %v6306_v52, %v6308_v17  ;;  %v8466_v60 = vld [vmem:[%s8790_s8 + $0x5a] sm:$0x3]  ;;  %vm10511_vm12 = vcmp.eq.s32.totalorder %v3123_v56, 1  ;;  %v8481_v56 = vld [vmem:[%s8790_s8 + $0x5e] sm:$0x3] }
 0x239   : > { %8462 = vmatmul.mubr.msk.bf16.vlgmr.msra.gmra.mxu1 %vm11719_vm1, %v8460_v58  ;;  %6338 = vmatprep.subr.bf16.mxu0 %v6314_v62  ;;  %v3246_v58 = vsel %vm3245_vm13, 1, %v11722_v6  ;;  %v3127_v62 = vrot.slane %v3111_v47, %v9303_v59  ;;  %vm10482_vm13 = vcmp.eq.s32.totalorder %v2988_v0, 1  ;;  %v10520_v0 = vsel %vm10472_vm11, 1, %v11722_v6 }
 0x23a   : > { %v10401_v63 = vpop.f32.mrf.mxu1  ;;  %v6312_v4 = vpop.permute.xlu1 %6311  ;;  %6397 = vmatprep.mubr.bf16.mxu1 %v11722_v6  ;;  %6356 = vmatprep.mubr.bf16.mxu0 %v11722_v6  ;;  %v3258_v43 = vrot.slane %v3246_v58, %v9283_v11  ;;  %v3523_v41 = vrot.slane %v10520_v0, %v9287_v49 }
 0x23b   : > { %v6310_v1 = vpop.permute.xlu0 %6309 }
 0x23c   : > { %v6315_v18 = vsel %vm11713_vm8, %v6308_v17, %v6310_v1  ;;  %v10407_v19 = vpop.f32.mrf.mxu0  ;;  %v6316_v5 = vsel %vm11713_vm8, %v6310_v1, %v6312_v4  ;;  %v10410_v20 = vpop.f32.mrf.mxu1  ;;  %v3115_v4 = vrot.slane %v3111_v47, %v9273_v45  ;;  %vm10554_vm2 = vcmp.eq.s32.totalorder %v3258_v43, 1 }
 0x23d   : > { %6379 = vmatprep.subr.bf16.mxu1 %v6316_v5  ;;  %v3527_v43 = vrot.slane %v10520_v0, %v9283_v11 }
 0x23e   : > { %v10412_v7 = vpop.f32.mrf.mxu0  ;;  %6380 = vmatpush1.bf16.msra.mxu1 %v6315_v18  ;;  %v10414_v24 = vpop.permute.xlu1 %6610  ;;  %vm10527_vm6 = vcmp.eq.s32.totalorder %v3115_v4, 1 }
 0x23f   : > { %11881 = vst [vmem:[#allocation4_spill] sm:$0xff] %v10412_v7  ;;  %v6304_v51 = vpop.permute.xlu0 %6303  ;;  %v3377_v23 = vpop.f32.mrf.mxu1  ;;  %6520 = vmatprep.subr.bf16.mxu1 %v8642_v13 }
 0x240   : > { %v6313_v37 = vsel %vm11713_vm8, %v6304_v51, %v6306_v52  ;;  %v3336_v38 = vpop.f32.mrf.mxu0  ;;  %vm10507_vm8 = vcmp.eq.s32.totalorder %v2984_v61, 1 }
 0x241   : > { %6339 = vmatpush1.bf16.msra.mxu0 %v6313_v37  ;;  %8465 = vmatmul.mubr.msk.bf16.vlgmr.msra.gmra.mxu1 %vm11719_vm1, %v8463_v32  ;;  %v3378_v40 = vpop.f32.mrf.mxu1  ;;  %v3250_v38 = vrot.slane %v3246_v58, %v9273_v45 }
 0x242   : > { %v3337_v33 = vpop.f32.mrf.mxu0  ;;  %v6615_v44 = vpop.permute.xlu1 %6614  ;;  %6479 = vmatprep.subr.bf16.mxu0 %v10063_v28  ;;  %6521 = vmatpush1.bf16.msra.mxu1 %v8640_v27  ;;  %v3380_v27 = vsel %vm2839_vm7, 1, %v11722_v6  ;;  %vm10503_vm7 = vmand %vm10458_vm5, %vm398_vm10  ;;  %vm10523_vm10 = vcmp.eq.s32.totalorder %v3127_v62, 1 }
 0x243   : > { %v6613_v14 = vpop.permute.xlu0 %6612  ;;  %6538 = vmatprep.mubr.bf16.mxu1 %v11722_v6  ;;  %v3396_v62 = vrot.slane %v3380_v27, %v9303_v59  ;;  %v10546_v4 = vsel %vm10503_vm7, 1, %v11722_v6  ;;  %vm10550_vm3 = vcmp.eq.s32.totalorder %v3250_v38, 1  ;;  %v11919_v38 = vmov 0 }
 0x244   : > { %v10438_v28 = vpop.f32.mrf.mxu0  ;;  %8464 = vmatmul.mubr.msk.bf16.vlgmr.msra.gmra.mxu0 %vm11719_vm1, %v8463_v32  ;;  %v6619_v16 = vsel %vm4143_vm15, %v10414_v24, %v6613_v14  ;;  %v3119_v32 = vrot.slane %v3111_v47, %v9287_v49  ;;  %v6620_v40 = vsel %vm4143_vm15, %v6613_v14, %v6615_v44  ;;  %v3262_v14 = vrot.slane %v3246_v58, %v9303_v59 }
 0x245   : > { %11882 = vst [vmem:[#allocation5_spill] sm:$0xff] %v10438_v28  ;;  %v10444_v54 = vpop.f32.mrf.mxu1  ;;  %6480 = vmatpush1.bf16.msra.mxu0 %v10094_v55  ;;  %6497 = vmatprep.mubr.bf16.mxu0 %v11722_v6  ;;  %v11933_v28 = vmov 0  }
 0x246   : > { %11883 = vst [vmem:[#allocation6_spill] sm:$0xff] %v10444_v54  ;;  %v10451_v17 = vpop.f32.mrf.mxu0  ;;  %6643 = vmatprep.subr.bf16.mxu0 %v6619_v16  ;;  %v6609_v57 = vpop.permute.xlu1 %6608  ;;  %vm10535_vm11 = vcmp.eq.s32.totalorder %v3119_v32, 1 }
 0x247   : > { %11884 = vst [vmem:[#allocation7_spill] sm:$0xff] %v10451_v17  ;;  %v10476_v1 = vpop.f32.mrf.mxu1  ;;  %v6617_v13 = vpop.permute.xlu0 %6616  ;;  %v3663_v17 = vrot.slane %v10546_v4, %v9283_v11 }
 0x248   : > { %11892 = vst [vmem:[#allocation8_spill] sm:$0xff] %v10476_v1  ;;  %v6621_v51 = vsel %vm4143_vm15, %v6615_v44, %v6617_v13  ;;  %v3470_v23 = vpop.f32.mrf.mxu0  ;;  %v3254_v44 = vrot.slane %v3246_v58, %v9287_v49  ;;  %v3392_v58 = vrot.slane %v3380_v27, %v9283_v11  ;;  %v3384_v13 = vrot.slane %v3380_v27, %v9273_v45 }
 0x249   : > { %v3511_v33 = vpop.f32.mrf.mxu1  ;;  %8472 = vmatmul.mubr.msk.bf16.vlgmr.msra.gmra.mxu1 %vm11719_vm1, %v8466_v60  ;;  %6684 = vmatprep.subr.bf16.mxu1 %v6621_v51  ;;  %v11926_v1 = vmov 0 }
 0x24a   : > { %6685 = vmatpush1.bf16.msra.mxu1 %v6620_v40  ;;  %v6747_v16 = vpop.permute.xlu1 %6746  ;;  %v3471_v53 = vpop.f32.mrf.mxu0  ;;  %6702 = vmatprep.mubr.bf16.mxu1 %v11722_v6  ;;  %v6618_v40 = vsel %vm4143_vm15, %v6609_v57, %v10414_v24  ;;  %v3388_v24 = vrot.slane %v3380_v27, %v9287_v49  ;;  %v3519_v57 = vrot.slane %v10520_v0, %v9273_v45  ;;  %vm11916_vm15 = vcmp.lt.s32.totalorder %v9238_v34, 7 }
 0x24b   : > { %v3512_v30 = vpop.f32.mrf.mxu1  ;;  %v10533_v51 = vpop.permute.xlu0 %6744  ;;  %v11914_v53 = vmov 0  ;;  %vm10570_vm7 = vcmp.eq.s32.totalorder %v3254_v44, 1  ;;  %v11921_v27 = vmov 0  ;;  %v3531_v34 = vrot.slane %v10520_v0, %v9303_v59 }
 0x24c   : > { %8471 = vmatmul.mubr.msk.bf16.vlgmr.msra.gmra.mxu0 %vm11719_vm1, %v8466_v60  ;;  %v6753_v33 = vsel %vm11911_vm0, %v10533_v51, %v6747_v16  ;;  %v11915_v53 = vsel %vm10554_vm2, 4294967295, %v11914_v53  ;;  %vm10566_vm0 = vmand %vm10458_vm5, %vm11916_vm15  ;;  %v11920_v38 = vsel %vm10570_vm7, 4294967295, %v11919_v38  ;;  %vm10574_vm1 = vcmp.eq.s32.totalorder %v3262_v14, 1 }
 0x24d   : > { %6644 = vmatpush1.bf16.msra.mxu0 %v6618_v40  ;;  %6661 = vmatprep.mubr.bf16.mxu0 %v11722_v6  ;;  %v11922_v27 = vsel %vm10574_vm1, 4294967295, %v11921_v27  ;;  %v8473_v40 = vld [vmem:[%s8790_s8 + $0x5c] sm:$0x3]  ;;  %v10588_v44 = vsel %vm10458_vm5, 1, %v11722_v6  ;;  %vm10590_vm15 = vcmp.eq.s32.totalorder %v3384_v13, 1  ;;  %v11924_v14 = vmov 0 }
 0x24e   : > { %v10582_v36 = vpop.f32.mrf.mxu1  ;;  %6777 = vmatprep.subr.bf16.mxu0 %v6753_v33  ;;  %v6751_v30 = vpop.permute.xlu1 %6750  ;;  %v11925_v14 = vsel %vm10590_vm15, 4294967295, %v11924_v14  ;;  %v3667_v33 = vrot.slane %v10546_v4, %v9303_v59  ;;  %vm10600_vm1 = vcmp.eq.s32.totalorder %v3392_v58, 1  ;;  %vm10604_vm5 = vcmp.eq.s32.totalorder %v3396_v62, 1  ;;  %v11984_v7 = vld [vmem:[#allocation6_spill] sm:$0xff] }
 0x24f   : > { %11923 = vst [vmem:[#allocation9_spill] sm:$0xff] %v10582_v36  ;;  %v6749_v36 = vpop.permute.xlu0 %6748  ;;  %v11927_v1 = vsel %vm10600_vm1, 4294967295, %v11926_v1  ;;  %vm11930_vm7 = vcmask 982016   ;;  %v3655_v0 = vrot.slane %v10546_v4, %v9273_v45  ;;  %v10617_v58 = vsel %vm10566_vm0, 1, %v11933_v28 }
 0x250   : > { %v6754_v13 = vsel %vm11930_vm7, %v6747_v16, %v6749_v36  ;;  %v10609_v6 = vpop.f32.mrf.mxu0  ;;  %vm11932_vm15 = vmmov %vm11930_vm7  ;;  %vm10619_vm2 = vcmp.eq.s32.totalorder %v3388_v24, 1  ;;  %vm10623_vm1 = vcmp.eq.s32.totalorder %v3519_v57, 1  ;;  %v10627_v16 = vpop.f32.mrf.mxu1  ;;  %vm11939_vm7 = vcmask 130048   ;;  %v8484_v57 = vld [vmem:[%s8790_s8 + $0x60] sm:$0x3] }
 0x251   : > { %11931 = vst [vmem:[#allocation10_spill] sm:$0xff] %v10609_v6  ;;  %v6755_v54 = vsel %vm11932_vm15, %v6749_v36, %v6751_v30  ;;  %11938 = vst [vmem:[#allocation11_spill] sm:$0xff] %v10627_v16  ;;  %8480 = vmatmul.mubr.msk.bf16.vlgmr.msra.gmra.mxu1 %vm11939_vm7, %v8473_v40  ;;  %v3659_v36 = vrot.slane %v10546_v4, %v9287_v49  ;;  %v3789_v60 = vrot.slane %v10588_v44, %v9273_v45  ;;  %v11942_v30 = vmov 0 }
 0x252   : > { %6818 = vmatprep.subr.bf16.mxu1 %v6755_v54  ;;  %v2866_v24 = vsel %vm10462_vm4, %v10310_v21, 0.0  ;;  %vm10637_vm0 = vcmp.eq.s32.totalorder %v3527_v43, 1  ;;  %vm10641_vm15 = vcmp.eq.s32.totalorder %v3531_v34, 1  ;;  %v10645_v6 = vpop.f32.mrf.mxu0  ;;  %v10647_v54 = vpop.permute.xlu1 %6879  ;;  %6836 = vmatprep.mubr.bf16.mxu1 %v11933_v28  ;;  %v3797_v4 = vrot.slane %v10588_v44, %v9283_v11 }
 0x253   : > { %v11943_v30 = vsel %vm10641_vm15, 4294967295, %v11942_v30  ;;  %11945 = vst [vmem:[#allocation13_spill] sm:$0xff] %v10645_v6  ;;  %6819 = vmatpush1.bf16.msra.mxu1 %v6754_v13  ;;  %v3793_v21 = vrot.slane %v10588_v44, %v9287_v49  ;;  %v3801_v55 = vrot.slane %v10588_v44, %v9303_v59  ;;  %v2997_v43 = vsel %vm10478_vm14, %v10327_v8, 0.0  ;;  %v6743_v6 = vpop.permute.xlu0 %6742  ;;  %v3646_v16 = vpop.f32.mrf.mxu1 }
 0x254   : > { %11944 = vst [vmem:[#allocation12_spill] sm:$0xff] %v11943_v30  ;;  %v2999_v34 = vsel %vm10482_vm13, %v10333_v12, 0.0  ;;  %vm10662_vm4 = vcmp.eq.s32.totalorder %v3523_v41, 1  ;;  %v11946_v13 = vmov 0  ;;  %v3932_v30 = vrot.slane %v10617_v58, %v9283_v11  ;;  %v3605_v16 = vpop.f32.mrf.mxu0 }
 0x255   : > { %v11947_v13 = vsel %vm10662_vm4, 4294967295, %v11946_v13  ;;  %v3936_v44 = vrot.slane %v10617_v58, %v9303_v59  ;;  %v3000_v8 = vsel %vm10491_vm9, %v10341_v15, 0.0  ;;  %vm10673_vm14 = vcmp.eq.s32.totalorder %v3663_v17, 1 }
 0x256   : > { %vm10677_vm13 = vcmp.eq.s32.totalorder %v3667_v33, 1  ;;  %vm10681_vm7 = vcmp.eq.s32.totalorder %v3655_v0, 1  ;;  %vm11954_vm4 = vcmask 982016   ;;  %vm11955_vm15 = vcmask 130048   ;;  %v3647_v0 = vpop.f32.mrf.mxu1  ;;  %v3606_v47 = vpop.f32.mrf.mxu0 }
 0x257   : > { %v6752_v5 = vsel %vm11954_vm4, %v6743_v6, %v10533_v51  ;;  %8479 = vmatmul.mubr.msk.bf16.vlgmr.msra.gmra.mxu0 %vm11955_vm15, %v8473_v40  ;;  %v3924_v15 = vrot.slane %v10617_v58, %v9273_v45  ;;  %v3928_v17 = vrot.slane %v10617_v58, %v9287_v49  ;;  %v2870_v37 = vadd.f32 %v2866_v24, %v10285_v2  ;;  %v6884_v10 = vpop.permute.xlu1 %6883  ;;  %v6882_v24 = vpop.permute.xlu0 %6881  ;;  %v10835_v40 = vld [vmem:[%s11703_s0 + $0x2] ss:$4 sm:$0xf] }
 0x258   : > { %v2998_v33 = vsel %vm10507_vm8, %v10337_v42, 0.0  ;;  %v3134_v6 = vsel %vm10511_vm12, %v10357_v29, 0.0  ;;  %v3132_v51 = vsel %vm10527_vm6, %v10362_v22, 0.0  ;;  %vm10702_vm9 = vcmp.eq.s32.totalorder %v3659_v36, 1  ;;  %6778 = vmatpush1.bf16.msra.mxu0 %v6752_v5  ;;  %6795 = vmatprep.mubr.bf16.mxu0 %v11933_v28 }
 0x259   : > { %v3001_v2 = vadd.f32 %v2997_v43, %v10314_v35  ;;  %v3003_v42 = vadd.f32 %v2999_v34, %v10303_v31  ;;  %v3135_v29 = vsel %vm10523_vm10, %v10368_v25, 0.0  ;;  %vm10712_vm12 = vcmp.eq.s32.totalorder %v3797_v4, 1  ;;  %v10732_v34 = vpop.f32.mrf.mxu0 }
 0x25a   : > { %vm10717_vm6 = vcmp.eq.s32.totalorder %v3801_v55, 1  ;;  %v3004_v35 = vadd.f32 %v3000_v8, %v2870_v37  ;;  %v3133_v31 = vsel %vm10535_vm11, %v10372_v26, 0.0  ;;  %v3267_v25 = vsel %vm10550_vm3, %v10381_v46, 0.0 }
 0x25b   : > { %vm11962_vm10 = vnez %v11915_v53  ;;  %v3002_v4 = vadd.f32 %v2998_v33, %v10318_v9  ;;  %v3138_v55 = vadd.f32 %v3134_v6, %v3003_v42  ;;  %v3136_v43 = vadd.f32 %v3132_v51, %v3001_v2  ;;  %v10754_v53 = vpop.f32.mrf.mxu1  ;;  %v11981_v2 = vld [vmem:[#allocation5_spill] sm:$0xff] }
 0x25c   : > { %v3269_v61 = vsel %vm11962_vm10, %v10385_v48, 0.0  ;;  %vm10734_vm15 = vcmp.eq.s32.totalorder %v3789_v60, 1  ;;  %vm11965_vm11 = vcmask 785408   ;;  %vm10740_vm4 = vcmp.eq.s32.totalorder %v3793_v21, 1 }
 0x25d   : > { %v6888_v26 = vsel %vm11965_vm11, %v10647_v54, %v6882_v24  ;;  %vm10744_vm3 = vcmp.eq.s32.totalorder %v3932_v30, 1  ;;  %v11968_v48 = vmov 0  ;;  %v3139_v9 = vadd.f32 %v3135_v29, %v3004_v35  ;;  %v10760_v60 = vld [vmem:[%s11703_s0 + $0x1] ss:$4 sm:$0xf]  ;;  %v3780_v6 = vpop.f32.mrf.mxu1 }
 0x25e   : > { %v11969_v48 = vsel %vm10744_vm3, 4294967295, %v11968_v48  ;;  %vm11970_vm10 = vnez %v11920_v38  ;;  %vm11971_vm8 = vnez %v11922_v27  ;;  %vm11972_vm11 = vcmask 130048   ;;  %6912 = vmatprep.subr.bf16.mxu0 %v6888_v26  ;;  %v6878_v27 = vpop.permute.xlu1 %6877  ;;  %v11986_v29 = vld [vmem:[#allocation12_spill] sm:$0xff] }
 0x25f   : > { %v3268_v23 = vsel %vm11970_vm10, %v10389_v39, 0.0  ;;  %v3270_v32 = vsel %vm11971_vm8, %v10393_v50, 0.0  ;;  %8483 = vmatmul.mubr.msk.bf16.vlgmr.msra.gmra.mxu1 %vm11972_vm11, %v8481_v56  ;;  %v3137_v30 = vadd.f32 %v3133_v31, %v3002_v4  ;;  %v3271_v21 = vadd.f32 %v3267_v25, %v3136_v43  ;;  %v10766_v50 = vpop.f32.mrf.mxu0  ;;  %v3782_v31 = vpop.f32.mrf.mxu1 }
 0x260   : > { %v3273_v38 = vadd.f32 %v3269_v61, %v3138_v55  ;;  %vm11973_vm10 = vnez %v11925_v14  ;;  %6971 = vmatprep.mubr.bf16.mxu1 %v11933_v28  ;;  %vm10769_vm8 = vcmp.eq.s32.totalorder %v3936_v44, 1  ;;  %vm10773_vm11 = vcmp.eq.s32.totalorder %v3924_v15, 1  ;;  %v11979_v14 = vld [vmem:[#allocation4_spill] sm:$0xff]  ;;  %v6886_v15 = vpop.permute.xlu0 %6885  ;;  %v11989_v61 = vld [vmem:[#allocation7_spill] sm:$0xff] }
 0x261   : > { %v3401_v39 = vsel %vm11973_vm10, %v10407_v19, 0.0  ;;  %v11976_v16 = vmov 0  ;;  %vm11978_vm3 = vnez %v11927_v1  ;;  %v3404_v19 = vsel %vm10604_vm5, %v10410_v20, 0.0  ;;  %v3741_v20 = vpop.f32.mrf.mxu0  ;;  %v3950_v31 = vld [vmem:[#allocation2] sm:$0xff] }
 0x262   : > { %v11977_v16 = vsel %vm10773_vm11, 4294967295, %v11976_v16  ;;  %v3403_v37 = vsel %vm11978_vm3, %v10401_v63, 0.0  ;;  %v3402_v33 = vsel %vm10619_vm2, %v11979_v14, 0.0  ;;  %vm11980_vm10 = vcmask 785408   ;;  %v7017_v55 = vpop.permute.xlu1 %7016 }
 0x263   : > { %v6887_v44 = vsel %vm11980_vm10, %v6878_v27, %v10647_v54  ;;  %v3272_v51 = vadd.f32 %v3268_v23, %v3137_v30  ;;  %v3274_v0 = vadd.f32 %v3270_v32, %v3139_v9  ;;  %v3536_v1 = vsel %vm10623_vm1, %v11981_v2, 0.0  ;;  %vm11983_vm11 = vmmov %vm11980_vm10  ;;  %v11985_v54 = vld [vmem:[#allocation8_spill] sm:$0xff]  ;;  %v3742_v43 = vpop.f32.mrf.mxu0  ;;  %v11991_v9 = vld [vmem:[#allocation9_spill] sm:$0xff]  ;;  %v3783_v30 = vpop.f32.mrf.mxu1 }
 0x264   : > { %vm11982_vm3 = vcmask 130048   ;;  %v6890_v63 = vsel %vm11983_vm11, %v6884_v10, %v6886_v15  ;;  %v3405_v52 = vadd.f32 %v3401_v39, %v3271_v21  ;;  %v3538_v42 = vsel %vm10637_vm0, %v11984_v7, 0.0  ;;  %vm11988_vm5 = vmmov %vm11980_vm10  ;;  %v11993_v32 = vld [vmem:[#allocation10_spill] sm:$0xff]  ;;  %v7015_v21 = vpop.permute.xlu0 %7014  ;;  %v11994_v27 = vld [vmem:[#allocation13_spill] sm:$0xff] }
 0x265   : > { %8482 = vmatmul.mubr.msk.bf16.vlgmr.msra.gmra.mxu0 %vm11982_vm3, %v8481_v56  ;;  %vm11987_vm2 = vnez %v11986_v29  ;;  %v6889_v35 = vsel %vm11988_vm5, %v6882_v24, %v6884_v10  ;;  %6953 = vmatprep.subr.bf16.mxu1 %v6890_v63  ;;  %v3407_v62 = vadd.f32 %v3403_v37, %v3273_v38  ;;  %v3408_v56 = vadd.f32 %v3404_v19, %v3274_v0  ;;  %v11992_v24 = vld [vmem:[#allocation11_spill] sm:$0xff]  ;;  %v3949_v43 = vld [vmem:[#allocation2 + $0x30] sm:$0xff]  ;;  %vm12010_vm5 = vmmov %vm11982_vm3 }
 0x266   : > { %v3539_v47 = vsel %vm11987_vm2, %v11985_v54, 0.0  ;;  %6913 = vmatpush1.bf16.msra.mxu0 %v6887_v44  ;;  %v3406_v25 = vadd.f32 %v3402_v33, %v3272_v51  ;;  %vm11990_vm1 = vnez %v11947_v13  ;;  %6954 = vmatpush1.bf16.msra.mxu1 %v6889_v35  ;;  %v3540_v26 = vadd.f32 %v3536_v1, %v3405_v52  ;;  %v3912_v33 = vpop.f32.mrf.mxu1  ;;  %v7021_v44 = vpop.permute.xlu1 %7020  ;;  %v8487_v35 = vld [vmem:[%s8790_s8 + $0x62] sm:$0x3] }
 0x267   : > { %v3537_v4 = vsel %vm11990_vm1, %v11989_v61, 0.0  ;;  %6930 = vmatprep.mubr.bf16.mxu0 %v11933_v28  ;;  %v3674_v10 = vsel %vm10673_vm14, %v11991_v9, 0.0  ;;  %v3675_v23 = vsel %vm10677_vm13, %v11992_v24, 0.0  ;;  %v3672_v13 = vsel %vm10681_vm7, %v11993_v32, 0.0  ;;  %vm11996_vm14 = vmmov %vm11982_vm3  ;;  %v3871_v52 = vpop.f32.mrf.mxu0 }
 0x268   : > { %v3542_v38 = vadd.f32 %v3538_v42, %v3407_v62  ;;  %v3543_v39 = vadd.f32 %v3539_v47, %v3408_v56  ;;  %v3673_v37 = vsel %vm10702_vm9, %v11994_v27, 0.0  ;;  %vm11995_vm0 = vcmask 752640   ;;  %v7019_v1 = vpop.permute.xlu0 %7018  ;;  %v3914_v63 = vpop.f32.mrf.mxu1  ;;  %vm12011_vm1 = vmmov %vm11982_vm3 }
 0x269   : > { %v7023_v19 = vsel %vm11995_vm0, %v7015_v21, %v7017_v55  ;;  %v3541_v18 = vadd.f32 %v3537_v4, %v3406_v25  ;;  %v3808_v41 = vsel %vm10712_vm12, %v10754_v53, 0.0  ;;  %v3809_v14 = vsel %vm10717_vm6, %v3780_v6, 0.0  ;;  %8486 = vmatmul.mubr.msk.bf16.vlgmr.msra.gmra.mxu1 %vm11996_vm14, %v8484_v57  ;;  %vm12004_vm10 = vmmov %vm11995_vm0  ;;  %v3873_v29 = vpop.f32.mrf.mxu0 }
 0x26a   : > { %7047 = vmatprep.subr.bf16.mxu0 %v7023_v19  ;;  %vm11997_vm13 = vcmp.ge.s32.totalorder %v10760_v60, 4  ;;  %vm11998_vm7 = vcmp.ge.s32.totalorder %v10205_v3, 4  ;;  %vm4077_vm9 = vcmp.ge.s32.totalorder %v10835_v40, 4  ;;  %v3678_v22 = vadd.f32 %v3674_v10, %v3542_v38  ;;  %7106 = vmatprep.mubr.bf16.mxu1 %v11933_v28  ;;  %vm12005_vm2 = vmmov %vm11995_vm0  ;;  %v7149_v47 = vpop.permute.xlu1 %7148  ;;  %v3916_v56 = vpop.f32.mrf.mxu1 }
 0x26b   : > { %vm10828_vm11 = vmand %vm11998_vm7, %vm11997_vm13  ;;  %v3679_v36 = vadd.f32 %v3675_v23, %v3543_v39  ;;  %v3676_v53 = vadd.f32 %v3672_v13, %v3540_v26  ;;  %vm10841_vm12 = vcmp.eq.s32.totalorder %v3928_v17, 1  ;;  %v3677_v15 = vadd.f32 %v3673_v37, %v3541_v18 }
 0x26c   : > { %v3806_v51 = vsel %vm10734_vm15, %v10732_v34, 0.0  ;;  %v3807_v0 = vsel %vm10740_vm4, %v10766_v50, 0.0  ;;  %vm12003_vm6 = vnez %v11969_v48  ;;  %v3812_v58 = vadd.f32 %v3808_v41, %v3678_v22  ;;  %vm10861_vm15 = vmand %vm10828_vm11, %vm4077_vm9  ;;  %v7013_v5 = vpop.permute.xlu0 %7012  ;;  %v3917_v26 = vpop.f32.mrf.mxu1 }
 0x26d   : > { %v3943_v2 = vsel %vm12003_vm6, %v3912_v33, 0.0  ;;  %v3813_v17 = vadd.f32 %v3809_v14, %v3679_v36  ;;  %v7024_v20 = vsel %vm12004_vm10, %v7017_v55, %v7019_v1  ;;  %8485 = vmatmul.mubr.msk.bf16.vlgmr.msra.gmra.mxu0 %vm11982_vm3, %v8484_v57  ;;  %v7025_v8 = vsel %vm12005_vm2, %v7019_v1, %v7021_v44  ;;  %v3875_v57 = vpop.f32.mrf.mxu0 }
 0x26e   : > { %v3944_v46 = vsel %vm10769_vm8, %v3914_v63, 0.0  ;;  %vm12008_vm4 = vnez %v11977_v16  ;;  %7088 = vmatprep.subr.bf16.mxu1 %v7025_v8  ;;  %7065 = vmatprep.mubr.bf16.mxu0 %v11933_v28  ;;  %v3810_v50 = vadd.f32 %v3806_v51, %v3676_v53  ;;  %v3811_v7 = vadd.f32 %v3807_v0, %v3677_v15  ;;  %vm12009_vm8 = vmmov %vm11995_vm0  ;;  %v7153_v23 = vpop.permute.xlu1 %7152  ;;  %v4067_v30 = vpop.f32.mrf.mxu1 }
 0x26f   : > { %v3941_v48 = vsel %vm12008_vm4, %v3871_v52, 0.0  ;;  %v3947_v42 = vadd.f32 %v3943_v2, %v3812_v58  ;;  %v3948_v54 = vadd.f32 %v3944_v46, %v3813_v17  ;;  %7089 = vmatpush1.bf16.msra.mxu1 %v7024_v20  ;;  %v3942_v62 = vsel %vm10841_vm12, %v3873_v29, 0.0  ;;  %v3876_v24 = vpop.f32.mrf.mxu0  ;;  %v8490_v52 = vld [vmem:[%s8790_s8 + $0x64] sm:$0x3] }
 0x270   : > { %v4079_v16 = vsel %vm10861_vm15, 1, %v11933_v28  ;;  %v3945_v61 = vadd.f32 %v3941_v48, %v3810_v50  ;;  %v3946_v4 = vadd.f32 %v3942_v62, %v3811_v7  ;;  %v7022_v55 = vsel %vm12009_vm8, %v7013_v5, %v7015_v21  ;;  %v7151_v13 = vpop.permute.xlu0 %7150  ;;  %v4069_v19 = vpop.f32.mrf.mxu1 }
 0x271   : > { %v3956_v25 = vcombine.low %v3947_v42, %v3948_v54  ;;  %7048 = vmatpush1.bf16.msra.mxu0 %v7022_v55  ;;  %v4237_v32 = vsel %vm10828_vm11, 1, %v11933_v28  ;;  %v4091_v21 = vrot.slane %v4079_v16, %v9283_v11  ;;  %v4026_v39 = vpop.f32.mrf.mxu0  ;;  %v4083_v27 = vrot.slane %v4079_v16, %v9273_v45 }
 0x272   : > { %8489 = vmatmul.mubr.msk.bf16.vlgmr.msra.gmra.mxu1 %vm12010_vm5, %v8487_v35  ;;  %v3955_v10 = vcombine.low %v3945_v61, %v3946_v4  ;;  %vm12012_vm0 = vcmask 719872   ;;  %vm4372_vm14 = vcmp.lt.s32.totalorder %v10835_v40, 4  ;;  %v4095_v18 = vrot.slane %v4079_v16, %v9303_v59  ;;  %v7147_v36 = vpop.permute.xlu1 %7146  ;;  %v4071_v15 = vpop.f32.mrf.mxu1  ;;  %vm12032_vm5 = vmmov %vm12011_vm1 }
 0x273   : > { %v3960_v9 = vadd.f32 %v3956_v25, %v3950_v31  ;;  %7240 = vmatprep.mubr.bf16.mxu1 %v11933_v28  ;;  %v7157_v37 = vsel %vm12012_vm0, %v7149_v47, %v7151_v13  ;;  %v4249_v41 = vrot.slane %v4237_v32, %v9283_v11  ;;  %v4028_v14 = vpop.f32.mrf.mxu0  ;;  %v4087_v22 = vrot.slane %v4079_v16, %v9287_v49  ;;  %vm12015_vm7 = vmmov %vm12012_vm0 }
 0x274   : > { %v3959_v38 = vadd.f32 %v3955_v10, %v3949_v43  ;;  %7181 = vmatprep.subr.bf16.mxu0 %v7157_v37  ;;  %v4241_v53 = vrot.slane %v4237_v32, %v9273_v45  ;;  %vm10892_vm13 = vcmp.eq.s32.totalorder %v4091_v21, 1  ;;  %v7156_v44 = vsel %vm12015_vm7, %v7147_v36, %v7149_v47  ;;  %v7155_v6 = vpop.permute.xlu0 %7154  ;;  %vm10902_vm12 = vmand %vm10828_vm11, %vm4372_vm14  ;;  %v4072_v12 = vpop.f32.mrf.mxu1  ;;  %v8493_v36 = vld [vmem:[%s8790_s8 + $0x66] sm:$0x3] }
 0x275   : > { %3962 = vst [vmem:[#allocation2] sm:$0xff] %v3960_v9  ;;  %8488 = vmatmul.mubr.msk.bf16.vlgmr.msra.gmra.mxu0 %vm12011_vm1, %v8487_v35  ;;  %v4253_v51 = vrot.slane %v4237_v32, %v9303_v59  ;;  %vm10906_vm6 = vcmp.eq.s32.totalorder %v4083_v27, 1  ;;  %v4030_v1 = vpop.f32.mrf.mxu0  ;;  %vm12020_vm10 = vmmov %vm12012_vm0  ;;  %v4245_v17 = vrot.slane %v4237_v32, %v9287_v49  ;;  %vm10913_vm2 = vcmp.eq.s32.totalorder %v4095_v18, 1 }
 0x276   : > { %7199 = vmatprep.mubr.bf16.mxu0 %v11933_v28  ;;  %3961 = vst [vmem:[#allocation2 + $0x30] sm:$0xff] %v3959_v38  ;;  %7182 = vmatpush1.bf16.msra.mxu0 %v7156_v44  ;;  %v7159_v58 = vsel %vm12020_vm10, %v7153_v23, %v7155_v6  ;;  %vm12021_vm3 = vmmov %vm12012_vm0  ;;  %vm10918_vm11 = vcmp.eq.s32.totalorder %v4249_v41, 1  ;;  %v4102_v34 = vsel %vm10892_vm13, %v4067_v30, 0.0  ;;  %vm10924_vm15 = vcmp.eq.s32.totalorder %v4087_v22, 1  ;;  %v7286_v50 = vpop.permute.xlu1 %7285  ;;  %v4230_v47 = vpop.f32.mrf.mxu1 }
 0x277   : > { %v7158_v63 = vsel %vm12021_vm3, %v7151_v13, %v7153_v23  ;;  %7222 = vmatprep.subr.bf16.mxu1 %v7159_v58  ;;  %v4031_v48 = vpop.f32.mrf.mxu0  ;;  %vm10928_vm4 = vcmp.eq.s32.totalorder %v4241_v53, 1  ;;  %v4374_v42 = vsel %vm10902_vm12, 1, %v11933_v28  ;;  %v4100_v54 = vsel %vm10906_vm6, %v4026_v39, 0.0  ;;  %vm12036_vm13 = vmmov %vm12032_vm5 }
 0x278   : > { %7223 = vmatpush1.bf16.msra.mxu1 %v7158_v63  ;;  %v7284_v29 = vpop.permute.xlu0 %7283  ;;  %vm10937_vm8 = vcmp.eq.s32.totalorder %v4253_v51, 1  ;;  %v4103_v31 = vsel %vm10913_vm2, %v4069_v19, 0.0  ;;  %v4260_v5 = vsel %vm10918_vm11, %v4230_v47, 0.0  ;;  %vm12033_vm1 = vcmask 523264   ;;  %v4232_v55 = vpop.f32.mrf.mxu1 }
 0x279   : > { %v4189_v62 = vpop.f32.mrf.mxu0  ;;  %v7292_v56 = vsel %vm12033_vm1, %v7284_v29, %v7286_v50  ;;  %vm10947_vm0 = vcmp.eq.s32.totalorder %v4245_v17, 1  ;;  %v4101_v25 = vsel %vm10924_vm15, %v4028_v14, 0.0  ;;  %v4264_v4 = vadd.f32 %v4260_v5, %v4102_v34  ;;  %vm12038_vm6 = vmmov %vm12033_vm1 }
 0x27a   : > { %v4258_v61 = vsel %vm10928_vm4, %v4189_v62, 0.0  ;;  %7316 = vmatprep.subr.bf16.mxu0 %v7292_v56  ;;  %v4386_v57 = vrot.slane %v4374_v42, %v9283_v11  ;;  %v7290_v9 = vpop.permute.xlu1 %7289  ;;  %v4261_v10 = vsel %vm10937_vm8, %v4232_v55, 0.0  ;;  %v4378_v24 = vrot.slane %v4374_v42, %v9273_v45  ;;  %v4234_v30 = vpop.f32.mrf.mxu1  ;;  %vm12039_vm10 = vmmov %vm12033_vm1 }
 0x27b   : > { %8492 = vmatmul.mubr.msk.bf16.vlgmr.msra.gmra.mxu1 %vm12036_vm13, %v8490_v52  ;;  %v4262_v43 = vadd.f32 %v4258_v61, %v4100_v54  ;;  %v4191_v26 = vpop.f32.mrf.mxu0  ;;  %v4265_v32 = vadd.f32 %v4261_v10, %v4103_v31  ;;  %v4390_v21 = vrot.slane %v4374_v42, %v9303_v59  ;;  %vm12037_vm7 = vcmp.ge.s32.totalorder %v10205_v3, 4  ;;  %vm12044_vm15 = vmmov %vm12033_vm1  ;;  %v8496_v30 = vld [vmem:[%s8790_s8 + $0x68] sm:$0x3] }
 0x27c   : > { %7375 = vmatprep.mubr.bf16.mxu1 %v11933_v28  ;;  %v4259_v23 = vsel %vm10947_vm0, %v4191_v26, 0.0  ;;  %v7288_v13 = vpop.permute.xlu0 %7287  ;;  %vm4509_vm12 = vmand %vm12037_vm7, %vm4077_vm9  ;;  %v4382_v19 = vrot.slane %v4374_v42, %v9287_v49  ;;  %v4235_v18 = vpop.f32.mrf.mxu1  ;;  %vm4393_vm3 = vcmp.eq.s32.totalorder %v4386_v57, 1  ;;  %vm10972_vm2 = vcmp.eq.s32.totalorder %v4378_v24, 1 }
 0x27d   : > { %8491 = vmatmul.mubr.msk.bf16.vlgmr.msra.gmra.mxu0 %vm12032_vm5, %v8490_v52  ;;  %v4263_v38 = vadd.f32 %v4259_v23, %v4101_v25  ;;  %v7293_v39 = vsel %vm12038_vm6, %v7286_v50, %v7288_v13  ;;  %v4193_v27 = vpop.f32.mrf.mxu0  ;;  %v7294_v37 = vsel %vm12039_vm10, %v7288_v13, %v7290_v9  ;;  %v4510_v53 = vsel %vm4509_vm12, 1, %v11933_v28  ;;  %vm12047_vm8 = vmmov %vm12032_vm5 }
 0x27e   : > { %7334 = vmatprep.mubr.bf16.mxu0 %v11933_v28  ;;  %7357 = vmatprep.subr.bf16.mxu1 %v7294_v37  ;;  %v7420_v14 = vpop.permute.xlu1 %7419  ;;  %v4365_v44 = vpop.f32.mrf.mxu1  ;;  %vm10978_vm11 = vcmp.eq.s32.totalorder %v4390_v21, 1  ;;  %vm10983_vm4 = vcmp.eq.s32.totalorder %v4382_v19, 1  ;;  %v4522_v63 = vrot.slane %v4510_v53, %v9283_v11  ;;  %v4514_v34 = vrot.slane %v4510_v53, %v9273_v45 }
 0x27f   : > { %v4194_v41 = vpop.f32.mrf.mxu0  ;;  %7358 = vmatpush1.bf16.msra.mxu1 %v7293_v39  ;;  %v4397_v0 = vsel %vm4393_vm3, %v4365_v44, 0.0  ;;  %v4526_v42 = vrot.slane %v4510_v53, %v9303_v59  ;;  %vm12048_vm1 = vcmask 490496   ;;  %v4518_v35 = vrot.slane %v4510_v53, %v9287_v49 }
 0x280   : > { %v7282_v33 = vpop.permute.xlu0 %7281  ;;  %v4401_v58 = vadd.f32 %v4397_v0, %v4264_v4  ;;  %v4367_v17 = vpop.f32.mrf.mxu1  ;;  %vm11001_vm0 = vcmp.eq.s32.totalorder %v4522_v63, 1  ;;  %vm11006_vm13 = vcmp.eq.s32.totalorder %v4514_v34, 1  ;;  %v4644_v25 = vsel %vm12037_vm7, 1, %v11933_v28  ;;  %vm12053_vm12 = vmmov %vm12048_vm1 }
 0x281   : > { %v7291_v15 = vsel %vm12044_vm15, %v7282_v33, %v7284_v29  ;;  %v4324_v51 = vpop.f32.mrf.mxu0  ;;  %v4398_v8 = vsel %vm10978_vm11, %v4367_v17, 0.0  ;;  %vm11014_vm6 = vcmp.eq.s32.totalorder %v4526_v42, 1  ;;  %vm12056_vm10 = vmmov %vm12048_vm1  ;;  %vm11021_vm3 = vcmp.eq.s32.totalorder %v4518_v35, 1  ;;  %v8499_v35 = vld [vmem:[%s8790_s8 + $0x6a] sm:$0x3] }
 0x282   : > { %v4395_v1 = vsel %vm10972_vm2, %v4324_v51, 0.0  ;;  %7317 = vmatpush1.bf16.msra.mxu0 %v7291_v15  ;;  %v7424_v52 = vpop.permute.xlu1 %7423  ;;  %v4402_v48 = vadd.f32 %v4398_v8, %v4265_v32  ;;  %v4369_v7 = vpop.f32.mrf.mxu1  ;;  %vm12059_vm2 = vmmov %vm12048_vm1  ;;  %v4656_v21 = vrot.slane %v4644_v25, %v9283_v11  ;;  %v4648_v19 = vrot.slane %v4644_v25, %v9273_v45 }
 0x283   : > { %8495 = vmatmul.mubr.msk.bf16.vlgmr.msra.gmra.mxu1 %vm12047_vm8, %v8493_v36  ;;  %v4399_v20 = vadd.f32 %v4395_v1, %v4262_v43  ;;  %v4326_v12 = vpop.f32.mrf.mxu0  ;;  %v4660_v53 = vrot.slane %v4644_v25, %v9303_v59  ;;  %vm12060_vm11 = vmmov %vm12032_vm5  ;;  %vm12061_vm15 = vcmask 457728  }
 0x284   : > { %7511 = vmatprep.mubr.bf16.mxu1 %v11933_v28  ;;  %v4396_v46 = vsel %vm10983_vm4, %v4326_v12, 0.0  ;;  %v7422_v50 = vpop.permute.xlu0 %7421  ;;  %v4370_v31 = vpop.f32.mrf.mxu1  ;;  %vm12062_vm4 = vmmov %vm12037_vm7 }
 0x285   : > { %v4400_v54 = vadd.f32 %v4396_v46, %v4263_v38  ;;  %v4328_v29 = vpop.f32.mrf.mxu0  ;;  %8494 = vmatmul.mubr.msk.bf16.vlgmr.msra.gmra.mxu0 %vm12032_vm5, %v8493_v36  ;;  %v7428_v47 = vsel %vm12048_vm1, %v7420_v14, %v7422_v50  ;;  %v7429_v24 = vsel %vm12059_vm2, %v7422_v50, %v7424_v52  ;;  %v4652_v36 = vrot.slane %v4644_v25, %v9287_v49  ;;  %vm4779_vm8 = vmand %vm12062_vm4, %vm4372_vm14 }
 0x286   : > { %7452 = vmatprep.subr.bf16.mxu0 %v7428_v47  ;;  %7470 = vmatprep.mubr.bf16.mxu0 %v11933_v28  ;;  %v7418_v56 = vpop.permute.xlu1 %7417  ;;  %v4502_v55 = vpop.f32.mrf.mxu1  ;;  %vm11044_vm1 = vcmp.eq.s32.totalorder %v4656_v21, 1  ;;  %vm11058_vm7 = vcmp.eq.s32.totalorder %v4660_v53, 1  ;;  %v4780_v12 = vsel %vm4779_vm8, 1, %v11933_v28 }
 0x287   : > { %v4329_v5 = vpop.f32.mrf.mxu0  ;;  %v7427_v61 = vsel %vm12053_vm12, %v7418_v56, %v7420_v14  ;;  %v4533_v26 = vsel %vm11001_vm0, %v4502_v55, 0.0  ;;  %vm11048_vm0 = vcmp.eq.s32.totalorder %v4648_v19, 1  ;;  %vm12071_vm12 = vmmov %vm12061_vm15  ;;  %v4784_v31 = vrot.slane %v4780_v12, %v9273_v45 }
 0x288   : > { %v7426_v4 = vpop.permute.xlu0 %7425  ;;  %7453 = vmatpush1.bf16.msra.mxu0 %v7427_v61  ;;  %v4537_v32 = vadd.f32 %v4533_v26, %v4401_v58  ;;  %v4504_v13 = vpop.f32.mrf.mxu1  ;;  %v4792_v25 = vrot.slane %v4780_v12, %v9283_v11 }
 0x289   : > { %v4461_v43 = vpop.f32.mrf.mxu0  ;;  %v7430_v9 = vsel %vm12056_vm10, %v7424_v52, %v7426_v4  ;;  %v4534_v37 = vsel %vm11014_vm6, %v4504_v13, 0.0  ;;  %vm12072_vm6 = vmmov %vm12071_vm12  ;;  %vm4915_vm10 = vcmp.lt.s32.totalorder %v10760_v60, 4 }
 0x28a   : > { %v4531_v23 = vsel %vm11006_vm13, %v4461_v43, 0.0  ;;  %7493 = vmatprep.subr.bf16.mxu1 %v7430_v9  ;;  %v7556_v27 = vpop.permute.xlu1 %7555  ;;  %v4538_v41 = vadd.f32 %v4534_v37, %v4402_v48  ;;  %v4506_v22 = vpop.f32.mrf.mxu1  ;;  %vm11054_vm13 = vcmp.eq.s32.totalorder %v4652_v36, 1  ;;  %v4788_v43 = vrot.slane %v4780_v12, %v9287_v49 }
 0x28b   : > { %v4535_v38 = vadd.f32 %v4531_v23, %v4399_v20  ;;  %v4463_v39 = vpop.f32.mrf.mxu0  ;;  %7494 = vmatpush1.bf16.msra.mxu1 %v7429_v24  ;;  %v4796_v9 = vrot.slane %v4780_v12, %v9303_v59 }
 0x28c   : > { %v4532_v18 = vsel %vm11021_vm3, %v4463_v39, 0.0  ;;  %v7554_v14 = vpop.permute.xlu0 %7553  ;;  %v4507_v15 = vpop.f32.mrf.mxu1  ;;  %vm12073_vm3 = vmmov %vm12062_vm4  ;;  %vm4797_vm4 = vcmp.eq.s32.totalorder %v4784_v31, 1 }
 0x28d   : > { %v4536_v33 = vadd.f32 %v4532_v18, %v4400_v54  ;;  %v4465_v44 = vpop.f32.mrf.mxu0  ;;  %8497 = vmatmul.mubr.msk.bf16.vlgmr.msra.gmra.mxu0 %vm12060_vm11, %v8496_v30  ;;  %v7562_v6 = vsel %vm12061_vm15, %v7554_v14, %v7556_v27  ;;  %vm11081_vm2 = vmand %vm12073_vm3, %vm4915_vm10 }
 0x28e   : > { %8498 = vmatmul.mubr.msk.bf16.vlgmr.msra.gmra.mxu1 %vm12032_vm5, %v8496_v30  ;;  %7586 = vmatprep.subr.bf16.mxu0 %v7562_v6  ;;  %v7560_v2 = vpop.permute.xlu1 %7559  ;;  %v4637_v17 = vpop.f32.mrf.mxu1  ;;  %vm12076_vm11 = vmmov %vm12072_vm6 }
 0x28f   : > { %v4466_v0 = vpop.f32.mrf.mxu0  ;;  %7645 = vmatprep.mubr.bf16.mxu1 %v11933_v28  ;;  %7604 = vmatprep.mubr.bf16.mxu0 %v11933_v28  ;;  %v4667_v34 = vsel %vm11044_vm1, %v4637_v17, 0.0  ;;  %vm12077_vm15 = vmmov %vm12032_vm5  ;;  %vm4799_vm5 = vcmp.eq.s32.totalorder %v4792_v25, 1 }
 0x290   : > { %v7558_v58 = vpop.permute.xlu0 %7557  ;;  %v4671_v50 = vadd.f32 %v4667_v34, %v4537_v32  ;;  %v4639_v7 = vpop.f32.mrf.mxu1  ;;  %vm4917_vm8 = vmand %vm11081_vm2, %vm4077_vm9 }
 0x291   : > { %v7563_v52 = vsel %vm12071_vm12, %v7556_v27, %v7558_v58  ;;  %v4596_v8 = vpop.f32.mrf.mxu0  ;;  %v7564_v46 = vsel %vm12072_vm6, %v7558_v58, %v7560_v2  ;;  %v4668_v47 = vsel %vm11058_vm7, %v4639_v7, 0.0  ;;  %vm12078_vm1 = vmmov %vm12077_vm15  ;;  %vm11100_vm7 = vcmp.eq.s32.totalorder %v4796_v9, 1  ;;  %v8502_v58 = vld [vmem:[%s8790_s8 + $0x86] sm:$0x3] }
 0x292   : > { %v4665_v48 = vsel %vm11048_vm0, %v4596_v8, 0.0  ;;  %7627 = vmatprep.subr.bf16.mxu1 %v7564_v46  ;;  %v7731_v29 = vpop.permute.xlu1 %7730  ;;  %v4672_v5 = vadd.f32 %v4668_v47, %v4538_v41  ;;  %v4641_v16 = vpop.f32.mrf.mxu1  ;;  %vm12079_vm0 = vcmask 752640   ;;  %v4918_v39 = vsel %vm4917_vm8, 1, %v11933_v28  ;;  %vm12089_vm8 = vmmov %vm12078_vm1 }
 0x293   : > { %v4669_v42 = vadd.f32 %v4665_v48, %v4535_v38  ;;  %v4598_v54 = vpop.f32.mrf.mxu0  ;;  %7628 = vmatpush1.bf16.msra.mxu1 %v7563_v52  ;;  %vm12084_vm12 = vmmov %vm12079_vm0  ;;  %v4930_v51 = vrot.slane %v4918_v39, %v9283_v11  ;;  %v4934_v20 = vrot.slane %v4918_v39, %v9303_v59  ;;  %v4922_v12 = vrot.slane %v4918_v39, %v9273_v45 }
 0x294   : > { %v4666_v62 = vsel %vm11054_vm13, %v4598_v54, 0.0  ;;  %v7552_v56 = vpop.permute.xlu0 %7551  ;;  %v4642_v26 = vpop.f32.mrf.mxu1  ;;  %vm11096_vm13 = vcmp.eq.s32.totalorder %v4788_v43, 1  ;;  %vm12085_vm6 = vmmov %vm12079_vm0  ;;  %v4926_v46 = vrot.slane %v4918_v39, %v9287_v49  ;;  %v5053_v47 = vsel %vm11081_vm2, 1, %v11933_v28 }
 0x295   : > { %v4670_v4 = vadd.f32 %v4666_v62, %v4536_v33  ;;  %v7561_v55 = vsel %vm12076_vm11, %v7552_v56, %v7554_v14  ;;  %v4600_v57 = vpop.f32.mrf.mxu0  ;;  %vm12086_vm3 = vmmov %vm12079_vm0  ;;  %vm4937_vm11 = vcmp.eq.s32.totalorder %v4930_v51, 1  ;;  %v8510_v26 = vld [vmem:[%s8790_s8 + $0xbc] sm:$0x3]  ;;  %v5057_v9 = vrot.slane %v5053_v47, %v9273_v45 }
 0x296   : > { %7587 = vmatpush1.bf16.msra.mxu0 %v7561_v55  ;;  %8501 = vmatmul.mubr.msk.bf16.vlgmr.msra.gmra.mxu1 %vm12077_vm15, %v8499_v35  ;;  %v7735_v24 = vpop.permute.xlu1 %7734  ;;  %v4772_v21 = vpop.f32.mrf.mxu1  ;;  %vm12087_vm15 = vmmov %vm12079_vm0  ;;  %v5069_v38 = vrot.slane %v5053_v47, %v9303_v59 }
 0x297   : > { %v4601_v10 = vpop.f32.mrf.mxu0  ;;  %7822 = vmatprep.mubr.bf16.mxu1 %v11933_v28  ;;  %v4803_v37 = vsel %vm4799_vm5, %v4772_v21, 0.0  ;;  %vm11121_vm5 = vcmp.eq.s32.totalorder %v4934_v20, 1  ;;  %v5061_v21 = vrot.slane %v5053_v47, %v9287_v49 }
 0x298   : > { %v7733_v3 = vpop.permute.xlu0 %7732  ;;  %v4807_v41 = vadd.f32 %v4803_v37, %v4671_v50  ;;  %v4774_v36 = vpop.f32.mrf.mxu1 }
 0x299   : > { %v4731_v23 = vpop.f32.mrf.mxu0  ;;  %8500 = vmatmul.mubr.msk.bf16.vlgmr.msra.gmra.mxu0 %vm12078_vm1, %v8499_v35  ;;  %v7739_v32 = vsel %vm12079_vm0, %v7731_v29, %v7733_v3  ;;  %v4804_v44 = vsel %vm11100_vm7, %v4774_v36, 0.0  ;;  %v7740_v0 = vsel %vm12086_vm3, %v7733_v3, %v7735_v24  ;;  %vm4936_vm7 = vcmp.eq.s32.totalorder %v4926_v46, 1 }
 0x29a   : > { %v4801_v30 = vsel %vm4797_vm4, %v4731_v23, 0.0  ;;  %7763 = vmatprep.subr.bf16.mxu0 %v7739_v32  ;;  %7781 = vmatprep.mubr.bf16.mxu0 %v11933_v28  ;;  %v7729_v18 = vpop.permute.xlu1 %7728  ;;  %v4808_v2 = vadd.f32 %v4804_v44, %v4672_v5  ;;  %v4776_v1 = vpop.f32.mrf.mxu1  ;;  %vm12088_vm4 = vmmov %vm12078_vm1  ;;  %vm11125_vm1 = vcmp.eq.s32.totalorder %v4922_v12, 1  ;;  %v5065_v3 = vrot.slane %v5053_v47, %v9283_v11 }
 0x29b   : > { %v4805_v27 = vadd.f32 %v4801_v30, %v4669_v42  ;;  %v4733_v19 = vpop.f32.mrf.mxu0  ;;  %v7738_v22 = vsel %vm12084_vm12, %v7729_v18, %v7731_v29  ;;  %vm12095_vm12 = vmmov %vm12079_vm0  ;;  %vm5070_vm3 = vcmp.eq.s32.totalorder %v5057_v9, 1 }
 0x29c   : > { %v4802_v14 = vsel %vm11096_vm13, %v4733_v19, 0.0  ;;  %v7737_v53 = vpop.permute.xlu0 %7736  ;;  %7764 = vmatpush1.bf16.msra.mxu0 %v7738_v22  ;;  %v4777_v52 = vpop.f32.mrf.mxu1  ;;  %vm12094_vm13 = vmmov %vm12079_vm0 }
 0x29d   : > { %v4806_v33 = vadd.f32 %v4802_v14, %v4670_v4  ;;  %v7741_v6 = vsel %vm12085_vm6, %v7735_v24, %v7737_v53  ;;  %v4735_v15 = vpop.f32.mrf.mxu0  ;;  %vm12096_vm6 = vmmov %vm12088_vm4 }
 0x29e   : > { %7804 = vmatprep.subr.bf16.mxu1 %v7741_v6  ;;  %v7880_v17 = vpop.permute.xlu1 %7879  ;;  %v4908_v48 = vpop.f32.mrf.mxu1 }
 0x29f   : > { %7805 = vmatpush1.bf16.msra.mxu1 %v7740_v0  ;;  %v4736_v63 = vpop.f32.mrf.mxu0  ;;  %v4941_v54 = vsel %vm4937_vm11, %v4908_v48, 0.0  ;;  %vm5188_vm11 = vmand %vm11081_vm2, %vm4372_vm14  ;;  %vm12097_vm2 = vcmp.ge.s32.totalorder %v10760_v60, 4 }
 0x2a0   : > { %v7878_v8 = vpop.permute.xlu0 %7877  ;;  %v4945_v35 = vadd.f32 %v4941_v54, %v4807_v41  ;;  %v4910_v31 = vpop.f32.mrf.mxu1  ;;  %v5189_v18 = vsel %vm5188_vm11, 1, %v11933_v28 }
 0x2a1   : > { %v7886_v34 = vsel %vm12087_vm15, %v7878_v8, %v7880_v17  ;;  %8508 = vmatmul.mubr.msk.bf16.vlgmr.msra.gmra.mxu0 %vm12088_vm4, %v8502_v58  ;;  %v4867_v5 = vpop.f32.mrf.mxu0  ;;  %v4942_v16 = vsel %vm11121_vm5, %v4910_v31, 0.0  ;;  %vm5072_vm15 = vcmp.eq.s32.totalorder %v5065_v3, 1  ;;  %vm5073_vm5 = vcmp.eq.s32.totalorder %v5069_v38, 1 }
 0x2a2   : > { %7910 = vmatprep.subr.bf16.mxu0 %v7886_v34  ;;  %8509 = vmatmul.mubr.msk.bf16.vlgmr.msra.gmra.mxu1 %vm12089_vm8, %v8502_v58  ;;  %v7884_v50 = vpop.permute.xlu1 %7883  ;;  %v4939_v25 = vsel %vm11125_vm1, %v4867_v5, 0.0  ;;  %v4946_v4 = vadd.f32 %v4942_v16, %v4808_v2  ;;  %v4912_v43 = vpop.f32.mrf.mxu1  ;;  %vm5071_vm8 = vcmp.eq.s32.totalorder %v5061_v21, 1  ;;  %v5201_v15 = vrot.slane %v5189_v18, %v9283_v11  ;;  %vm5329_vm1 = vmand %vm12097_vm2, %vm4077_vm9 }
 0x2a3   : > { %7969 = vmatprep.mubr.bf16.mxu1 %v11933_v28  ;;  %7928 = vmatprep.mubr.bf16.mxu0 %v11933_v28  ;;  %v4943_v55 = vadd.f32 %v4939_v25, %v4805_v27  ;;  %v4869_v57 = vpop.f32.mrf.mxu0  ;;  %v5205_v1 = vrot.slane %v5189_v18, %v9303_v59  ;;  %v5193_v58 = vrot.slane %v5189_v18, %v9273_v45  ;;  %v5330_v20 = vsel %vm5329_vm1, 1, %v11933_v28 }
 0x2a4   : > { %v7882_v29 = vpop.permute.xlu0 %7881  ;;  %v4940_v10 = vsel %vm4936_vm7, %v4869_v57, 0.0  ;;  %v4913_v30 = vpop.f32.mrf.mxu1  ;;  %v5197_v63 = vrot.slane %v5189_v18, %v9287_v49  ;;  %v5342_v48 = vrot.slane %v5330_v20, %v9283_v11  ;;  %v5334_v31 = vrot.slane %v5330_v20, %v9273_v45 }
 0x2a5   : > { %v7887_v62 = vsel %vm12079_vm0, %v7880_v17, %v7882_v29  ;;  %v7888_v56 = vsel %vm12094_vm13, %v7882_v29, %v7884_v50  ;;  %v4944_v23 = vadd.f32 %v4940_v10, %v4806_v33  ;;  %v4871_v13 = vpop.f32.mrf.mxu0  ;;  %vm5208_vm0 = vcmp.eq.s32.totalorder %v5201_v15, 1 }
 0x2a6   : > { %7951 = vmatprep.subr.bf16.mxu1 %v7888_v56  ;;  %vm5209_vm13 = vcmp.eq.s32.totalorder %v5205_v1, 1  ;;  %vm5206_vm7 = vcmp.eq.s32.totalorder %v5193_v58, 1  ;;  %v5338_v25 = vrot.slane %v5330_v20, %v9287_v49 }
 0x2a7   : > { %7952 = vmatpush1.bf16.msra.mxu1 %v7887_v62  ;;  %v4872_v39 = vpop.f32.mrf.mxu0 }
 0x2a8   : > { %v7876_v24 = vpop.permute.xlu0 %7875 }
 0x2a9   : > { %v7885_v32 = vsel %vm12095_vm12, %v7876_v24, %v7878_v8  ;;  %v5005_v27 = vpop.f32.mrf.mxu0  ;;  %v5046_v19 = vpop.f32.mrf.mxu1  ;;  %vm5207_vm12 = vcmp.eq.s32.totalorder %v5197_v63, 1 }
 0x2aa   : > { %7911 = vmatpush1.bf16.msra.mxu0 %v7885_v32  ;;  %8517 = vmatmul.mubr.msk.bf16.vlgmr.msra.gmra.mxu1 %vm12096_vm6, %v8510_v26  ;;  %v5074_v37 = vsel %vm5070_vm3, %v5005_v27, 0.0  ;;  %v5076_v14 = vsel %vm5072_vm15, %v5046_v19, 0.0  ;;  %vm5349_vm6 = vcmp.eq.s32.totalorder %v5342_v48, 1  ;;  %vm12098_vm3 = vmmov %vm12097_vm2  ;;  %vm5347_vm15 = vcmp.eq.s32.totalorder %v5334_v31, 1 }
 0x2ab   : > { %v5078_v41 = vadd.f32 %v5074_v37, %v4943_v55  ;;  %v5007_v22 = vpop.f32.mrf.mxu0  ;;  %v5080_v36 = vadd.f32 %v5076_v14, %v4945_v35  ;;  %v5048_v33 = vpop.f32.mrf.mxu1  ;;  %v5346_v35 = vrot.slane %v5330_v20, %v9303_v59 }
 0x2ac   : > { %v5075_v53 = vsel %vm5071_vm8, %v5007_v22, 0.0  ;;  %v5077_v6 = vsel %vm5073_vm5, %v5048_v33, 0.0  ;;  %vm12099_vm8 = vmmov %vm12097_vm2 }
 0x2ad   : > { %8516 = vmatmul.mubr.msk.bf16.vlgmr.msra.gmra.mxu0 %vm12088_vm4, %v8510_v26  ;;  %v5079_v44 = vadd.f32 %v5075_v53, %v4944_v23  ;;  %v5009_v61 = vpop.f32.mrf.mxu0  ;;  %v5081_v51 = vadd.f32 %v5077_v6, %v4946_v4  ;;  %v5050_v0 = vpop.f32.mrf.mxu1  ;;  %v5491_v4 = vsel %vm12098_vm3, 1, %v11933_v28  ;;  %vm5350_vm11 = vcmp.eq.s32.totalorder %v5346_v35, 1  ;;  %vm5625_vm5 = vmand %vm12099_vm8, %vm4372_vm14 }
 0x2ae   : > { %vm5348_vm4 = vcmp.eq.s32.totalorder %v5338_v25, 1  ;;  %v5503_v24 = vrot.slane %v5491_v4, %v9283_v11  ;;  %v5507_v38 = vrot.slane %v5491_v4, %v9303_v59  ;;  %v5495_v39 = vrot.slane %v5491_v4, %v9273_v45 }
 0x2af   : > { %v5010_v2 = vpop.f32.mrf.mxu0  ;;  %v5051_v17 = vpop.f32.mrf.mxu1  ;;  %v5626_v14 = vsel %vm5625_vm5, 1, %v11933_v28 }
 0x2b0   : > { %vm5510_vm2 = vcmp.eq.s32.totalorder %v5503_v24, 1  ;;  %vm5511_vm1 = vcmp.eq.s32.totalorder %v5507_v38, 1  ;;  %v5638_v61 = vrot.slane %v5626_v14, %v9283_v11  ;;  %v5642_v17 = vrot.slane %v5626_v14, %v9303_v59 }
 0x2b1   : > { %v5630_v63 = vrot.slane %v5626_v14, %v9273_v45 }
 0x2b2   : > { %v5181_v12 = vpop.f32.mrf.mxu1 }
 0x2b3   : > { %v5212_v52 = vsel %vm5208_vm0, %v5181_v12, 0.0  ;;  %vm5508_vm0 = vcmp.eq.s32.totalorder %v5495_v39, 1 }
 0x2b4   : > { %v5216_v8 = vadd.f32 %v5212_v52, %v5080_v36  ;;  %v5183_v34 = vpop.f32.mrf.mxu1  ;;  %v5140_v46 = vpop.f32.mrf.mxu0 }
 0x2b5   : > { %v5213_v50 = vsel %vm5209_vm13, %v5183_v34, 0.0  ;;  %v5210_v7 = vsel %vm5206_vm7, %v5140_v46, 0.0  ;;  %vm5645_vm7 = vcmp.eq.s32.totalorder %v5638_v61, 1  ;;  %v5634_v34 = vrot.slane %v5626_v14, %v9287_v49 }
 0x2b6   : > { %v5217_v42 = vadd.f32 %v5213_v50, %v5081_v51  ;;  %v5214_v54 = vadd.f32 %v5210_v7, %v5078_v41  ;;  %v5185_v29 = vpop.f32.mrf.mxu1  ;;  %v5142_v47 = vpop.f32.mrf.mxu0  ;;  %v5499_v41 = vrot.slane %v5491_v4, %v9287_v49  ;;  %v5760_v46 = vsel %vm4077_vm9, 1, %v11933_v28 }
 0x2b7   : > { %v5211_v62 = vsel %vm5207_vm12, %v5142_v47, 0.0  ;;  %vm5646_vm12 = vcmp.eq.s32.totalorder %v5642_v17, 1  ;;  %vm5644_vm3 = vcmp.eq.s32.totalorder %v5634_v34, 1  ;;  %v5772_v47 = vrot.slane %v5760_v46, %v9283_v11 }
 0x2b8   : > { %v5215_v5 = vadd.f32 %v5211_v62, %v5079_v44  ;;  %v5186_v56 = vpop.f32.mrf.mxu1  ;;  %v5144_v16 = vpop.f32.mrf.mxu0  ;;  %vm5509_vm13 = vcmp.eq.s32.totalorder %v5499_v41, 1  ;;  %v5776_v25 = vrot.slane %v5760_v46, %v9303_v59  ;;  %v5764_v4 = vrot.slane %v5760_v46, %v9273_v45 }
 0x2ba   : > { %v5322_v55 = vpop.f32.mrf.mxu1  ;;  %v5145_v57 = vpop.f32.mrf.mxu0 }
 0x2bb   : > { %v5353_v43 = vsel %vm5349_vm6, %v5322_v55, 0.0  ;;  %vm5643_vm6 = vcmp.eq.s32.totalorder %v5630_v63, 1 }
 0x2bc   : > { %v5357_v26 = vadd.f32 %v5353_v43, %v5216_v8  ;;  %v5324_v9 = vpop.f32.mrf.mxu1  ;;  %v5281_v10 = vpop.f32.mrf.mxu0 }
 0x2bd   : > { %v5354_v3 = vsel %vm5350_vm11, %v5324_v9, 0.0  ;;  %v5351_v23 = vsel %vm5347_vm15, %v5281_v10, 0.0  ;;  %vm5779_vm11 = vcmp.eq.s32.totalorder %v5772_v47, 1  ;;  %v5768_v9 = vrot.slane %v5760_v46, %v9287_v49 }
 0x2be   : > { %v5358_v32 = vadd.f32 %v5354_v3, %v5217_v42  ;;  %v5355_v13 = vadd.f32 %v5351_v23, %v5214_v54  ;;  %v5326_v30 = vpop.f32.mrf.mxu1  ;;  %v5283_v21 = vpop.f32.mrf.mxu0  ;;  %vm5780_vm15 = vcmp.eq.s32.totalorder %v5776_v25, 1 }
 0x2bf   : > { %v5352_v27 = vsel %vm5348_vm4, %v5283_v21, 0.0  ;;  %vm5777_vm4 = vcmp.eq.s32.totalorder %v5764_v4, 1  ;;  %vm5778_vm8 = vcmp.eq.s32.totalorder %v5768_v9, 1 }
 0x2c0   : > { %v5356_v37 = vadd.f32 %v5352_v27, %v5215_v5  ;;  %v5327_v19 = vpop.f32.mrf.mxu1  ;;  %v5285_v18 = vpop.f32.mrf.mxu0 }
 0x2c2   : > { %v5484_v22 = vpop.f32.mrf.mxu1  ;;  %v5286_v36 = vpop.f32.mrf.mxu0 }
 0x2c3   : > { %v5514_v53 = vsel %vm5510_vm2, %v5484_v22, 0.0  ;;  %vm6137_vm2 = vmand %vm4915_vm10, %vm4077_vm9 }
 0x2c4   : > { %v5518_v33 = vadd.f32 %v5514_v53, %v5357_v26  ;;  %v5486_v44 = vpop.f32.mrf.mxu1  ;;  %v5443_v6 = vpop.f32.mrf.mxu0 }
 0x2c5   : > { %v5515_v15 = vsel %vm5511_vm1, %v5486_v44, 0.0  ;;  %v5512_v51 = vsel %vm5508_vm0, %v5443_v6, 0.0 }
 0x2c6   : > { %v5519_v0 = vadd.f32 %v5515_v15, %v5358_v32  ;;  %v5516_v2 = vadd.f32 %v5512_v51, %v5355_v13  ;;  %v5488_v1 = vpop.f32.mrf.mxu1  ;;  %v5445_v58 = vpop.f32.mrf.mxu0 }
 0x2c7   : > { %v5513_v20 = vsel %vm5509_vm13, %v5445_v58, 0.0 }
 0x2c8   : > { %v5517_v12 = vadd.f32 %v5513_v20, %v5356_v37  ;;  %v5489_v52 = vpop.f32.mrf.mxu1  ;;  %v5447_v8 = vpop.f32.mrf.mxu0 }
 0x2ca   : > { %v5618_v48 = vpop.f32.mrf.mxu1  ;;  %v5448_v50 = vpop.f32.mrf.mxu0 }
 0x2cb   : > { %v5649_v7 = vsel %vm5645_vm7, %v5618_v48, 0.0  ;;  %v6138_v48 = vsel %vm6137_vm2, 1, %v11933_v28 }
 0x2cc   : > { %v5653_v42 = vadd.f32 %v5649_v7, %v5518_v33  ;;  %v5620_v54 = vpop.f32.mrf.mxu1  ;;  %v5577_v29 = vpop.f32.mrf.mxu0  ;;  %v6003_v33 = vsel %vm4372_vm14, 1, %v11933_v28  ;;  %v6154_v4 = vrot.slane %v6138_v48, %v9303_v59 }
 0x2cd   : > { %v5650_v35 = vsel %vm5646_vm12, %v5620_v54, 0.0  ;;  %v5647_v31 = vsel %vm5643_vm6, %v5577_v29, 0.0  ;;  %v6015_v58 = vrot.slane %v6003_v33, %v9283_v11  ;;  %v6011_v20 = vrot.slane %v6003_v33, %v9287_v49 }
 0x2ce   : > { %v5654_v62 = vadd.f32 %v5650_v35, %v5519_v0  ;;  %v5651_v5 = vadd.f32 %v5647_v31, %v5516_v2  ;;  %v5622_v56 = vpop.f32.mrf.mxu1  ;;  %v5579_v16 = vpop.f32.mrf.mxu0  ;;  %v6007_v2 = vrot.slane %v6003_v33, %v9273_v45  ;;  %vm6158_vm12 = vcmp.eq.s32.totalorder %v6154_v4, 1 }
 0x2cf   : > { %v5648_v55 = vsel %vm5644_vm3, %v5579_v16, 0.0  ;;  %vm6022_vm1 = vcmp.eq.s32.totalorder %v6015_v58, 1  ;;  %vm6021_vm0 = vcmp.eq.s32.totalorder %v6011_v20, 1 }
 0x2d0   : > { %v5652_v57 = vadd.f32 %v5648_v55, %v5517_v12  ;;  %v5623_v43 = vpop.f32.mrf.mxu1  ;;  %v5581_v26 = vpop.f32.mrf.mxu0  ;;  %v6019_v12 = vrot.slane %v6003_v33, %v9303_v59  ;;  %vm6020_vm5 = vcmp.eq.s32.totalorder %v6007_v2, 1  ;;  %v6142_v55 = vrot.slane %v6138_v48, %v9273_v45 }
 0x2d1   : > { %v6146_v43 = vrot.slane %v6138_v48, %v9287_v49 }
 0x2d2   : > { %v5753_v10 = vpop.f32.mrf.mxu1  ;;  %v5582_v24 = vpop.f32.mrf.mxu0  ;;  %vm6023_vm13 = vcmp.eq.s32.totalorder %v6019_v12, 1  ;;  %vm6155_vm6 = vcmp.eq.s32.totalorder %v6142_v55, 1 }
 0x2d3   : > { %v5783_v3 = vsel %vm5779_vm11, %v5753_v10, 0.0  ;;  %v6272_v10 = vsel %vm4915_vm10, 1, %v11933_v28  ;;  %vm6156_vm3 = vcmp.eq.s32.totalorder %v6146_v43, 1  ;;  %vm6406_vm11 = vmand %vm4915_vm10, %vm4372_vm14 }
 0x2d4   : > { %v5787_v23 = vadd.f32 %v5783_v3, %v5653_v42  ;;  %v5755_v32 = vpop.f32.mrf.mxu1  ;;  %v5712_v13 = vpop.f32.mrf.mxu0 }
 0x2d5   : > { %v5784_v30 = vsel %vm5780_vm15, %v5755_v32, 0.0  ;;  %v5781_v21 = vsel %vm5777_vm4, %v5712_v13, 0.0 }
 0x2d6   : > { %v5788_v38 = vadd.f32 %v5784_v30, %v5654_v62  ;;  %v5785_v39 = vadd.f32 %v5781_v21, %v5651_v5  ;;  %v5757_v27 = vpop.f32.mrf.mxu1  ;;  %v5714_v37 = vpop.f32.mrf.mxu0  ;;  %v6150_v5 = vrot.slane %v6138_v48, %v9283_v11 }
 0x2d7   : > { %v5782_v19 = vsel %vm5778_vm8, %v5714_v37, 0.0  ;;  %v6276_v27 = vrot.slane %v6272_v10, %v9273_v45 }
 0x2d8   : > { %v5786_v18 = vadd.f32 %v5782_v19, %v5652_v57  ;;  %v5758_v41 = vpop.f32.mrf.mxu1  ;;  %v5716_v14 = vpop.f32.mrf.mxu0  ;;  %vm6157_vm7 = vcmp.eq.s32.totalorder %v6150_v5, 1  ;;  %v6284_v19 = vrot.slane %v6272_v10, %v9283_v11 }
 0x2d9   : > { %vm6289_vm15 = vcmp.eq.s32.totalorder %v6276_v27, 1 }
 0x2da   : > { %v5887_v22 = vpop.f32.mrf.mxu1  ;;  %v5717_v36 = vpop.f32.mrf.mxu0  ;;  %vm6291_vm4 = vcmp.eq.s32.totalorder %v6284_v19, 1 }
 0x2db   : > { %v5896_v53 = vadd.f32 %v5887_v22, %v5787_v23  ;;  %v6280_v22 = vrot.slane %v6272_v10, %v9287_v49  ;;  %v6288_v36 = vrot.slane %v6272_v10, %v9303_v59 }
 0x2dc   : > { %v5889_v44 = vpop.f32.mrf.mxu1  ;;  %v5846_v6 = vpop.f32.mrf.mxu0 }
 0x2dd   : > { %v5897_v61 = vadd.f32 %v5889_v44, %v5788_v38  ;;  %v5894_v15 = vadd.f32 %v5846_v6, %v5785_v39  ;;  %vm6290_vm8 = vcmp.eq.s32.totalorder %v6280_v22, 1  ;;  %v11217_v44 = vsel %vm6406_vm11, 1, %v11933_v28 }
 0x2de   : > { %v5848_v51 = vpop.f32.mrf.mxu0  ;;  %v5891_v0 = vpop.f32.mrf.mxu1 }
 0x2df   : > { %v5895_v1 = vadd.f32 %v5848_v51, %v5786_v18 }
 0x2e0   : > { %v5850_v17 = vpop.f32.mrf.mxu0  ;;  %v5892_v63 = vpop.f32.mrf.mxu1 }
 0x2e1   : > { %v6419_v17 = vrot.slane %v11217_v44, %v9283_v11 }
 0x2e2   : > { %v5851_v52 = vpop.f32.mrf.mxu0 }
 0x2e3   : > { %vm6426_vm2 = vcmp.eq.s32.totalorder %v6419_v17, 1 }
 0x2e4   : > { %v5955_v8 = vpop.f32.mrf.mxu0 }
 0x2e5   : > { %v6024_v34 = vsel %vm6020_vm5, %v5955_v8, 0.0  ;;  %v5996_v46 = vpop.f32.mrf.mxu1  ;;  %vm6292_vm5 = vcmp.eq.s32.totalorder %v6288_v36, 1 }
 0x2e6   : > { %v6028_v50 = vadd.f32 %v6024_v34, %v5894_v15  ;;  %v6026_v7 = vsel %vm6022_vm1, %v5996_v46, 0.0  ;;  %v5957_v42 = vpop.f32.mrf.mxu0  ;;  %v6411_v46 = vrot.slane %v11217_v44, %v9273_v45 }
 0x2e7   : > { %v6030_v54 = vadd.f32 %v6026_v7, %v5896_v53  ;;  %v6025_v29 = vsel %vm6021_vm0, %v5957_v42, 0.0  ;;  %v5998_v47 = vpop.f32.mrf.mxu1 }
 0x2e8   : > { %v6029_v35 = vadd.f32 %v6025_v29, %v5895_v1  ;;  %v6027_v31 = vsel %vm6023_vm13, %v5998_v47, 0.0  ;;  %v5959_v62 = vpop.f32.mrf.mxu0  ;;  %vm6424_vm1 = vcmp.eq.s32.totalorder %v6411_v46, 1  ;;  %vm12102_vm13 = vcmp.ge.s32.totalorder %v10760_v60, 4 }
 0x2e9   : > { %v6031_v56 = vadd.f32 %v6027_v31, %v5897_v61  ;;  %v6000_v16 = vpop.f32.mrf.mxu1 }
 0x2ea   : > { %v5960_v25 = vpop.f32.mrf.mxu0 }
 0x2eb   : > { %v6001_v57 = vpop.f32.mrf.mxu1 }
 0x2ee   : > { %v6130_v26 = vpop.f32.mrf.mxu1 }
 0x2ef   : > { %v6161_v9 = vsel %vm6157_vm7, %v6130_v26, 0.0 }
 0x2f0   : > { %v6165_v24 = vadd.f32 %v6161_v9, %v6030_v54  ;;  %v6132_v3 = vpop.f32.mrf.mxu1  ;;  %v6089_v23 = vpop.f32.mrf.mxu0 }
 0x2f1   : > { %v6162_v32 = vsel %vm6158_vm12, %v6132_v3, 0.0  ;;  %v6159_v13 = vsel %vm6155_vm6, %v6089_v23, 0.0 }
 0x2f2   : > { %v6166_v30 = vadd.f32 %v6162_v32, %v6031_v56  ;;  %v6163_v21 = vadd.f32 %v6159_v13, %v6028_v50  ;;  %v6091_v38 = vpop.f32.mrf.mxu0  ;;  %v6134_v39 = vpop.f32.mrf.mxu1 }
 0x2f3   : > { %v6160_v37 = vsel %vm6156_vm3, %v6091_v38, 0.0 }
 0x2f4   : > { %v6164_v18 = vadd.f32 %v6160_v37, %v6029_v35  ;;  %v6093_v41 = vpop.f32.mrf.mxu0  ;;  %v6135_v14 = vpop.f32.mrf.mxu1 }
 0x2f6   : > { %v6094_v53 = vpop.f32.mrf.mxu0 }
 0x2f8   : > { %v6224_v33 = vpop.f32.mrf.mxu0 }
 0x2f9   : > { %v6293_v6 = vsel %vm6289_vm15, %v6224_v33, 0.0  ;;  %v6265_v61 = vpop.f32.mrf.mxu1 }
 0x2fa   : > { %v6297_v15 = vadd.f32 %v6293_v6, %v6163_v21  ;;  %v6295_v51 = vsel %vm6291_vm4, %v6265_v61, 0.0  ;;  %v6226_v0 = vpop.f32.mrf.mxu0 }
 0x2fb   : > { %v6299_v2 = vadd.f32 %v6295_v51, %v6165_v24  ;;  %v6294_v1 = vsel %vm6290_vm8, %v6226_v0, 0.0  ;;  %v6267_v58 = vpop.f32.mrf.mxu1  ;;  %v8650_v0 = vld [vmem:[%s11703_s0] ss:$4 sm:$0xf] }
 0x2fc   : > { %v11221_v63 = vadd.f32 %v6294_v1, %v6164_v18  ;;  %v6296_v20 = vsel %vm6292_vm5, %v6267_v58, 0.0  ;;  %v6228_v12 = vpop.f32.mrf.mxu0  ;;  %vm6547_vm0 = vcmp.lt.s32.totalorder %v8650_v0, 4 }
 0x2fd   : > { %v11223_v52 = vadd.f32 %v6296_v20, %v6166_v30  ;;  %v6269_v8 = vpop.f32.mrf.mxu1  ;;  %vm6548_vm7 = vmand %vm6547_vm0, %vm12102_vm13 }
 0x2fe   : > { %v6229_v34 = vpop.f32.mrf.mxu0  ;;  %vm6549_vm12 = vmand %vm6548_vm7, %vm4077_vm9 }
 0x2ff   : > { %v6270_v48 = vpop.f32.mrf.mxu1  ;;  %v6550_v46 = vsel %vm6549_vm12, 1, %v11933_v28  ;;  %vm6845_vm6 = vmand %vm6548_vm7, %vm4372_vm14 }
 0x300   : > { %vm6980_vm3 = vmand %vm6547_vm0, %vm4077_vm9 }
 0x301   : > { %v6399_v50 = vpop.f32.mrf.mxu1  ;;  %vm11309_vm11 = vmand %vm6547_vm0, %vm4915_vm10 }
 0x302   : > { %v6430_v7 = vsel %vm6426_vm2, %v6399_v50, 0.0  ;;  %v6423_v50 = vrot.slane %v11217_v44, %v9303_v59  ;;  %vm11322_vm4 = vmand %vm6547_vm0, %vm4372_vm14 }
 0x303   : > { %v11227_v42 = vadd.f32 %v6430_v7, %v6299_v2  ;;  %v11229_v54 = vpop.f32.mrf.mxu1  ;;  %v6415_v7 = vrot.slane %v11217_v44, %v9287_v49  ;;  %vm11351_vm2 = vmand %vm11309_vm11, %vm4077_vm9 }
 0x304   : > { %v6358_v29 = vpop.f32.mrf.mxu0  ;;  %vm11313_vm15 = vcmp.eq.s32.totalorder %v6423_v50, 1 }
 0x305   : > { %v6428_v47 = vsel %vm6424_vm1, %v6358_v29, 0.0  ;;  %v6403_v35 = vpop.f32.mrf.mxu1  ;;  %v6711_v29 = vsel %vm6548_vm7, 1, %v11933_v28  ;;  %vm11328_vm10 = vcmp.eq.s32.totalorder %v6415_v7, 1  ;;  %v6431_v44 = vsel %vm11313_vm15, %v11229_v54, 0.0 }
 0x306   : > { %v11231_v31 = vadd.f32 %v6428_v47, %v6297_v15  ;;  %v11233_v62 = vpop.f32.mrf.mxu0  ;;  %v6562_v35 = vrot.slane %v6550_v46, %v9283_v11 }
 0x307   : > { %v6404_v5 = vpop.f32.mrf.mxu1 }
 0x308   : > { %v6362_v56 = vpop.f32.mrf.mxu0  ;;  %v6566_v5 = vrot.slane %v6550_v46, %v9303_v59  ;;  %vm11337_vm8 = vcmp.eq.s32.totalorder %v6562_v35, 1  ;;  %v7250_v35 = vsel %vm11322_vm4, 1, %v11933_v28 }
 0x309   : > { %v11235_v16 = vpop.f32.mrf.mxu1  ;;  %v6846_v56 = vsel %vm6845_vm6, 1, %v11933_v28 }
 0x30a   : > { %v6363_v25 = vpop.f32.mrf.mxu0  ;;  %vm11341_vm5 = vcmp.eq.s32.totalorder %v6566_v5, 1  ;;  %v6850_v50 = vrot.slane %v6846_v56, %v9273_v45  ;;  %v6854_v7 = vrot.slane %v6846_v56, %v9287_v49 }
 0x30b   : > { %v11237_v4 = vpop.f32.mrf.mxu1 }
 0x30c   : > { %v11239_v55 = vpop.f32.mrf.mxu0 }
 0x30d   : > { %v6544_v57 = vpop.f32.mrf.mxu1 }
 0x30e   : > { %v11241_v43 = vpop.f32.mrf.mxu0  ;;  %v6554_v57 = vrot.slane %v6550_v46, %v9273_v45 }
 0x30f   : > { %v6545_v26 = vpop.f32.mrf.mxu1 }
 0x310   : > { %v6503_v9 = vpop.f32.mrf.mxu0  ;;  %v6558_v26 = vrot.slane %v6550_v46, %v9287_v49  ;;  %vm11355_vm1 = vcmp.eq.s32.totalorder %v6554_v57, 1  ;;  %v12184_v46 = vmov 0 }
 0x311   : > { %v11243_v10 = vpop.f32.mrf.mxu1  ;;  %v6981_v9 = vsel %vm6980_vm3, 1, %v11933_v28 }
 0x312   : > { %v6504_v24 = vpop.f32.mrf.mxu0 }
 0x313   : > { %v11245_v3 = vpop.f32.mrf.mxu1 }
 0x315   : > { %v6708_v32 = vpop.f32.mrf.mxu1 }
 0x316   : > { %v12162_v32 = vmov 0 }
 0x317   : > { %v11247_v23 = vpop.f32.mrf.mxu0  ;;  %v6709_v30 = vpop.f32.mrf.mxu1 }
 0x318   : > { %v6723_v30 = vrot.slane %v6711_v29, %v9283_v11 }
 0x319   : > { %v11249_v13 = vpop.f32.mrf.mxu0 }
 0x31a   : > { %vm11369_vm9 = vcmp.eq.s32.totalorder %v6723_v30, 1  ;;  %v12188_v30 = vmov 0 }
 0x31b   : > { %v6667_v21 = vpop.f32.mrf.mxu0 }
 0x31c   : > { %v6727_v21 = vrot.slane %v6711_v29, %v9303_v59 }
 0x31d   : > { %v6668_v39 = vpop.f32.mrf.mxu0 }
 0x31e   : > { %vm11373_vm13 = vcmp.eq.s32.totalorder %v6727_v21, 1  ;;  %v12133_v39 = vmov 0  ;;  %v6985_v21 = vrot.slane %v6981_v9, %v9273_v45 }
 0x31f   : > { %v11251_v38 = vpop.f32.mrf.mxu1 }
 0x321   : > { %v11253_v27 = vpop.f32.mrf.mxu1 }
 0x323   : > { %v6842_v19 = vpop.f32.mrf.mxu1 }
 0x325   : > { %v11255_v37 = vpop.f32.mrf.mxu0  ;;  %v6843_v41 = vpop.f32.mrf.mxu1 }
 0x326   : > { %v6715_v41 = vrot.slane %v6711_v29, %v9273_v45 }
 0x327   : > { %v11257_v18 = vpop.f32.mrf.mxu0 }
 0x328   : > { %vm11379_vm7 = vcmp.eq.s32.totalorder %v6715_v41, 1 }
 0x329   : > { %v6801_v14 = vpop.f32.mrf.mxu0  ;;  %v11259_v22 = vpop.f32.mrf.mxu1 }
 0x32a   : > { %v6719_v14 = vrot.slane %v6711_v29, %v9287_v49  ;;  %v6997_v29 = vrot.slane %v6981_v9, %v9303_v59 }
 0x32b   : > { %v6802_v36 = vpop.f32.mrf.mxu0  ;;  %v11261_v53 = vpop.f32.mrf.mxu1 }
 0x32c   : > { %v6858_v36 = vrot.slane %v6846_v56, %v9283_v11  ;;  %vm11383_vm12 = vcmp.eq.s32.totalorder %v6719_v14, 1  ;;  %v12139_v14 = vmov 0 }
 0x32d   : > { %v11263_v33 = vpop.f32.mrf.mxu0  ;;  %v6977_v6 = vpop.f32.mrf.mxu1  ;;  %v12134_v39 = vsel %vm11383_vm12, 4294967295, %v12133_v39  ;;  %vm11412_vm12 = vmand %vm11309_vm11, %vm4372_vm14 }
 0x32e   : > { %12100 = vst [vmem:[#allocation4_spill] sm:$0xff] %v11263_v33  ;;  %v7115_v6 = vsel %vm6547_vm0, 1, %v11933_v28  ;;  %vm11359_vm0 = vcmp.eq.s32.totalorder %v6558_v26, 1  ;;  %vm11387_vm6 = vcmp.eq.s32.totalorder %v6858_v36, 1  ;;  %v7262_v36 = vrot.slane %v7250_v35, %v9283_v11 }
 0x32f   : > { %v11265_v61 = vpop.f32.mrf.mxu0  ;;  %v6978_v15 = vpop.f32.mrf.mxu1  ;;  %v7119_v40 = vrot.slane %v7115_v6, %v9273_v45 }
 0x330   : > { %12101 = vst [vmem:[#allocation5_spill] sm:$0xff] %v11265_v61  ;;  %v7258_v61 = vrot.slane %v7250_v35, %v9287_v49  ;;  %vm11467_vm15 = vcmp.eq.s32.totalorder %v7262_v36, 1 }
 0x331   : > { %v6936_v51 = vpop.f32.mrf.mxu0 }
 0x332   : > { %v11270_v2 = vpop.f32.mrf.mxu1 }
 0x333   : > { %v6937_v1 = vpop.f32.mrf.mxu0 }
 0x334   : > { %v11272_v58 = vpop.f32.mrf.mxu1 }
 0x335   : > { %v11277_v17 = vpop.f32.mrf.mxu0 }
 0x336   : > { %12103 = vst [vmem:[#allocation6_spill] sm:$0xff] %v11277_v17  ;;  %v7112_v20 = vpop.f32.mrf.mxu1  ;;  %v11433_v17 = vsel %vm11309_vm11, 1, %v11933_v28  ;;  %vm11450_vm11 = vcmp.eq.s32.totalorder %v6985_v21, 1 }
 0x337   : > { %v11279_v12 = vpop.f32.mrf.mxu0  ;;  %v6862_v20 = vrot.slane %v6846_v56, %v9303_v59  ;;  %v7524_v51 = vrot.slane %v11433_v17, %v9273_v45 }
 0x338   : > { %12104 = vst [vmem:[#allocation8_spill] sm:$0xff] %v11279_v12  ;;  %v7113_v8 = vpop.f32.mrf.mxu1 }
 0x339   : > { %v7071_v34 = vpop.f32.mrf.mxu0  ;;  %v6993_v8 = vrot.slane %v6981_v9, %v9283_v11  ;;  %vm11396_vm3 = vcmp.eq.s32.totalorder %v6862_v20, 1  ;;  %v12144_v20 = vmov 0 }
 0x33b   : > { %v7072_v48 = vpop.f32.mrf.mxu0  ;;  %v11299_v25 = vpop.f32.mrf.mxu1  ;;  %vm11400_vm4 = vcmp.eq.s32.totalorder %v6993_v8, 1  ;;  %v12146_v8 = vmov 0 }
 0x33c   : > { %12106 = vst [vmem:[#allocation7_spill] sm:$0xff] %v11299_v25  ;;  %v12140_v14 = vsel %vm11400_vm4, 4294967295, %v12139_v14  ;;  %vm11424_vm4 = vcmp.eq.s32.totalorder %v6997_v29, 1 }
 0x33d   : > { %v11294_v47 = vpop.f32.mrf.mxu0  ;;  %v11326_v60 = vpop.f32.mrf.mxu1 }
 0x33e   : > { %12105 = vst [vmem:[#allocation12_spill] sm:$0xff] %v11294_v47  ;;  %12114 = vst [vmem:[#allocation11_spill] sm:$0xff] %v11326_v60  ;;  %v7266_v47 = vrot.slane %v7250_v35, %v9303_v59 }
 0x33f   : > { %v11304_v24 = vpop.f32.mrf.mxu0  ;;  %v7246_v34 = vpop.f32.mrf.mxu1 }
 0x340   : > { %12107 = vst [vmem:[#allocation9_spill] sm:$0xff] %v11304_v24  ;;  %v7131_v34 = vrot.slane %v7115_v6, %v9303_v59  ;;  %v12131_v24 = vmov 0 }
 0x341   : > { %v7205_v15 = vpop.f32.mrf.mxu0  ;;  %v7247_v56 = vpop.f32.mrf.mxu1  ;;  %v12132_v24 = vsel %vm11379_vm7, 4294967295, %v12131_v24  ;;  %vm11420_vm7 = vcmp.eq.s32.totalorder %v6854_v7, 1 }
 0x342   : > { %v7127_v15 = vrot.slane %v7115_v6, %v9283_v11  ;;  %v7386_v56 = vsel %vm11351_vm2, 1, %v11933_v28  ;;  %vm11416_vm2 = vcmp.eq.s32.totalorder %v6850_v50, 1  ;;  %v12147_v8 = vsel %vm11420_vm7, 4294967295, %v12146_v8 }
 0x343   : > { %v7206_v5 = vpop.f32.mrf.mxu0  ;;  %v11406_v12 = vpop.f32.mrf.mxu1  ;;  %v12145_v20 = vsel %vm11416_vm2, 4294967295, %v12144_v20  ;;  %vm11439_vm2 = vcmp.eq.s32.totalorder %v7131_v34, 1  ;;  %v7398_v29 = vrot.slane %v7386_v56, %v9283_v11  ;;  %v7402_v25 = vrot.slane %v7386_v56, %v9303_v59  ;;  %v12202_v50 = vld [vmem:[#allocation7_spill] sm:$0xff] }
 0x344   : > { %v6989_v5 = vrot.slane %v6981_v9, %v9287_v49  ;;  %12141 = vst [vmem:[#allocation10_spill] sm:$0xff] %v11406_v12  ;;  %v7123_v12 = vrot.slane %v7115_v6, %v9287_v49  ;;  %vm11435_vm14 = vcmp.eq.s32.totalorder %v7127_v15, 1  ;;  %v12155_v6 = vmov 0  ;;  %v12207_v15 = vld [vmem:[#allocation8_spill] sm:$0xff] }
 0x345   : > { %v11444_v60 = vpop.f32.mrf.mxu1  ;;  %v12156_v6 = vsel %vm11450_vm11, 4294967295, %v12155_v6  ;;  %v7254_v34 = vrot.slane %v7250_v35, %v9273_v45  ;;  %v11460_v33 = vpop.f32.mrf.mxu0  ;;  %vm11471_vm11 = vcmp.eq.s32.totalorder %v7266_v47, 1  ;;  %v7390_v21 = vrot.slane %v7386_v56, %v9273_v45  ;;  %v12203_v7 = vld [vmem:[#allocation11_spill] sm:$0xff] }
 0x346   : > { %12154 = vst [vmem:[#allocation13_spill] sm:$0xff] %v11444_v60  ;;  %vm11454_vm7 = vcmp.eq.s32.totalorder %v6989_v5, 1  ;;  %12159 = vst [vmem:[#allocation14_spill] sm:$0xff] %v11460_v33  ;;  %v11465_v60 = vsel %vm11412_vm12, 1, %v11933_v28  ;;  %v12163_v32 = vsel %vm11471_vm11, 4294967295, %v12162_v32  ;;  %v7532_v35 = vrot.slane %v11433_v17, %v9283_v11 }
 0x347   : > { %12164 = vst [vmem:[#allocation15_spill] sm:$0xff] %v12163_v32  ;;  %v7381_v5 = vpop.f32.mrf.mxu1  ;;  %v7536_v33 = vrot.slane %v11433_v17, %v9303_v59  ;;  %v6573_v28 = vsel %vm11337_vm8, %v11235_v16, 0.0  ;;  %v6574_v47 = vsel %vm11341_vm5, %v11237_v4, 0.0  ;;  %vm11486_vm12 = vcmp.eq.s32.totalorder %v7119_v40, 1 }
 0x348   : > { %vm11490_vm11 = vcmp.eq.s32.totalorder %v7123_v12, 1  ;;  %v11494_v5 = vpop.f32.mrf.mxu0  ;;  %v7394_v32 = vrot.slane %v7386_v56, %v9287_v49  ;;  %v6435_v16 = vadd.f32 %v6431_v44, %v11223_v52  ;;  %v6429_v4 = vsel %vm11328_vm10, %v11233_v62, 0.0 }
 0x349   : > { %12169 = vst [vmem:[#allocation16_spill] sm:$0xff] %v11494_v5  ;;  %vm11503_vm8 = vcmp.eq.s32.totalorder %v7398_v29, 1  ;;  %vm11507_vm5 = vcmp.eq.s32.totalorder %v7402_v25, 1  ;;  %v12172_v12 = vmov 0  ;;  %v7382_v40 = vpop.f32.mrf.mxu1  ;;  %v7528_v56 = vrot.slane %v11433_v17, %v9287_v49 }
 0x34a   : > { %v12173_v12 = vsel %vm11507_vm5, 4294967295, %v12172_v12  ;;  %v7667_v5 = vrot.slane %v11465_v60, %v9283_v11  ;;  %v6734_v52 = vsel %vm11369_vm9, %v11243_v10, 0.0  ;;  %v6735_v62 = vsel %vm11373_vm13, %v11245_v3, 0.0  ;;  %v7340_v17 = vpop.f32.mrf.mxu0 }
 0x34b   : > { %vm11521_vm10 = vcmp.eq.s32.totalorder %v7254_v34, 1  ;;  %vm11525_vm5 = vcmp.eq.s32.totalorder %v7258_v61, 1  ;;  %v7671_v11 = vrot.slane %v11465_v60, %v9303_v59  ;;  %v7659_v57 = vrot.slane %v11465_v60, %v9273_v45  ;;  %v12208_v54 = vld [vmem:[#allocation10_spill] sm:$0xff] }
 0x34c   : > { %v6577_v10 = vadd.f32 %v6573_v28, %v11227_v42  ;;  %v6578_v29 = vadd.f32 %v6574_v47, %v6435_v16  ;;  %v6571_v3 = vsel %vm11355_vm1, %v11239_v55, 0.0  ;;  %v6572_v61 = vsel %vm11359_vm0, %v11241_v43, 0.0 }
 0x34d   : > { %vm11540_vm9 = vcmp.eq.s32.totalorder %v7532_v35, 1  ;;  %vm11544_vm13 = vcmp.eq.s32.totalorder %v7536_v33, 1  ;;  %v12180_v59 = vmov 0  ;;  %v6433_v44 = vadd.f32 %v6429_v4, %v11221_v63  ;;  %v7341_v33 = vpop.f32.mrf.mxu0  ;;  %v12201_v4 = vld [vmem:[#allocation5_spill] sm:$0xff] }
 0x34e   : > { %v12181_v59 = vsel %vm11544_vm13, 4294967295, %v12180_v59  ;;  %v6869_v42 = vsel %vm11387_vm6, %v11251_v38, 0.0  ;;  %v6870_v55 = vsel %vm11396_vm3, %v11253_v27, 0.0  ;;  %vm11555_vm1 = vcmp.eq.s32.totalorder %v7390_v21, 1 }
 0x34f   : > { %vm11559_vm0 = vcmp.eq.s32.totalorder %v7394_v32, 1  ;;  %v7663_v63 = vrot.slane %v11465_v60, %v9287_v49  ;;  %v6738_v48 = vadd.f32 %v6734_v52, %v6577_v10  ;;  %v6739_v34 = vadd.f32 %v6735_v62, %v6578_v29 }
 0x350   : > { %v12185_v46 = vsel %vm11559_vm0, 4294967295, %v12184_v46  ;;  %vm12186_vm6 = vnez %v12132_v24  ;;  %vm12187_vm3 = vnez %v12134_v39  ;;  %vm11571_vm13 = vcmp.eq.s32.totalorder %v7667_v5, 1 }
 0x351   : > { %v6732_v38 = vsel %vm12186_vm6, %v11247_v23, 0.0  ;;  %v6733_v27 = vsel %vm12187_vm3, %v11249_v13, 0.0  ;;  %v12189_v30 = vsel %vm11571_vm13, 4294967295, %v12188_v30  ;;  %v6575_v41 = vadd.f32 %v6571_v3, %v11231_v31  ;;  %v11582_v23 = vpop.f32.mrf.mxu0 }
 0x352   : > { %v6576_v32 = vadd.f32 %v6572_v61, %v6433_v44  ;;  %vm12190_vm0 = vnez %v12140_v14  ;;  %v7005_v24 = vsel %vm11424_vm4, %v11261_v53, 0.0  ;;  %vm11584_vm6 = vcmp.eq.s32.totalorder %v7524_v51, 1  ;;  %v7513_v14 = vpop.f32.mrf.mxu1 }
 0x353   : > { %v7004_v21 = vsel %vm12190_vm0, %v11259_v22, 0.0  ;;  %vm11588_vm3 = vcmp.eq.s32.totalorder %v7528_v56, 1  ;;  %v6873_v31 = vadd.f32 %v6869_v42, %v6738_v48  ;;  %v6874_v35 = vadd.f32 %v6870_v55, %v6739_v34  ;;  %v12209_v48 = vld [vmem:[#allocation13_spill] sm:$0xff] }
 0x354   : > { %vm12195_vm13 = vnez %v12145_v20  ;;  %vm12196_vm0 = vnez %v12147_v8  ;;  %vm11598_vm4 = vcmp.eq.s32.totalorder %v7671_v11, 1  ;;  %v6736_v28 = vadd.f32 %v6732_v38, %v6575_v41  ;;  %v12199_v8 = vld [vmem:[#allocation4_spill] sm:$0xff]  ;;  %v7515_v56 = vpop.f32.mrf.mxu1 }
 0x355   : > { %v6867_v22 = vsel %vm12195_vm13, %v11255_v37, 0.0  ;;  %v6868_v53 = vsel %vm12196_vm0, %v11257_v18, 0.0  ;;  %v6737_v47 = vadd.f32 %v6733_v27, %v6576_v32  ;;  %v7138_v5 = vsel %vm11435_vm14, %v11270_v2, 0.0  ;;  %v7474_v37 = vpop.f32.mrf.mxu0  ;;  %v12211_v27 = vld [vmem:[#allocation12_spill] sm:$0xff]  ;;  %v12212_v32 = vld [vmem:[#allocation9_spill] sm:$0xff] }
 0x356   : > { %v7139_v20 = vsel %vm11439_vm2, %v11272_v58, 0.0  ;;  %v7008_v51 = vadd.f32 %v7004_v21, %v6873_v31  ;;  %v7009_v16 = vadd.f32 %v7005_v24, %v6874_v35  ;;  %vm12200_vm13 = vnez %v12156_v6  ;;  %v12204_v58 = vld [vmem:[#allocation15_spill] sm:$0xff]  ;;  %v12206_v6 = vld [vmem:[#allocation6_spill] sm:$0xff]  ;;  %v7517_v44 = vpop.f32.mrf.mxu1 }
 0x357   : > { %v7002_v18 = vsel %vm12200_vm13, %v12199_v8, 0.0  ;;  %v7003_v40 = vsel %vm11454_vm7, %v12201_v4, 0.0  ;;  %v6871_v52 = vadd.f32 %v6867_v22, %v6736_v28  ;;  %v6872_v62 = vadd.f32 %v6868_v53, %v6737_v47  ;;  %v7476_v11 = vpop.f32.mrf.mxu0  ;;  %v12214_v28 = vld [vmem:[#allocation14_spill] sm:$0xff]  ;;  %v12215_v47 = vld [vmem:[#allocation16_spill] sm:$0xff]  ;;  %v7833_v44 = vld [vmem:[#allocation2 + $0x20] sm:$0xff] }
 0x358   : > { %v7273_v2 = vsel %vm11467_vm15, %v12202_v50, 0.0  ;;  %vm12205_vm2 = vnez %v12204_v58  ;;  %v7142_v10 = vadd.f32 %v7138_v5, %v7008_v51  ;;  %v7143_v29 = vadd.f32 %v7139_v20, %v7009_v16  ;;  %v7518_v24 = vpop.f32.mrf.mxu1  ;;  %v7685_v11 = vld [vmem:[#allocation2 + $0x18] sm:$0xff] }
 0x359   : > { %v7274_v17 = vsel %vm12205_vm2, %v12203_v7, 0.0  ;;  %v7136_v3 = vsel %vm11486_vm12, %v12206_v6, 0.0  ;;  %v7137_v61 = vsel %vm11490_vm11, %v12207_v15, 0.0  ;;  %v7006_v42 = vadd.f32 %v7002_v18, %v6871_v52  ;;  %v7477_v38 = vpop.f32.mrf.mxu0 }
 0x35a   : > { %v7007_v55 = vadd.f32 %v7003_v40, %v6872_v62  ;;  %v7409_v33 = vsel %vm11503_vm8, %v12208_v54, 0.0  ;;  %vm12210_vm7 = vnez %v12173_v12  ;;  %v7271_v36 = vsel %vm11521_vm10, %v12211_v27, 0.0  ;;  %v7647_v5 = vpop.f32.mrf.mxu1 }
 0x35b   : > { %v7410_v34 = vsel %vm12210_vm7, %v12209_v48, 0.0  ;;  %v7277_v41 = vadd.f32 %v7273_v2, %v7142_v10  ;;  %v7272_v9 = vsel %vm11525_vm5, %v12212_v32, 0.0  ;;  %v7278_v21 = vadd.f32 %v7274_v17, %v7143_v29  ;;  %v7606_v45 = vpop.f32.mrf.mxu0 }
 0x35c   : > { %v7140_v31 = vadd.f32 %v7136_v3, %v7006_v42  ;;  %v7141_v35 = vadd.f32 %v7137_v61, %v7007_v55  ;;  %v7543_v1 = vsel %vm11540_vm9, %v7513_v14, 0.0  ;;  %vm12213_vm14 = vnez %v12181_v59  ;;  %v7649_v8 = vpop.f32.mrf.mxu1  ;;  %v7832_v3 = vld [vmem:[#allocation2 + $0x8] sm:$0xff] }
 0x35d   : > { %v7544_v12 = vsel %vm12213_vm14, %v7515_v56, 0.0  ;;  %v7413_v22 = vadd.f32 %v7409_v33, %v7277_v41  ;;  %v7414_v53 = vadd.f32 %v7410_v34, %v7278_v21  ;;  %v7407_v25 = vsel %vm11555_vm1, %v12214_v28, 0.0  ;;  %v7686_v56 = vld [vmem:[#allocation2 + $0x10] sm:$0xff]  ;;  %v7608_v52 = vpop.f32.mrf.mxu0  ;;  %v7980_v41 = vld [vmem:[#allocation2 + $0x38] sm:$0xff] }
 0x35e   : > { %vm12216_vm11 = vnez %v12185_v46  ;;  %v7275_v20 = vadd.f32 %v7271_v36, %v7140_v31  ;;  %v7276_v51 = vadd.f32 %v7272_v9, %v7141_v35  ;;  %vm12217_vm15 = vnez %v12189_v30  ;;  %v7651_v39 = vpop.f32.mrf.mxu1  ;;  %v7979_v35 = vld [vmem:[#allocation2 + $0x28] sm:$0xff] }
 0x35f   : > { %v7408_v19 = vsel %vm12216_vm11, %v12215_v47, 0.0  ;;  %v7678_v26 = vsel %vm12217_vm15, %v7647_v5, 0.0  ;;  %vm11653_vm12 = vcmp.eq.s32.totalorder %v7659_v57, 1  ;;  %v7541_v43 = vsel %vm11584_vm6, %v11582_v23, 0.0  ;;  %v7610_v58 = vpop.f32.mrf.mxu0 }
 0x360   : > { %v7547_v14 = vadd.f32 %v7543_v1, %v7413_v22  ;;  %v7542_v46 = vsel %vm11588_vm3, %v7474_v37, 0.0  ;;  %v7548_v16 = vadd.f32 %v7544_v12, %v7414_v53  ;;  %v7411_v18 = vadd.f32 %v7407_v25, %v7275_v20  ;;  %v7652_v2 = vpop.f32.mrf.mxu1 }
 0x361   : > { %v7412_v30 = vadd.f32 %v7408_v19, %v7276_v51  ;;  %v7679_v4 = vsel %vm11598_vm4, %v7649_v8, 0.0  ;;  %vm7673_vm8 = vcmp.eq.s32.totalorder %v7663_v63, 1  ;;  %v7676_v23 = vsel %vm11653_vm12, %v7606_v45, 0.0  ;;  %v7611_v60 = vpop.f32.mrf.mxu0 }
 0x362   : > { %v7682_v57 = vadd.f32 %v7678_v26, %v7547_v14  ;;  %v7683_v40 = vadd.f32 %v7679_v4, %v7548_v16  ;;  %v7545_v13 = vadd.f32 %v7541_v43, %v7411_v18  ;;  %v7677_v50 = vsel %vm7673_vm8, %v7608_v52, 0.0  ;;  %v7824_v29 = vpop.f32.mrf.mxu1 }
 0x363   : > { %v7546_v37 = vadd.f32 %v7542_v46, %v7412_v30  ;;  %v7783_v10 = vpop.f32.mrf.mxu0 }
 0x364   : > { %v7692_v62 = vcombine.low %v7682_v57, %v7683_v40  ;;  %v7680_v0 = vadd.f32 %v7676_v23, %v7545_v13  ;;  %v7826_v61 = vpop.f32.mrf.mxu1 }
 0x365   : > { %v7681_v7 = vadd.f32 %v7677_v50, %v7546_v37  ;;  %v7785_v6 = vpop.f32.mrf.mxu0  ;;  %v7839_v42 = vcombine.low %v7824_v29, %v7826_v61 }
 0x366   : > { %v7696_v17 = vadd.f32 %v7692_v62, %v7686_v56  ;;  %v7838_v15 = vcombine.low %v7783_v10, %v7785_v6  ;;  %v7828_v33 = vpop.f32.mrf.mxu1 }
 0x367   : > { %v7691_v49 = vcombine.low %v7680_v0, %v7681_v7  ;;  %v7787_v55 = vpop.f32.mrf.mxu0  ;;  %v7843_v48 = vadd.f32 %v7839_v42, %v7833_v44 }
 0x368   : > { %7698 = vst [vmem:[#allocation2 + $0x10] sm:$0xff] %v7696_v17  ;;  %v7842_v54 = vadd.f32 %v7838_v15, %v7832_v3  ;;  %v7829_v38 = vpop.f32.mrf.mxu1 }
 0x369   : > { %v7695_v63 = vadd.f32 %v7691_v49, %v7685_v11  ;;  %v7788_v34 = vpop.f32.mrf.mxu0  ;;  %7845 = vst [vmem:[#allocation2 + $0x20] sm:$0xff] %v7843_v48 }
 0x36a   : > { %7844 = vst [vmem:[#allocation2 + $0x8] sm:$0xff] %v7842_v54  ;;  %v7971_v27 = vpop.f32.mrf.mxu1 }
 0x36b   : > { %7697 = vst [vmem:[#allocation2 + $0x18] sm:$0xff] %v7695_v63 }
 0x36c   : > { %v7973_v36 = vpop.f32.mrf.mxu1 }
 0x36d   : > { %v7930_v32 = vpop.f32.mrf.mxu0  ;;  %v7986_v9 = vcombine.low %v7971_v27, %v7973_v36 }
 0x36e   : > { %v7975_v21 = vpop.f32.mrf.mxu1 }
 0x36f   : > { %v7990_v24 = vadd.f32 %v7986_v9, %v7980_v41  ;;  %v7932_v31 = vpop.f32.mrf.mxu0 }
 0x370   : > { %v7985_v1 = vcombine.low %v7930_v32, %v7932_v31  ;;  %v7976_v12 = vpop.f32.mrf.mxu1  ;;  %7996 = sbr.rel (%p8518_p8) target bundleno = 1031 (0x407), region = 44 }
 0x371   : > { %7992 = vst [vmem:[#allocation2 + $0x38] sm:$0xff] %v7990_v24  ;;  %v7934_v22 = vpop.f32.mrf.mxu0 }
 0x372   : > { %v7989_v53 = vadd.f32 %v7985_v1, %v7979_v35 }
 0x373   : > { %v7935_v28 = vpop.f32.mrf.mxu0 }
 0x374   : > { %7991 = vst [vmem:[#allocation2 + $0x28] sm:$0xff] %v7989_v53 }
 0x375   : > { %v8007_v25 = vld [vmem:[%s11706_s3 + $0x8] sm:$0xf]  ;;  %v8005_v47 = vld [vmem:[%s11706_s3] sm:$0xf]  ;;  %v8720_v19 = vmov 0   ;;  %v7997_v45 = vld [vmem:[#allocation2 + $0x30] sm:$0xff] }
 0x376   : > { %8652 = vset.pattern.permute.xlu1 %v8720_v19  ;;  %8651 = vset.pattern.permute.xlu0 %v8720_v19  ;;  %v8008_v5 = vld [vmem:[%s11706_s3 + $0xc] sm:$0xf]  ;;  %v8006_v20 = vld [vmem:[%s11706_s3 + $0x4] sm:$0xf]  ;;  %v8721_v51 = vmov 839922192  }
 0x377   : > { %8019 = vperm.xlu1 %8652, %v8007_v25   ;;  %8011 = vperm.xlu0 %8651, %v8005_v47   ;;  %v8026_v26 = vunpack.c.l.s4 %v8721_v51  ;;  %v12220_v43 = vld [vmem:[#allocation3_spill] sm:$0xff]  ;;  %v8722_v46 = vmov 1983009808   ;;  %v8001_v8 = vld [vmem:[#allocation2 + $0x8] sm:$0xff]  ;;  %v7999_v49 = vld [vmem:[#allocation2 + $0x18] sm:$0xff] }
 0x378   : > { %v8132_v16 = vunpack.c.l.s4 %v8722_v46  ;;  %v8002_v30 = vld [vmem:[#allocation2 + $0x20] sm:$0xff]  ;;  %v8004_v2 = vld [vmem:[#allocation2 + $0x38] sm:$0xff]  ;;  %v8000_v60 = vld [vmem:[#allocation2 + $0x10] sm:$0xff] }
 0x379   : > { %v8027_v59 = vunpack.c.0.s8 %v8026_v26  ;;  %v7998_v57 = vld [vmem:[#allocation2] sm:$0xff] }
 0x37a   : > { %v8133_v39 = vunpack.c.0.s8 %v8132_v16 }
 0x37b   : > { %8023 = vperm.xlu1 %8652, %v8008_v5   ;;  %8015 = vperm.xlu0 %8651, %v8006_v20   ;;  %v8030_v14 = vsub.s32 %v8027_v59, %v12220_v43  ;;  %v8003_v50 = vld [vmem:[#allocation2 + $0x28] sm:$0xff] }
 0x37c   : > { %v8136_v63 = vsub.s32 %v8133_v39, %v12220_v43 }
 0x3f2   : > { %v8020_v18 = vpop.permute.xlu1 %8019  ;;  %v8012_v4 = vpop.permute.xlu0 %8011 }
 0x3f3   : > { %v8045_v40 = vrot.slane %v8020_v18, %v8030_v14  ;;  %v8031_v23 = vrot.slane %v8012_v4, %v8030_v14 }
 0x3f5   : > { %v8061_v13 = vadd.f32 %v8045_v40, %v8001_v8  ;;  %v8062_v37 = vadd.f32 %v8045_v40, %v8002_v30  ;;  %v8057_v56 = vadd.f32 %v8031_v23, %v7997_v45  ;;  %v8058_v52 = vadd.f32 %v8031_v23, %v7998_v57 }
 0x3f6   : > { %v8024_v62 = vpop.permute.xlu1 %8023  ;;  %v8016_v0 = vpop.permute.xlu0 %8015 }
 0x3f7   : > { %v8069_v7 = vmax.f32 %v8061_v13, 0.0  ;;  %v8070_v58 = vmax.f32 %v8062_v37, 0.0  ;;  %v8065_v17 = vmax.f32 %v8057_v56, 0.0  ;;  %v8066_v11 = vmax.f32 %v8058_v52, 0.0 }
 0x3f8   : > { %v8052_v10 = vrot.slane %v8024_v62, %v8030_v14  ;;  %v8038_v29 = vrot.slane %v8016_v0, %v8030_v14 }
 0x3f9   : > { %v8085_v6 = vcombine.high %v8069_v7, %v8069_v7  ;;  %v8086_v3 = vcombine.high %v8070_v58, %v8070_v58  ;;  %v8081_v15 = vcombine.high %v8065_v17, %v8065_v17  ;;  %v8082_v61 = vcombine.high %v8066_v11, %v8066_v11 }
 0x3fa   : > { %v8063_v44 = vadd.f32 %v8052_v10, %v8003_v50  ;;  %v8064_v42 = vadd.f32 %v8052_v10, %v8004_v2  ;;  %v8059_v55 = vadd.f32 %v8038_v29, %v7999_v49  ;;  %v8060_v54 = vadd.f32 %v8038_v29, %v8000_v60 }
 0x3fb   : > { %v8523_v33 = vpack.c.bf16 %v8085_v6, %v8069_v7  ;;  %v8524_v48 = vpack.c.bf16 %v8086_v3, %v8070_v58  ;;  %v8519_v34 = vpack.c.bf16 %v8081_v15, %v8065_v17  ;;  %v8520_v38 = vpack.c.bf16 %v8082_v61, %v8066_v11 }
 0x3fc   : > { %v8071_v27 = vmax.f32 %v8063_v44, 0.0  ;;  %v8072_v36 = vmax.f32 %v8064_v42, 0.0  ;;  %v8067_v41 = vmax.f32 %v8059_v55, 0.0  ;;  %v8068_v32 = vmax.f32 %v8060_v54, 0.0 }
 0x3fd   : > { %v8171_v9 = vrot.slane %v8523_v33, %v8136_v63  ;;  %v8178_v21 = vrot.slane %v8524_v48, %v8136_v63  ;;  %v8137_v24 = vrot.slane %v8519_v34, %v8136_v63  ;;  %v8144_v31 = vrot.slane %v8520_v38, %v8136_v63 }
 0x3fe   : > { %v8087_v35 = vcombine.high %v8071_v27, %v8071_v27  ;;  %v8088_v1 = vcombine.high %v8072_v36, %v8072_v36  ;;  %v8083_v12 = vcombine.high %v8067_v41, %v8067_v41  ;;  %v8084_v22 = vcombine.high %v8068_v32, %v8068_v32 }
 0x3ff   : > { %v8179_v53 = vcombine.low %v8171_v9, %v8178_v21  ;;  %v8145_v28 = vcombine.low %v8137_v24, %v8144_v31 }
 0x400   : > { %v8525_v25 = vpack.c.bf16 %v8087_v35, %v8071_v27  ;;  %v8526_v47 = vpack.c.bf16 %v8088_v1, %v8072_v36  ;;  %v8521_v19 = vpack.c.bf16 %v8083_v12, %v8067_v41  ;;  %v8522_v5 = vpack.c.bf16 %v8084_v22, %v8068_v32 }
 0x401   : > { %8203 = vst [vmem:[%s8785_s28 + $0x10] sm:$0xff] %v8179_v53  ;;  %8201 = vst [vmem:[%s8785_s28] sm:$0xff] %v8145_v28 }
 0x402   : > { %v8188_v20 = vrot.slane %v8525_v25, %v8136_v63  ;;  %v8195_v51 = vrot.slane %v8526_v47, %v8136_v63  ;;  %v8154_v26 = vrot.slane %v8521_v19, %v8136_v63  ;;  %v8161_v59 = vrot.slane %v8522_v5, %v8136_v63 }
 0x404   : > { %v8196_v43 = vcombine.low %v8188_v20, %v8195_v51  ;;  %v8162_v14 = vcombine.low %v8154_v26, %v8161_v59 }
 0x406   : > { %8204 = vst [vmem:[%s8785_s28 + $0x18] sm:$0xff] %v8196_v43  ;;  %8202 = vst [vmem:[%s8785_s28 + $0x8] sm:$0xff] %v8162_v14 }
 0x407 PF: > { %s14_s19 = sadd.s32 1, %s8691_s19   ;;  %s12221_s15 = smov %s8683_s17 }
 0x408   : > { %p11_p9 = scmp.ge.s32.totalorder %s14_s19, 6   ;;  %s12222_s16 = smov %s8687_s18 }
 0x409   : > { %s12223_s17 = smov %s12226_s20  ;;  %s12224_s18 = smov %s12230_s21 }
 0x40a   :  { %13 = sbr.rel (!%p11_p9) target bundleno = 3 (0x3), region = 137 }

</bundles_post_ra>
